<compile_context>
chip_gen: v7x
topology: tpu7x:2x2x1
jax: 0.10.0
libtpu: 0.0.40
codegen_flags: <defaults>
</compile_context>

<pallas_src>
import math

import jax
import jax.numpy as jnp
from jax.experimental import pallas as pl
from jax.experimental.pallas import tpu as pltpu


# ----------------------------------------------------------------------------
# Shared element-wise helpers (pure jnp -> usable inside kernels and reference)
# ----------------------------------------------------------------------------
def _elu(v):
    # ELU(alpha=1): x if x > 0 else exp(x) - 1  (clamp exp arg for safety)
    return jnp.where(v > 0.0, v, jnp.exp(jnp.minimum(v, 0.0)) - 1.0)


# ----------------------------------------------------------------------------
# Kernel A: fused conv1..conv4 encoder (stride-2, 3x3, pad 1)
#
# Activation layout everywhere: (H*W, 2*batch*channels)  -- lane-dense.
#   conv1: one matmul on a precomputed patch matrix with a block-diagonal
#          (over images) weight.
#   conv2..4: y = sum_{t=0..8} (G_t @ x) @ Wbd_t + b  with precomputed 0/1
#          gather matrices G_t (they encode the stride-2 tap pattern and the
#          zero padding), so no strided/gather memory ops are needed in-kernel.
# ----------------------------------------------------------------------------
def _encoder_kernel(p1_ref, wc1_ref, bc1_ref,
                    g2_ref, wc2_ref, bc2_ref,
                    g3_ref, wc3_ref, bc3_ref,
                    g4_ref, wc4_ref, bc4_ref,
                    out_ref):
    def conv_taps(x_f32, g_ref, w_ref, b_ref, apply_elu):
        xb = x_f32.astype(jnp.bfloat16)          # bf16 MXU operands, f32 accum
        acc = None
        for t in range(9):                       # static unroll over 3x3 taps
            gx = jnp.dot(g_ref[t], xb, preferred_element_type=jnp.float32)
            y = jnp.dot(gx.astype(jnp.bfloat16), w_ref[t],
                        preferred_element_type=jnp.float32)
            acc = y if acc is None else acc + y
        acc = acc + b_ref[...]
        return _elu(acc) if apply_elu else acc

    # conv1 + ELU : (Ho1*Wo1, 2B*C*9) @ (2B*C*9, 2B*32)
    x = jnp.dot(p1_ref[...], wc1_ref[...], preferred_element_type=jnp.float32)
    x = _elu(x + bc1_ref[...])
    x = conv_taps(x, g2_ref, wc2_ref, bc2_ref, True)    # conv2 + ELU
    x = conv_taps(x, g3_ref, wc3_ref, bc3_ref, True)    # conv3 + ELU
    x = conv_taps(x, g4_ref, wc4_ref, bc4_ref, False)   # conv4 (no ELU)
    out_ref[...] = x                                    # (h4*w4, 2B*32) f32


# ----------------------------------------------------------------------------
# Kernel B: fused encoder FCs + inverse head (softmax) + forward head
# ----------------------------------------------------------------------------
def _make_head_kernel(batch):
    def head_kernel(xf_ref, onehot_ref,
                    ew1_ref, eb1_ref, ew2_ref, eb2_ref,
                    iw1a_ref, iw1b_ref, ib1_ref, iw2_ref, ib2_ref,
                    fw1a_ref, fw1b_ref, fb1_ref, fw2_ref, fb2_ref,
                    ap_ref, s2_ref, sp_ref):
        def bdot(a, w_ref):
            return jnp.dot(a.astype(jnp.bfloat16), w_ref[...],
                           preferred_element_type=jnp.float32)

        # shared encoder FCs on the stacked (2*batch, 288) features
        h = _elu(bdot(xf_ref[...], ew1_ref) + eb1_ref[...])     # (2B, 512)
        s = bdot(h, ew2_ref) + eb2_ref[...]                     # (2B, 288)
        s1 = s[:batch]
        s2 = s[batch:]
        s2_ref[...] = s2

        # inverse model: Linear(576,100) + ReLU + Linear(100,12) + Softmax
        # (fc1 weight pre-split so no concat is needed in-kernel)
        hi = bdot(s1, iw1a_ref) + bdot(s2, iw1b_ref) + ib1_ref[...]
        hi = jnp.maximum(hi, 0.0)
        logits = bdot(hi, iw2_ref) + ib2_ref[...]               # (B, 12)
        logits = logits - jnp.max(logits, axis=1, keepdims=True)
        e = jnp.exp(logits)
        ap_ref[...] = e / jnp.sum(e, axis=1, keepdims=True)

        # forward model: Linear(300,1000) + ReLU + Linear(1000,288)
        hf = bdot(s1, fw1a_ref) + bdot(onehot_ref[...], fw1b_ref) + fb1_ref[...]
        hf = jnp.maximum(hf, 0.0)
        sp_ref[...] = bdot(hf, fw2_ref) + fb2_ref[...]
    return head_kernel


# ----------------------------------------------------------------------------
# JAX-level glue (runs once per forward, all tiny)
# ----------------------------------------------------------------------------
def _conv1_patches(x):
    """(N, C, H, W) NCHW -> (Ho*Wo, N*C*9) bf16 patch matrix for a k3 s2 p1 conv.

    Lane order: image-major, then (c, kh, kw) -- matching the block-diagonal
    conv1 weight built in prepare_params.  Only the raw 4-channel input is
    im2col'd at the XLA level; later convs gather in-kernel."""
    n, c, h, w = x.shape
    ho, wo = (h + 1) // 2, (w + 1) // 2
    xp = jnp.pad(x, ((0, 0), (0, 0), (1, 1), (1, 1)))
    taps = []
    for kh in range(3):
        for kw in range(3):
            taps.append(xp[:, :, kh:kh + 2 * ho - 1:2, kw:kw + 2 * wo - 1:2])
    p = jnp.stack(taps, axis=0).reshape(3, 3, n, c, ho, wo)
    p = p.transpose(4, 5, 2, 3, 0, 1)            # (ho, wo, n, c, kh, kw)
    return p.reshape(ho * wo, n * c * 9).astype(jnp.bfloat16)


def _gather_mats(hi, wi):
    """0/1 gather matrices (9, Ho*Wo, Hi*Wi) for a k3 s2 p1 conv (tap = kh*3+kw).

    Row p = ho*Wo+wo of tap (kh, kw) selects flattened input (2ho+kh-1, 2wo+kw-1),
    or is all-zero when that position falls into the zero padding."""
    ho, wo = (hi + 1) // 2, (wi + 1) // 2
    oh = jnp.arange(ho)
    ow = jnp.arange(wo)
    src_cols = jnp.arange(hi * wi)
    taps = []
    for kh in range(3):
        for kw in range(3):
            h_in = 2 * oh + kh - 1
            w_in = 2 * ow + kw - 1
            valid = (((h_in >= 0) & (h_in < hi))[:, None]
                     & ((w_in >= 0) & (w_in < wi))[None, :])
            src = (jnp.clip(h_in, 0, hi - 1)[:, None] * wi
                   + jnp.clip(w_in, 0, wi - 1)[None, :])
            g = (src_cols[None, None, :] == src[:, :, None]) & valid[:, :, None]
            taps.append(g.reshape(ho * wo, hi * wi))
    return jnp.stack(taps, axis=0).astype(jnp.bfloat16)


# ----------------------------------------------------------------------------
# Parameters (deterministic init mimicking PyTorch default uniform(+-1/sqrt(fan_in)))
# ----------------------------------------------------------------------------
def _uniform(key, shape, bound):
    return jax.random.uniform(key, shape, jnp.float32, -bound, bound)


def init_params(key, frames_per_state):
    def lin(k, fan_in, fan_out):
        k1, k2 = jax.random.split(k)
        bound = 1.0 / math.sqrt(fan_in)
        return _uniform(k1, (fan_in, fan_out), bound), _uniform(k2, (fan_out,), bound)

    def conv(k, cin, cout):
        k1, k2 = jax.random.split(k)
        bound = 1.0 / math.sqrt(cin * 9)
        return _uniform(k1, (cout, cin, 3, 3), bound), _uniform(k2, (cout,), bound)

    keys = jax.random.split(key, 10)
    return {
        "conv1": conv(keys[0], frames_per_state, 32),
        "conv2": conv(keys[1], 32, 32),
        "conv3": conv(keys[2], 32, 32),
        "conv4": conv(keys[3], 32, 32),
        "enc_fc1": lin(keys[4], 288, 512),
        "enc_fc2": lin(keys[5], 512, 288),
        "inv_fc1": lin(keys[6], 288 * 2, 100),
        "inv_fc2": lin(keys[7], 100, 12),
        "fwd_fc1": lin(keys[8], 288 + 12, 1000),
        "fwd_fc2": lin(keys[9], 1000, 288),
    }


def prepare_params(params, batch, input_hw):
    """One-time packing of weights for the fused kernels (reshapes, block-diagonal
    conv weights, gather matrices, enc_fc1 row permutation, bf16 casts)."""
    b2 = 2 * batch                      # both states encoded in one pass
    h, w = input_hw
    eye = jnp.eye(b2, dtype=jnp.float32)
    prep = {}

    # conv1: patch-matmul weight, block-diagonal over the 2*batch images
    w1, bias1 = params["conv1"]                          # (32, C, 3, 3), (32,)
    c_in = w1.shape[1]
    w1_mat = w1.reshape(32, c_in * 9).T                  # rows ordered (c, kh, kw)
    prep["wc1"] = jnp.kron(eye, w1_mat).astype(jnp.bfloat16)   # (2B*C*9, 2B*32)
    prep["bc1"] = jnp.tile(bias1, b2).reshape(1, -1).astype(jnp.float32)

    # conv2..4: per-tap block-diagonal weights + gather matrices
    hh, ww = h, w
    for i, name in ((2, "conv2"), (3, "conv3"), (4, "conv4")):
        hh, ww = (hh + 1) // 2, (ww + 1) // 2            # input spatial of this conv
        wi, bi = params[name]                            # (32, 32, 3, 3), (32,)
        taps = [jnp.kron(eye, wi[:, :, kh, kw].T)
                for kh in range(3) for kw in range(3)]
        prep[f"wc{i}"] = jnp.stack(taps, axis=0).astype(jnp.bfloat16)  # (9, 2B*32, 2B*32)
        prep[f"bc{i}"] = jnp.tile(bi, b2).reshape(1, -1).astype(jnp.float32)
        prep[f"g{i}"] = _gather_mats(hh, ww)
    hh, ww = (hh + 1) // 2, (ww + 1) // 2                # conv4 output spatial
    assert hh * ww * 32 == 288, "encoder flatten size must be 288"

    # encoder FCs -- permute enc_fc1 rows once so the kernel-side flatten order
    # (h, w, c) matches PyTorch's NCHW (c, h, w) flatten.
    we1, be1 = params["enc_fc1"]                         # (288, 512)
    hw = hh * ww
    perm = (jnp.arange(32)[None, :] * hw + jnp.arange(hw)[:, None]).reshape(-1)
    prep["enc_w1"] = we1[perm, :].astype(jnp.bfloat16)
    prep["enc_b1"] = be1.reshape(1, -1).astype(jnp.float32)
    we2, be2 = params["enc_fc2"]
    prep["enc_w2"] = we2.astype(jnp.bfloat16)
    prep["enc_b2"] = be2.reshape(1, -1).astype(jnp.float32)

    # inverse head (fc1 weight split so the kernel never concatenates)
    wi1, bi1 = params["inv_fc1"]                         # (576, 100)
    prep["inv_w1a"] = wi1[:288].astype(jnp.bfloat16)
    prep["inv_w1b"] = wi1[288:].astype(jnp.bfloat16)
    prep["inv_b1"] = bi1.reshape(1, -1).astype(jnp.float32)
    wi2, bi2 = params["inv_fc2"]
    prep["inv_w2"] = wi2.astype(jnp.bfloat16)
    prep["inv_b2"] = bi2.reshape(1, -1).astype(jnp.float32)

    # forward head
    wf1, bf1 = params["fwd_fc1"]                         # (300, 1000)
    prep["fwd_w1a"] = wf1[:288].astype(jnp.bfloat16)
    prep["fwd_w1b"] = wf1[288:].astype(jnp.bfloat16)
    prep["fwd_b1"] = bf1.reshape(1, -1).astype(jnp.float32)
    wf2, bf2 = params["fwd_fc2"]
    prep["fwd_w2"] = wf2.astype(jnp.bfloat16)
    prep["fwd_b2"] = bf2.reshape(1, -1).astype(jnp.float32)
    return prep


# ----------------------------------------------------------------------------
# MarioICM forward: exactly two pallas_call's
# ----------------------------------------------------------------------------
def mario_icm_forward(prep, state1, action, state2):
    batch = state1.shape[0]
    b2 = 2 * batch
    n_act = 12
    hw4 = prep["enc_w1"].shape[0] // 32                  # final spatial (=9)
    vmem = pl.BlockSpec(memory_space=pltpu.MemorySpace.VMEM)

    # encode both states in one pass
    x = jnp.concatenate([state1, state2], axis=0)        # (2B, C, H, W)
    p1 = _conv1_patches(x)                               # (Ho*Wo, 2B*C*9) bf16

    a4 = pl.pallas_call(
        _encoder_kernel,
        out_shape=jax.ShapeDtypeStruct((hw4, b2 * 32), jnp.float32),
        in_specs=[vmem] * 12,
        out_specs=vmem,
    )(p1, prep["wc1"], prep["bc1"],
      prep["g2"], prep["wc2"], prep["bc2"],
      prep["g3"], prep["wc3"], prep["bc3"],
      prep["g4"], prep["wc4"], prep["bc4"])

    # tiny layout fix between the two kernels: (hw, 2B*32) -> (2B, hw*32)
    xf = a4.reshape(hw4, b2, 32).transpose(1, 0, 2).reshape(b2, hw4 * 32)
    onehot = jax.nn.one_hot(action, n_act, dtype=jnp.float32)

    action_pred, s2, s2_pred = pl.pallas_call(
        _make_head_kernel(batch),
        out_shape=(jax.ShapeDtypeStruct((batch, n_act), jnp.float32),
                   jax.ShapeDtypeStruct((batch, 288), jnp.float32),
                   jax.ShapeDtypeStruct((batch, 288), jnp.float32)),
        in_specs=[vmem] * 16,
        out_specs=(vmem, vmem, vmem),
    )(xf, onehot,
      prep["enc_w1"], prep["enc_b1"], prep["enc_w2"], prep["enc_b2"],
      prep["inv_w1a"], prep["inv_w1b"], prep["inv_b1"], prep["inv_w2"], prep["inv_b2"],
      prep["fwd_w1a"], prep["fwd_w1b"], prep["fwd_b1"], prep["fwd_w2"], prep["fwd_b2"])

    return action_pred, s2, s2_pred


# ----------------------------------------------------------------------------
# Pure-JAX (XLA) reference of the PyTorch module, for a numerical self-check
# ----------------------------------------------------------------------------
def _ref_forward(params, state1, action, state2):
    def conv(x, w, b):
        y = jax.lax.conv_general_dilated(
            x, w, window_strides=(2, 2), padding=((1, 1), (1, 1)),
            dimension_numbers=("NCHW", "OIHW", "NCHW"))
        return y + b[None, :, None, None]

    def encode(x):
        x = _elu(conv(x, *params["conv1"]))
        x = _elu(conv(x, *params["conv2"]))
        x = _elu(conv(x, *params["conv3"]))
        x = conv(x, *params["conv4"])
        x = x.reshape(x.shape[0], -1)
        x = _elu(x @ params["enc_fc1"][0] + params["enc_fc1"][1])
        return x @ params["enc_fc2"][0] + params["enc_fc2"][1]

    s1 = encode(state1)
    s2 = encode(state2)
    states = jnp.concatenate([s1, s2], axis=1)
    h = jnp.maximum(states @ params["inv_fc1"][0] + params["inv_fc1"][1], 0.0)
    ap = jax.nn.softmax(h @ params["inv_fc2"][0] + params["inv_fc2"][1], axis=1)
    oh = jax.nn.one_hot(action, 12, dtype=jnp.float32)
    sa = jnp.concatenate([s1, oh], axis=1)
    hf = jnp.maximum(sa @ params["fwd_fc1"][0] + params["fwd_fc1"][1], 0.0)
    sp = hf @ params["fwd_fc2"][0] + params["fwd_fc2"][1]
    return ap, s2, sp


if __name__ == "__main__":
    key = jax.random.PRNGKey(0)
    kp, k1, k2, ka = jax.random.split(key, 4)

    frames_per_state = 4
    batch = 2
    H = W = 42   # 42 -> 21 -> 11 -> 6 -> 3 spatial, so flatten = 32*3*3 = 288

    params = init_params(kp, frames_per_state)
    state1 = jax.random.normal(k1, (batch, frames_per_state, H, W), jnp.float32)
    state2 = jax.random.normal(k2, (batch, frames_per_state, H, W), jnp.float32)
    action = jax.random.randint(ka, (batch,), 0, 12)

    prep = prepare_params(params, batch, (H, W))         # one-time weight packing

    fwd = jax.jit(mario_icm_forward)
    out = jax.block_until_ready(fwd(prep, state1, action, state2))
    action_pred, s2, s2_pred = out

    # structural checks
    assert action_pred.shape == (batch, 12)
    assert s2.shape == (batch, 288)
    assert s2_pred.shape == (batch, 288)
    assert bool(jnp.allclose(jnp.sum(action_pred, axis=1), 1.0, atol=1e-5))

    # numerical check against an XLA f32 reference (bf16 MXU operands -> loose tol)
    ref_ap, ref_s2, ref_sp = jax.block_until_ready(
        jax.jit(_ref_forward)(params, state1, action, state2))

    def _relerr(a, b):
        return float(jnp.linalg.norm(a - b) / (jnp.linalg.norm(b) + 1e-6))

    assert _relerr(action_pred, ref_ap) < 0.1
    assert _relerr(s2, ref_s2) < 0.1
    assert _relerr(s2_pred, ref_sp) < 0.1

    print("KERNEL_OK")
</pallas_src>

<mosaic_0001>
module attributes {stable_mosaic.version = 11 : i64} {
  func.func @_encoder_kernel(%arg0: memref<441x144xbf16, #tpu.memory_space<vmem>>, %arg1: memref<144x128xbf16, #tpu.memory_space<vmem>>, %arg2: memref<1x128xf32, #tpu.memory_space<vmem>>, %arg3: memref<9x121x441xbf16, #tpu.memory_space<vmem>>, %arg4: memref<9x128x128xbf16, #tpu.memory_space<vmem>>, %arg5: memref<1x128xf32, #tpu.memory_space<vmem>>, %arg6: memref<9x36x121xbf16, #tpu.memory_space<vmem>>, %arg7: memref<9x128x128xbf16, #tpu.memory_space<vmem>>, %arg8: memref<1x128xf32, #tpu.memory_space<vmem>>, %arg9: memref<9x9x36xbf16, #tpu.memory_space<vmem>>, %arg10: memref<9x128x128xbf16, #tpu.memory_space<vmem>>, %arg11: memref<1x128xf32, #tpu.memory_space<vmem>>, %arg12: memref<9x128xf32, #tpu.memory_space<vmem>>) attributes {dimension_semantics = [], scalar_prefetch = 0 : i64, scratch_operands = 0 : i64, tpu.core_type = #tpu.core_type<tc>} {
    %c0 = arith.constant 0 : index
    %c0_0 = arith.constant 0 : index
    %0 = vector.load %arg0[%c0, %c0_0] : memref<441x144xbf16, #tpu.memory_space<vmem>>, vector<441x144xbf16>
    %c0_1 = arith.constant 0 : index
    %c0_2 = arith.constant 0 : index
    %1 = vector.load %arg1[%c0_1, %c0_2] : memref<144x128xbf16, #tpu.memory_space<vmem>>, vector<144x128xbf16>
    %cst = arith.constant dense<0.000000e+00> : vector<441x128xf32>
    %2 = tpu.matmul %0, %1, %cst {dimension_numbers = #tpu.dot_dimension_numbers<[1], [0], [0], [1], [0, 0, 1, 1], [], []>} : vector<441x144xbf16>, vector<144x128xbf16>, vector<441x128xf32> -> vector<441x128xf32>
    %c0_3 = arith.constant 0 : index
    %c0_4 = arith.constant 0 : index
    %3 = vector.load %arg2[%c0_3, %c0_4] : memref<1x128xf32, #tpu.memory_space<vmem>>, vector<1x128xf32>
    %4 = vector.broadcast %3 : vector<1x128xf32> to vector<441x128xf32>
    %5 = arith.addf %2, %4 : vector<441x128xf32>
    %cst_5 = arith.constant 0.000000e+00 : f32
    %6 = vector.broadcast %cst_5 : f32 to vector<441x128xf32>
    %7 = arith.cmpf ogt, %5, %6 : vector<441x128xf32>
    %cst_6 = arith.constant 0.000000e+00 : f32
    %8 = vector.broadcast %cst_6 : f32 to vector<441x128xf32>
    %9 = arith.minimumf %5, %8 : vector<441x128xf32>
    %10 = math.exp %9 : vector<441x128xf32>
    %cst_7 = arith.constant 1.000000e+00 : f32
    %11 = vector.broadcast %cst_7 : f32 to vector<441x128xf32>
    %12 = arith.subf %10, %11 : vector<441x128xf32>
    %13 = arith.select %7, %5, %12 : vector<441x128xi1>, vector<441x128xf32>
    %14 = arith.truncf %13 : vector<441x128xf32> to vector<441x128xbf16>
    %c0_8 = arith.constant 0 : index
    %c0_9 = arith.constant 0 : index
    %c0_10 = arith.constant 0 : index
    %15 = vector.load %arg3[%c0_8, %c0_9, %c0_10] : memref<9x121x441xbf16, #tpu.memory_space<vmem>>, vector<1x121x441xbf16>
    %16 = vector.shape_cast %15 : vector<1x121x441xbf16> to vector<121x441xbf16>
    %cst_11 = arith.constant dense<0.000000e+00> : vector<121x128xf32>
    %17 = tpu.matmul %16, %14, %cst_11 {dimension_numbers = #tpu.dot_dimension_numbers<[1], [0], [0], [1], [0, 0, 1, 1], [], []>} : vector<121x441xbf16>, vector<441x128xbf16>, vector<121x128xf32> -> vector<121x128xf32>
    %18 = arith.truncf %17 : vector<121x128xf32> to vector<121x128xbf16>
    %c0_12 = arith.constant 0 : index
    %c0_13 = arith.constant 0 : index
    %c0_14 = arith.constant 0 : index
    %19 = vector.load %arg4[%c0_12, %c0_13, %c0_14] : memref<9x128x128xbf16, #tpu.memory_space<vmem>>, vector<1x128x128xbf16>
    %20 = vector.shape_cast %19 : vector<1x128x128xbf16> to vector<128x128xbf16>
    %cst_15 = arith.constant dense<0.000000e+00> : vector<121x128xf32>
    %21 = tpu.matmul %18, %20, %cst_15 {dimension_numbers = #tpu.dot_dimension_numbers<[1], [0], [0], [1], [0, 0, 1, 1], [], []>} : vector<121x128xbf16>, vector<128x128xbf16>, vector<121x128xf32> -> vector<121x128xf32>
    %c1 = arith.constant 1 : index
    %c0_16 = arith.constant 0 : index
    %c0_17 = arith.constant 0 : index
    %22 = vector.load %arg3[%c1, %c0_16, %c0_17] : memref<9x121x441xbf16, #tpu.memory_space<vmem>>, vector<1x121x441xbf16>
    %23 = vector.shape_cast %22 : vector<1x121x441xbf16> to vector<121x441xbf16>
    %cst_18 = arith.constant dense<0.000000e+00> : vector<121x128xf32>
    %24 = tpu.matmul %23, %14, %cst_18 {dimension_numbers = #tpu.dot_dimension_numbers<[1], [0], [0], [1], [0, 0, 1, 1], [], []>} : vector<121x441xbf16>, vector<441x128xbf16>, vector<121x128xf32> -> vector<121x128xf32>
    %25 = arith.truncf %24 : vector<121x128xf32> to vector<121x128xbf16>
    %c1_19 = arith.constant 1 : index
    %c0_20 = arith.constant 0 : index
    %c0_21 = arith.constant 0 : index
    %26 = vector.load %arg4[%c1_19, %c0_20, %c0_21] : memref<9x128x128xbf16, #tpu.memory_space<vmem>>, vector<1x128x128xbf16>
    %27 = vector.shape_cast %26 : vector<1x128x128xbf16> to vector<128x128xbf16>
    %cst_22 = arith.constant dense<0.000000e+00> : vector<121x128xf32>
    %28 = tpu.matmul %25, %27, %cst_22 {dimension_numbers = #tpu.dot_dimension_numbers<[1], [0], [0], [1], [0, 0, 1, 1], [], []>} : vector<121x128xbf16>, vector<128x128xbf16>, vector<121x128xf32> -> vector<121x128xf32>
    %29 = arith.addf %21, %28 : vector<121x128xf32>
    %c2 = arith.constant 2 : index
    %c0_23 = arith.constant 0 : index
    %c0_24 = arith.constant 0 : index
    %30 = vector.load %arg3[%c2, %c0_23, %c0_24] : memref<9x121x441xbf16, #tpu.memory_space<vmem>>, vector<1x121x441xbf16>
    %31 = vector.shape_cast %30 : vector<1x121x441xbf16> to vector<121x441xbf16>
    %cst_25 = arith.constant dense<0.000000e+00> : vector<121x128xf32>
    %32 = tpu.matmul %31, %14, %cst_25 {dimension_numbers = #tpu.dot_dimension_numbers<[1], [0], [0], [1], [0, 0, 1, 1], [], []>} : vector<121x441xbf16>, vector<441x128xbf16>, vector<121x128xf32> -> vector<121x128xf32>
    %33 = arith.truncf %32 : vector<121x128xf32> to vector<121x128xbf16>
    %c2_26 = arith.constant 2 : index
    %c0_27 = arith.constant 0 : index
    %c0_28 = arith.constant 0 : index
    %34 = vector.load %arg4[%c2_26, %c0_27, %c0_28] : memref<9x128x128xbf16, #tpu.memory_space<vmem>>, vector<1x128x128xbf16>
    %35 = vector.shape_cast %34 : vector<1x128x128xbf16> to vector<128x128xbf16>
    %cst_29 = arith.constant dense<0.000000e+00> : vector<121x128xf32>
    %36 = tpu.matmul %33, %35, %cst_29 {dimension_numbers = #tpu.dot_dimension_numbers<[1], [0], [0], [1], [0, 0, 1, 1], [], []>} : vector<121x128xbf16>, vector<128x128xbf16>, vector<121x128xf32> -> vector<121x128xf32>
    %37 = arith.addf %29, %36 : vector<121x128xf32>
    %c3 = arith.constant 3 : index
    %c0_30 = arith.constant 0 : index
    %c0_31 = arith.constant 0 : index
    %38 = vector.load %arg3[%c3, %c0_30, %c0_31] : memref<9x121x441xbf16, #tpu.memory_space<vmem>>, vector<1x121x441xbf16>
    %39 = vector.shape_cast %38 : vector<1x121x441xbf16> to vector<121x441xbf16>
    %cst_32 = arith.constant dense<0.000000e+00> : vector<121x128xf32>
    %40 = tpu.matmul %39, %14, %cst_32 {dimension_numbers = #tpu.dot_dimension_numbers<[1], [0], [0], [1], [0, 0, 1, 1], [], []>} : vector<121x441xbf16>, vector<441x128xbf16>, vector<121x128xf32> -> vector<121x128xf32>
    %41 = arith.truncf %40 : vector<121x128xf32> to vector<121x128xbf16>
    %c3_33 = arith.constant 3 : index
    %c0_34 = arith.constant 0 : index
    %c0_35 = arith.constant 0 : index
    %42 = vector.load %arg4[%c3_33, %c0_34, %c0_35] : memref<9x128x128xbf16, #tpu.memory_space<vmem>>, vector<1x128x128xbf16>
    %43 = vector.shape_cast %42 : vector<1x128x128xbf16> to vector<128x128xbf16>
    %cst_36 = arith.constant dense<0.000000e+00> : vector<121x128xf32>
    %44 = tpu.matmul %41, %43, %cst_36 {dimension_numbers = #tpu.dot_dimension_numbers<[1], [0], [0], [1], [0, 0, 1, 1], [], []>} : vector<121x128xbf16>, vector<128x128xbf16>, vector<121x128xf32> -> vector<121x128xf32>
    %45 = arith.addf %37, %44 : vector<121x128xf32>
    %c4 = arith.constant 4 : index
    %c0_37 = arith.constant 0 : index
    %c0_38 = arith.constant 0 : index
    %46 = vector.load %arg3[%c4, %c0_37, %c0_38] : memref<9x121x441xbf16, #tpu.memory_space<vmem>>, vector<1x121x441xbf16>
    %47 = vector.shape_cast %46 : vector<1x121x441xbf16> to vector<121x441xbf16>
    %cst_39 = arith.constant dense<0.000000e+00> : vector<121x128xf32>
    %48 = tpu.matmul %47, %14, %cst_39 {dimension_numbers = #tpu.dot_dimension_numbers<[1], [0], [0], [1], [0, 0, 1, 1], [], []>} : vector<121x441xbf16>, vector<441x128xbf16>, vector<121x128xf32> -> vector<121x128xf32>
    %49 = arith.truncf %48 : vector<121x128xf32> to vector<121x128xbf16>
    %c4_40 = arith.constant 4 : index
    %c0_41 = arith.constant 0 : index
    %c0_42 = arith.constant 0 : index
    %50 = vector.load %arg4[%c4_40, %c0_41, %c0_42] : memref<9x128x128xbf16, #tpu.memory_space<vmem>>, vector<1x128x128xbf16>
    %51 = vector.shape_cast %50 : vector<1x128x128xbf16> to vector<128x128xbf16>
    %cst_43 = arith.constant dense<0.000000e+00> : vector<121x128xf32>
    %52 = tpu.matmul %49, %51, %cst_43 {dimension_numbers = #tpu.dot_dimension_numbers<[1], [0], [0], [1], [0, 0, 1, 1], [], []>} : vector<121x128xbf16>, vector<128x128xbf16>, vector<121x128xf32> -> vector<121x128xf32>
    %53 = arith.addf %45, %52 : vector<121x128xf32>
    %c5 = arith.constant 5 : index
    %c0_44 = arith.constant 0 : index
    %c0_45 = arith.constant 0 : index
    %54 = vector.load %arg3[%c5, %c0_44, %c0_45] : memref<9x121x441xbf16, #tpu.memory_space<vmem>>, vector<1x121x441xbf16>
    %55 = vector.shape_cast %54 : vector<1x121x441xbf16> to vector<121x441xbf16>
    %cst_46 = arith.constant dense<0.000000e+00> : vector<121x128xf32>
    %56 = tpu.matmul %55, %14, %cst_46 {dimension_numbers = #tpu.dot_dimension_numbers<[1], [0], [0], [1], [0, 0, 1, 1], [], []>} : vector<121x441xbf16>, vector<441x128xbf16>, vector<121x128xf32> -> vector<121x128xf32>
    %57 = arith.truncf %56 : vector<121x128xf32> to vector<121x128xbf16>
    %c5_47 = arith.constant 5 : index
    %c0_48 = arith.constant 0 : index
    %c0_49 = arith.constant 0 : index
    %58 = vector.load %arg4[%c5_47, %c0_48, %c0_49] : memref<9x128x128xbf16, #tpu.memory_space<vmem>>, vector<1x128x128xbf16>
    %59 = vector.shape_cast %58 : vector<1x128x128xbf16> to vector<128x128xbf16>
    %cst_50 = arith.constant dense<0.000000e+00> : vector<121x128xf32>
    %60 = tpu.matmul %57, %59, %cst_50 {dimension_numbers = #tpu.dot_dimension_numbers<[1], [0], [0], [1], [0, 0, 1, 1], [], []>} : vector<121x128xbf16>, vector<128x128xbf16>, vector<121x128xf32> -> vector<121x128xf32>
    %61 = arith.addf %53, %60 : vector<121x128xf32>
    %c6 = arith.constant 6 : index
    %c0_51 = arith.constant 0 : index
    %c0_52 = arith.constant 0 : index
    %62 = vector.load %arg3[%c6, %c0_51, %c0_52] : memref<9x121x441xbf16, #tpu.memory_space<vmem>>, vector<1x121x441xbf16>
    %63 = vector.shape_cast %62 : vector<1x121x441xbf16> to vector<121x441xbf16>
    %cst_53 = arith.constant dense<0.000000e+00> : vector<121x128xf32>
    %64 = tpu.matmul %63, %14, %cst_53 {dimension_numbers = #tpu.dot_dimension_numbers<[1], [0], [0], [1], [0, 0, 1, 1], [], []>} : vector<121x441xbf16>, vector<441x128xbf16>, vector<121x128xf32> -> vector<121x128xf32>
    %65 = arith.truncf %64 : vector<121x128xf32> to vector<121x128xbf16>
    %c6_54 = arith.constant 6 : index
    %c0_55 = arith.constant 0 : index
    %c0_56 = arith.constant 0 : index
    %66 = vector.load %arg4[%c6_54, %c0_55, %c0_56] : memref<9x128x128xbf16, #tpu.memory_space<vmem>>, vector<1x128x128xbf16>
    %67 = vector.shape_cast %66 : vector<1x128x128xbf16> to vector<128x128xbf16>
    %cst_57 = arith.constant dense<0.000000e+00> : vector<121x128xf32>
    %68 = tpu.matmul %65, %67, %cst_57 {dimension_numbers = #tpu.dot_dimension_numbers<[1], [0], [0], [1], [0, 0, 1, 1], [], []>} : vector<121x128xbf16>, vector<128x128xbf16>, vector<121x128xf32> -> vector<121x128xf32>
    %69 = arith.addf %61, %68 : vector<121x128xf32>
    %c7 = arith.constant 7 : index
    %c0_58 = arith.constant 0 : index
    %c0_59 = arith.constant 0 : index
    %70 = vector.load %arg3[%c7, %c0_58, %c0_59] : memref<9x121x441xbf16, #tpu.memory_space<vmem>>, vector<1x121x441xbf16>
    %71 = vector.shape_cast %70 : vector<1x121x441xbf16> to vector<121x441xbf16>
    %cst_60 = arith.constant dense<0.000000e+00> : vector<121x128xf32>
    %72 = tpu.matmul %71, %14, %cst_60 {dimension_numbers = #tpu.dot_dimension_numbers<[1], [0], [0], [1], [0, 0, 1, 1], [], []>} : vector<121x441xbf16>, vector<441x128xbf16>, vector<121x128xf32> -> vector<121x128xf32>
    %73 = arith.truncf %72 : vector<121x128xf32> to vector<121x128xbf16>
    %c7_61 = arith.constant 7 : index
    %c0_62 = arith.constant 0 : index
    %c0_63 = arith.constant 0 : index
    %74 = vector.load %arg4[%c7_61, %c0_62, %c0_63] : memref<9x128x128xbf16, #tpu.memory_space<vmem>>, vector<1x128x128xbf16>
    %75 = vector.shape_cast %74 : vector<1x128x128xbf16> to vector<128x128xbf16>
    %cst_64 = arith.constant dense<0.000000e+00> : vector<121x128xf32>
    %76 = tpu.matmul %73, %75, %cst_64 {dimension_numbers = #tpu.dot_dimension_numbers<[1], [0], [0], [1], [0, 0, 1, 1], [], []>} : vector<121x128xbf16>, vector<128x128xbf16>, vector<121x128xf32> -> vector<121x128xf32>
    %77 = arith.addf %69, %76 : vector<121x128xf32>
    %c8 = arith.constant 8 : index
    %c0_65 = arith.constant 0 : index
    %c0_66 = arith.constant 0 : index
    %78 = vector.load %arg3[%c8, %c0_65, %c0_66] : memref<9x121x441xbf16, #tpu.memory_space<vmem>>, vector<1x121x441xbf16>
    %79 = vector.shape_cast %78 : vector<1x121x441xbf16> to vector<121x441xbf16>
    %cst_67 = arith.constant dense<0.000000e+00> : vector<121x128xf32>
    %80 = tpu.matmul %79, %14, %cst_67 {dimension_numbers = #tpu.dot_dimension_numbers<[1], [0], [0], [1], [0, 0, 1, 1], [], []>} : vector<121x441xbf16>, vector<441x128xbf16>, vector<121x128xf32> -> vector<121x128xf32>
    %81 = arith.truncf %80 : vector<121x128xf32> to vector<121x128xbf16>
    %c8_68 = arith.constant 8 : index
    %c0_69 = arith.constant 0 : index
    %c0_70 = arith.constant 0 : index
    %82 = vector.load %arg4[%c8_68, %c0_69, %c0_70] : memref<9x128x128xbf16, #tpu.memory_space<vmem>>, vector<1x128x128xbf16>
    %83 = vector.shape_cast %82 : vector<1x128x128xbf16> to vector<128x128xbf16>
    %cst_71 = arith.constant dense<0.000000e+00> : vector<121x128xf32>
    %84 = tpu.matmul %81, %83, %cst_71 {dimension_numbers = #tpu.dot_dimension_numbers<[1], [0], [0], [1], [0, 0, 1, 1], [], []>} : vector<121x128xbf16>, vector<128x128xbf16>, vector<121x128xf32> -> vector<121x128xf32>
    %85 = arith.addf %77, %84 : vector<121x128xf32>
    %c0_72 = arith.constant 0 : index
    %c0_73 = arith.constant 0 : index
    %86 = vector.load %arg5[%c0_72, %c0_73] : memref<1x128xf32, #tpu.memory_space<vmem>>, vector<1x128xf32>
    %87 = vector.broadcast %86 : vector<1x128xf32> to vector<121x128xf32>
    %88 = arith.addf %85, %87 : vector<121x128xf32>
    %cst_74 = arith.constant 0.000000e+00 : f32
    %89 = vector.broadcast %cst_74 : f32 to vector<121x128xf32>
    %90 = arith.cmpf ogt, %88, %89 : vector<121x128xf32>
    %cst_75 = arith.constant 0.000000e+00 : f32
    %91 = vector.broadcast %cst_75 : f32 to vector<121x128xf32>
    %92 = arith.minimumf %88, %91 : vector<121x128xf32>
    %93 = math.exp %92 : vector<121x128xf32>
    %cst_76 = arith.constant 1.000000e+00 : f32
    %94 = vector.broadcast %cst_76 : f32 to vector<121x128xf32>
    %95 = arith.subf %93, %94 : vector<121x128xf32>
    %96 = arith.select %90, %88, %95 : vector<121x128xi1>, vector<121x128xf32>
    %97 = arith.truncf %96 : vector<121x128xf32> to vector<121x128xbf16>
    %c0_77 = arith.constant 0 : index
    %c0_78 = arith.constant 0 : index
    %c0_79 = arith.constant 0 : index
    %98 = vector.load %arg6[%c0_77, %c0_78, %c0_79] : memref<9x36x121xbf16, #tpu.memory_space<vmem>>, vector<1x36x121xbf16>
    %99 = vector.shape_cast %98 : vector<1x36x121xbf16> to vector<36x121xbf16>
    %cst_80 = arith.constant dense<0.000000e+00> : vector<36x128xf32>
    %100 = tpu.matmul %99, %97, %cst_80 {dimension_numbers = #tpu.dot_dimension_numbers<[1], [0], [0], [1], [0, 0, 1, 1], [], []>} : vector<36x121xbf16>, vector<121x128xbf16>, vector<36x128xf32> -> vector<36x128xf32>
    %101 = arith.truncf %100 : vector<36x128xf32> to vector<36x128xbf16>
    %c0_81 = arith.constant 0 : index
    %c0_82 = arith.constant 0 : index
    %c0_83 = arith.constant 0 : index
    %102 = vector.load %arg7[%c0_81, %c0_82, %c0_83] : memref<9x128x128xbf16, #tpu.memory_space<vmem>>, vector<1x128x128xbf16>
    %103 = vector.shape_cast %102 : vector<1x128x128xbf16> to vector<128x128xbf16>
    %cst_84 = arith.constant dense<0.000000e+00> : vector<36x128xf32>
    %104 = tpu.matmul %101, %103, %cst_84 {dimension_numbers = #tpu.dot_dimension_numbers<[1], [0], [0], [1], [0, 0, 1, 1], [], []>} : vector<36x128xbf16>, vector<128x128xbf16>, vector<36x128xf32> -> vector<36x128xf32>
    %c1_85 = arith.constant 1 : index
    %c0_86 = arith.constant 0 : index
    %c0_87 = arith.constant 0 : index
    %105 = vector.load %arg6[%c1_85, %c0_86, %c0_87] : memref<9x36x121xbf16, #tpu.memory_space<vmem>>, vector<1x36x121xbf16>
    %106 = vector.shape_cast %105 : vector<1x36x121xbf16> to vector<36x121xbf16>
    %cst_88 = arith.constant dense<0.000000e+00> : vector<36x128xf32>
    %107 = tpu.matmul %106, %97, %cst_88 {dimension_numbers = #tpu.dot_dimension_numbers<[1], [0], [0], [1], [0, 0, 1, 1], [], []>} : vector<36x121xbf16>, vector<121x128xbf16>, vector<36x128xf32> -> vector<36x128xf32>
    %108 = arith.truncf %107 : vector<36x128xf32> to vector<36x128xbf16>
    %c1_89 = arith.constant 1 : index
    %c0_90 = arith.constant 0 : index
    %c0_91 = arith.constant 0 : index
    %109 = vector.load %arg7[%c1_89, %c0_90, %c0_91] : memref<9x128x128xbf16, #tpu.memory_space<vmem>>, vector<1x128x128xbf16>
    %110 = vector.shape_cast %109 : vector<1x128x128xbf16> to vector<128x128xbf16>
    %cst_92 = arith.constant dense<0.000000e+00> : vector<36x128xf32>
    %111 = tpu.matmul %108, %110, %cst_92 {dimension_numbers = #tpu.dot_dimension_numbers<[1], [0], [0], [1], [0, 0, 1, 1], [], []>} : vector<36x128xbf16>, vector<128x128xbf16>, vector<36x128xf32> -> vector<36x128xf32>
    %112 = arith.addf %104, %111 : vector<36x128xf32>
    %c2_93 = arith.constant 2 : index
    %c0_94 = arith.constant 0 : index
    %c0_95 = arith.constant 0 : index
    %113 = vector.load %arg6[%c2_93, %c0_94, %c0_95] : memref<9x36x121xbf16, #tpu.memory_space<vmem>>, vector<1x36x121xbf16>
    %114 = vector.shape_cast %113 : vector<1x36x121xbf16> to vector<36x121xbf16>
    %cst_96 = arith.constant dense<0.000000e+00> : vector<36x128xf32>
    %115 = tpu.matmul %114, %97, %cst_96 {dimension_numbers = #tpu.dot_dimension_numbers<[1], [0], [0], [1], [0, 0, 1, 1], [], []>} : vector<36x121xbf16>, vector<121x128xbf16>, vector<36x128xf32> -> vector<36x128xf32>
    %116 = arith.truncf %115 : vector<36x128xf32> to vector<36x128xbf16>
    %c2_97 = arith.constant 2 : index
    %c0_98 = arith.constant 0 : index
    %c0_99 = arith.constant 0 : index
    %117 = vector.load %arg7[%c2_97, %c0_98, %c0_99] : memref<9x128x128xbf16, #tpu.memory_space<vmem>>, vector<1x128x128xbf16>
    %118 = vector.shape_cast %117 : vector<1x128x128xbf16> to vector<128x128xbf16>
    %cst_100 = arith.constant dense<0.000000e+00> : vector<36x128xf32>
    %119 = tpu.matmul %116, %118, %cst_100 {dimension_numbers = #tpu.dot_dimension_numbers<[1], [0], [0], [1], [0, 0, 1, 1], [], []>} : vector<36x128xbf16>, vector<128x128xbf16>, vector<36x128xf32> -> vector<36x128xf32>
    %120 = arith.addf %112, %119 : vector<36x128xf32>
    %c3_101 = arith.constant 3 : index
    %c0_102 = arith.constant 0 : index
    %c0_103 = arith.constant 0 : index
    %121 = vector.load %arg6[%c3_101, %c0_102, %c0_103] : memref<9x36x121xbf16, #tpu.memory_space<vmem>>, vector<1x36x121xbf16>
    %122 = vector.shape_cast %121 : vector<1x36x121xbf16> to vector<36x121xbf16>
    %cst_104 = arith.constant dense<0.000000e+00> : vector<36x128xf32>
    %123 = tpu.matmul %122, %97, %cst_104 {dimension_numbers = #tpu.dot_dimension_numbers<[1], [0], [0], [1], [0, 0, 1, 1], [], []>} : vector<36x121xbf16>, vector<121x128xbf16>, vector<36x128xf32> -> vector<36x128xf32>
    %124 = arith.truncf %123 : vector<36x128xf32> to vector<36x128xbf16>
    %c3_105 = arith.constant 3 : index
    %c0_106 = arith.constant 0 : index
    %c0_107 = arith.constant 0 : index
    %125 = vector.load %arg7[%c3_105, %c0_106, %c0_107] : memref<9x128x128xbf16, #tpu.memory_space<vmem>>, vector<1x128x128xbf16>
    %126 = vector.shape_cast %125 : vector<1x128x128xbf16> to vector<128x128xbf16>
    %cst_108 = arith.constant dense<0.000000e+00> : vector<36x128xf32>
    %127 = tpu.matmul %124, %126, %cst_108 {dimension_numbers = #tpu.dot_dimension_numbers<[1], [0], [0], [1], [0, 0, 1, 1], [], []>} : vector<36x128xbf16>, vector<128x128xbf16>, vector<36x128xf32> -> vector<36x128xf32>
    %128 = arith.addf %120, %127 : vector<36x128xf32>
    %c4_109 = arith.constant 4 : index
    %c0_110 = arith.constant 0 : index
    %c0_111 = arith.constant 0 : index
    %129 = vector.load %arg6[%c4_109, %c0_110, %c0_111] : memref<9x36x121xbf16, #tpu.memory_space<vmem>>, vector<1x36x121xbf16>
    %130 = vector.shape_cast %129 : vector<1x36x121xbf16> to vector<36x121xbf16>
    %cst_112 = arith.constant dense<0.000000e+00> : vector<36x128xf32>
    %131 = tpu.matmul %130, %97, %cst_112 {dimension_numbers = #tpu.dot_dimension_numbers<[1], [0], [0], [1], [0, 0, 1, 1], [], []>} : vector<36x121xbf16>, vector<121x128xbf16>, vector<36x128xf32> -> vector<36x128xf32>
    %132 = arith.truncf %131 : vector<36x128xf32> to vector<36x128xbf16>
    %c4_113 = arith.constant 4 : index
    %c0_114 = arith.constant 0 : index
    %c0_115 = arith.constant 0 : index
    %133 = vector.load %arg7[%c4_113, %c0_114, %c0_115] : memref<9x128x128xbf16, #tpu.memory_space<vmem>>, vector<1x128x128xbf16>
    %134 = vector.shape_cast %133 : vector<1x128x128xbf16> to vector<128x128xbf16>
    %cst_116 = arith.constant dense<0.000000e+00> : vector<36x128xf32>
    %135 = tpu.matmul %132, %134, %cst_116 {dimension_numbers = #tpu.dot_dimension_numbers<[1], [0], [0], [1], [0, 0, 1, 1], [], []>} : vector<36x128xbf16>, vector<128x128xbf16>, vector<36x128xf32> -> vector<36x128xf32>
    %136 = arith.addf %128, %135 : vector<36x128xf32>
    %c5_117 = arith.constant 5 : index
    %c0_118 = arith.constant 0 : index
    %c0_119 = arith.constant 0 : index
    %137 = vector.load %arg6[%c5_117, %c0_118, %c0_119] : memref<9x36x121xbf16, #tpu.memory_space<vmem>>, vector<1x36x121xbf16>
    %138 = vector.shape_cast %137 : vector<1x36x121xbf16> to vector<36x121xbf16>
    %cst_120 = arith.constant dense<0.000000e+00> : vector<36x128xf32>
    %139 = tpu.matmul %138, %97, %cst_120 {dimension_numbers = #tpu.dot_dimension_numbers<[1], [0], [0], [1], [0, 0, 1, 1], [], []>} : vector<36x121xbf16>, vector<121x128xbf16>, vector<36x128xf32> -> vector<36x128xf32>
    %140 = arith.truncf %139 : vector<36x128xf32> to vector<36x128xbf16>
    %c5_121 = arith.constant 5 : index
    %c0_122 = arith.constant 0 : index
    %c0_123 = arith.constant 0 : index
    %141 = vector.load %arg7[%c5_121, %c0_122, %c0_123] : memref<9x128x128xbf16, #tpu.memory_space<vmem>>, vector<1x128x128xbf16>
    %142 = vector.shape_cast %141 : vector<1x128x128xbf16> to vector<128x128xbf16>
    %cst_124 = arith.constant dense<0.000000e+00> : vector<36x128xf32>
    %143 = tpu.matmul %140, %142, %cst_124 {dimension_numbers = #tpu.dot_dimension_numbers<[1], [0], [0], [1], [0, 0, 1, 1], [], []>} : vector<36x128xbf16>, vector<128x128xbf16>, vector<36x128xf32> -> vector<36x128xf32>
    %144 = arith.addf %136, %143 : vector<36x128xf32>
    %c6_125 = arith.constant 6 : index
    %c0_126 = arith.constant 0 : index
    %c0_127 = arith.constant 0 : index
    %145 = vector.load %arg6[%c6_125, %c0_126, %c0_127] : memref<9x36x121xbf16, #tpu.memory_space<vmem>>, vector<1x36x121xbf16>
    %146 = vector.shape_cast %145 : vector<1x36x121xbf16> to vector<36x121xbf16>
    %cst_128 = arith.constant dense<0.000000e+00> : vector<36x128xf32>
    %147 = tpu.matmul %146, %97, %cst_128 {dimension_numbers = #tpu.dot_dimension_numbers<[1], [0], [0], [1], [0, 0, 1, 1], [], []>} : vector<36x121xbf16>, vector<121x128xbf16>, vector<36x128xf32> -> vector<36x128xf32>
    %148 = arith.truncf %147 : vector<36x128xf32> to vector<36x128xbf16>
    %c6_129 = arith.constant 6 : index
    %c0_130 = arith.constant 0 : index
    %c0_131 = arith.constant 0 : index
    %149 = vector.load %arg7[%c6_129, %c0_130, %c0_131] : memref<9x128x128xbf16, #tpu.memory_space<vmem>>, vector<1x128x128xbf16>
    %150 = vector.shape_cast %149 : vector<1x128x128xbf16> to vector<128x128xbf16>
    %cst_132 = arith.constant dense<0.000000e+00> : vector<36x128xf32>
    %151 = tpu.matmul %148, %150, %cst_132 {dimension_numbers = #tpu.dot_dimension_numbers<[1], [0], [0], [1], [0, 0, 1, 1], [], []>} : vector<36x128xbf16>, vector<128x128xbf16>, vector<36x128xf32> -> vector<36x128xf32>
    %152 = arith.addf %144, %151 : vector<36x128xf32>
    %c7_133 = arith.constant 7 : index
    %c0_134 = arith.constant 0 : index
    %c0_135 = arith.constant 0 : index
    %153 = vector.load %arg6[%c7_133, %c0_134, %c0_135] : memref<9x36x121xbf16, #tpu.memory_space<vmem>>, vector<1x36x121xbf16>
    %154 = vector.shape_cast %153 : vector<1x36x121xbf16> to vector<36x121xbf16>
    %cst_136 = arith.constant dense<0.000000e+00> : vector<36x128xf32>
    %155 = tpu.matmul %154, %97, %cst_136 {dimension_numbers = #tpu.dot_dimension_numbers<[1], [0], [0], [1], [0, 0, 1, 1], [], []>} : vector<36x121xbf16>, vector<121x128xbf16>, vector<36x128xf32> -> vector<36x128xf32>
    %156 = arith.truncf %155 : vector<36x128xf32> to vector<36x128xbf16>
    %c7_137 = arith.constant 7 : index
    %c0_138 = arith.constant 0 : index
    %c0_139 = arith.constant 0 : index
    %157 = vector.load %arg7[%c7_137, %c0_138, %c0_139] : memref<9x128x128xbf16, #tpu.memory_space<vmem>>, vector<1x128x128xbf16>
    %158 = vector.shape_cast %157 : vector<1x128x128xbf16> to vector<128x128xbf16>
    %cst_140 = arith.constant dense<0.000000e+00> : vector<36x128xf32>
    %159 = tpu.matmul %156, %158, %cst_140 {dimension_numbers = #tpu.dot_dimension_numbers<[1], [0], [0], [1], [0, 0, 1, 1], [], []>} : vector<36x128xbf16>, vector<128x128xbf16>, vector<36x128xf32> -> vector<36x128xf32>
    %160 = arith.addf %152, %159 : vector<36x128xf32>
    %c8_141 = arith.constant 8 : index
    %c0_142 = arith.constant 0 : index
    %c0_143 = arith.constant 0 : index
    %161 = vector.load %arg6[%c8_141, %c0_142, %c0_143] : memref<9x36x121xbf16, #tpu.memory_space<vmem>>, vector<1x36x121xbf16>
    %162 = vector.shape_cast %161 : vector<1x36x121xbf16> to vector<36x121xbf16>
    %cst_144 = arith.constant dense<0.000000e+00> : vector<36x128xf32>
    %163 = tpu.matmul %162, %97, %cst_144 {dimension_numbers = #tpu.dot_dimension_numbers<[1], [0], [0], [1], [0, 0, 1, 1], [], []>} : vector<36x121xbf16>, vector<121x128xbf16>, vector<36x128xf32> -> vector<36x128xf32>
    %164 = arith.truncf %163 : vector<36x128xf32> to vector<36x128xbf16>
    %c8_145 = arith.constant 8 : index
    %c0_146 = arith.constant 0 : index
    %c0_147 = arith.constant 0 : index
    %165 = vector.load %arg7[%c8_145, %c0_146, %c0_147] : memref<9x128x128xbf16, #tpu.memory_space<vmem>>, vector<1x128x128xbf16>
    %166 = vector.shape_cast %165 : vector<1x128x128xbf16> to vector<128x128xbf16>
    %cst_148 = arith.constant dense<0.000000e+00> : vector<36x128xf32>
    %167 = tpu.matmul %164, %166, %cst_148 {dimension_numbers = #tpu.dot_dimension_numbers<[1], [0], [0], [1], [0, 0, 1, 1], [], []>} : vector<36x128xbf16>, vector<128x128xbf16>, vector<36x128xf32> -> vector<36x128xf32>
    %168 = arith.addf %160, %167 : vector<36x128xf32>
    %c0_149 = arith.constant 0 : index
    %c0_150 = arith.constant 0 : index
    %169 = vector.load %arg8[%c0_149, %c0_150] : memref<1x128xf32, #tpu.memory_space<vmem>>, vector<1x128xf32>
    %170 = vector.broadcast %169 : vector<1x128xf32> to vector<36x128xf32>
    %171 = arith.addf %168, %170 : vector<36x128xf32>
    %cst_151 = arith.constant 0.000000e+00 : f32
    %172 = vector.broadcast %cst_151 : f32 to vector<36x128xf32>
    %173 = arith.cmpf ogt, %171, %172 : vector<36x128xf32>
    %cst_152 = arith.constant 0.000000e+00 : f32
    %174 = vector.broadcast %cst_152 : f32 to vector<36x128xf32>
    %175 = arith.minimumf %171, %174 : vector<36x128xf32>
    %176 = math.exp %175 : vector<36x128xf32>
    %cst_153 = arith.constant 1.000000e+00 : f32
    %177 = vector.broadcast %cst_153 : f32 to vector<36x128xf32>
    %178 = arith.subf %176, %177 : vector<36x128xf32>
    %179 = arith.select %173, %171, %178 : vector<36x128xi1>, vector<36x128xf32>
    %180 = arith.truncf %179 : vector<36x128xf32> to vector<36x128xbf16>
    %c0_154 = arith.constant 0 : index
    %c0_155 = arith.constant 0 : index
    %c0_156 = arith.constant 0 : index
    %181 = vector.load %arg9[%c0_154, %c0_155, %c0_156] : memref<9x9x36xbf16, #tpu.memory_space<vmem>>, vector<1x9x36xbf16>
    %182 = vector.shape_cast %181 : vector<1x9x36xbf16> to vector<9x36xbf16>
    %cst_157 = arith.constant dense<0.000000e+00> : vector<9x128xf32>
    %183 = tpu.matmul %182, %180, %cst_157 {dimension_numbers = #tpu.dot_dimension_numbers<[1], [0], [0], [1], [0, 0, 1, 1], [], []>} : vector<9x36xbf16>, vector<36x128xbf16>, vector<9x128xf32> -> vector<9x128xf32>
    %184 = arith.truncf %183 : vector<9x128xf32> to vector<9x128xbf16>
    %c0_158 = arith.constant 0 : index
    %c0_159 = arith.constant 0 : index
    %c0_160 = arith.constant 0 : index
    %185 = vector.load %arg10[%c0_158, %c0_159, %c0_160] : memref<9x128x128xbf16, #tpu.memory_space<vmem>>, vector<1x128x128xbf16>
    %186 = vector.shape_cast %185 : vector<1x128x128xbf16> to vector<128x128xbf16>
    %cst_161 = arith.constant dense<0.000000e+00> : vector<9x128xf32>
    %187 = tpu.matmul %184, %186, %cst_161 {dimension_numbers = #tpu.dot_dimension_numbers<[1], [0], [0], [1], [0, 0, 1, 1], [], []>} : vector<9x128xbf16>, vector<128x128xbf16>, vector<9x128xf32> -> vector<9x128xf32>
    %c1_162 = arith.constant 1 : index
    %c0_163 = arith.constant 0 : index
    %c0_164 = arith.constant 0 : index
    %188 = vector.load %arg9[%c1_162, %c0_163, %c0_164] : memref<9x9x36xbf16, #tpu.memory_space<vmem>>, vector<1x9x36xbf16>
    %189 = vector.shape_cast %188 : vector<1x9x36xbf16> to vector<9x36xbf16>
    %cst_165 = arith.constant dense<0.000000e+00> : vector<9x128xf32>
    %190 = tpu.matmul %189, %180, %cst_165 {dimension_numbers = #tpu.dot_dimension_numbers<[1], [0], [0], [1], [0, 0, 1, 1], [], []>} : vector<9x36xbf16>, vector<36x128xbf16>, vector<9x128xf32> -> vector<9x128xf32>
    %191 = arith.truncf %190 : vector<9x128xf32> to vector<9x128xbf16>
    %c1_166 = arith.constant 1 : index
    %c0_167 = arith.constant 0 : index
    %c0_168 = arith.constant 0 : index
    %192 = vector.load %arg10[%c1_166, %c0_167, %c0_168] : memref<9x128x128xbf16, #tpu.memory_space<vmem>>, vector<1x128x128xbf16>
    %193 = vector.shape_cast %192 : vector<1x128x128xbf16> to vector<128x128xbf16>
    %cst_169 = arith.constant dense<0.000000e+00> : vector<9x128xf32>
    %194 = tpu.matmul %191, %193, %cst_169 {dimension_numbers = #tpu.dot_dimension_numbers<[1], [0], [0], [1], [0, 0, 1, 1], [], []>} : vector<9x128xbf16>, vector<128x128xbf16>, vector<9x128xf32> -> vector<9x128xf32>
    %195 = arith.addf %187, %194 : vector<9x128xf32>
    %c2_170 = arith.constant 2 : index
    %c0_171 = arith.constant 0 : index
    %c0_172 = arith.constant 0 : index
    %196 = vector.load %arg9[%c2_170, %c0_171, %c0_172] : memref<9x9x36xbf16, #tpu.memory_space<vmem>>, vector<1x9x36xbf16>
    %197 = vector.shape_cast %196 : vector<1x9x36xbf16> to vector<9x36xbf16>
    %cst_173 = arith.constant dense<0.000000e+00> : vector<9x128xf32>
    %198 = tpu.matmul %197, %180, %cst_173 {dimension_numbers = #tpu.dot_dimension_numbers<[1], [0], [0], [1], [0, 0, 1, 1], [], []>} : vector<9x36xbf16>, vector<36x128xbf16>, vector<9x128xf32> -> vector<9x128xf32>
    %199 = arith.truncf %198 : vector<9x128xf32> to vector<9x128xbf16>
    %c2_174 = arith.constant 2 : index
    %c0_175 = arith.constant 0 : index
    %c0_176 = arith.constant 0 : index
    %200 = vector.load %arg10[%c2_174, %c0_175, %c0_176] : memref<9x128x128xbf16, #tpu.memory_space<vmem>>, vector<1x128x128xbf16>
    %201 = vector.shape_cast %200 : vector<1x128x128xbf16> to vector<128x128xbf16>
    %cst_177 = arith.constant dense<0.000000e+00> : vector<9x128xf32>
    %202 = tpu.matmul %199, %201, %cst_177 {dimension_numbers = #tpu.dot_dimension_numbers<[1], [0], [0], [1], [0, 0, 1, 1], [], []>} : vector<9x128xbf16>, vector<128x128xbf16>, vector<9x128xf32> -> vector<9x128xf32>
    %203 = arith.addf %195, %202 : vector<9x128xf32>
    %c3_178 = arith.constant 3 : index
    %c0_179 = arith.constant 0 : index
    %c0_180 = arith.constant 0 : index
    %204 = vector.load %arg9[%c3_178, %c0_179, %c0_180] : memref<9x9x36xbf16, #tpu.memory_space<vmem>>, vector<1x9x36xbf16>
    %205 = vector.shape_cast %204 : vector<1x9x36xbf16> to vector<9x36xbf16>
    %cst_181 = arith.constant dense<0.000000e+00> : vector<9x128xf32>
    %206 = tpu.matmul %205, %180, %cst_181 {dimension_numbers = #tpu.dot_dimension_numbers<[1], [0], [0], [1], [0, 0, 1, 1], [], []>} : vector<9x36xbf16>, vector<36x128xbf16>, vector<9x128xf32> -> vector<9x128xf32>
    %207 = arith.truncf %206 : vector<9x128xf32> to vector<9x128xbf16>
    %c3_182 = arith.constant 3 : index
    %c0_183 = arith.constant 0 : index
    %c0_184 = arith.constant 0 : index
    %208 = vector.load %arg10[%c3_182, %c0_183, %c0_184] : memref<9x128x128xbf16, #tpu.memory_space<vmem>>, vector<1x128x128xbf16>
    %209 = vector.shape_cast %208 : vector<1x128x128xbf16> to vector<128x128xbf16>
    %cst_185 = arith.constant dense<0.000000e+00> : vector<9x128xf32>
    %210 = tpu.matmul %207, %209, %cst_185 {dimension_numbers = #tpu.dot_dimension_numbers<[1], [0], [0], [1], [0, 0, 1, 1], [], []>} : vector<9x128xbf16>, vector<128x128xbf16>, vector<9x128xf32> -> vector<9x128xf32>
    %211 = arith.addf %203, %210 : vector<9x128xf32>
    %c4_186 = arith.constant 4 : index
    %c0_187 = arith.constant 0 : index
    %c0_188 = arith.constant 0 : index
    %212 = vector.load %arg9[%c4_186, %c0_187, %c0_188] : memref<9x9x36xbf16, #tpu.memory_space<vmem>>, vector<1x9x36xbf16>
    %213 = vector.shape_cast %212 : vector<1x9x36xbf16> to vector<9x36xbf16>
    %cst_189 = arith.constant dense<0.000000e+00> : vector<9x128xf32>
    %214 = tpu.matmul %213, %180, %cst_189 {dimension_numbers = #tpu.dot_dimension_numbers<[1], [0], [0], [1], [0, 0, 1, 1], [], []>} : vector<9x36xbf16>, vector<36x128xbf16>, vector<9x128xf32> -> vector<9x128xf32>
    %215 = arith.truncf %214 : vector<9x128xf32> to vector<9x128xbf16>
    %c4_190 = arith.constant 4 : index
    %c0_191 = arith.constant 0 : index
    %c0_192 = arith.constant 0 : index
    %216 = vector.load %arg10[%c4_190, %c0_191, %c0_192] : memref<9x128x128xbf16, #tpu.memory_space<vmem>>, vector<1x128x128xbf16>
    %217 = vector.shape_cast %216 : vector<1x128x128xbf16> to vector<128x128xbf16>
    %cst_193 = arith.constant dense<0.000000e+00> : vector<9x128xf32>
    %218 = tpu.matmul %215, %217, %cst_193 {dimension_numbers = #tpu.dot_dimension_numbers<[1], [0], [0], [1], [0, 0, 1, 1], [], []>} : vector<9x128xbf16>, vector<128x128xbf16>, vector<9x128xf32> -> vector<9x128xf32>
    %219 = arith.addf %211, %218 : vector<9x128xf32>
    %c5_194 = arith.constant 5 : index
    %c0_195 = arith.constant 0 : index
    %c0_196 = arith.constant 0 : index
    %220 = vector.load %arg9[%c5_194, %c0_195, %c0_196] : memref<9x9x36xbf16, #tpu.memory_space<vmem>>, vector<1x9x36xbf16>
    %221 = vector.shape_cast %220 : vector<1x9x36xbf16> to vector<9x36xbf16>
    %cst_197 = arith.constant dense<0.000000e+00> : vector<9x128xf32>
    %222 = tpu.matmul %221, %180, %cst_197 {dimension_numbers = #tpu.dot_dimension_numbers<[1], [0], [0], [1], [0, 0, 1, 1], [], []>} : vector<9x36xbf16>, vector<36x128xbf16>, vector<9x128xf32> -> vector<9x128xf32>
    %223 = arith.truncf %222 : vector<9x128xf32> to vector<9x128xbf16>
    %c5_198 = arith.constant 5 : index
    %c0_199 = arith.constant 0 : index
    %c0_200 = arith.constant 0 : index
    %224 = vector.load %arg10[%c5_198, %c0_199, %c0_200] : memref<9x128x128xbf16, #tpu.memory_space<vmem>>, vector<1x128x128xbf16>
    %225 = vector.shape_cast %224 : vector<1x128x128xbf16> to vector<128x128xbf16>
    %cst_201 = arith.constant dense<0.000000e+00> : vector<9x128xf32>
    %226 = tpu.matmul %223, %225, %cst_201 {dimension_numbers = #tpu.dot_dimension_numbers<[1], [0], [0], [1], [0, 0, 1, 1], [], []>} : vector<9x128xbf16>, vector<128x128xbf16>, vector<9x128xf32> -> vector<9x128xf32>
    %227 = arith.addf %219, %226 : vector<9x128xf32>
    %c6_202 = arith.constant 6 : index
    %c0_203 = arith.constant 0 : index
    %c0_204 = arith.constant 0 : index
    %228 = vector.load %arg9[%c6_202, %c0_203, %c0_204] : memref<9x9x36xbf16, #tpu.memory_space<vmem>>, vector<1x9x36xbf16>
    %229 = vector.shape_cast %228 : vector<1x9x36xbf16> to vector<9x36xbf16>
    %cst_205 = arith.constant dense<0.000000e+00> : vector<9x128xf32>
    %230 = tpu.matmul %229, %180, %cst_205 {dimension_numbers = #tpu.dot_dimension_numbers<[1], [0], [0], [1], [0, 0, 1, 1], [], []>} : vector<9x36xbf16>, vector<36x128xbf16>, vector<9x128xf32> -> vector<9x128xf32>
    %231 = arith.truncf %230 : vector<9x128xf32> to vector<9x128xbf16>
    %c6_206 = arith.constant 6 : index
    %c0_207 = arith.constant 0 : index
    %c0_208 = arith.constant 0 : index
    %232 = vector.load %arg10[%c6_206, %c0_207, %c0_208] : memref<9x128x128xbf16, #tpu.memory_space<vmem>>, vector<1x128x128xbf16>
    %233 = vector.shape_cast %232 : vector<1x128x128xbf16> to vector<128x128xbf16>
    %cst_209 = arith.constant dense<0.000000e+00> : vector<9x128xf32>
    %234 = tpu.matmul %231, %233, %cst_209 {dimension_numbers = #tpu.dot_dimension_numbers<[1], [0], [0], [1], [0, 0, 1, 1], [], []>} : vector<9x128xbf16>, vector<128x128xbf16>, vector<9x128xf32> -> vector<9x128xf32>
    %235 = arith.addf %227, %234 : vector<9x128xf32>
    %c7_210 = arith.constant 7 : index
    %c0_211 = arith.constant 0 : index
    %c0_212 = arith.constant 0 : index
    %236 = vector.load %arg9[%c7_210, %c0_211, %c0_212] : memref<9x9x36xbf16, #tpu.memory_space<vmem>>, vector<1x9x36xbf16>
    %237 = vector.shape_cast %236 : vector<1x9x36xbf16> to vector<9x36xbf16>
    %cst_213 = arith.constant dense<0.000000e+00> : vector<9x128xf32>
    %238 = tpu.matmul %237, %180, %cst_213 {dimension_numbers = #tpu.dot_dimension_numbers<[1], [0], [0], [1], [0, 0, 1, 1], [], []>} : vector<9x36xbf16>, vector<36x128xbf16>, vector<9x128xf32> -> vector<9x128xf32>
    %239 = arith.truncf %238 : vector<9x128xf32> to vector<9x128xbf16>
    %c7_214 = arith.constant 7 : index
    %c0_215 = arith.constant 0 : index
    %c0_216 = arith.constant 0 : index
    %240 = vector.load %arg10[%c7_214, %c0_215, %c0_216] : memref<9x128x128xbf16, #tpu.memory_space<vmem>>, vector<1x128x128xbf16>
    %241 = vector.shape_cast %240 : vector<1x128x128xbf16> to vector<128x128xbf16>
    %cst_217 = arith.constant dense<0.000000e+00> : vector<9x128xf32>
    %242 = tpu.matmul %239, %241, %cst_217 {dimension_numbers = #tpu.dot_dimension_numbers<[1], [0], [0], [1], [0, 0, 1, 1], [], []>} : vector<9x128xbf16>, vector<128x128xbf16>, vector<9x128xf32> -> vector<9x128xf32>
    %243 = arith.addf %235, %242 : vector<9x128xf32>
    %c8_218 = arith.constant 8 : index
    %c0_219 = arith.constant 0 : index
    %c0_220 = arith.constant 0 : index
    %244 = vector.load %arg9[%c8_218, %c0_219, %c0_220] : memref<9x9x36xbf16, #tpu.memory_space<vmem>>, vector<1x9x36xbf16>
    %245 = vector.shape_cast %244 : vector<1x9x36xbf16> to vector<9x36xbf16>
    %cst_221 = arith.constant dense<0.000000e+00> : vector<9x128xf32>
    %246 = tpu.matmul %245, %180, %cst_221 {dimension_numbers = #tpu.dot_dimension_numbers<[1], [0], [0], [1], [0, 0, 1, 1], [], []>} : vector<9x36xbf16>, vector<36x128xbf16>, vector<9x128xf32> -> vector<9x128xf32>
    %247 = arith.truncf %246 : vector<9x128xf32> to vector<9x128xbf16>
    %c8_222 = arith.constant 8 : index
    %c0_223 = arith.constant 0 : index
    %c0_224 = arith.constant 0 : index
    %248 = vector.load %arg10[%c8_222, %c0_223, %c0_224] : memref<9x128x128xbf16, #tpu.memory_space<vmem>>, vector<1x128x128xbf16>
    %249 = vector.shape_cast %248 : vector<1x128x128xbf16> to vector<128x128xbf16>
    %cst_225 = arith.constant dense<0.000000e+00> : vector<9x128xf32>
    %250 = tpu.matmul %247, %249, %cst_225 {dimension_numbers = #tpu.dot_dimension_numbers<[1], [0], [0], [1], [0, 0, 1, 1], [], []>} : vector<9x128xbf16>, vector<128x128xbf16>, vector<9x128xf32> -> vector<9x128xf32>
    %251 = arith.addf %243, %250 : vector<9x128xf32>
    %c0_226 = arith.constant 0 : index
    %c0_227 = arith.constant 0 : index
    %252 = vector.load %arg11[%c0_226, %c0_227] : memref<1x128xf32, #tpu.memory_space<vmem>>, vector<1x128xf32>
    %253 = vector.broadcast %252 : vector<1x128xf32> to vector<9x128xf32>
    %254 = arith.addf %251, %253 : vector<9x128xf32>
    %c0_228 = arith.constant 0 : index
    %c0_229 = arith.constant 0 : index
    %255 = vector.load %arg12[%c0_228, %c0_229] : memref<9x128xf32, #tpu.memory_space<vmem>>, vector<9x128xf32>
    tpu.vector_store %arg12[%c0_228, %c0_229], %254 {strides = array<i32>} : memref<9x128xf32, #tpu.memory_space<vmem>>, vector<9x128xf32>,
    return
  }
}

module attributes {stable_mosaic.version = 11 : i64} {
  func.func @head_kernel(%arg0: memref<4x288xf32, #tpu.memory_space<vmem>>, %arg1: memref<2x12xf32, #tpu.memory_space<vmem>>, %arg2: memref<288x512xbf16, #tpu.memory_space<vmem>>, %arg3: memref<1x512xf32, #tpu.memory_space<vmem>>, %arg4: memref<512x288xbf16, #tpu.memory_space<vmem>>, %arg5: memref<1x288xf32, #tpu.memory_space<vmem>>, %arg6: memref<288x100xbf16, #tpu.memory_space<vmem>>, %arg7: memref<288x100xbf16, #tpu.memory_space<vmem>>, %arg8: memref<1x100xf32, #tpu.memory_space<vmem>>, %arg9: memref<100x12xbf16, #tpu.memory_space<vmem>>, %arg10: memref<1x12xf32, #tpu.memory_space<vmem>>, %arg11: memref<288x1000xbf16, #tpu.memory_space<vmem>>, %arg12: memref<12x1000xbf16, #tpu.memory_space<vmem>>, %arg13: memref<1x1000xf32, #tpu.memory_space<vmem>>, %arg14: memref<1000x288xbf16, #tpu.memory_space<vmem>>, %arg15: memref<1x288xf32, #tpu.memory_space<vmem>>, %arg16: memref<2x12xf32, #tpu.memory_space<vmem>>, %arg17: memref<2x288xf32, #tpu.memory_space<vmem>>, %arg18: memref<2x288xf32, #tpu.memory_space<vmem>>) attributes {dimension_semantics = [], scalar_prefetch = 0 : i64, scratch_operands = 0 : i64, tpu.core_type = #tpu.core_type<tc>} {
    %c0 = arith.constant 0 : index
    %c0_0 = arith.constant 0 : index
    %0 = vector.load %arg0[%c0, %c0_0] : memref<4x288xf32, #tpu.memory_space<vmem>>, vector<4x288xf32>
    %1 = arith.truncf %0 : vector<4x288xf32> to vector<4x288xbf16>
    %c0_1 = arith.constant 0 : index
    %c0_2 = arith.constant 0 : index
    %2 = vector.load %arg2[%c0_1, %c0_2] : memref<288x512xbf16, #tpu.memory_space<vmem>>, vector<288x512xbf16>
    %cst = arith.constant dense<0.000000e+00> : vector<4x512xf32>
    %3 = tpu.matmul %1, %2, %cst {dimension_numbers = #tpu.dot_dimension_numbers<[1], [0], [0], [1], [0, 0, 1, 1], [], []>} : vector<4x288xbf16>, vector<288x512xbf16>, vector<4x512xf32> -> vector<4x512xf32>
    %c0_3 = arith.constant 0 : index
    %c0_4 = arith.constant 0 : index
    %4 = vector.load %arg3[%c0_3, %c0_4] : memref<1x512xf32, #tpu.memory_space<vmem>>, vector<1x512xf32>
    %5 = vector.broadcast %4 : vector<1x512xf32> to vector<4x512xf32>
    %6 = arith.addf %3, %5 : vector<4x512xf32>
    %cst_5 = arith.constant 0.000000e+00 : f32
    %7 = vector.broadcast %cst_5 : f32 to vector<4x512xf32>
    %8 = arith.cmpf ogt, %6, %7 : vector<4x512xf32>
    %cst_6 = arith.constant 0.000000e+00 : f32
    %9 = vector.broadcast %cst_6 : f32 to vector<4x512xf32>
    %10 = arith.minimumf %6, %9 : vector<4x512xf32>
    %11 = math.exp %10 : vector<4x512xf32>
    %cst_7 = arith.constant 1.000000e+00 : f32
    %12 = vector.broadcast %cst_7 : f32 to vector<4x512xf32>
    %13 = arith.subf %11, %12 : vector<4x512xf32>
    %14 = arith.select %8, %6, %13 : vector<4x512xi1>, vector<4x512xf32>
    %15 = arith.truncf %14 : vector<4x512xf32> to vector<4x512xbf16>
    %c0_8 = arith.constant 0 : index
    %c0_9 = arith.constant 0 : index
    %16 = vector.load %arg4[%c0_8, %c0_9] : memref<512x288xbf16, #tpu.memory_space<vmem>>, vector<512x288xbf16>
    %cst_10 = arith.constant dense<0.000000e+00> : vector<4x288xf32>
    %17 = tpu.matmul %15, %16, %cst_10 {dimension_numbers = #tpu.dot_dimension_numbers<[1], [0], [0], [1], [0, 0, 1, 1], [], []>} : vector<4x512xbf16>, vector<512x288xbf16>, vector<4x288xf32> -> vector<4x288xf32>
    %c0_11 = arith.constant 0 : index
    %c0_12 = arith.constant 0 : index
    %18 = vector.load %arg5[%c0_11, %c0_12] : memref<1x288xf32, #tpu.memory_space<vmem>>, vector<1x288xf32>
    %19 = vector.broadcast %18 : vector<1x288xf32> to vector<4x288xf32>
    %20 = arith.addf %17, %19 : vector<4x288xf32>
    %21 = vector.extract_strided_slice %20 {offsets = [0, 0], sizes = [2, 288], strides = [1, 1]} : vector<4x288xf32> to vector<2x288xf32>
    %22 = vector.extract_strided_slice %20 {offsets = [2, 0], sizes = [2, 288], strides = [1, 1]} : vector<4x288xf32> to vector<2x288xf32>
    %c0_13 = arith.constant 0 : index
    %c0_14 = arith.constant 0 : index
    %23 = vector.load %arg17[%c0_13, %c0_14] : memref<2x288xf32, #tpu.memory_space<vmem>>, vector<2x288xf32>
    tpu.vector_store %arg17[%c0_13, %c0_14], %22 {strides = array<i32>} : memref<2x288xf32, #tpu.memory_space<vmem>>, vector<2x288xf32>,
    %24 = arith.truncf %21 : vector<2x288xf32> to vector<2x288xbf16>
    %c0_15 = arith.constant 0 : index
    %c0_16 = arith.constant 0 : index
    %25 = vector.load %arg6[%c0_15, %c0_16] : memref<288x100xbf16, #tpu.memory_space<vmem>>, vector<288x100xbf16>
    %cst_17 = arith.constant dense<0.000000e+00> : vector<2x100xf32>
    %26 = tpu.matmul %24, %25, %cst_17 {dimension_numbers = #tpu.dot_dimension_numbers<[1], [0], [0], [1], [0, 0, 1, 1], [], []>} : vector<2x288xbf16>, vector<288x100xbf16>, vector<2x100xf32> -> vector<2x100xf32>
    %27 = arith.truncf %22 : vector<2x288xf32> to vector<2x288xbf16>
    %c0_18 = arith.constant 0 : index
    %c0_19 = arith.constant 0 : index
    %28 = vector.load %arg7[%c0_18, %c0_19] : memref<288x100xbf16, #tpu.memory_space<vmem>>, vector<288x100xbf16>
    %cst_20 = arith.constant dense<0.000000e+00> : vector<2x100xf32>
    %29 = tpu.matmul %27, %28, %cst_20 {dimension_numbers = #tpu.dot_dimension_numbers<[1], [0], [0], [1], [0, 0, 1, 1], [], []>} : vector<2x288xbf16>, vector<288x100xbf16>, vector<2x100xf32> -> vector<2x100xf32>
    %30 = arith.addf %26, %29 : vector<2x100xf32>
    %c0_21 = arith.constant 0 : index
    %c0_22 = arith.constant 0 : index
    %31 = vector.load %arg8[%c0_21, %c0_22] : memref<1x100xf32, #tpu.memory_space<vmem>>, vector<1x100xf32>
    %32 = vector.broadcast %31 : vector<1x100xf32> to vector<2x100xf32>
    %33 = arith.addf %30, %32 : vector<2x100xf32>
    %cst_23 = arith.constant 0.000000e+00 : f32
    %34 = vector.broadcast %cst_23 : f32 to vector<2x100xf32>
    %35 = arith.maximumf %33, %34 : vector<2x100xf32>
    %36 = arith.truncf %35 : vector<2x100xf32> to vector<2x100xbf16>
    %c0_24 = arith.constant 0 : index
    %c0_25 = arith.constant 0 : index
    %37 = vector.load %arg9[%c0_24, %c0_25] : memref<100x12xbf16, #tpu.memory_space<vmem>>, vector<100x12xbf16>
    %cst_26 = arith.constant dense<0.000000e+00> : vector<2x12xf32>
    %38 = tpu.matmul %36, %37, %cst_26 {dimension_numbers = #tpu.dot_dimension_numbers<[1], [0], [0], [1], [0, 0, 1, 1], [], []>} : vector<2x100xbf16>, vector<100x12xbf16>, vector<2x12xf32> -> vector<2x12xf32>
    %c0_27 = arith.constant 0 : index
    %c0_28 = arith.constant 0 : index
    %39 = vector.load %arg10[%c0_27, %c0_28] : memref<1x12xf32, #tpu.memory_space<vmem>>, vector<1x12xf32>
    %40 = vector.broadcast %39 : vector<1x12xf32> to vector<2x12xf32>
    %41 = arith.addf %38, %40 : vector<2x12xf32>
    %cst_29 = arith.constant dense<0xFF800000> : vector<2xf32>
    %42 = vector.multi_reduction <maximumf>, %41, %cst_29 [1] : vector<2x12xf32> to vector<2xf32>
    %43 = vector.shape_cast %42 : vector<2xf32> to vector<2x1xf32>
    %44 = vector.broadcast %43 : vector<2x1xf32> to vector<2x12xf32>
    %45 = arith.subf %41, %44 : vector<2x12xf32>
    %46 = math.exp %45 : vector<2x12xf32>
    %cst_30 = arith.constant dense<0.000000e+00> : vector<2xf32>
    %47 = vector.multi_reduction <add>, %46, %cst_30 [1] : vector<2x12xf32> to vector<2xf32>
    %48 = vector.shape_cast %47 : vector<2xf32> to vector<2x1xf32>
    %49 = vector.broadcast %48 : vector<2x1xf32> to vector<2x12xf32>
    %50 = arith.divf %46, %49 : vector<2x12xf32>
    %c0_31 = arith.constant 0 : index
    %c0_32 = arith.constant 0 : index
    %51 = vector.load %arg16[%c0_31, %c0_32] : memref<2x12xf32, #tpu.memory_space<vmem>>, vector<2x12xf32>
    tpu.vector_store %arg16[%c0_31, %c0_32], %50 {strides = array<i32>} : memref<2x12xf32, #tpu.memory_space<vmem>>, vector<2x12xf32>,
    %52 = arith.truncf %21 : vector<2x288xf32> to vector<2x288xbf16>
    %c0_33 = arith.constant 0 : index
    %c0_34 = arith.constant 0 : index
    %53 = vector.load %arg11[%c0_33, %c0_34] : memref<288x1000xbf16, #tpu.memory_space<vmem>>, vector<288x1000xbf16>
    %cst_35 = arith.constant dense<0.000000e+00> : vector<2x1000xf32>
    %54 = tpu.matmul %52, %53, %cst_35 {dimension_numbers = #tpu.dot_dimension_numbers<[1], [0], [0], [1], [0, 0, 1, 1], [], []>} : vector<2x288xbf16>, vector<288x1000xbf16>, vector<2x1000xf32> -> vector<2x1000xf32>
    %c0_36 = arith.constant 0 : index
    %c0_37 = arith.constant 0 : index
    %55 = vector.load %arg1[%c0_36, %c0_37] : memref<2x12xf32, #tpu.memory_space<vmem>>, vector<2x12xf32>
    %56 = arith.truncf %55 : vector<2x12xf32> to vector<2x12xbf16>
    %c0_38 = arith.constant 0 : index
    %c0_39 = arith.constant 0 : index
    %57 = vector.load %arg12[%c0_38, %c0_39] : memref<12x1000xbf16, #tpu.memory_space<vmem>>, vector<12x1000xbf16>
    %cst_40 = arith.constant dense<0.000000e+00> : vector<2x1000xf32>
    %58 = tpu.matmul %56, %57, %cst_40 {dimension_numbers = #tpu.dot_dimension_numbers<[1], [0], [0], [1], [0, 0, 1, 1], [], []>} : vector<2x12xbf16>, vector<12x1000xbf16>, vector<2x1000xf32> -> vector<2x1000xf32>
    %59 = arith.addf %54, %58 : vector<2x1000xf32>
    %c0_41 = arith.constant 0 : index
    %c0_42 = arith.constant 0 : index
    %60 = vector.load %arg13[%c0_41, %c0_42] : memref<1x1000xf32, #tpu.memory_space<vmem>>, vector<1x1000xf32>
    %61 = vector.broadcast %60 : vector<1x1000xf32> to vector<2x1000xf32>
    %62 = arith.addf %59, %61 : vector<2x1000xf32>
    %cst_43 = arith.constant 0.000000e+00 : f32
    %63 = vector.broadcast %cst_43 : f32 to vector<2x1000xf32>
    %64 = arith.maximumf %62, %63 : vector<2x1000xf32>
    %65 = arith.truncf %64 : vector<2x1000xf32> to vector<2x1000xbf16>
    %c0_44 = arith.constant 0 : index
    %c0_45 = arith.constant 0 : index
    %66 = vector.load %arg14[%c0_44, %c0_45] : memref<1000x288xbf16, #tpu.memory_space<vmem>>, vector<1000x288xbf16>
    %cst_46 = arith.constant dense<0.000000e+00> : vector<2x288xf32>
    %67 = tpu.matmul %65, %66, %cst_46 {dimension_numbers = #tpu.dot_dimension_numbers<[1], [0], [0], [1], [0, 0, 1, 1], [], []>} : vector<2x1000xbf16>, vector<1000x288xbf16>, vector<2x288xf32> -> vector<2x288xf32>
    %c0_47 = arith.constant 0 : index
    %c0_48 = arith.constant 0 : index
    %68 = vector.load %arg15[%c0_47, %c0_48] : memref<1x288xf32, #tpu.memory_space<vmem>>, vector<1x288xf32>
    %69 = vector.broadcast %68 : vector<1x288xf32> to vector<2x288xf32>
    %70 = arith.addf %67, %69 : vector<2x288xf32>
    %c0_49 = arith.constant 0 : index
    %c0_50 = arith.constant 0 : index
    %71 = vector.load %arg18[%c0_49, %c0_50] : memref<2x288xf32, #tpu.memory_space<vmem>>, vector<2x288xf32>
    tpu.vector_store %arg18[%c0_49, %c0_50], %70 {strides = array<i32>} : memref<2x288xf32, #tpu.memory_space<vmem>>, vector<2x288xf32>,
    return
  }
}

</mosaic_0001>

<bundles_post_ra>
// kernel: mario_icm_forward.3
= control target key start
LH: loop header
LB: loop body
LE: loop exit
PB: predicated region body
PF: predicated region fallthrough
CT: control target
= control target key end

     0   :  { %s8834_s0 = inlined_call_operand.vmem [shape: f32[4,288], index: 0, kind: input, shape index: {}]   ;;  %s8835_s1 = inlined_call_operand.vmem [shape: f32[2,12], index: 1, kind: input, shape index: {}]   ;;  %s8836_s2 = inlined_call_operand.vmem [shape: bf16[288,512], index: 2, kind: input, shape index: {}]   ;;  %s8837_s3 = inlined_call_operand.vmem [shape: f32[1,512], index: 3, kind: input, shape index: {}]   ;;  %s8838_s4 = inlined_call_operand.vmem [shape: bf16[512,288], index: 4, kind: input, shape index: {}]   ;;  %s8839_s5 = inlined_call_operand.vmem [shape: f32[1,288], index: 5, kind: input, shape index: {}]   ;;  %s8840_s6 = inlined_call_operand.vmem [shape: bf16[288,100], index: 6, kind: input, shape index: {}]   ;;  %s8841_s7 = inlined_call_operand.vmem [shape: bf16[288,100], index: 7, kind: input, shape index: {}]   ;;  %s8842_s8 = inlined_call_operand.vmem [shape: f32[1,100], index: 8, kind: input, shape index: {}]   ;;  %s8843_s9 = inlined_call_operand.vmem [shape: bf16[100,12], index: 9, kind: input, shape index: {}]   ;;  %s8844_s10 = inlined_call_operand.vmem [shape: f32[1,12], index: 10, kind: input, shape index: {}]   ;;  %s8845_s11 = inlined_call_operand.vmem [shape: bf16[288,1000], index: 11, kind: input, shape index: {}]   ;;  %s8846_s12 = inlined_call_operand.vmem [shape: bf16[12,1000], index: 12, kind: input, shape index: {}]   ;;  %s8847_s13 = inlined_call_operand.vmem [shape: f32[1,1000], index: 13, kind: input, shape index: {}]   ;;  %s8848_s14 = inlined_call_operand.vmem [shape: bf16[1000,288], index: 14, kind: input, shape index: {}]   ;;  %s8849_s15 = inlined_call_operand.vmem [shape: f32[1,288], index: 15, kind: input, shape index: {}]   ;;  %s8850_s16 = inlined_call_operand.hbm [shape: f32[2,12], index: 16, kind: output, shape index: {0}]   ;;  %s8851_s17 = inlined_call_operand.hbm [shape: f32[2,288], index: 17, kind: output, shape index: {1}]   ;;  %s8852_s18 = inlined_call_operand.hbm [shape: f32[2,288], index: 18, kind: output, shape index: {2}]  }
   0x1   :  { %8855 = sst [smem:[#allocation9_spill]] %s8834_s0 }
   0x2   :  { %8856 = sst [smem:[#allocation10_spill]] %s8835_s1 }
   0x3   :  { %8857 = sst [smem:[#allocation11_spill]] %s8836_s2 }
   0x4   :  { %24 = vsyncpa [#allocation3], 0  ;;  %s8858_s29 = sld [smem:[#allocation11_spill]]  ;;  %s8859_s25 = sld [smem:[#allocation9_spill]]  ;;  %vm521_vm0 = vcmask 261120  }
   0xa   :  { %v6131_v0 = vld [vmem:[%s8858_s29 + $0x4] ss:$16 sps:$4 sm:$0xff]   ;;  %v6133_v1 = vld [vmem:[%s8858_s29] ss:$16 sps:$4 sm:$0xff]   ;;  %v6164_v10 = vld [vmem:[%s8858_s29 + $0xc] ss:$16 sps:$4 sm:$0xff]  }
   0xb   :  { %525 = vmatprep.subr.bf16.mxu0 %v6131_v0  ;;  %v6134_v2 = vld [vmem:[%s8858_s29 + $0x24] ss:$16 sps:$4 sm:$0xff]   ;;  %v6136_v3 = vld [vmem:[%s8858_s29 + $0x20] ss:$16 sps:$4 sm:$0xff]   ;;  %v6166_v11 = vld [vmem:[%s8858_s29 + $0x8] ss:$16 sps:$4 sm:$0xff]   ;;  %607 = vmatprep.subr.bf16.mxu1 %v6164_v10 }
   0xc   :  { %526 = vmatpush1.bf16.msra.mxu0 %v6133_v1  ;;  %v6137_v4 = vld [vmem:[%s8858_s29 + $0x44] ss:$16 sps:$4 sm:$0xff]   ;;  %v6139_v5 = vld [vmem:[%s8858_s29 + $0x40] ss:$16 sps:$4 sm:$0xff]   ;;  %608 = vmatpush1.bf16.msra.mxu1 %v6166_v11  ;;  %v6170_v13 = vld [vmem:[%s8858_s29 + $0x2c] ss:$16 sps:$4 sm:$0xff]  }
   0xd   :  { %527 = vmatprep.subr.bf16.mxu0 %v6134_v2  ;;  %v6140_v6 = vld [vmem:[%s8858_s29 + $0x64] ss:$16 sps:$4 sm:$0xff]   ;;  %v6142_v7 = vld [vmem:[%s8858_s29 + $0x60] ss:$16 sps:$4 sm:$0xff]   ;;  %v6172_v14 = vld [vmem:[%s8858_s29 + $0x28] ss:$16 sps:$4 sm:$0xff]   ;;  %609 = vmatprep.subr.bf16.mxu1 %v6170_v13 }
   0xe   :  { %v6143_v8 = vld [vmem:[%s8858_s29 + $0x84] ss:$16 sps:$4 sm:$0xff]   ;;  %v6145_v9 = vld [vmem:[%s8858_s29 + $0x80] ss:$16 sps:$4 sm:$0xff]   ;;  %v6176_v17 = vld [vmem:[%s8858_s29 + $0x4c] ss:$16 sps:$4 sm:$0xff]  }
   0xf   :  { %v6146_v12 = vld [vmem:[%s8858_s29 + $0xa4] ss:$16 sps:$4 sm:$0xff]   ;;  %v6148_v15 = vld [vmem:[%s8858_s29 + $0xa0] ss:$16 sps:$4 sm:$0xff]   ;;  %v6178_v18 = vld [vmem:[%s8858_s29 + $0x48] ss:$16 sps:$4 sm:$0xff]  }
  0x10   :  { %528 = vmatpush1.bf16.msra.mxu0 %v6136_v3  ;;  %v6149_v16 = vld [vmem:[%s8858_s29 + $0xc4] ss:$16 sps:$4 sm:$0xff]   ;;  %610 = vmatpush1.bf16.msra.mxu1 %v6172_v14  ;;  %v6151_v19 = vld [vmem:[%s8858_s29 + $0xc0] ss:$16 sps:$4 sm:$0xff]   ;;  %v6182_v20 = vld [vmem:[%s8858_s29 + $0x6c] ss:$16 sps:$4 sm:$0xff]  }
  0x11   :  { %529 = vmatprep.subr.bf16.mxu0 %v6137_v4  ;;  %611 = vmatprep.subr.bf16.mxu1 %v6176_v17  ;;  %v6152_v21 = vld [vmem:[%s8858_s29 + $0xe4] ss:$16 sps:$4 sm:$0xff]   ;;  %v6184_v22 = vld [vmem:[%s8858_s29 + $0x68] ss:$16 sps:$4 sm:$0xff]   ;;  %v6154_v23 = vld [vmem:[%s8858_s29 + $0xe0] ss:$16 sps:$4 sm:$0xff]  }
  0x12   :  { %v6188_v24 = vld [vmem:[%s8858_s29 + $0x8c] ss:$16 sps:$4 sm:$0xff]   ;;  %v6155_v25 = vld [vmem:[%s8858_s29 + $0x104] ss:$16 sps:$4 sm:$0xff]   ;;  %v6157_v27 = vld [vmem:[%s8858_s29 + $0x100] ss:$16 sps:$4 sm:$0xff]  }
  0x13   :  { %v6927_v26 = vld [vmem:[%s8859_s25] sm:$0xff]  ;;  %v6190_v28 = vld [vmem:[%s8858_s29 + $0x88] ss:$16 sps:$4 sm:$0xff]   ;;  %v6194_v30 = vld [vmem:[%s8858_s29 + $0xac] ss:$16 sps:$4 sm:$0xff]  }
  0x14   :  { %530 = vmatpush1.bf16.msra.mxu0 %v6139_v5  ;;  %612 = vmatpush1.bf16.msra.mxu1 %v6178_v18  ;;  %v62_v29 = vcombine.high %v6927_v26, %v6927_v26  ;;  %v6158_v31 = vld [vmem:[%s8858_s29 + $0x124] ss:$16 sps:$4 sm:$0xff]   ;;  %v6160_v33 = vld [vmem:[%s8858_s29 + $0x120] ss:$16 sps:$4 sm:$0xff]   ;;  %v6196_v34 = vld [vmem:[%s8858_s29 + $0xa8] ss:$16 sps:$4 sm:$0xff]   ;;  %v64_v62 = vpack.c.bf16 %v6927_v26, %v6927_v26 }
  0x15   :  { %531 = vmatprep.subr.bf16.mxu0 %v6140_v6  ;;  %613 = vmatprep.subr.bf16.mxu1 %v6182_v20  ;;  %v6201_v35 = vld [vmem:[%s8858_s29 + $0xcc] ss:$16 sps:$4 sm:$0xff]   ;;  %v6161_v36 = vld [vmem:[%s8858_s29 + $0x144] ss:$16 sps:$4 sm:$0xff]   ;;  %v6163_v37 = vld [vmem:[%s8858_s29 + $0x140] ss:$16 sps:$4 sm:$0xff]  }
  0x16   :  { %v65_v32 = vpack.c.bf16 %v62_v29, %v62_v29  ;;  %v6203_v38 = vld [vmem:[%s8858_s29 + $0xc8] ss:$16 sps:$4 sm:$0xff]   ;;  %v6204_v39 = vld [vmem:[%s8858_s29 + $0xec] ss:$16 sps:$4 sm:$0xff]   ;;  %v6167_v40 = vld [vmem:[%s8858_s29 + $0x164] ss:$16 sps:$4 sm:$0xff]  }
  0x17   :  { %v6169_v41 = vld [vmem:[%s8858_s29 + $0x160] ss:$16 sps:$4 sm:$0xff]   ;;  %v6209_v42 = vld [vmem:[%s8858_s29 + $0xe8] ss:$16 sps:$4 sm:$0xff]   ;;  %v6210_v43 = vld [vmem:[%s8858_s29 + $0x10c] ss:$16 sps:$4 sm:$0xff]  }
  0x18   :  { %532 = vmatpush1.bf16.msra.mxu0 %v6142_v7  ;;  %614 = vmatpush1.bf16.msra.mxu1 %v6184_v22  ;;  %v6173_v44 = vld [vmem:[%s8858_s29 + $0x184] ss:$16 sps:$4 sm:$0xff]   ;;  %v6175_v45 = vld [vmem:[%s8858_s29 + $0x180] ss:$16 sps:$4 sm:$0xff]   ;;  %v6212_v46 = vld [vmem:[%s8858_s29 + $0x108] ss:$16 sps:$4 sm:$0xff]  }
  0x19   :  { %533 = vmatprep.subr.bf16.mxu0 %v6143_v8  ;;  %615 = vmatprep.subr.bf16.mxu1 %v6188_v24  ;;  %v6213_v47 = vld [vmem:[%s8858_s29 + $0x12c] ss:$16 sps:$4 sm:$0xff]   ;;  %v6179_v48 = vld [vmem:[%s8858_s29 + $0x1a4] ss:$16 sps:$4 sm:$0xff]   ;;  %v6181_v49 = vld [vmem:[%s8858_s29 + $0x1a0] ss:$16 sps:$4 sm:$0xff]  }
  0x1a   :  { %557 = vmatprep.mubr.bf16.mxu0 %v65_v32  ;;  %639 = vmatprep.mubr.bf16.mxu1 %v65_v32  ;;  %v6215_v50 = vld [vmem:[%s8858_s29 + $0x128] ss:$16 sps:$4 sm:$0xff]   ;;  %v6216_v51 = vld [vmem:[%s8858_s29 + $0x14c] ss:$16 sps:$4 sm:$0xff]   ;;  %v6185_v52 = vld [vmem:[%s8858_s29 + $0x1c4] ss:$16 sps:$4 sm:$0xff]  }
  0x1b   :  { %v6187_v53 = vld [vmem:[%s8858_s29 + $0x1c0] ss:$16 sps:$4 sm:$0xff]   ;;  %v6218_v54 = vld [vmem:[%s8858_s29 + $0x148] ss:$16 sps:$4 sm:$0xff]   ;;  %v6219_v55 = vld [vmem:[%s8858_s29 + $0x16c] ss:$16 sps:$4 sm:$0xff]  }
  0x1c   :  { %534 = vmatpush1.bf16.msra.mxu0 %v6145_v9  ;;  %616 = vmatpush1.bf16.msra.mxu1 %v6190_v28  ;;  %v6191_v56 = vld [vmem:[%s8858_s29 + $0x1e4] ss:$16 sps:$4 sm:$0xff]   ;;  %v6193_v57 = vld [vmem:[%s8858_s29 + $0x1e0] ss:$16 sps:$4 sm:$0xff]   ;;  %v6221_v58 = vld [vmem:[%s8858_s29 + $0x168] ss:$16 sps:$4 sm:$0xff]  }
  0x1d   :  { %535 = vmatprep.subr.bf16.mxu0 %v6146_v12  ;;  %617 = vmatprep.subr.bf16.mxu1 %v6194_v30  ;;  %v6222_v59 = vld [vmem:[%s8858_s29 + $0x18c] ss:$16 sps:$4 sm:$0xff]   ;;  %v6200_v60 = vld [vmem:[%s8858_s29 + $0x204] ss:$16 sps:$4 sm:$0xff]   ;;  %v6198_v61 = vld [vmem:[%s8858_s29 + $0x200] ss:$16 sps:$4 sm:$0xff]  }
  0x1e   :  { %v6224_v63 = vld [vmem:[%s8858_s29 + $0x188] ss:$16 sps:$4 sm:$0xff]   ;;  %v6208_v0 = vld [vmem:[%s8858_s29 + $0x224] ss:$16 sps:$4 sm:$0xff]   ;;  %v6225_v1 = vld [vmem:[%s8858_s29 + $0x1ac] ss:$16 sps:$4 sm:$0xff]  }
  0x1f   :  { %v6227_v2 = vld [vmem:[%s8858_s29 + $0x1a8] ss:$16 sps:$4 sm:$0xff]   ;;  %v6206_v3 = vld [vmem:[%s8858_s29 + $0x220] ss:$16 sps:$4 sm:$0xff]   ;;  %v6228_v4 = vld [vmem:[%s8858_s29 + $0x1cc] ss:$16 sps:$4 sm:$0xff]  }
  0x20   :  { %536 = vmatpush1.bf16.msra.mxu0 %v6148_v15  ;;  %618 = vmatpush1.bf16.msra.mxu1 %v6196_v34  ;;  %v6233_v5 = vld [vmem:[%s8858_s29 + $0x20c] ss:$16 sps:$4 sm:$0xff]   ;;  %v6744_v6 = vmov 0   ;;  %v6230_v7 = vld [vmem:[%s8858_s29 + $0x1c8] ss:$16 sps:$4 sm:$0xff]  }
  0x21   :  { %537 = vmatprep.subr.bf16.mxu0 %v6149_v16  ;;  %619 = vmatprep.subr.bf16.mxu1 %v6201_v35  ;;  %v60_v8 = vld [vmem:[%s8859_s25 + $0x8] sm:$0xf]  ;;  %v6234_v9 = vld [vmem:[%s8858_s29 + $0x1ec] ss:$16 sps:$4 sm:$0xff]   ;;  %v6242_v18 = vld [vmem:[%s8838_s4 + $0x4] ss:$12 sps:$4 sm:$0xff]  }
  0x22   :  { %v6236_v10 = vld [vmem:[%s8858_s29 + $0x1e8] ss:$16 sps:$4 sm:$0xff]   ;;  %v66_v12 = vpack.c.bf16 %v60_v8, %v60_v8  ;;  %v6239_v13 = vld [vmem:[%s8858_s29 + $0x22c] ss:$16 sps:$4 sm:$0xff]   ;;  %v6266_v35 = vld [vmem:[%s8838_s4 + $0xc4] ss:$12 sps:$4 sm:$0xff]  }
  0x23   :  { %v6231_v11 = vld [vmem:[%s8858_s29 + $0x208] ss:$16 sps:$4 sm:$0xff]   ;;  %v6272_v17 = vld [vmem:[%s8838_s4 + $0xe0] ss:$12 sps:$4 sm:$0xff]   ;;  %v6246_v24 = vld [vmem:[%s8838_s4 + $0x30] ss:$12 sps:$4 sm:$0xff]  }
  0x24   :  { %538 = vmatpush1.bf16.msra.mxu0 %v6151_v19  ;;  %620 = vmatpush1.bf16.msra.mxu1 %v6203_v38  ;;  %v6267_v14 = vld [vmem:[%s8838_s4 + $0xc8] ss:$12 sps:$4 sm:$0xff]   ;;  %v6273_v19 = vld [vmem:[%s8838_s4 + $0x20] ss:$12 sps:$4 sm:$0xff]   ;;  %v6243_v22 = vld [vmem:[%s8838_s4 + $0x18] ss:$12 sps:$4 sm:$0xff]  }
  0x25   :  { %539 = vmatprep.subr.bf16.mxu0 %v6152_v21  ;;  %621 = vmatprep.subr.bf16.mxu1 %v6204_v39  ;;  %v6268_v15 = vld [vmem:[%s8838_s4 + $0x8] ss:$12 sps:$4 sm:$0xff]   ;;  %v6240_v20 = vld [vmem:[%s8838_s4] ss:$12 sps:$4 sm:$0xff]   ;;  %v6255_v30 = vld [vmem:[%s8838_s4 + $0x78] ss:$12 sps:$4 sm:$0xff]  }
  0x26   :  { %v6237_v16 = vld [vmem:[%s8858_s29 + $0x228] ss:$16 sps:$4 sm:$0xff]   ;;  %v6252_v28 = vld [vmem:[%s8838_s4 + $0x60] ss:$12 sps:$4 sm:$0xff]   ;;  %v6258_v32 = vld [vmem:[%s8838_s4 + $0x90] ss:$12 sps:$4 sm:$0xff]  }
  0x27   :  { %v6245_v21 = vld [vmem:[%s8838_s4 + $0x1c] ss:$12 sps:$4 sm:$0xff]   ;;  %v6269_v38 = vld [vmem:[%s8838_s4 + $0xd8] ss:$12 sps:$4 sm:$0xff]   ;;  %v6276_v39 = vld [vmem:[%s8838_s4 + $0xf4] ss:$12 sps:$4 sm:$0xff]  }
  0x28   :  { %540 = vmatpush1.bf16.msra.mxu0 %v6154_v23  ;;  %622 = vmatpush1.bf16.msra.mxu1 %v6209_v42  ;;  %v6248_v23 = vld [vmem:[%s8838_s4 + $0x34] ss:$12 sps:$4 sm:$0xff]   ;;  %v6257_v29 = vld [vmem:[%s8838_s4 + $0x7c] ss:$12 sps:$4 sm:$0xff]   ;;  %v6278_v42 = vld [vmem:[%s8838_s4 + $0x38] ss:$12 sps:$4 sm:$0xff]  }
  0x29   :  { %541 = vmatprep.subr.bf16.mxu0 %v6155_v25  ;;  %623 = vmatprep.subr.bf16.mxu1 %v6210_v43  ;;  %v6251_v25 = vld [vmem:[%s8838_s4 + $0x4c] ss:$12 sps:$4 sm:$0xff]   ;;  %v6249_v26 = vld [vmem:[%s8838_s4 + $0x48] ss:$12 sps:$4 sm:$0xff]  }
  0x2a   :  { %v6261_v34 = vld [vmem:[%s8838_s4 + $0xa8] ss:$12 sps:$4 sm:$0xff]   ;;  %v6281_v43 = vld [vmem:[%s8838_s4 + $0x10c] ss:$12 sps:$4 sm:$0xff]  }
  0x2c   :  { %542 = vmatpush1.bf16.msra.mxu0 %v6157_v27  ;;  %624 = vmatpush1.bf16.msra.mxu1 %v6212_v46  ;;  %v6254_v27 = vld [vmem:[%s8838_s4 + $0x64] ss:$12 sps:$4 sm:$0xff]  }
  0x2d   :  { %543 = vmatprep.subr.bf16.mxu0 %v6158_v31  ;;  %625 = vmatprep.subr.bf16.mxu1 %v6213_v47  ;;  %v6260_v31 = vld [vmem:[%s8838_s4 + $0x94] ss:$12 sps:$4 sm:$0xff]   ;;  %v6283_v46 = vld [vmem:[%s8838_s4 + $0x50] ss:$12 sps:$4 sm:$0xff]  }
  0x2e   :  { %v6286_v47 = vld [vmem:[%s8838_s4 + $0x124] ss:$12 sps:$4 sm:$0xff]  }
  0x30   :  { %544 = vmatpush1.bf16.msra.mxu0 %v6160_v33  ;;  %626 = vmatpush1.bf16.msra.mxu1 %v6215_v50  ;;  %v6263_v33 = vld [vmem:[%s8838_s4 + $0xac] ss:$12 sps:$4 sm:$0xff]   ;;  %v6288_v50 = vld [vmem:[%s8838_s4 + $0x68] ss:$12 sps:$4 sm:$0xff]  }
  0x31   :  { %545 = vmatprep.subr.bf16.mxu0 %v6161_v36  ;;  %627 = vmatprep.subr.bf16.mxu1 %v6216_v51  ;;  %v6264_v36 = vld [vmem:[%s8838_s4 + $0xc0] ss:$12 sps:$4 sm:$0xff]   ;;  %v6291_v51 = vld [vmem:[%s8838_s4 + $0x13c] ss:$12 sps:$4 sm:$0xff]  }
  0x34   :  { %546 = vmatpush1.bf16.msra.mxu0 %v6163_v37  ;;  %628 = vmatpush1.bf16.msra.mxu1 %v6218_v54  ;;  %v6271_v37 = vld [vmem:[%s8838_s4 + $0xdc] ss:$12 sps:$4 sm:$0xff]   ;;  %v6293_v54 = vld [vmem:[%s8838_s4 + $0x80] ss:$12 sps:$4 sm:$0xff]  }
  0x35   :  { %547 = vmatprep.subr.bf16.mxu0 %v6167_v40  ;;  %629 = vmatprep.subr.bf16.mxu1 %v6219_v55  ;;  %v6277_v40 = vld [vmem:[%s8838_s4 + $0xf8] ss:$12 sps:$4 sm:$0xff]   ;;  %v6296_v55 = vld [vmem:[%s8838_s4 + $0x154] ss:$12 sps:$4 sm:$0xff]  }
  0x38   :  { %548 = vmatpush1.bf16.msra.mxu0 %v6169_v41  ;;  %630 = vmatpush1.bf16.msra.mxu1 %v6221_v58  ;;  %v6274_v41 = vld [vmem:[%s8838_s4 + $0xf0] ss:$12 sps:$4 sm:$0xff]   ;;  %v6298_v58 = vld [vmem:[%s8838_s4 + $0x98] ss:$12 sps:$4 sm:$0xff]  }
  0x39   :  { %549 = vmatprep.subr.bf16.mxu0 %v6173_v44  ;;  %631 = vmatprep.subr.bf16.mxu1 %v6222_v59  ;;  %v6282_v44 = vld [vmem:[%s8838_s4 + $0x110] ss:$12 sps:$4 sm:$0xff]   ;;  %v6301_v59 = vld [vmem:[%s8838_s4 + $0x16c] ss:$12 sps:$4 sm:$0xff]  }
  0x3c   :  { %550 = vmatpush1.bf16.msra.mxu0 %v6175_v45  ;;  %632 = vmatpush1.bf16.msra.mxu1 %v6224_v63  ;;  %v6279_v45 = vld [vmem:[%s8838_s4 + $0x108] ss:$12 sps:$4 sm:$0xff]   ;;  %v6306_v63 = vld [vmem:[%s8838_s4 + $0x184] ss:$12 sps:$4 sm:$0xff]  }
  0x3d   :  { %551 = vmatprep.subr.bf16.mxu0 %v6179_v48  ;;  %633 = vmatprep.subr.bf16.mxu1 %v6225_v1  ;;  %v6287_v48 = vld [vmem:[%s8838_s4 + $0x128] ss:$12 sps:$4 sm:$0xff]  }
  0x40   :  { %552 = vmatpush1.bf16.msra.mxu0 %v6181_v49  ;;  %634 = vmatpush1.bf16.msra.mxu1 %v6227_v2  ;;  %v6284_v49 = vld [vmem:[%s8838_s4 + $0x120] ss:$12 sps:$4 sm:$0xff]  }
  0x41   :  { %553 = vmatprep.subr.bf16.mxu0 %v6185_v52  ;;  %635 = vmatprep.subr.bf16.mxu1 %v6228_v4  ;;  %v6292_v52 = vld [vmem:[%s8838_s4 + $0x140] ss:$12 sps:$4 sm:$0xff]  }
  0x44   :  { %554 = vmatpush1.bf16.msra.mxu0 %v6187_v53  ;;  %636 = vmatpush1.bf16.msra.mxu1 %v6230_v7  ;;  %v6289_v53 = vld [vmem:[%s8838_s4 + $0x138] ss:$12 sps:$4 sm:$0xff]  }
  0x45   :  { %555 = vmatprep.subr.bf16.mxu0 %v6191_v56  ;;  %637 = vmatprep.subr.bf16.mxu1 %v6234_v9  ;;  %v6297_v56 = vld [vmem:[%s8838_s4 + $0x158] ss:$12 sps:$4 sm:$0xff]  }
  0x48   :  { %556 = vmatpush1.bf16.msra.mxu0 %v6193_v57  ;;  %638 = vmatpush1.bf16.msra.mxu1 %v6236_v10  ;;  %v6294_v57 = vld [vmem:[%s8838_s4 + $0x150] ss:$12 sps:$4 sm:$0xff]  }
  0x49   :  { %566 = vmatprep.subr.bf16.mxu0 %v6200_v60  ;;  %5894 = vmatprep.subr.bf16.mxu1 %v6267_v14  ;;  %v6302_v60 = vld [vmem:[%s8838_s4 + $0x170] ss:$12 sps:$4 sm:$0xff]  }
  0x4b   :  { %558 = vmatmul.mubr.bf16.vlgmr.msra.gmra.mrb[0].mxu0 %v64_v62  ;;  %640 = vmatmul.mubr.bf16.vlgmr.msra.gmra.mrb[0].mxu1 %v64_v62  ;;  %v6303_v62 = vld [vmem:[%s8838_s4 + $0xb0] ss:$12 sps:$4 sm:$0xff]  }
  0x4c   :  { %567 = vmatpush1.bf16.msra.mxu0 %v6198_v61  ;;  %598 = vmatprep.mubr.bf16.mxu0 %v6744_v6  ;;  %v6299_v61 = vld [vmem:[%s8838_s4 + $0x168] ss:$12 sps:$4 sm:$0xff]  }
  0x4d   :  { %568 = vmatprep.subr.bf16.mxu0 %v6208_v0  ;;  %5895 = vmatpush3.bf16.msra.mxu1 %v6268_v15  ;;  %v6307_v0 = vld [vmem:[%s8838_s4 + $0x248] ss:$12 sps:$4 sm:$0xff]  }
  0x4e   :  { %5896 = vmatprep.subr.bf16.mxu1 %v6272_v17 }
  0x50   :  { %569 = vmatpush1.bf16.msra.mxu0 %v6206_v3 }
  0x51   :  { %648 = vmatprep.subr.bf16.mxu0 %v6233_v5  ;;  %5897 = vmatpush3.bf16.msra.mxu1 %v6273_v19 }
  0x52   :  { %5898 = vmatprep.subr.bf16.mxu1 %v6277_v40 }
  0x55   :  { %5899 = vmatpush3.bf16.msra.mxu1 %v6278_v42 }
  0x56   :  { %5900 = vmatprep.subr.bf16.mxu1 %v6282_v44 }
  0x57   :  { %5388 = vmatmul.mubr.msk.bf16.vlgmr.msra.gmra.mrb[0].mxu0 %vm521_vm0, %v66_v12 }
  0x58   :  { %649 = vmatpush1.bf16.msra.mxu0 %v6231_v11  ;;  %680 = vmatprep.mubr.bf16.mxu0 %v6744_v6 }
  0x59   :  { %650 = vmatprep.subr.bf16.mxu0 %v6239_v13  ;;  %5901 = vmatpush3.bf16.msra.mxu1 %v6283_v46 }
  0x5a   :  { %5902 = vmatprep.subr.bf16.mxu1 %v6287_v48 }
  0x5c   :  { %651 = vmatpush1.bf16.msra.mxu0 %v6237_v16 }
  0x5d   :  { %1374 = vmatprep.subr.bf16.mxu0 %v6242_v18  ;;  %5903 = vmatpush3.bf16.msra.mxu1 %v6288_v50 }
  0x5e   :  { %5904 = vmatprep.subr.bf16.mxu1 %v6292_v52 }
  0x5f   :  { %5389 = vmatmul.mubr.msk.bf16.vlgmr.msra.gmra.mrb[4].mxu0 %vm521_vm0, %v66_v12 }
  0x60   :  { %1375 = vmatpush1.bf16.msra.mxu0 %v6240_v20 }
  0x61   :  { %1376 = vmatprep.subr.bf16.mxu0 %v6245_v21  ;;  %5905 = vmatpush3.bf16.msra.mxu1 %v6293_v54 }
  0x62   :  { %5906 = vmatprep.subr.bf16.mxu1 %v6297_v56 }
  0x64   :  { %1377 = vmatpush1.bf16.msra.mxu0 %v6243_v22 }
  0x65   :  { %1378 = vmatprep.subr.bf16.mxu0 %v6248_v23  ;;  %5907 = vmatpush3.bf16.msra.mxu1 %v6298_v58 }
  0x66   :  { %5908 = vmatprep.subr.bf16.mxu1 %v6302_v60 }
  0x68   :  { %1379 = vmatpush1.bf16.msra.mxu0 %v6246_v24 }
  0x69   :  { %1380 = vmatprep.subr.bf16.mxu0 %v6251_v25  ;;  %5909 = vmatpush3.bf16.msra.mxu1 %v6303_v62 }
  0x6a   :  { %5916 = vmatprep.subr.bf16.mxu1 %v6307_v0 }
  0x6c   :  { %1381 = vmatpush1.bf16.msra.mxu0 %v6249_v26 }
  0x6d   :  { %1382 = vmatprep.subr.bf16.mxu0 %v6254_v27 }
  0x70   :  { %1383 = vmatpush1.bf16.msra.mxu0 %v6252_v28 }
  0x71   :  { %1384 = vmatprep.subr.bf16.mxu0 %v6257_v29 }
  0x74   :  { %1385 = vmatpush1.bf16.msra.mxu0 %v6255_v30 }
  0x75   :  { %1386 = vmatprep.subr.bf16.mxu0 %v6260_v31 }
  0x78   :  { %1387 = vmatpush1.bf16.msra.mxu0 %v6258_v32 }
  0x79   :  { %1388 = vmatprep.subr.bf16.mxu0 %v6263_v33 }
  0x7c   :  { %1389 = vmatpush1.bf16.msra.mxu0 %v6261_v34 }
  0x7d   :  { %1390 = vmatprep.subr.bf16.mxu0 %v6266_v35 }
  0x80   :  { %1391 = vmatpush1.bf16.msra.mxu0 %v6264_v36 }
  0x81   :  { %1392 = vmatprep.subr.bf16.mxu0 %v6271_v37 }
  0x84   :  { %1393 = vmatpush1.bf16.msra.mxu0 %v6269_v38 }
  0x85   :  { %1394 = vmatprep.subr.bf16.mxu0 %v6276_v39 }
  0x88   :  { %1395 = vmatpush1.bf16.msra.mxu0 %v6274_v41 }
  0x89   :  { %1396 = vmatprep.subr.bf16.mxu0 %v6281_v43 }
  0x8c   :  { %1397 = vmatpush1.bf16.msra.mxu0 %v6279_v45 }
  0x8d   :  { %1398 = vmatprep.subr.bf16.mxu0 %v6286_v47 }
  0x90   :  { %1399 = vmatpush1.bf16.msra.mxu0 %v6284_v49 }
  0x91   :  { %1400 = vmatprep.subr.bf16.mxu0 %v6291_v51 }
  0x94   :  { %1401 = vmatpush1.bf16.msra.mxu0 %v6289_v53 }
  0x95   :  { %1402 = vmatprep.subr.bf16.mxu0 %v6296_v55 }
  0x98   :  { %1403 = vmatpush1.bf16.msra.mxu0 %v6294_v57 }
  0x99   :  { %1404 = vmatprep.subr.bf16.mxu0 %v6301_v59 }
  0x9c   :  { %1405 = vmatpush1.bf16.msra.mxu0 %v6299_v61 }
  0x9d   :  { %1415 = vmatprep.subr.bf16.mxu0 %v6306_v63 }
  0x9e   :  { %25 = vsyncpa [#allocation5], 0  ;;  %v141_v1 = vlaneseq  ;;  %v139_v4 = vld [vmem:[%s8837_s3] sm:$0xf]  ;;  %v6308_v45 = vld [vmem:[%s8838_s4 + $0x188] ss:$12 sps:$4 sm:$0xff]  }
  0x9f   :  { %v6304_v44 = vld [vmem:[%s8838_s4 + $0x180] ss:$12 sps:$4 sm:$0xff]   ;;  %v6311_v47 = vld [vmem:[%s8838_s4 + $0x19c] ss:$12 sps:$4 sm:$0xff]   ;;  %v6309_v51 = vld [vmem:[%s8838_s4 + $0x198] ss:$12 sps:$4 sm:$0xff]  }
  0xa0   :  { %v7228_v2 = vshrl.u32 %v141_v1, 7  ;;  %v6312_v48 = vld [vmem:[%s8838_s4 + $0x260] ss:$12 sps:$4 sm:$0xff]   ;;  %v6317_v54 = vld [vmem:[%s8838_s4 + $0x278] ss:$12 sps:$4 sm:$0xff]   ;;  %vm6746_vm5 = vmmov 0  }
  0xa1   :  { %v6313_v52 = vld [vmem:[%s8838_s4 + $0x1a0] ss:$12 sps:$4 sm:$0xff]   ;;  %v6314_v58 = vld [vmem:[%s8838_s4 + $0x1b0] ss:$12 sps:$4 sm:$0xff]   ;;  %v6318_v59 = vld [vmem:[%s8838_s4 + $0x1b8] ss:$12 sps:$4 sm:$0xff]  }
  0xa2   :  { %v7231_v3 = vsub.s32 0, %v7228_v2  ;;  %v7237_v5 = vsub.s32 1, %v7228_v2  ;;  %v7241_v8 = vsub.s32 2, %v7228_v2  ;;  %v155_v10 = vsub.s32 3, %v7228_v2  ;;  %v6316_v53 = vld [vmem:[%s8838_s4 + $0x1b4] ss:$12 sps:$4 sm:$0xff]  }
  0xa3   :  { %v6321_v61 = vld [vmem:[%s8838_s4 + $0x1cc] ss:$12 sps:$4 sm:$0xff]   ;;  %v6322_v62 = vld [vmem:[%s8838_s4 + $0x290] ss:$12 sps:$4 sm:$0xff]   ;;  %v6319_v63 = vld [vmem:[%s8838_s4 + $0x1c8] ss:$12 sps:$4 sm:$0xff]  }
  0xa4   :  { %v144_v7 = vrot.slane %v139_v4, %v7231_v3  ;;  %v148_v9 = vrot.slane %v139_v4, %v7237_v5  ;;  %v152_v14 = vrot.slane %v139_v4, %v7241_v8  ;;  %v156_v17 = vrot.slane %v139_v4, %v155_v10  ;;  %v6323_v0 = vld [vmem:[%s8838_s4 + $0x1d0] ss:$12 sps:$4 sm:$0xff]   ;;  %v6327_v4 = vld [vmem:[%s8838_s4 + $0x2a8] ss:$12 sps:$4 sm:$0xff]   ;;  %s8862_s28 = sld [smem:[#allocation10_spill]]  ;;  %s6749_s19 = smov [#allocation2]  }
  0xa5   :  { %v6326_v1 = vld [vmem:[%s8838_s4 + $0x1e4] ss:$12 sps:$4 sm:$0xff]   ;;  %vm1556_vm6 = vcmask 1041408   ;;  %vm1557_vm7 = vcmask 1043458   ;;  %vm1559_vm9 = vcmask 259076   ;;  %vm2346_vm11 = vcmask 1045504  }
  0xa6   :  { %vm1558_vm8 = vmor %vm1557_vm7, %vm1556_vm6  ;;  %vm2342_vm12 = vcmask 97280   ;;  %vm2096_vm13 = vcmask 818176   ;;  %vm2143_vm14 = vcmask 91136   ;;  %vm4920_vm15 = vcmask 1043456   ;;  %s5281_s1 = sshll.u32 %s6749_s19, 4  ;;  %s8781_s1 = int_to_ptr.vmem [resolvable:$true] %s5281_s1 }
  0xa7   :  { %vm7495_vm10 = vmor %vm1559_vm9, %vm1558_vm8 }
 0x11e   :  { %v641_v20 = vpop.f32.mrb[0].mxu1 }
 0x11f   :  { %v643_v22 = vpop.f32.mrb[1].mxu1  ;;  %v642_v24 = vadd.f32 %v641_v20, %v152_v14  ;;  %v6333_v14 = vld [vmem:[%s8838_s4 + $0x200] ss:$12 sps:$4 sm:$0xff]   ;;  %v6338_v20 = vld [vmem:[%s8838_s4 + $0x218] ss:$12 sps:$4 sm:$0xff]  }
 0x120   :  { %v645_v25 = vpop.f32.mrb[2].mxu1  ;;  %v644_v27 = vadd.f32 %v643_v22, %v156_v17  ;;  %v6337_v17 = vld [vmem:[%s8838_s4 + $0x2d8] ss:$12 sps:$4 sm:$0xff]   ;;  %v6342_v22 = vld [vmem:[%s8838_s4 + $0x2f0] ss:$12 sps:$4 sm:$0xff]  }
 0x121   :  { %v646_v28 = vpop.f32.mrb[3].mxu1  ;;  %v6343_v25 = vld [vmem:[%s8838_s4 + $0x230] ss:$12 sps:$4 sm:$0xff]  }
 0x122   :  { %v6344_v28 = vld [vmem:[%s8838_s4 + $0x240] ss:$12 sps:$4 sm:$0xff]  }
 0x12a   :  { %v600_v11 = vpop.f32.mrb[0].mxu0 }
 0x12b   :  { %v6096_v12 = vadd.f32 %v600_v11, %v144_v7  ;;  %v602_v13 = vpop.f32.mrb[1].mxu0  ;;  %v6324_v7 = vld [vmem:[%s8838_s4 + $0x1e0] ss:$12 sps:$4 sm:$0xff]   ;;  %v6331_v11 = vld [vmem:[%s8838_s4 + $0x1fc] ss:$12 sps:$4 sm:$0xff]  }
 0x12c   :  { %v6097_v15 = vadd.f32 %v602_v13, %v148_v9  ;;  %v604_v16 = vpop.f32.mrb[2].mxu0  ;;  %v6328_v9 = vld [vmem:[%s8838_s4 + $0x1e8] ss:$12 sps:$4 sm:$0xff]   ;;  %v6329_v13 = vld [vmem:[%s8838_s4 + $0x1f8] ss:$12 sps:$4 sm:$0xff]  }
 0x12d   :  { %v693_v18 = vmin.f32 %v6096_v12, 0.0  ;;  %v605_v19 = vpop.f32.mrb[3].mxu0  ;;  %vm689_vm1 = vcmp.gt.f32.partialorder %v6096_v12, 0.0  ;;  %v6336_v16 = vld [vmem:[%s8838_s4 + $0x214] ss:$12 sps:$4 sm:$0xff]  }
 0x12e   :  { %v694_v21 = vmin.f32 %v6097_v15, 0.0  ;;  %vm690_vm2 = vcmp.gt.f32.partialorder %v6097_v15, 0.0  ;;  %v6334_v19 = vld [vmem:[%s8838_s4 + $0x210] ss:$12 sps:$4 sm:$0xff]  }
 0x12f   :  { %v697_v23 = vmul.f32 1.442695, %v693_v18 }
 0x130   :  { %v699_v26 = vmul.f32 1.442695, %v694_v21  ;;  %v6341_v21 = vld [vmem:[%s8838_s4 + $0x22c] ss:$12 sps:$4 sm:$0xff]  }
 0x131   :  { %6662 = vpow2.f32 %v697_v23 }
 0x132   :  { %6664 = vpow2.f32 %v699_v26  ;;  %v682_v29 = vpop.f32.mrb[4].mxu0  ;;  %v6346_v26 = vld [vmem:[%s8838_s4 + $0x244] ss:$12 sps:$4 sm:$0xff]  }
 0x133   :  { %v7248_v30 = vadd.f32 %v682_v29, %v642_v24  ;;  %v684_v31 = vpop.f32.mrb[5].mxu0  ;;  %v6339_v24 = vld [vmem:[%s8838_s4 + $0x228] ss:$12 sps:$4 sm:$0xff]  }
 0x134   :  { %v685_v32 = vadd.f32 %v684_v31, %v644_v27  ;;  %v686_v33 = vpop.f32.mrb[6].mxu0  ;;  %v6349_v29 = vld [vmem:[%s8838_s4 + $0x25c] ss:$12 sps:$4 sm:$0xff]   ;;  %v6352_v31 = vld [vmem:[%s8838_s4 + $0x274] ss:$12 sps:$4 sm:$0xff]  }
 0x135   :  { %v687_v34 = vpop.f32.mrb[7].mxu0  ;;  %v695_v49 = vmin.f32 %v7248_v30, 0.0  ;;  %vm691_vm4 = vcmp.gt.f32.partialorder %v7248_v30, 0.0  ;;  %v6355_v33 = vld [vmem:[%s8838_s4 + $0x28c] ss:$12 sps:$4 sm:$0xff]  }
 0x136   :  { %v696_v35 = vmin.f32 %v685_v32, 0.0  ;;  %vm692_vm3 = vcmp.gt.f32.partialorder %v685_v32, 0.0  ;;  %v6353_v34 = vld [vmem:[%s8838_s4 + $0x288] ss:$12 sps:$4 sm:$0xff]  }
 0x137   :  { %v701_v56 = vmul.f32 1.442695, %v695_v49  ;;  %v6374_v49 = vld [vmem:[%s8841_s7 + $0x8] sm:$0xff]  }
 0x138   :  { %v703_v36 = vmul.f32 1.442695, %v696_v35  ;;  %v6358_v35 = vld [vmem:[%s8838_s4 + $0x2a4] ss:$12 sps:$4 sm:$0xff]  }
 0x13a   :  { %6666 = vpow2.f32 %v703_v36  ;;  %v6356_v36 = vld [vmem:[%s8838_s4 + $0x2a0] ss:$12 sps:$4 sm:$0xff]  }
 0x13b   :  { %v6663_v37 = vpop.eup %6662  ;;  %6668 = vpow2.f32 %v701_v56  ;;  %v6382_v56 = vld [vmem:[%s8841_s7 + $0x68] sm:$0xff]  }
 0x13c   :  { %v6665_v38 = vpop.eup %6664  ;;  %v5390_v39 = vadd.f32 -1.0, %v6663_v37  ;;  %v6361_v37 = vld [vmem:[%s8838_s4 + $0x2bc] ss:$12 sps:$4 sm:$0xff]  }
 0x13d   :  { %v5391_v40 = vadd.f32 -1.0, %v6665_v38  ;;  %v6359_v38 = vld [vmem:[%s8838_s4 + $0x2b8] ss:$12 sps:$4 sm:$0xff]  }
 0x13e   :  { %v709_v41 = vsel %vm689_vm1, %v6096_v12, %v5390_v39  ;;  %v6332_v12 = vld [vmem:[%s8838_s4 + $0x2c0] ss:$12 sps:$4 sm:$0xff]  }
 0x13f   :  { %v710_v42 = vsel %vm690_vm2, %v6097_v15, %v5391_v40  ;;  %v713_v46 = vpack.c.bf16 %v709_v41, %v709_v41  ;;  %v6364_v39 = vld [vmem:[%s8838_s4 + $0x2d4] ss:$12 sps:$4 sm:$0xff]   ;;  %v6362_v40 = vld [vmem:[%s8838_s4 + $0x2d0] ss:$12 sps:$4 sm:$0xff]   ;;  %v6367_v41 = vld [vmem:[%s8838_s4 + $0x2ec] ss:$12 sps:$4 sm:$0xff]  }
 0x140   :  { %v714_v43 = vpack.c.bf16 %v710_v42, %v710_v42  ;;  %v6365_v42 = vld [vmem:[%s8838_s4 + $0x2e8] ss:$12 sps:$4 sm:$0xff]  }
 0x142   :  { %1406 = vmatprep.mubr.bf16.mxu0 %v714_v43  ;;  %1488 = vmatprep.mubr.bf16.mxu1 %v714_v43  ;;  %v6368_v43 = vld [vmem:[%s8841_s7 + $0x80] sm:$0xff]  }
 0x143   :  { %1407 = vmatmul.mubr.bf16.vlgmr.msra.gmra.mrb[8].mxu0 %v713_v46  ;;  %1489 = vmatmul.mubr.bf16.vlgmr.msra.gmra.mrb[4].mxu1 %v713_v46  ;;  %v6370_v46 = vld [vmem:[%s8841_s7 + $0x40] sm:$0xff]  }
 0x144   :  { %v6667_v50 = vpop.eup %6666  ;;  %1416 = vmatpush1.bf16.msra.mxu0 %v6304_v44  ;;  %5917 = vmatpush3.bf16.msra.mxu1 %v6308_v45  ;;  %v6745_v44 = vmov 0.0   ;;  %v6369_v45 = vld [vmem:[%s8841_s7 + $0x88] sm:$0xff]  }
 0x145   :  { %1417 = vmatprep.subr.bf16.mxu0 %v6311_v47  ;;  %5918 = vmatprep.subr.bf16.mxu1 %v6312_v48  ;;  %v5393_v55 = vadd.f32 -1.0, %v6667_v50  ;;  %v6669_v15 = vpop.eup %6668  ;;  %v6371_v47 = vld [vmem:[%s8841_s7] sm:$0xff]   ;;  %v6373_v48 = vld [vmem:[%s8841_s7 + $0x48] sm:$0xff]   ;;  %v6376_v50 = vld [vmem:[%s8841_s7 + $0x50] sm:$0xff]  }
 0x146   :  { %v5392_v18 = vadd.f32 -1.0, %v6669_v15 }
 0x147   :  { %v712_v57 = vsel %vm692_vm3, %v685_v32, %v5393_v55  ;;  %v6350_v32 = vld [vmem:[%s8838_s4 + $0x270] ss:$12 sps:$4 sm:$0xff]   ;;  %v6381_v55 = vld [vmem:[%s8841_s7 + $0x20] sm:$0xff]  }
 0x148   :  { %1418 = vmatpush1.bf16.msra.mxu0 %v6309_v51  ;;  %5919 = vmatpush3.bf16.msra.mxu1 %v6313_v52  ;;  %v716_v60 = vpack.c.bf16 %v712_v57, %v712_v57  ;;  %v711_v23 = vsel %vm691_vm4, %v7248_v30, %v5392_v18  ;;  %v6347_v30 = vld [vmem:[%s8838_s4 + $0x258] ss:$12 sps:$4 sm:$0xff]   ;;  %v6377_v51 = vld [vmem:[%s8841_s7 + $0x10] sm:$0xff]   ;;  %v6383_v57 = vld [vmem:[%s8841_s7 + $0x28] sm:$0xff]  }
 0x149   :  { %1419 = vmatprep.subr.bf16.mxu0 %v6316_v53  ;;  %5920 = vmatprep.subr.bf16.mxu1 %v6317_v54  ;;  %v715_v27 = vpack.c.bf16 %v711_v23, %v711_v23  ;;  %v6378_v52 = vld [vmem:[%s8841_s7 + $0x58] sm:$0xff]   ;;  %v6380_v54 = vld [vmem:[%s8841_s7 + $0x60] sm:$0xff]   ;;  %v6747_v23 = vmov 1983009808  }
 0x14a   :  { %1528 = vmatprep.mubr.bf16.mxu1 %v716_v60  ;;  %1447 = vmatprep.mubr.bf16.mxu0 %v716_v60  ;;  %v6379_v53 = vld [vmem:[%s8841_s7 + $0x18] sm:$0xff]  }
 0x14b   :  { %v6386_v60 = vld [vmem:[%s8841_s7 + $0x78] sm:$0xff]  }
 0x14c   :  { %1420 = vmatpush1.bf16.msra.mxu0 %v6314_v58  ;;  %5921 = vmatpush3.bf16.msra.mxu1 %v6318_v59  ;;  %v6384_v58 = vld [vmem:[%s8841_s7 + $0x70] sm:$0xff]  }
 0x14d   :  { %1421 = vmatprep.subr.bf16.mxu0 %v6321_v61  ;;  %5922 = vmatprep.subr.bf16.mxu1 %v6322_v62  ;;  %v6385_v59 = vld [vmem:[%s8841_s7 + $0x30] sm:$0xff]   ;;  %v6387_v61 = vld [vmem:[%s8841_s7 + $0x38] sm:$0xff]   ;;  %v6388_v62 = vld [vmem:[%s8840_s6 + $0x40] sm:$0xff]  }
 0x150   :  { %1422 = vmatpush1.bf16.msra.mxu0 %v6319_v63  ;;  %5923 = vmatpush3.bf16.msra.mxu1 %v6323_v0 }
 0x151   :  { %1423 = vmatprep.subr.bf16.mxu0 %v6326_v1  ;;  %5924 = vmatprep.subr.bf16.mxu1 %v6327_v4 }
 0x154   :  { %1424 = vmatpush1.bf16.msra.mxu0 %v6324_v7  ;;  %5925 = vmatpush3.bf16.msra.mxu1 %v6328_v9  ;;  %v845_v9 = vld [vmem:[%s8839_s5] sm:$0x7] }
 0x155   :  { %1425 = vmatprep.subr.bf16.mxu0 %v6331_v11  ;;  %5926 = vmatprep.subr.bf16.mxu1 %v6332_v12  ;;  %v858_v11 = vrot.slane %v845_v9, %v7241_v8 }
 0x158   :  { %1426 = vmatpush1.bf16.msra.mxu0 %v6329_v13  ;;  %5927 = vmatpush3.bf16.msra.mxu1 %v6333_v14 }
 0x159   :  { %1427 = vmatprep.subr.bf16.mxu0 %v6336_v16  ;;  %5928 = vmatprep.subr.bf16.mxu1 %v6337_v17 }
 0x15c   :  { %1428 = vmatpush1.bf16.msra.mxu0 %v6334_v19  ;;  %5929 = vmatpush3.bf16.msra.mxu1 %v6338_v20  ;;  %v6372_v20 = vld [vmem:[%s8840_s6 + $0x80] sm:$0xff]  }
 0x15d   :  { %1429 = vmatprep.subr.bf16.mxu0 %v6341_v21  ;;  %5930 = vmatprep.subr.bf16.mxu1 %v6342_v22  ;;  %v6375_v22 = vld [vmem:[%s8840_s6 + $0x88] sm:$0xff]  }
 0x160   :  { %1430 = vmatpush1.bf16.msra.mxu0 %v6339_v24  ;;  %5931 = vmatpush3.bf16.msra.mxu1 %v6343_v25  ;;  %v1541_v24 = vunpack.c.l.s4 %v6747_v23  ;;  %v850_v25 = vrot.slane %v845_v9, %v7231_v3 }
 0x161   :  { %1431 = vmatprep.subr.bf16.mxu0 %v6346_v26  ;;  %5938 = vmatprep.subr.bf16.mxu1 %v6370_v46 }
 0x162   :  { %v1542_v26 = vunpack.c.0.s8 %v1541_v24  ;;  %v2284_v24 = vld [vmem:[%s8845_s11 + $0x400] sm:$0xff] }
 0x163   :  { %1529 = vmatmul.mubr.bf16.vlgmr.msra.gmra.mrb[8].mxu1 %v715_v27 }
 0x164   :  { %1432 = vmatpush1.bf16.msra.mxu0 %v6344_v28  ;;  %5939 = vmatpush3.bf16.msra.mxu1 %v6371_v47  ;;  %v6391_v47 = vld [vmem:[%s8840_s6 + $0x8] sm:$0xff]  }
 0x165   :  { %1433 = vmatprep.subr.bf16.mxu0 %v6349_v29  ;;  %5940 = vmatprep.subr.bf16.mxu1 %v6373_v48  ;;  %v6392_v48 = vld [vmem:[%s8840_s6 + $0x50] sm:$0xff]  }
 0x168   :  { %1434 = vmatpush1.bf16.msra.mxu0 %v6347_v30  ;;  %5941 = vmatpush3.bf16.msra.mxu1 %v6374_v49  ;;  %v6393_v49 = vld [vmem:[%s8840_s6 + $0x10] sm:$0xff]  }
 0x169   :  { %1435 = vmatprep.subr.bf16.mxu0 %v6352_v31  ;;  %5942 = vmatprep.subr.bf16.mxu1 %v6376_v50  ;;  %v7478_v31 = vsub.s32 %v1542_v26, %v7228_v2  ;;  %v6394_v50 = vld [vmem:[%s8840_s6 + $0x58] sm:$0xff]  }
 0x16c   :  { %1436 = vmatpush1.bf16.msra.mxu0 %v6350_v32  ;;  %5943 = vmatpush3.bf16.msra.mxu1 %v6377_v51  ;;  %v6395_v51 = vld [vmem:[%s8840_s6 + $0x18] sm:$0xff]  }
 0x16d   :  { %1437 = vmatprep.subr.bf16.mxu0 %v6355_v33  ;;  %5944 = vmatprep.subr.bf16.mxu1 %v6378_v52  ;;  %v6396_v52 = vld [vmem:[%s8840_s6 + $0x60] sm:$0xff]  }
 0x170   :  { %1438 = vmatpush1.bf16.msra.mxu0 %v6353_v34  ;;  %5945 = vmatpush3.bf16.msra.mxu1 %v6379_v53  ;;  %v6397_v53 = vld [vmem:[%s8840_s6 + $0x20] sm:$0xff]  }
 0x171   :  { %1439 = vmatprep.subr.bf16.mxu0 %v6358_v35  ;;  %5946 = vmatprep.subr.bf16.mxu1 %v6380_v54  ;;  %v6398_v54 = vld [vmem:[%s8840_s6 + $0x68] sm:$0xff]  }
 0x174   :  { %1440 = vmatpush1.bf16.msra.mxu0 %v6356_v36  ;;  %5947 = vmatpush3.bf16.msra.mxu1 %v6381_v55  ;;  %v6399_v55 = vld [vmem:[%s8840_s6 + $0x28] sm:$0xff]  }
 0x175   :  { %1441 = vmatprep.subr.bf16.mxu0 %v6361_v37  ;;  %5948 = vmatprep.subr.bf16.mxu1 %v6382_v56  ;;  %v6400_v56 = vld [vmem:[%s8840_s6 + $0x70] sm:$0xff]  }
 0x178   :  { %1442 = vmatpush1.bf16.msra.mxu0 %v6359_v38  ;;  %5949 = vmatpush3.bf16.msra.mxu1 %v6383_v57  ;;  %v6401_v57 = vld [vmem:[%s8840_s6 + $0x30] sm:$0xff]  }
 0x179   :  { %1443 = vmatprep.subr.bf16.mxu0 %v6364_v39  ;;  %5950 = vmatprep.subr.bf16.mxu1 %v6384_v58  ;;  %v6402_v58 = vld [vmem:[%s8840_s6 + $0x78] sm:$0xff]  }
 0x17c   :  { %1444 = vmatpush1.bf16.msra.mxu0 %v6362_v40  ;;  %5951 = vmatpush3.bf16.msra.mxu1 %v6385_v59  ;;  %v2302_v59 = vld [vmem:[%s8846_s12] sm:$0xff] }
 0x17d   :  { %1445 = vmatprep.subr.bf16.mxu0 %v6367_v41  ;;  %5952 = vmatprep.subr.bf16.mxu1 %v6386_v60  ;;  %v6389_v41 = vld [vmem:[%s8840_s6] sm:$0xff]  }
 0x17e   :  { %v2306_v60 = vld [vmem:[%s8846_s12 + $0x20] sm:$0x33] }
 0x180   :  { %1446 = vmatpush1.bf16.msra.mxu0 %v6365_v42  ;;  %5953 = vmatpush3.bf16.msra.mxu1 %v6387_v61  ;;  %v6403_v61 = vld [vmem:[%s8840_s6 + $0x38] sm:$0xff]  }
 0x181   :  { %6062 = vmatprep.subr.bf16.mxu0 %v6745_v44  ;;  %5963 = vmatprep.subr.bf16.mxu1 %v6388_v62  ;;  %v5539_v62 = vcombine.high %v2302_v59, %v2306_v60 }
 0x183   :  { %1448 = vmatmul.mubr.bf16.vlgmr.msra.gmra.mrb[8].mxu0 %v715_v27  ;;  %v854_v27 = vrot.slane %v845_v9, %v7237_v5  ;;  %v2300_v9 = vld [vmem:[%s8862_s28] sm:$0x3] }
 0x184   :  { %6063 = vmatpush3.bf16.msra.mxu0 %v6368_v43  ;;  %6066 = vmatprep.mubr.msk.bf16.mxu0 %vm6746_vm5, %v6745_v44  ;;  %v6390_v43 = vld [vmem:[%s8840_s6 + $0x48] sm:$0xff]  }
 0x185   :  { %6064 = vmatprep.subr.bf16.mxu0 %v6745_v44 }
 0x188   :  { %6065 = vmatpush3.bf16.msra.mxu0 %v6369_v45 }
 0x189   :  { %6070 = vmatprep.subr.bf16.mxu0 %v6745_v44 }
 0x216   :  { %v5910_v63 = vpop.f32.mrb[4].mxu1 }
 0x217   :  { %v5911_v0 = vpop.f32.mrb[5].mxu1 }
 0x218   :  { %v5912_v1 = vadd.f32 %v5911_v0, %v5910_v63  ;;  %v5913_v4 = vpop.f32.mrb[6].mxu1  ;;  %v5538_v63 = vcombine.low %v2302_v59, %v2306_v60  ;;  %v2303_v0 = vld [vmem:[%s8846_s12 + $0x8] sm:$0xff] }
 0x219   :  { %v5914_v7 = vpop.f32.mrb[7].mxu1 }
 0x21a   :  { %v1491_v14 = vadd.f32 %v5912_v1, %v858_v11  ;;  %v2307_v1 = vld [vmem:[%s8846_s12 + $0x28] sm:$0x33]  ;;  %v2348_v4 = vsel %vm2346_vm11, %v5538_v63, 0  ;;  %v6404_v63 = vld [vmem:[%s8843_s9] sm:$0xff]  }
 0x21b   :  { %v5541_v7 = vcombine.high %v2303_v0, %v2307_v1  ;;  %v5540_v11 = vcombine.low %v2303_v0, %v2307_v1  ;;  %v6405_v1 = vld [vmem:[%s8843_s9 + $0x8] sm:$0xff]  }
 0x236   :  { %v5932_v12 = vpop.f32.mrb[8].mxu1 }
 0x237   :  { %v5933_v13 = vpop.f32.mrb[9].mxu1 }
 0x238   :  { %v5934_v15 = vadd.f32 %v5933_v13, %v5932_v12  ;;  %v5935_v16 = vpop.f32.mrb[10].mxu1  ;;  %v2304_v12 = vld [vmem:[%s8846_s12 + $0x10] sm:$0xff] }
 0x239   :  { %v5936_v17 = vpop.f32.mrb[11].mxu1  ;;  %v2308_v13 = vld [vmem:[%s8846_s12 + $0x30] sm:$0x33] }
 0x23a   :  { %v1531_v18 = vadd.f32 %v5934_v15, %v1491_v14  ;;  %v2301_v14 = vpack.c.bf16 %v2300_v9, %v2300_v9  ;;  %v2354_v15 = vsel %vm2346_vm11, %v5540_v11, 0  ;;  %v5543_v16 = vcombine.high %v2304_v12, %v2308_v13  ;;  %v2217_v9 = vld [vmem:[%s8845_s11 + $0x1e8] sm:$0xff] }
 0x23b   :  { %v5542_v17 = vcombine.low %v2304_v12, %v2308_v13  ;;  %v6406_v12 = vld [vmem:[%s8843_s9 + $0x10] sm:$0xff]  }
 0x23c   :  { %v7457_v19 = vpack.c.bf16 %v1531_v18, %v1531_v18  ;;  %v1553_v38 = vrot.slane %v1531_v18, %v7478_v31  ;;  %v2305_v18 = vld [vmem:[%s8846_s12 + $0x18] sm:$0xff] }
 0x23e   :  { %v1642_v21 = vrot.slane %v7457_v19, 1 }
 0x240   :  { %6067 = vmatmul.mubr.msk.bf16.vlgmr.msra.gmra.mrb[12].mxu0 %vm521_vm0, %v1642_v21  ;;  %v2360_v21 = vsel %vm2346_vm11, %v5542_v17, 0  ;;  %v6407_v17 = vld [vmem:[%s8843_s9 + $0x18] sm:$0xff]  }
 0x241   :  { %6071 = vmatpush3.bf16.msra.mxu0 %v6372_v20  ;;  %6074 = vmatprep.mubr.msk.bf16.mxu0 %vm6746_vm5, %v6745_v44  ;;  %v2309_v20 = vld [vmem:[%s8846_s12 + $0x38] sm:$0x33] }
 0x242   :  { %6072 = vmatprep.subr.bf16.mxu0 %v6745_v44  ;;  %v5544_v23 = vcombine.low %v2305_v18, %v2309_v20 }
 0x244   :  { %v2366_v26 = vsel %vm2346_vm11, %v5544_v23, 0 }
 0x245   :  { %6073 = vmatpush3.bf16.msra.mxu0 %v6375_v22  ;;  %v5545_v22 = vcombine.high %v2305_v18, %v2309_v20  ;;  %v2229_v20 = vld [vmem:[%s8845_s11 + $0x248] sm:$0xff] }
 0x246   :  { %6078 = vmatprep.subr.bf16.mxu0 %v6745_v44 }
 0x248   :  { %6075 = vmatmul.mubr.msk.bf16.vlgmr.msra.gmra.mrb[16].mxu0 %vm521_vm0, %v7457_v19 }
 0x249   :  { %6092 = vmatprep.mubr.msk.bf16.mxu0 %vm6746_vm5, %v6745_v44  ;;  %6079 = vmatpush3.bf16.msra.mxu0 %v6404_v63 }
 0x24a   :  { %6080 = vmatprep.subr.bf16.mxu0 %v6745_v44 }
 0x24d   :  { %6081 = vmatpush3.bf16.msra.mxu0 %v6405_v1  ;;  %v2298_v1 = vld [vmem:[%s8845_s11 + $0x470] sm:$0xff] }
 0x24e   :  { %6082 = vmatprep.subr.bf16.mxu0 %v6745_v44 }
 0x251   :  { %6083 = vmatpush3.bf16.msra.mxu0 %v6406_v12 }
 0x252   :  { %6084 = vmatprep.subr.bf16.mxu0 %v6745_v44 }
 0x255   :  { %6085 = vmatpush3.bf16.msra.mxu0 %v6407_v17 }
 0x256   :  { %v1449_v28 = vpop.f32.mrb[8].mxu0  ;;  %6086 = vmatprep.subr.bf16.mxu0 %v6745_v44 }
 0x257   :  { %v6102_v29 = vadd.f32 %v1449_v28, %v850_v25  ;;  %v1451_v30 = vpop.f32.mrb[9].mxu0  ;;  %v2288_v25 = vld [vmem:[%s8845_s11 + $0x420] sm:$0xff] }
 0x258   :  { %v6103_v32 = vadd.f32 %v1451_v30, %v854_v27  ;;  %v1453_v33 = vpop.f32.mrb[10].mxu0  ;;  %v5683_v27 = vcombine.high %v2284_v24, %v2288_v25  ;;  %v2292_v28 = vld [vmem:[%s8845_s11 + $0x440] sm:$0xff]  ;;  %v5682_v30 = vcombine.low %v2284_v24, %v2288_v25  ;;  %v2237_v24 = vld [vmem:[%s8845_s11 + $0x288] sm:$0xff] }
 0x259   :  { %v7480_v34 = vpack.c.bf16 %v6102_v29, %v6102_v29  ;;  %v1454_v35 = vpop.f32.mrb[11].mxu0  ;;  %v2157_v33 = vld [vmem:[%s8845_s11 + $0x8] sm:$0xff] }
 0x25a   :  { %v1539_v36 = vcombine.low %v6102_v29, %v6103_v32  ;;  %v7482_v37 = vpack.c.bf16 %v6103_v32, %v6103_v32  ;;  %v2296_v29 = vld [vmem:[%s8845_s11 + $0x460] sm:$0xff]  ;;  %v2161_v35 = vld [vmem:[%s8845_s11 + $0x28] sm:$0xff] }
 0x25b   :  { %v1640_v42 = vrot.slane %v7480_v34, 1  ;;  %v5691_v32 = vcombine.high %v2292_v28, %v2296_v29  ;;  %v2241_v25 = vld [vmem:[%s8845_s11 + $0x2a8] sm:$0xff] }
 0x25c   :  { %v1546_v39 = vrot.slane %v1539_v36, %v7478_v31  ;;  %v1641_v40 = vrot.slane %v7482_v37, 1  ;;  %v5690_v36 = vcombine.low %v2292_v28, %v2296_v29  ;;  %v2245_v28 = vld [vmem:[%s8845_s11 + $0x2c8] sm:$0xff] }
 0x25d   :  { %v2249_v29 = vld [vmem:[%s8845_s11 + $0x2e8] sm:$0xff] }
 0x25e   :  { %1788 = vmatprep.mubr.bf16.mxu1 %v1641_v40  ;;  %v1554_v46 = vcombine.high %v1546_v39, %v1553_v38  ;;  %v5557_v38 = vcombine.high %v2157_v33, %v2161_v35  ;;  %v2165_v39 = vld [vmem:[%s8845_s11 + $0x48] sm:$0xff] }
 0x25f   :  { %1789 = vmatmul.mubr.bf16.vlgmr.msra.gmra.mrb[12].mxu1 %v1640_v42  ;;  %v2169_v40 = vld [vmem:[%s8845_s11 + $0x68] sm:$0xff] }
 0x260   :  { %5964 = vmatpush3.bf16.msra.mxu1 %v6389_v41  ;;  %1979 = vmatprep.mubr.bf16.mxu1 %v7482_v37  ;;  %1561 = vst.msk [vmem:[#allocation4] sm:$0x3f] %vm7495_vm10, %v1554_v46  ;;  %v5556_v41 = vcombine.low %v2157_v33, %v2161_v35  ;;  %v5565_v42 = vcombine.high %v2165_v39, %v2169_v40  ;;  %v2177_v46 = vld [vmem:[%s8845_s11 + $0xa8] sm:$0xff] }
 0x261   :  { %5965 = vmatprep.subr.bf16.mxu1 %v6390_v43  ;;  %v2173_v43 = vld [vmem:[%s8845_s11 + $0x88] sm:$0xff] }
 0x262   :  { %v2253_v33 = vld [vmem:[%s8845_s11 + $0x308] sm:$0xff] }
 0x263   :  { %v2257_v35 = vld [vmem:[%s8845_s11 + $0x328] sm:$0xff] }
 0x264   :  { %5966 = vmatpush3.bf16.msra.mxu1 %v6391_v47  ;;  %v5564_v47 = vcombine.low %v2165_v39, %v2169_v40  ;;  %v2261_v39 = vld [vmem:[%s8845_s11 + $0x348] sm:$0xff] }
 0x265   :  { %5967 = vmatprep.subr.bf16.mxu1 %v6392_v48  ;;  %v5573_v48 = vcombine.high %v2173_v43, %v2177_v46  ;;  %v2265_v40 = vld [vmem:[%s8845_s11 + $0x368] sm:$0xff] }
 0x268   :  { %5968 = vmatpush3.bf16.msra.mxu1 %v6393_v49  ;;  %v2181_v49 = vld [vmem:[%s8845_s11 + $0xc8] sm:$0xff] }
 0x269   :  { %5969 = vmatprep.subr.bf16.mxu1 %v6394_v50  ;;  %v2185_v50 = vld [vmem:[%s8845_s11 + $0xe8] sm:$0xff] }
 0x26c   :  { %5970 = vmatpush3.bf16.msra.mxu1 %v6395_v51  ;;  %v5572_v51 = vcombine.low %v2173_v43, %v2177_v46  ;;  %v5661_v43 = vcombine.high %v2261_v39, %v2265_v40  ;;  %v2269_v46 = vld [vmem:[%s8845_s11 + $0x388] sm:$0xff] }
 0x26d   :  { %5971 = vmatprep.subr.bf16.mxu1 %v6396_v52  ;;  %v5581_v52 = vcombine.high %v2181_v49, %v2185_v50 }
 0x270   :  { %5972 = vmatpush3.bf16.msra.mxu1 %v6397_v53  ;;  %v2189_v53 = vld [vmem:[%s8845_s11 + $0x108] sm:$0xff] }
 0x271   :  { %5973 = vmatprep.subr.bf16.mxu1 %v6398_v54  ;;  %v2193_v54 = vld [vmem:[%s8845_s11 + $0x128] sm:$0xff] }
 0x272   :  { %v5588_v59 = vcombine.low %v2189_v53, %v2193_v54 }
 0x274   :  { %5974 = vmatpush3.bf16.msra.mxu1 %v6399_v55  ;;  %v5580_v55 = vcombine.low %v2181_v49, %v2185_v50  ;;  %v5660_v49 = vcombine.low %v2261_v39, %v2265_v40  ;;  %v2211_v39 = vld [vmem:[%s8845_s11 + $0x1b8] sm:$0xff] }
 0x275   :  { %5975 = vmatprep.subr.bf16.mxu1 %v6400_v56  ;;  %v5589_v56 = vcombine.high %v2189_v53, %v2193_v54  ;;  %v6410_v53 = vld [vmem:[%s8843_s9 + $0x30] ss:$0 sps:$4 sm:$0x33]  }
 0x278   :  { %5976 = vmatpush3.bf16.msra.mxu1 %v6401_v57  ;;  %v2197_v57 = vld [vmem:[%s8845_s11 + $0x148] sm:$0xff] }
 0x279   :  { %5977 = vmatprep.subr.bf16.mxu1 %v6402_v58  ;;  %v2201_v58 = vld [vmem:[%s8845_s11 + $0x168] sm:$0xff] }
 0x27a   :  { %v5597_v60 = vcombine.high %v2197_v57, %v2201_v58  ;;  %v5596_v0 = vcombine.low %v2197_v57, %v2201_v58  ;;  %v7728_v57 = vld [vmem:[%s8845_s11] sm:$0xff]  ;;  %v2286_v58 = vld [vmem:[%s8845_s11 + $0x410] sm:$0xff] }
 0x27c   :  { %5978 = vmatpush3.bf16.msra.mxu1 %v6403_v61  ;;  %v2205_v61 = vld [vmem:[%s8845_s11 + $0x188] sm:$0xff] }
 0x27d   :  { %5546 = vmatprep.subr.msk.bf16.mxu1 %vm2346_vm11, %v5539_v62  ;;  %v2209_v62 = vld [vmem:[%s8845_s11 + $0x1a8] sm:$0xff] }
 0x27e   :  { %v5604_v11 = vcombine.low %v2205_v61, %v2209_v62 }
 0x27f   :  { %1980 = vmatmul.mubr.bf16.vlgmr.msra.gmra.mrb[16].mxu1 %v7480_v34 }
 0x280   :  { %2372 = vmatpush1.bf16.msra.mxu1 %v2348_v4  ;;  %2403 = vmatprep.mubr.bf16.mxu1 %v6744_v6  ;;  %v5605_v4 = vcombine.high %v2205_v61, %v2209_v62 }
 0x281   :  { %5548 = vmatprep.subr.msk.bf16.mxu1 %vm2346_vm11, %v5541_v7  ;;  %v2213_v7 = vld [vmem:[%s8845_s11 + $0x1c8] sm:$0xff] }
 0x282   :  { %v5613_v13 = vcombine.high %v2213_v7, %v2217_v9 }
 0x287   :  { %5547 = vmatmul.mubr.msk.bf16.vlgmr.msra.gmra.mrb[20].mxu1 %vm2342_vm12, %v2301_v14 }
 0x288   :  { %2413 = vmatpush1.bf16.msra.mxu1 %v2354_v15  ;;  %2444 = vmatprep.mubr.bf16.mxu1 %v6744_v6  ;;  %v2225_v15 = vld [vmem:[%s8845_s11 + $0x228] sm:$0xff] }
 0x289   :  { %5550 = vmatprep.subr.msk.bf16.mxu1 %vm2346_vm11, %v5543_v16  ;;  %v5612_v16 = vcombine.low %v2213_v7, %v2217_v9  ;;  %v2159_v9 = vld [vmem:[%s8845_s11 + $0x18] sm:$0xff] }
 0x28f   :  { %5549 = vmatmul.mubr.msk.bf16.vlgmr.msra.gmra.mrb[24].mxu1 %vm2342_vm12, %v2301_v14 }
 0x290   :  { %2454 = vmatpush1.bf16.msra.mxu1 %v2360_v21  ;;  %2485 = vmatprep.mubr.bf16.mxu1 %v6744_v6  ;;  %v2233_v21 = vld [vmem:[%s8845_s11 + $0x268] sm:$0xff] }
 0x291   :  { %5552 = vmatprep.subr.msk.bf16.mxu1 %vm2346_vm11, %v5545_v22  ;;  %v5629_v23 = vcombine.high %v2229_v20, %v2233_v21 }
 0x297   :  { %5551 = vmatmul.mubr.msk.bf16.vlgmr.msra.gmra.mrb[28].mxu1 %vm2342_vm12, %v2301_v14 }
 0x298   :  { %2495 = vmatpush1.bf16.msra.mxu1 %v2366_v26  ;;  %2526 = vmatprep.mubr.bf16.mxu1 %v6744_v6  ;;  %v5628_v26 = vcombine.low %v2229_v20, %v2233_v21  ;;  %v2179_v20 = vld [vmem:[%s8845_s11 + $0xb8] sm:$0xff] }
 0x299   :  { %3296 = vmatprep.subr.bf16.mxu1 %v5683_v27  ;;  %v5637_v27 = vcombine.high %v2237_v24, %v2241_v25 }
 0x29f   :  { %5553 = vmatmul.mubr.msk.bf16.vlgmr.msra.gmra.mrb[32].mxu1 %vm2342_vm12, %v2301_v14  ;;  %v2221_v14 = vld [vmem:[%s8845_s11 + $0x208] sm:$0xff] }
 0x2a0   :  { %3297 = vmatpush1.bf16.msra.mxu1 %v5682_v30  ;;  %3328 = vmatprep.mubr.bf16.mxu1 %v6744_v6  ;;  %v5621_v18 = vcombine.high %v2221_v14, %v2225_v15  ;;  %v5620_v22 = vcombine.low %v2221_v14, %v2225_v15  ;;  %v5636_v30 = vcombine.low %v2237_v24, %v2241_v25  ;;  %v2167_v14 = vld [vmem:[%s8845_s11 + $0x58] sm:$0xff] }
 0x2a1   :  { %3298 = vmatprep.subr.bf16.mxu1 %v5691_v32  ;;  %v5645_v32 = vcombine.high %v2245_v28, %v2249_v29  ;;  %v2171_v15 = vld [vmem:[%s8845_s11 + $0x78] sm:$0xff] }
 0x2a2   :  { %v5569_v17 = vcombine.high %v2167_v14, %v2171_v15  ;;  %v5568_v21 = vcombine.low %v2167_v14, %v2171_v15  ;;  %v2187_v24 = vld [vmem:[%s8845_s11 + $0xf8] sm:$0xff] }
 0x2a4   :  { %3299 = vmatpush1.bf16.msra.mxu1 %v5690_v36  ;;  %v5644_v36 = vcombine.low %v2245_v28, %v2249_v29  ;;  %v2195_v28 = vld [vmem:[%s8845_s11 + $0x138] sm:$0xff] }
 0x2a5   :  { %3337 = vmatprep.subr.bf16.mxu1 %v5557_v38  ;;  %v5653_v38 = vcombine.high %v2253_v33, %v2257_v35 }
 0x2a7   :  { %5698 = vmatmul.mubr.msk.bf16.vlgmr.msra.gmra.mrb[36].mxu1 %vm521_vm0, %v7457_v19 }
 0x2a8   :  { %3338 = vmatpush1.bf16.msra.mxu1 %v5556_v41  ;;  %3369 = vmatprep.mubr.bf16.mxu1 %v7482_v37  ;;  %v6408_v41 = vld [vmem:[%s8843_s9 + $0x20] sm:$0xff]  }
 0x2a9   :  { %3339 = vmatprep.subr.bf16.mxu1 %v5565_v42  ;;  %v5652_v42 = vcombine.low %v2253_v33, %v2257_v35  ;;  %6087 = vmatpush3.bf16.msra.mxu0 %v6408_v41  ;;  %v2203_v33 = vld [vmem:[%s8845_s11 + $0x178] sm:$0xff] }
 0x2aa   :  { %6088 = vmatprep.subr.bf16.mxu0 %v6745_v44 }
 0x2ac   :  { %3340 = vmatpush1.bf16.msra.mxu1 %v5564_v47  ;;  %v2273_v47 = vld [vmem:[%s8845_s11 + $0x3a8] sm:$0xff] }
 0x2ad   :  { %3341 = vmatprep.subr.bf16.mxu1 %v5573_v48  ;;  %v6409_v48 = vld [vmem:[%s8843_s9 + $0x28] sm:$0xff]   ;;  %v5669_v50 = vcombine.high %v2269_v46, %v2273_v47  ;;  %v5668_v54 = vcombine.low %v2269_v46, %v2273_v47 }
 0x2ae   :  { %6089 = vmatpush3.bf16.msra.mxu0 %v6409_v48  ;;  %v2223_v48 = vld [vmem:[%s8845_s11 + $0x218] sm:$0xff] }
 0x2af   :  { %6090 = vmatprep.subr.bf16.mxu0 %v6745_v44  ;;  %v7733_v44 = vld [vmem:[%s8845_s11 + $0x20] sm:$0xff] }
 0x2b0   :  { %3342 = vmatpush1.bf16.msra.mxu1 %v5572_v51  ;;  %v2277_v51 = vld [vmem:[%s8845_s11 + $0x3c8] sm:$0xff]  ;;  %v5555_v61 = vcombine.high %v7728_v57, %v7733_v44 }
 0x2b1   :  { %3343 = vmatprep.subr.bf16.mxu1 %v5581_v52  ;;  %v2281_v52 = vld [vmem:[%s8845_s11 + $0x3e8] sm:$0xff] }
 0x2b2   :  { %v5676_v62 = vcombine.low %v2277_v51, %v2281_v52 }
 0x2b4   :  { %3344 = vmatpush1.bf16.msra.mxu1 %v5580_v55  ;;  %v2101_v55 = vsel %vm1556_vm6, %v6410_v53, 0  ;;  %v2235_v53 = vld [vmem:[%s8845_s11 + $0x278] sm:$0xff] }
 0x2b5   :  { %3345 = vmatprep.subr.bf16.mxu1 %v5589_v56  ;;  %v5677_v56 = vcombine.high %v2277_v51, %v2281_v52  ;;  %6091 = vmatpush3.bf16.msra.mxu0 %v2101_v55  ;;  %v2231_v52 = vld [vmem:[%s8845_s11 + $0x258] sm:$0xff] }
 0x2b6   :  { %3255 = vmatprep.subr.bf16.mxu0 %v5555_v61  ;;  %v5633_v55 = vcombine.high %v2231_v52, %v2235_v53 }
 0x2b8   :  { %3346 = vmatpush1.bf16.msra.mxu1 %v5588_v59  ;;  %v2290_v59 = vld [vmem:[%s8845_s11 + $0x430] sm:$0xff] }
 0x2b9   :  { %3347 = vmatprep.subr.bf16.mxu1 %v5597_v60  ;;  %v5554_v60 = vcombine.low %v7728_v57, %v7733_v44  ;;  %v5687_v63 = vcombine.high %v2286_v58, %v2290_v59 }
 0x2bc   :  { %3348 = vmatpush1.bf16.msra.mxu1 %v5596_v0  ;;  %v2294_v0 = vld [vmem:[%s8845_s11 + $0x450] sm:$0xff] }
 0x2bd   :  { %3349 = vmatprep.subr.bf16.mxu1 %v5605_v4  ;;  %v5686_v4 = vcombine.low %v2286_v58, %v2290_v59  ;;  %v5695_v7 = vcombine.high %v2294_v0, %v2298_v1  ;;  %v5694_v12 = vcombine.low %v2294_v0, %v2298_v1  ;;  %v2243_v58 = vld [vmem:[%s8845_s11 + $0x2b8] sm:$0xff]  ;;  %v5632_v59 = vcombine.low %v2231_v52, %v2235_v53 }
 0x2c0   :  { %3350 = vmatpush1.bf16.msra.mxu1 %v5604_v11  ;;  %v2163_v11 = vld [vmem:[%s8845_s11 + $0x38] sm:$0xff] }
 0x2c1   :  { %3351 = vmatprep.subr.bf16.mxu1 %v5613_v13  ;;  %v5561_v13 = vcombine.high %v2159_v9, %v2163_v11 }
 0x2c4   :  { %3352 = vmatpush1.bf16.msra.mxu1 %v5612_v16  ;;  %v5560_v16 = vcombine.low %v2159_v9, %v2163_v11 }
 0x2c5   :  { %3353 = vmatprep.subr.bf16.mxu1 %v5621_v18  ;;  %v2175_v18 = vld [vmem:[%s8845_s11 + $0x98] sm:$0xff] }
 0x2c6   :  { %v5576_v25 = vcombine.low %v2175_v18, %v2179_v20 }
 0x2c8   :  { %3354 = vmatpush1.bf16.msra.mxu1 %v5620_v22  ;;  %v5577_v22 = vcombine.high %v2175_v18, %v2179_v20 }
 0x2c9   :  { %3355 = vmatprep.subr.bf16.mxu1 %v5629_v23  ;;  %v2183_v23 = vld [vmem:[%s8845_s11 + $0xd8] sm:$0xff] }
 0x2ca   :  { %v5584_v29 = vcombine.low %v2183_v23, %v2187_v24 }
 0x2cc   :  { %3356 = vmatpush1.bf16.msra.mxu1 %v5628_v26  ;;  %v5585_v26 = vcombine.high %v2183_v23, %v2187_v24 }
 0x2cd   :  { %3357 = vmatprep.subr.bf16.mxu1 %v5637_v27  ;;  %v2191_v27 = vld [vmem:[%s8845_s11 + $0x118] sm:$0xff] }
 0x2ce   :  { %v5592_v35 = vcombine.low %v2191_v27, %v2195_v28 }
 0x2d0   :  { %3358 = vmatpush1.bf16.msra.mxu1 %v5636_v30  ;;  %v5593_v30 = vcombine.high %v2191_v27, %v2195_v28 }
 0x2d1   :  { %3359 = vmatprep.subr.bf16.mxu1 %v5645_v32  ;;  %v2199_v32 = vld [vmem:[%s8845_s11 + $0x158] sm:$0xff] }
 0x2d2   :  { %v5600_v40 = vcombine.low %v2199_v32, %v2203_v33 }
 0x2d4   :  { %3360 = vmatpush1.bf16.msra.mxu1 %v5644_v36  ;;  %v5601_v36 = vcombine.high %v2199_v32, %v2203_v33 }
 0x2d5   :  { %3361 = vmatprep.subr.bf16.mxu1 %v5653_v38  ;;  %v2207_v38 = vld [vmem:[%s8845_s11 + $0x198] sm:$0xff] }
 0x2d6   :  { %v5609_v41 = vcombine.high %v2207_v38, %v2211_v39  ;;  %v5608_v46 = vcombine.low %v2207_v38, %v2211_v39 }
 0x2d8   :  { %3362 = vmatpush1.bf16.msra.mxu1 %v5652_v42  ;;  %v2215_v42 = vld [vmem:[%s8845_s11 + $0x1d8] sm:$0xff] }
 0x2d9   :  { %3363 = vmatprep.subr.bf16.mxu1 %v5661_v43  ;;  %v2219_v43 = vld [vmem:[%s8845_s11 + $0x1f8] sm:$0xff] }
 0x2da   :  { %v5617_v47 = vcombine.high %v2215_v42, %v2219_v43 }
 0x2dc   :  { %3364 = vmatpush1.bf16.msra.mxu1 %v5660_v49  ;;  %v2227_v49 = vld [vmem:[%s8845_s11 + $0x238] sm:$0xff] }
 0x2dd   :  { %3365 = vmatprep.subr.bf16.mxu1 %v5669_v50  ;;  %v5616_v50 = vcombine.low %v2215_v42, %v2219_v43  ;;  %v5625_v51 = vcombine.high %v2223_v48, %v2227_v49 }
 0x2e0   :  { %3366 = vmatpush1.bf16.msra.mxu1 %v5668_v54  ;;  %v5624_v54 = vcombine.low %v2223_v48, %v2227_v49 }
 0x2e1   :  { %3367 = vmatprep.subr.bf16.mxu1 %v5677_v56  ;;  %v2239_v56 = vld [vmem:[%s8845_s11 + $0x298] sm:$0xff] }
 0x2e2   :  { %v5641_v61 = vcombine.high %v2239_v56, %v2243_v58 }
 0x2e4   :  { %3368 = vmatpush1.bf16.msra.mxu1 %v5676_v62  ;;  %v2247_v62 = vld [vmem:[%s8845_s11 + $0x2d8] sm:$0xff] }
 0x2e5   :  { %3460 = vmatprep.subr.bf16.mxu1 %v5687_v63  ;;  %v2251_v63 = vld [vmem:[%s8845_s11 + $0x2f8] sm:$0xff] }
 0x2e6   :  { %v5649_v9 = vcombine.high %v2247_v62, %v2251_v63  ;;  %v5648_v14 = vcombine.low %v2247_v62, %v2251_v63 }
 0x2e7   :  { %3370 = vmatmul.mubr.bf16.vlgmr.msra.gmra.mrb[40].mxu1 %v7480_v34 }
 0x2e8   :  { %3461 = vmatpush1.bf16.msra.mxu1 %v5686_v4  ;;  %3492 = vmatprep.mubr.bf16.mxu1 %v6744_v6  ;;  %v5640_v4 = vcombine.low %v2239_v56, %v2243_v58  ;;  %v2168_v56 = vld [vmem:[%s8845_s11 + $0x60] sm:$0xff] }
 0x2e9   :  { %3462 = vmatprep.subr.bf16.mxu1 %v5695_v7 }
 0x2ec   :  { %3463 = vmatpush1.bf16.msra.mxu1 %v5694_v12  ;;  %v2255_v12 = vld [vmem:[%s8845_s11 + $0x318] sm:$0xff] }
 0x2ed   :  { %3501 = vmatprep.subr.bf16.mxu1 %v5561_v13  ;;  %v2259_v13 = vld [vmem:[%s8845_s11 + $0x338] sm:$0xff] }
 0x2ee   :  { %v5657_v15 = vcombine.high %v2255_v12, %v2259_v13 }
 0x2ef   :  { %5700 = vmatmul.mubr.msk.bf16.vlgmr.msra.gmra.mrb[44].mxu1 %vm521_vm0, %v7457_v19 }
 0x2f0   :  { %3502 = vmatpush1.bf16.msra.mxu1 %v5560_v16  ;;  %3533 = vmatprep.mubr.bf16.mxu1 %v7482_v37  ;;  %v2263_v16 = vld [vmem:[%s8845_s11 + $0x358] sm:$0xff] }
 0x2f1   :  { %3503 = vmatprep.subr.bf16.mxu1 %v5569_v17  ;;  %v2267_v17 = vld [vmem:[%s8845_s11 + $0x378] sm:$0xff] }
 0x2f2   :  { %v5665_v23 = vcombine.high %v2263_v16, %v2267_v17  ;;  %v5664_v27 = vcombine.low %v2263_v16, %v2267_v17  ;;  %v2188_v16 = vld [vmem:[%s8845_s11 + $0x100] sm:$0xff] }
 0x2f3   :  { %v2192_v17 = vld [vmem:[%s8845_s11 + $0x120] sm:$0xff] }
 0x2f4   :  { %3504 = vmatpush1.bf16.msra.mxu1 %v5568_v21  ;;  %v5656_v21 = vcombine.low %v2255_v12, %v2259_v13  ;;  %v2180_v12 = vld [vmem:[%s8845_s11 + $0xc0] sm:$0xff] }
 0x2f5   :  { %3505 = vmatprep.subr.bf16.mxu1 %v5577_v22  ;;  %v2184_v13 = vld [vmem:[%s8845_s11 + $0xe0] sm:$0xff] }
 0x2f8   :  { %3506 = vmatpush1.bf16.msra.mxu1 %v5576_v25  ;;  %v2271_v25 = vld [vmem:[%s8845_s11 + $0x398] sm:$0xff] }
 0x2f9   :  { %3507 = vmatprep.subr.bf16.mxu1 %v5585_v26  ;;  %v2275_v26 = vld [vmem:[%s8845_s11 + $0x3b8] sm:$0xff] }
 0x2fa   :  { %v5673_v28 = vcombine.high %v2271_v25, %v2275_v26  ;;  %v5672_v32 = vcombine.low %v2271_v25, %v2275_v26  ;;  %v5586_v26 = vcombine.low %v2188_v16, %v2192_v17 }
 0x2fc   :  { %3508 = vmatpush1.bf16.msra.mxu1 %v5584_v29  ;;  %v2279_v29 = vld [vmem:[%s8845_s11 + $0x3d8] sm:$0xff] }
 0x2fd   :  { %3509 = vmatprep.subr.bf16.mxu1 %v5593_v30  ;;  %v2283_v30 = vld [vmem:[%s8845_s11 + $0x3f8] sm:$0xff] }
 0x2fe   :  { %v5681_v33 = vcombine.high %v2279_v29, %v2283_v30 }
 0x300   :  { %3510 = vmatpush1.bf16.msra.mxu1 %v5592_v35  ;;  %v5680_v35 = vcombine.low %v2279_v29, %v2283_v30  ;;  %v2204_v29 = vld [vmem:[%s8845_s11 + $0x180] sm:$0xff] }
 0x301   :  { %3511 = vmatprep.subr.bf16.mxu1 %v5601_v36  ;;  %v2208_v30 = vld [vmem:[%s8845_s11 + $0x1a0] sm:$0xff] }
 0x304   :  { %3512 = vmatpush1.bf16.msra.mxu1 %v5600_v40 }
 0x305   :  { %3513 = vmatprep.subr.bf16.mxu1 %v5609_v41 }
 0x308   :  { %3514 = vmatpush1.bf16.msra.mxu1 %v5608_v46 }
 0x309   :  { %3515 = vmatprep.subr.bf16.mxu1 %v5617_v47 }
 0x30c   :  { %3516 = vmatpush1.bf16.msra.mxu1 %v5616_v50 }
 0x30d   :  { %3517 = vmatprep.subr.bf16.mxu1 %v5625_v51  ;;  %v5528_v51 = vld [vmem:[%s8842_s8] ss:$0 sm:$0xff] }
 0x310   :  { %3518 = vmatpush1.bf16.msra.mxu1 %v5624_v54 }
 0x311   :  { %3519 = vmatprep.subr.bf16.mxu1 %v5633_v55  ;;  %v2164_v55 = vld [vmem:[%s8845_s11 + $0x40] sm:$0xff] }
 0x313   :  { %v1830_v0 = vpop.f32.mrb[12].mxu0 }
 0x314   :  { %3520 = vmatpush1.bf16.msra.mxu1 %v5632_v59  ;;  %v6068_v1 = vpop.f32.mrb[13].mxu0 }
 0x315   :  { %v1833_v7 = vpop.f32.mrb[14].mxu0  ;;  %3521 = vmatprep.subr.bf16.mxu1 %v5641_v61  ;;  %v2172_v1 = vld [vmem:[%s8845_s11 + $0x80] sm:$0xff] }
 0x316   :  { %v6069_v11 = vpop.f32.mrb[15].mxu0  ;;  %v5562_v7 = vcombine.low %v2164_v55, %v2168_v56 }
 0x318   :  { %3522 = vmatpush1.bf16.msra.mxu1 %v5640_v4  ;;  %v2176_v4 = vld [vmem:[%s8845_s11 + $0xa0] sm:$0xff] }
 0x319   :  { %3523 = vmatprep.subr.bf16.mxu1 %v5649_v9  ;;  %v5571_v9 = vcombine.high %v2172_v1, %v2176_v4  ;;  %v5570_v57 = vcombine.low %v2172_v1, %v2176_v4  ;;  %v2244_v4 = vld [vmem:[%s8845_s11 + $0x2c0] sm:$0xff] }
 0x31b   :  { %v2021_v18 = vpop.f32.mrb[16].mxu0 }
 0x31c   :  { %3524 = vmatpush1.bf16.msra.mxu1 %v5648_v14  ;;  %v6076_v20 = vpop.f32.mrb[17].mxu0 }
 0x31d   :  { %v2024_v22 = vpop.f32.mrb[18].mxu0  ;;  %3525 = vmatprep.subr.bf16.mxu1 %v5657_v15  ;;  %v5587_v20 = vcombine.high %v2188_v16, %v2192_v17  ;;  %v2264_v16 = vld [vmem:[%s8845_s11 + $0x360] sm:$0xff] }
 0x31e   :  { %v6077_v24 = vpop.f32.mrb[19].mxu0 }
 0x31f   :  { %v2200_v24 = vld [vmem:[%s8845_s11 + $0x160] sm:$0xff] }
 0x320   :  { %3526 = vmatpush1.bf16.msra.mxu1 %v5656_v21 }
 0x321   :  { %3527 = vmatprep.subr.bf16.mxu1 %v5665_v23  ;;  %v2196_v23 = vld [vmem:[%s8845_s11 + $0x140] sm:$0xff] }
 0x324   :  { %3528 = vmatpush1.bf16.msra.mxu1 %v5664_v27 }
 0x325   :  { %3529 = vmatprep.subr.bf16.mxu1 %v5673_v28  ;;  %v5595_v28 = vcombine.high %v2196_v23, %v2200_v24 }
 0x328   :  { %3530 = vmatpush1.bf16.msra.mxu1 %v5672_v32  ;;  %v5594_v32 = vcombine.low %v2196_v23, %v2200_v24  ;;  %v2272_v23 = vld [vmem:[%s8845_s11 + $0x3a0] sm:$0xff] }
 0x329   :  { %3531 = vmatprep.subr.bf16.mxu1 %v5681_v33 }
 0x32c   :  { %3532 = vmatpush1.bf16.msra.mxu1 %v5680_v35  ;;  %v5603_v35 = vcombine.high %v2204_v29, %v2208_v30 }
 0x32f   :  { %3534 = vmatmul.mubr.bf16.vlgmr.msra.gmra.mrb[48].mxu1 %v7480_v34 }
 0x332   :  { %v5954_v36 = vpop.f32.mrb[12].mxu1 }
 0x333   :  { %v5955_v38 = vpop.f32.mrb[13].mxu1 }
 0x334   :  { %v5956_v39 = vadd.f32 %v5955_v38, %v5954_v36  ;;  %v5957_v40 = vpop.f32.mrb[14].mxu1  ;;  %v2212_v38 = vld [vmem:[%s8845_s11 + $0x1c0] sm:$0xff] }
 0x335   :  { %v5958_v41 = vpop.f32.mrb[15].mxu1 }
 0x336   :  { %v1831_v42 = vadd.f32 %v5956_v39, %v1830_v0  ;;  %v5563_v0 = vcombine.high %v2164_v55, %v2168_v56  ;;  %v2216_v39 = vld [vmem:[%s8845_s11 + $0x1e0] sm:$0xff]  ;;  %v5602_v41 = vcombine.low %v2204_v29, %v2208_v30  ;;  %v2285_v30 = vld [vmem:[%s8845_s11 + $0x408] sm:$0xff] }
 0x352   :  { %v5979_v43 = vpop.f32.mrb[16].mxu1 }
 0x353   :  { %v5980_v46 = vpop.f32.mrb[17].mxu1 }
 0x354   :  { %v5981_v47 = vadd.f32 %v5980_v46, %v5979_v43  ;;  %v5982_v48 = vpop.f32.mrb[18].mxu1  ;;  %v5611_v43 = vcombine.high %v2212_v38, %v2216_v39  ;;  %v2220_v46 = vld [vmem:[%s8845_s11 + $0x200] sm:$0xff] }
 0x355   :  { %v5983_v49 = vpop.f32.mrb[19].mxu1  ;;  %v5610_v48 = vcombine.low %v2212_v38, %v2216_v39  ;;  %v2293_v39 = vld [vmem:[%s8845_s11 + $0x448] sm:$0xff] }
 0x356   :  { %v1982_v50 = vadd.f32 %v5981_v47, %v1831_v42  ;;  %v2224_v47 = vld [vmem:[%s8845_s11 + $0x220] sm:$0xff] }
 0x358   :  { %v2022_v52 = vadd.f32 %v2021_v18, %v1982_v50  ;;  %v5578_v18 = vcombine.low %v2180_v12, %v2184_v13  ;;  %v5619_v50 = vcombine.high %v2220_v46, %v2224_v47 }
 0x35a   :  { %v2034_v53 = vadd.f32 %v5528_v51, %v2022_v52  ;;  %v7856_v54 = vpop.f32.mrb[20].mxu1  ;;  %v2228_v52 = vld [vmem:[%s8845_s11 + $0x240] sm:$0xff] }
 0x35b   :  { %v7864_v58 = vpop.f32.mrb[21].mxu1 }
 0x35c   :  { %v2035_v59 = vmax.f32 %v2034_v53, 0.0  ;;  %v2409_v61 = vpop.f32.mrb[22].mxu1  ;;  %v2232_v53 = vld [vmem:[%s8845_s11 + $0x260] sm:$0xff] }
 0x35d   :  { %v2410_v62 = vpop.f32.mrb[23].mxu1  ;;  %v5627_v61 = vcombine.high %v2228_v52, %v2232_v53 }
 0x35e   :  { %v2036_v63 = vpack.c.bf16 %v2035_v59, %v2035_v59  ;;  %v5618_v59 = vcombine.low %v2220_v46, %v2224_v47  ;;  %v2236_v62 = vld [vmem:[%s8845_s11 + $0x280] sm:$0xff]  ;;  %v2162_v46 = vld [vmem:[%s8845_s11 + $0x30] sm:$0xff] }
 0x360   :  { %6093 = vmatmul.mubr.msk.bf16.vlgmr.msra.gmra.mrb[20].mxu0 %vm2096_vm13, %v2036_v63  ;;  %v2240_v63 = vld [vmem:[%s8845_s11 + $0x2a0] sm:$0xff] }
 0x361   :  { %3256 = vmatpush1.bf16.msra.mxu0 %v5554_v60  ;;  %3287 = vmatprep.mubr.bf16.mxu0 %v7482_v37  ;;  %v5579_v60 = vcombine.high %v2180_v12, %v2184_v13  ;;  %v5635_v1 = vcombine.high %v2236_v62, %v2240_v63  ;;  %v2252_v13 = vld [vmem:[%s8845_s11 + $0x300] sm:$0xff] }
 0x362   :  { %3257 = vmatprep.subr.bf16.mxu0 %v5563_v0  ;;  %v7876_v11 = vpop.f32.mrb[24].mxu1  ;;  %v5626_v0 = vcombine.low %v2228_v52, %v2232_v53  ;;  %v2170_v52 = vld [vmem:[%s8845_s11 + $0x70] sm:$0xff] }
 0x363   :  { %v7884_v14 = vpop.f32.mrb[25].mxu1 }
 0x364   :  { %v2450_v15 = vpop.f32.mrb[26].mxu1 }
 0x365   :  { %3258 = vmatpush1.bf16.msra.mxu0 %v5562_v7  ;;  %v2451_v44 = vpop.f32.mrb[27].mxu1  ;;  %v2248_v7 = vld [vmem:[%s8845_s11 + $0x2e0] sm:$0xff] }
 0x366   :  { %3259 = vmatprep.subr.bf16.mxu0 %v5571_v9  ;;  %v5634_v9 = vcombine.low %v2236_v62, %v2240_v63  ;;  %v5643_v12 = vcombine.high %v2244_v4, %v2248_v7  ;;  %v2256_v15 = vld [vmem:[%s8845_s11 + $0x320] sm:$0xff]  ;;  %v2182_v63 = vld [vmem:[%s8845_s11 + $0xd0] sm:$0xff] }
 0x367   :  { %v5651_v44 = vcombine.high %v2252_v13, %v2256_v15  ;;  %v5650_v17 = vcombine.low %v2252_v13, %v2256_v15  ;;  %v2198_v13 = vld [vmem:[%s8845_s11 + $0x150] sm:$0xff] }
 0x368   :  { %v2202_v15 = vld [vmem:[%s8845_s11 + $0x170] sm:$0xff] }
 0x369   :  { %3260 = vmatpush1.bf16.msra.mxu0 %v5570_v57  ;;  %v5642_v57 = vcombine.low %v2244_v4, %v2248_v7  ;;  %v2190_v7 = vld [vmem:[%s8845_s11 + $0x110] sm:$0xff] }
 0x36a   :  { %3261 = vmatprep.subr.bf16.mxu0 %v5579_v60  ;;  %v7892_v21 = vpop.f32.mrb[28].mxu1  ;;  %v2260_v60 = vld [vmem:[%s8845_s11 + $0x340] sm:$0xff] }
 0x36b   :  { %v7894_v22 = vpop.f32.mrb[29].mxu1  ;;  %v5658_v24 = vcombine.low %v2260_v60, %v2264_v16 }
 0x36c   :  { %v2491_v25 = vpop.f32.mrb[30].mxu1 }
 0x36d   :  { %3262 = vmatpush1.bf16.msra.mxu0 %v5578_v18  ;;  %v2492_v27 = vpop.f32.mrb[31].mxu1  ;;  %v5659_v18 = vcombine.high %v2260_v60, %v2264_v16  ;;  %v2206_v60 = vld [vmem:[%s8845_s11 + $0x190] sm:$0xff] }
 0x36e   :  { %3263 = vmatprep.subr.bf16.mxu0 %v5587_v20  ;;  %v2268_v20 = vld [vmem:[%s8845_s11 + $0x380] sm:$0xff]  ;;  %v2210_v16 = vld [vmem:[%s8845_s11 + $0x1b0] sm:$0xff] }
 0x36f   :  { %v5667_v25 = vcombine.high %v2268_v20, %v2272_v23  ;;  %v2280_v27 = vld [vmem:[%s8845_s11 + $0x3e0] sm:$0xff] }
 0x371   :  { %3264 = vmatpush1.bf16.msra.mxu0 %v5586_v26  ;;  %v2276_v26 = vld [vmem:[%s8845_s11 + $0x3c0] sm:$0xff] }
 0x372   :  { %3265 = vmatprep.subr.bf16.mxu0 %v5595_v28  ;;  %v7908_v33 = vpop.f32.mrb[32].mxu1  ;;  %v5666_v28 = vcombine.low %v2268_v20, %v2272_v23  ;;  %v5675_v29 = vcombine.high %v2276_v26, %v2280_v27  ;;  %v5607_v20 = vcombine.high %v2206_v60, %v2210_v16 }
 0x373   :  { %v7910_v36 = vpop.f32.mrb[33].mxu1 }
 0x374   :  { %v2532_v40 = vpop.f32.mrb[34].mxu1 }
 0x375   :  { %3266 = vmatpush1.bf16.msra.mxu0 %v5594_v32  ;;  %v2533_v42 = vpop.f32.mrb[35].mxu1  ;;  %v2289_v32 = vld [vmem:[%s8845_s11 + $0x428] sm:$0xff] }
 0x376   :  { %3267 = vmatprep.subr.bf16.mxu0 %v5603_v35  ;;  %v5674_v35 = vcombine.low %v2276_v26, %v2280_v27  ;;  %v5685_v38 = vcombine.high %v2285_v30, %v2289_v32  ;;  %v2297_v40 = vld [vmem:[%s8845_s11 + $0x468] sm:$0xff]  ;;  %v2218_v26 = vld [vmem:[%s8845_s11 + $0x1f0] sm:$0xff] }
 0x377   :  { %v5693_v42 = vcombine.high %v2293_v39, %v2297_v40  ;;  %v5692_v47 = vcombine.low %v2293_v39, %v2297_v40 }
 0x379   :  { %3268 = vmatpush1.bf16.msra.mxu0 %v5602_v41  ;;  %v5684_v41 = vcombine.low %v2285_v30, %v2289_v32  ;;  %v5606_v30 = vcombine.low %v2206_v60, %v2210_v16  ;;  %v2278_v60 = vld [vmem:[%s8845_s11 + $0x3d0] sm:$0xff] }
 0x37a   :  { %v7924_v49 = vpop.f32.mrb[36].mxu1  ;;  %3269 = vmatprep.subr.bf16.mxu0 %v5611_v43  ;;  %v2158_v43 = vld [vmem:[%s8845_s11 + $0x10] sm:$0xff] }
 0x37b   :  { %v7926_v51 = vpop.f32.mrb[37].mxu1  ;;  %v5558_v53 = vcombine.low %v2158_v43, %v2162_v46  ;;  %v2282_v16 = vld [vmem:[%s8845_s11 + $0x3f0] sm:$0xff] }
 0x37c   :  { %v3334_v55 = vpop.f32.mrb[38].mxu1 }
 0x37d   :  { %3270 = vmatpush1.bf16.msra.mxu0 %v5610_v48  ;;  %v3335_v56 = vpop.f32.mrb[39].mxu1  ;;  %v5559_v48 = vcombine.high %v2158_v43, %v2162_v46 }
 0x37e   :  { %3271 = vmatprep.subr.bf16.mxu0 %v5619_v50  ;;  %v2166_v50 = vld [vmem:[%s8845_s11 + $0x50] sm:$0xff] }
 0x37f   :  { %v5567_v55 = vcombine.high %v2166_v50, %v2170_v52  ;;  %v2174_v56 = vld [vmem:[%s8845_s11 + $0x90] sm:$0xff] }
 0x381   :  { %3272 = vmatpush1.bf16.msra.mxu0 %v5618_v59  ;;  %v2178_v59 = vld [vmem:[%s8845_s11 + $0xb0] sm:$0xff] }
 0x382   :  { %3273 = vmatprep.subr.bf16.mxu0 %v5627_v61  ;;  %v5566_v61 = vcombine.low %v2166_v50, %v2170_v52  ;;  %v5575_v62 = vcombine.high %v2174_v56, %v2178_v59  ;;  %v2238_v50 = vld [vmem:[%s8845_s11 + $0x290] sm:$0xff] }
 0x383   :  { %v2242_v52 = vld [vmem:[%s8845_s11 + $0x2b0] sm:$0xff] }
 0x385   :  { %3274 = vmatpush1.bf16.msra.mxu0 %v5626_v0  ;;  %v2186_v0 = vld [vmem:[%s8845_s11 + $0xf0] sm:$0xff] }
 0x386   :  { %3275 = vmatprep.subr.bf16.mxu0 %v5635_v1  ;;  %v5574_v1 = vcombine.low %v2174_v56, %v2178_v59  ;;  %v5583_v4 = vcombine.high %v2182_v63, %v2186_v0  ;;  %v2246_v56 = vld [vmem:[%s8845_s11 + $0x2d0] sm:$0xff] }
 0x387   :  { %v2250_v59 = vld [vmem:[%s8845_s11 + $0x2f0] sm:$0xff] }
 0x389   :  { %3276 = vmatpush1.bf16.msra.mxu0 %v5634_v9  ;;  %v5582_v9 = vcombine.low %v2182_v63, %v2186_v0  ;;  %v2254_v63 = vld [vmem:[%s8845_s11 + $0x310] sm:$0xff] }
 0x38a   :  { %3277 = vmatprep.subr.bf16.mxu0 %v5643_v12  ;;  %v2258_v0 = vld [vmem:[%s8845_s11 + $0x330] sm:$0xff] }
 0x38d   :  { %3278 = vmatpush1.bf16.msra.mxu0 %v5642_v57 }
 0x38e   :  { %3279 = vmatprep.subr.bf16.mxu0 %v5651_v44  ;;  %v5599_v44 = vcombine.high %v2198_v13, %v2202_v15 }
 0x391   :  { %3280 = vmatpush1.bf16.msra.mxu0 %v5650_v17  ;;  %v5598_v17 = vcombine.low %v2198_v13, %v2202_v15  ;;  %v2270_v13 = vld [vmem:[%s8845_s11 + $0x390] sm:$0xff] }
 0x392   :  { %3281 = vmatprep.subr.bf16.mxu0 %v5659_v18  ;;  %v2274_v15 = vld [vmem:[%s8845_s11 + $0x3b0] sm:$0xff] }
 0x395   :  { %3282 = vmatpush1.bf16.msra.mxu0 %v5658_v24 }
 0x396   :  { %3283 = vmatprep.subr.bf16.mxu0 %v5667_v25  ;;  %v2214_v25 = vld [vmem:[%s8845_s11 + $0x1d0] sm:$0xff] }
 0x397   :  { %v5615_v32 = vcombine.high %v2214_v25, %v2218_v26 }
 0x399   :  { %3284 = vmatpush1.bf16.msra.mxu0 %v5666_v28 }
 0x39a   :  { %3285 = vmatprep.subr.bf16.mxu0 %v5675_v29 }
 0x39d   :  { %3286 = vmatpush1.bf16.msra.mxu0 %v5674_v35  ;;  %v2226_v35 = vld [vmem:[%s8845_s11 + $0x230] sm:$0xff] }
 0x39e   :  { %3378 = vmatprep.subr.bf16.mxu0 %v5685_v38  ;;  %v5614_v38 = vcombine.low %v2214_v25, %v2218_v26  ;;  %v5678_v25 = vcombine.low %v2278_v60, %v2282_v16 }
 0x3a0   :  { %3288 = vmatmul.mubr.bf16.vlgmr.msra.gmra.mrb[24].mxu0 %v7480_v34 }
 0x3a1   :  { %3379 = vmatpush1.bf16.msra.mxu0 %v5684_v41  ;;  %3410 = vmatprep.mubr.bf16.mxu0 %v6744_v6  ;;  %v2230_v41 = vld [vmem:[%s8845_s11 + $0x250] sm:$0xff] }
 0x3a2   :  { %3380 = vmatprep.subr.bf16.mxu0 %v5693_v42  ;;  %v2234_v42 = vld [vmem:[%s8845_s11 + $0x270] sm:$0xff] }
 0x3a5   :  { %3381 = vmatpush1.bf16.msra.mxu0 %v5692_v47 }
 0x3a6   :  { %3419 = vmatprep.subr.bf16.mxu0 %v5559_v48  ;;  %v5631_v48 = vcombine.high %v2230_v41, %v2234_v42 }
 0x3a8   :  { %5699 = vmatmul.mubr.msk.bf16.vlgmr.msra.gmra.mrb[28].mxu0 %vm521_vm0, %v7457_v19 }
 0x3a9   :  { %3420 = vmatpush1.bf16.msra.mxu0 %v5558_v53  ;;  %3451 = vmatprep.mubr.bf16.mxu0 %v7482_v37  ;;  %v2194_v37 = vld [vmem:[%s8845_s11 + $0x130] sm:$0xff]  ;;  %v5630_v53 = vcombine.low %v2230_v41, %v2234_v42 }
 0x3aa   :  { %3421 = vmatprep.subr.bf16.mxu0 %v5567_v55  ;;  %v5591_v12 = vcombine.high %v2190_v7, %v2194_v37  ;;  %v5590_v57 = vcombine.low %v2190_v7, %v2194_v37  ;;  %v5639_v55 = vcombine.high %v2238_v50, %v2242_v52  ;;  %v2262_v7 = vld [vmem:[%s8845_s11 + $0x350] sm:$0xff] }
 0x3ab   :  { %v2266_v37 = vld [vmem:[%s8845_s11 + $0x370] sm:$0xff] }
 0x3ac   :  { %v6419_v41 = vld [vmem:[%s8848_s14 + $0x34] ss:$12 sps:$4 sm:$0xff]   ;;  %v6417_v42 = vld [vmem:[%s8848_s14 + $0x30] ss:$12 sps:$4 sm:$0xff]  }
 0x3ad   :  { %3422 = vmatpush1.bf16.msra.mxu0 %v5566_v61  ;;  %v5638_v61 = vcombine.low %v2238_v50, %v2242_v52  ;;  %v6426_v50 = vld [vmem:[%s8848_s14 + $0x78] ss:$12 sps:$4 sm:$0xff]  }
 0x3ae   :  { %3423 = vmatprep.subr.bf16.mxu0 %v5575_v62  ;;  %v5647_v62 = vcombine.high %v2246_v56, %v2250_v59 }
 0x3b1   :  { %3424 = vmatpush1.bf16.msra.mxu0 %v5574_v1  ;;  %v5646_v1 = vcombine.low %v2246_v56, %v2250_v59 }
 0x3b2   :  { %3425 = vmatprep.subr.bf16.mxu0 %v5583_v4  ;;  %v5655_v4 = vcombine.high %v2254_v63, %v2258_v0 }
 0x3b5   :  { %3426 = vmatpush1.bf16.msra.mxu0 %v5582_v9  ;;  %v5654_v9 = vcombine.low %v2254_v63, %v2258_v0  ;;  %v6429_v63 = vld [vmem:[%s8848_s14 + $0x90] ss:$12 sps:$4 sm:$0xff]   ;;  %v6434_v0 = vld [vmem:[%s8848_s14 + $0xac] ss:$12 sps:$4 sm:$0xff]  }
 0x3b6   :  { %3427 = vmatprep.subr.bf16.mxu0 %v5591_v12  ;;  %v5663_v12 = vcombine.high %v2262_v7, %v2266_v37 }
 0x3b9   :  { %3428 = vmatpush1.bf16.msra.mxu0 %v5590_v57  ;;  %v5662_v57 = vcombine.low %v2262_v7, %v2266_v37  ;;  %v6476_v7 = vld [vmem:[%s8848_s14 + $0x484] ss:$12 sps:$4 sm:$0xff]  }
 0x3ba   :  { %v3371_v18 = vpop.f32.mrb[40].mxu1  ;;  %3429 = vmatprep.subr.bf16.mxu0 %v5599_v44  ;;  %v5671_v44 = vcombine.high %v2270_v13, %v2274_v15  ;;  %v6438_v37 = vld [vmem:[%s8848_s14 + $0xd8] ss:$12 sps:$4 sm:$0xff]   ;;  %5053 = vmatprep.subr.bf16.mxu1 %v6476_v7  ;;  %v6540_v7 = vld [vmem:[%s8848_s14 + $0x588] ss:$12 sps:$4 sm:$0xff]  }
 0x3bb   :  { %v8030_v23 = vadd.f32 %v3371_v18, %v7876_v11  ;;  %v3373_v24 = vpop.f32.mrb[41].mxu1  ;;  %v2222_v11 = vld [vmem:[%s8845_s11 + $0x210] sm:$0xff]  ;;  %v5679_v18 = vcombine.high %v2278_v60, %v2282_v16 }
 0x3bc   :  { %v8039_v27 = vadd.f32 %v3373_v24, %v7884_v14  ;;  %v3375_v28 = vpop.f32.mrb[42].mxu1  ;;  %v5623_v14 = vcombine.high %v2222_v11, %v2226_v35  ;;  %v5622_v47 = vcombine.low %v2222_v11, %v2226_v35  ;;  %v2291_v24 = vld [vmem:[%s8845_s11 + $0x438] sm:$0xff]  ;;  %v6413_v35 = vld [vmem:[%s8848_s14 + $0x4] ss:$12 sps:$4 sm:$0xff]   ;;  %v6488_v60 = vld [vmem:[%s8848_s14 + $0x4b4] ss:$12 sps:$4 sm:$0xff]  }
 0x3bd   :  { %v3376_v29 = vpop.f32.mrb[43].mxu1  ;;  %3430 = vmatpush1.bf16.msra.mxu0 %v5598_v17  ;;  %v5670_v17 = vcombine.low %v2270_v13, %v2274_v15  ;;  %v2295_v28 = vld [vmem:[%s8845_s11 + $0x458] sm:$0xff]  ;;  %v6444_v16 = vld [vmem:[%s8848_s14 + $0x108] ss:$12 sps:$4 sm:$0xff]  }
 0x3be   :  { %3431 = vmatprep.subr.bf16.mxu0 %v5607_v20  ;;  %v2287_v20 = vld [vmem:[%s8845_s11 + $0x418] sm:$0xff] }
 0x3bf   :  { %v5689_v26 = vcombine.high %v2287_v20, %v2291_v24  ;;  %v2299_v29 = vld [vmem:[%s8845_s11 + $0x478] sm:$0xff] }
 0x3c0   :  { %v5696_v11 = vcombine.low %v2295_v28, %v2299_v29  ;;  %v6482_v13 = vld [vmem:[%s8848_s14 + $0x49c] ss:$12 sps:$4 sm:$0xff]  }
 0x3c1   :  { %3432 = vmatpush1.bf16.msra.mxu0 %v5606_v30  ;;  %v5688_v30 = vcombine.low %v2287_v20, %v2291_v24  ;;  %v6441_v15 = vld [vmem:[%s8848_s14 + $0xf0] ss:$12 sps:$4 sm:$0xff]   ;;  %v6494_v20 = vld [vmem:[%s8848_s14 + $0x4cc] ss:$12 sps:$4 sm:$0xff]  }
 0x3c2   :  { %v8047_v39 = vpop.f32.mrb[44].mxu1  ;;  %3433 = vmatprep.subr.bf16.mxu0 %v5615_v32  ;;  %v5697_v32 = vcombine.high %v2295_v28, %v2299_v29  ;;  %v6447_v24 = vld [vmem:[%s8848_s14 + $0x120] ss:$12 sps:$4 sm:$0xff]   ;;  %v6500_v28 = vld [vmem:[%s8848_s14 + $0x4e4] ss:$12 sps:$4 sm:$0xff]  }
 0x3c3   :  { %v8049_v40 = vpop.f32.mrb[45].mxu1  ;;  %v6450_v29 = vld [vmem:[%s8848_s14 + $0x138] ss:$12 sps:$4 sm:$0xff]  }
 0x3c4   :  { %v3498_v43 = vpop.f32.mrb[46].mxu1 }
 0x3c5   :  { %3434 = vmatpush1.bf16.msra.mxu0 %v5614_v38  ;;  %v3499_v46 = vpop.f32.mrb[47].mxu1  ;;  %v6411_v38 = vld [vmem:[%s8848_s14] ss:$12 sps:$4 sm:$0xff]   ;;  %v6420_v43 = vld [vmem:[%s8848_s14 + $0x48] ss:$12 sps:$4 sm:$0xff]  }
 0x3c6   :  { %3435 = vmatprep.subr.bf16.mxu0 %v5623_v14  ;;  %v6416_v14 = vld [vmem:[%s8848_s14 + $0x1c] ss:$12 sps:$4 sm:$0xff]   ;;  %v6425_v46 = vld [vmem:[%s8848_s14 + $0x64] ss:$12 sps:$4 sm:$0xff]  }
 0x3c9   :  { %3436 = vmatpush1.bf16.msra.mxu0 %v5622_v47  ;;  %v6423_v47 = vld [vmem:[%s8848_s14 + $0x60] ss:$12 sps:$4 sm:$0xff]  }
 0x3ca   :  { %3437 = vmatprep.subr.bf16.mxu0 %v5631_v48  ;;  %v6428_v48 = vld [vmem:[%s8848_s14 + $0x7c] ss:$12 sps:$4 sm:$0xff]  }
 0x3cd   :  { %3438 = vmatpush1.bf16.msra.mxu0 %v5630_v53  ;;  %v6431_v53 = vld [vmem:[%s8848_s14 + $0x94] ss:$12 sps:$4 sm:$0xff]  }
 0x3ce   :  { %3439 = vmatprep.subr.bf16.mxu0 %v5639_v55 }
 0x3d1   :  { %3440 = vmatpush1.bf16.msra.mxu0 %v5638_v61 }
 0x3d2   :  { %3441 = vmatprep.subr.bf16.mxu0 %v5647_v62 }
 0x3d5   :  { %3442 = vmatpush1.bf16.msra.mxu0 %v5646_v1  ;;  %v6435_v1 = vld [vmem:[%s8848_s14 + $0xc0] ss:$12 sps:$4 sm:$0xff]  }
 0x3d6   :  { %3443 = vmatprep.subr.bf16.mxu0 %v5655_v4  ;;  %v6440_v4 = vld [vmem:[%s8848_s14 + $0xdc] ss:$12 sps:$4 sm:$0xff]  }
 0x3d9   :  { %3444 = vmatpush1.bf16.msra.mxu0 %v5654_v9  ;;  %v6474_v9 = vld [vmem:[%s8848_s14 + $0x480] ss:$12 sps:$4 sm:$0xff]  }
 0x3da   :  { %3445 = vmatprep.subr.bf16.mxu0 %v5663_v12  ;;  %v6443_v12 = vld [vmem:[%s8848_s14 + $0xf4] ss:$12 sps:$4 sm:$0xff]   ;;  %5054 = vmatpush1.bf16.msra.mxu1 %v6474_v9 }
 0x3db   :  { %5055 = vmatprep.subr.bf16.mxu1 %v6482_v13  ;;  %v6546_v9 = vld [vmem:[%s8848_s14 + $0x5a0] ss:$12 sps:$4 sm:$0xff]   ;;  %v6552_v13 = vld [vmem:[%s8848_s14 + $0x5b8] ss:$12 sps:$4 sm:$0xff]  }
 0x3dd   :  { %3446 = vmatpush1.bf16.msra.mxu0 %v5662_v57  ;;  %v6480_v57 = vld [vmem:[%s8848_s14 + $0x498] ss:$12 sps:$4 sm:$0xff]  }
 0x3de   :  { %3447 = vmatprep.subr.bf16.mxu0 %v5671_v44  ;;  %v6446_v44 = vld [vmem:[%s8848_s14 + $0x10c] ss:$12 sps:$4 sm:$0xff]   ;;  %5056 = vmatpush1.bf16.msra.mxu1 %v6480_v57 }
 0x3df   :  { %5057 = vmatprep.subr.bf16.mxu1 %v6488_v60 }
 0x3e1   :  { %3448 = vmatpush1.bf16.msra.mxu0 %v5670_v17  ;;  %v6486_v17 = vld [vmem:[%s8848_s14 + $0x4b0] ss:$12 sps:$4 sm:$0xff]  }
 0x3e2   :  { %3449 = vmatprep.subr.bf16.mxu0 %v5679_v18  ;;  %v6449_v18 = vld [vmem:[%s8848_s14 + $0x124] ss:$12 sps:$4 sm:$0xff]   ;;  %5058 = vmatpush1.bf16.msra.mxu1 %v6486_v17 }
 0x3e3   :  { %5059 = vmatprep.subr.bf16.mxu1 %v6494_v20  ;;  %v8316_v17 = vld [vmem:[%s8847_s13] sm:$0xff] }
 0x3e5   :  { %3450 = vmatpush1.bf16.msra.mxu0 %v5678_v25  ;;  %v6492_v25 = vld [vmem:[%s8848_s14 + $0x4c8] ss:$12 sps:$4 sm:$0xff]  }
 0x3e6   :  { %3542 = vmatprep.subr.bf16.mxu0 %v5689_v26  ;;  %v6452_v26 = vld [vmem:[%s8848_s14 + $0x13c] ss:$12 sps:$4 sm:$0xff]   ;;  %5060 = vmatpush1.bf16.msra.mxu1 %v6492_v25 }
 0x3e7   :  { %5061 = vmatprep.subr.bf16.mxu1 %v6500_v28  ;;  %v3592_v28 = vrot.slane %v8316_v17, %v7237_v5 }
 0x3e8   :  { %3452 = vmatmul.mubr.bf16.vlgmr.msra.gmra.mrb[32].mxu0 %v7480_v34  ;;  %v6414_v34 = vld [vmem:[%s8848_s14 + $0x18] ss:$12 sps:$4 sm:$0xff]  }
 0x3e9   :  { %3543 = vmatpush1.bf16.msra.mxu0 %v5688_v30  ;;  %3574 = vmatprep.mubr.bf16.mxu0 %v6744_v6  ;;  %v6498_v30 = vld [vmem:[%s8848_s14 + $0x4e0] ss:$12 sps:$4 sm:$0xff]  }
 0x3ea   :  { %3544 = vmatprep.subr.bf16.mxu0 %v5697_v32  ;;  %v6455_v32 = vld [vmem:[%s8848_s14 + $0x154] ss:$12 sps:$4 sm:$0xff]   ;;  %5062 = vmatpush1.bf16.msra.mxu1 %v6498_v30 }
 0x3ed   :  { %3545 = vmatpush1.bf16.msra.mxu0 %v5696_v11  ;;  %v6506_v11 = vld [vmem:[%s8848_s14 + $0x4fc] ss:$12 sps:$4 sm:$0xff]  }
 0x3ee   :  { %4930 = vmatprep.subr.bf16.mxu0 %v6413_v35  ;;  %v6453_v35 = vld [vmem:[%s8848_s14 + $0x150] ss:$12 sps:$4 sm:$0xff]   ;;  %5063 = vmatprep.subr.bf16.mxu1 %v6506_v11 }
 0x3f0   :  { %5701 = vmatmul.mubr.msk.bf16.vlgmr.msra.gmra.mrb[36].mxu0 %vm521_vm0, %v7457_v19  ;;  %v6422_v19 = vld [vmem:[%s8848_s14 + $0x4c] ss:$12 sps:$4 sm:$0xff]   ;;  %vm4916_vm0 = vcmask 850944  }
 0x3f1   :  { %4931 = vmatpush1.bf16.msra.mxu0 %v6411_v38  ;;  %v6504_v38 = vld [vmem:[%s8848_s14 + $0x4f8] ss:$12 sps:$4 sm:$0xff]  }
 0x3f2   :  { %4932 = vmatprep.subr.bf16.mxu0 %v6416_v14  ;;  %v6458_v14 = vld [vmem:[%s8848_s14 + $0x16c] ss:$12 sps:$4 sm:$0xff]   ;;  %5064 = vmatpush1.bf16.msra.mxu1 %v6504_v38 }
 0x3f5   :  { %4933 = vmatpush1.bf16.msra.mxu0 %v6414_v34  ;;  %v6512_v34 = vld [vmem:[%s8848_s14 + $0x514] ss:$12 sps:$4 sm:$0xff]  }
 0x3f6   :  { %4934 = vmatprep.subr.bf16.mxu0 %v6419_v41  ;;  %v6456_v41 = vld [vmem:[%s8848_s14 + $0x168] ss:$12 sps:$4 sm:$0xff]   ;;  %5065 = vmatprep.subr.bf16.mxu1 %v6512_v34 }
 0x3f9   :  { %4935 = vmatpush1.bf16.msra.mxu0 %v6417_v42  ;;  %v6510_v42 = vld [vmem:[%s8848_s14 + $0x510] ss:$12 sps:$4 sm:$0xff]  }
 0x3fa   :  { %4936 = vmatprep.subr.bf16.mxu0 %v6422_v19  ;;  %v6461_v19 = vld [vmem:[%s8848_s14 + $0x184] ss:$12 sps:$4 sm:$0xff]   ;;  %5066 = vmatpush1.bf16.msra.mxu1 %v6510_v42 }
 0x3fd   :  { %4937 = vmatpush1.bf16.msra.mxu0 %v6420_v43  ;;  %v6518_v43 = vld [vmem:[%s8848_s14 + $0x52c] ss:$12 sps:$4 sm:$0xff]  }
 0x3fe   :  { %4938 = vmatprep.subr.bf16.mxu0 %v6425_v46  ;;  %v6516_v46 = vld [vmem:[%s8848_s14 + $0x528] ss:$12 sps:$4 sm:$0xff]   ;;  %5067 = vmatprep.subr.bf16.mxu1 %v6518_v43 }
 0x3ff   :  { %5068 = vmatpush1.bf16.msra.mxu1 %v6516_v46 }
 0x401   :  { %4939 = vmatpush1.bf16.msra.mxu0 %v6423_v47  ;;  %v6524_v47 = vld [vmem:[%s8848_s14 + $0x544] ss:$12 sps:$4 sm:$0xff]  }
 0x402   :  { %v3535_v52 = vpop.f32.mrb[48].mxu1  ;;  %4940 = vmatprep.subr.bf16.mxu0 %v6428_v48  ;;  %v5529_v48 = vld [vmem:[%s8844_s10] ss:$0 sm:$0xff]  ;;  %5069 = vmatprep.subr.bf16.mxu1 %v6524_v47 }
 0x403   :  { %v8149_v55 = vadd.f32 %v3535_v52, %v7908_v33  ;;  %v3537_v56 = vpop.f32.mrb[49].mxu1  ;;  %v6432_v33 = vld [vmem:[%s8848_s14 + $0xa8] ss:$12 sps:$4 sm:$0xff]  }
 0x404   :  { %v8152_v59 = vadd.f32 %v3537_v56, %v7910_v36  ;;  %v3539_v61 = vpop.f32.mrb[50].mxu1  ;;  %v6437_v36 = vld [vmem:[%s8848_s14 + $0xc4] ss:$12 sps:$4 sm:$0xff]  }
 0x405   :  { %v3540_v62 = vpop.f32.mrb[51].mxu1  ;;  %4941 = vmatpush1.bf16.msra.mxu0 %v6426_v50  ;;  %v6522_v50 = vld [vmem:[%s8848_s14 + $0x540] ss:$12 sps:$4 sm:$0xff]   ;;  %v6530_v61 = vld [vmem:[%s8848_s14 + $0x55c] ss:$12 sps:$4 sm:$0xff]  }
 0x406   :  { %4942 = vmatprep.subr.bf16.mxu0 %v6431_v53  ;;  %5070 = vmatpush1.bf16.msra.mxu1 %v6522_v50  ;;  %v6467_v50 = vld [vmem:[%s8848_s14 + $0x1b4] ss:$12 sps:$4 sm:$0xff]  }
 0x407   :  { %5071 = vmatprep.subr.bf16.mxu1 %v6530_v61  ;;  %v6470_v61 = vld [vmem:[%s8848_s14 + $0x1cc] ss:$12 sps:$4 sm:$0xff]  }
 0x409   :  { %4943 = vmatpush1.bf16.msra.mxu0 %v6429_v63  ;;  %v6528_v63 = vld [vmem:[%s8848_s14 + $0x558] ss:$12 sps:$4 sm:$0xff]  }
 0x40a   :  { %4944 = vmatprep.subr.bf16.mxu0 %v6434_v0  ;;  %5072 = vmatpush1.bf16.msra.mxu1 %v6528_v63  ;;  %v6473_v63 = vld [vmem:[%s8848_s14 + $0x1e4] ss:$12 sps:$4 sm:$0xff]  }
 0x40d   :  { %4945 = vmatpush1.bf16.msra.mxu0 %v6432_v33 }
 0x40e   :  { %4946 = vmatprep.subr.bf16.mxu0 %v6437_v36  ;;  %v6536_v36 = vld [vmem:[%s8848_s14 + $0x574] ss:$12 sps:$4 sm:$0xff]  }
 0x40f   :  { %5073 = vmatprep.subr.bf16.mxu1 %v6536_v36  ;;  %v6477_v36 = vld [vmem:[%s8848_s14 + $0x1f8] ss:$12 sps:$4 sm:$0xff]  }
 0x411   :  { %4947 = vmatpush1.bf16.msra.mxu0 %v6435_v1  ;;  %v6534_v1 = vld [vmem:[%s8848_s14 + $0x570] ss:$12 sps:$4 sm:$0xff]  }
 0x412   :  { %4948 = vmatprep.subr.bf16.mxu0 %v6440_v4  ;;  %5074 = vmatpush1.bf16.msra.mxu1 %v6534_v1  ;;  %v6542_v4 = vld [vmem:[%s8848_s14 + $0x58c] ss:$12 sps:$4 sm:$0xff]   ;;  %v6485_v1 = vld [vmem:[%s8848_s14 + $0x214] ss:$12 sps:$4 sm:$0xff]  }
 0x413   :  { %5075 = vmatprep.subr.bf16.mxu1 %v6542_v4  ;;  %v6483_v4 = vld [vmem:[%s8848_s14 + $0x210] ss:$12 sps:$4 sm:$0xff]  }
 0x415   :  { %4949 = vmatpush1.bf16.msra.mxu0 %v6438_v37  ;;  %v6548_v37 = vld [vmem:[%s8848_s14 + $0x5a4] ss:$12 sps:$4 sm:$0xff]  }
 0x416   :  { %4950 = vmatprep.subr.bf16.mxu0 %v6443_v12  ;;  %5076 = vmatpush1.bf16.msra.mxu1 %v6540_v7  ;;  %v6554_v12 = vld [vmem:[%s8848_s14 + $0x5bc] ss:$12 sps:$4 sm:$0xff]   ;;  %v6491_v7 = vld [vmem:[%s8848_s14 + $0x22c] ss:$12 sps:$4 sm:$0xff]  }
 0x417   :  { %5077 = vmatprep.subr.bf16.mxu1 %v6548_v37  ;;  %v6489_v37 = vld [vmem:[%s8848_s14 + $0x228] ss:$12 sps:$4 sm:$0xff]  }
 0x419   :  { %4951 = vmatpush1.bf16.msra.mxu0 %v6441_v15  ;;  %v3897_v15 = vld [vmem:[%s8848_s14 + $0x5d0] sm:$0xff] }
 0x41a   :  { %4952 = vmatprep.subr.bf16.mxu0 %v6446_v44  ;;  %5078 = vmatpush1.bf16.msra.mxu1 %v6546_v9  ;;  %v5889_v57 = vcombine.high %v3897_v15, %v3897_v15  ;;  %v5888_v44 = vcombine.low %v3897_v15, %v3897_v15  ;;  %v6497_v9 = vld [vmem:[%s8848_s14 + $0x244] ss:$12 sps:$4 sm:$0xff]  }
 0x41b   :  { %5079 = vmatprep.subr.bf16.mxu1 %v6554_v12  ;;  %v6495_v12 = vld [vmem:[%s8848_s14 + $0x240] ss:$12 sps:$4 sm:$0xff]   ;;  %v6501_v15 = vld [vmem:[%s8848_s14 + $0x258] ss:$12 sps:$4 sm:$0xff]  }
 0x41c   :  { %v4922_v60 = vsel %vm4920_vm15, %v5888_v44, 0  ;;  %v6507_v44 = vld [vmem:[%s8848_s14 + $0x270] ss:$12 sps:$4 sm:$0xff]  }
 0x41d   :  { %4953 = vmatpush1.bf16.msra.mxu0 %v6444_v16  ;;  %v6563_v16 = vld [vmem:[%s8848_s14 + $0xc8] ss:$12 sps:$4 sm:$0xff]  }
 0x41e   :  { %4954 = vmatprep.subr.bf16.mxu0 %v6449_v18  ;;  %5080 = vmatpush1.bf16.msra.mxu1 %v6552_v13  ;;  %v6503_v13 = vld [vmem:[%s8848_s14 + $0x25c] ss:$12 sps:$4 sm:$0xff]  }
 0x41f   :  { %5891 = vmatprep.subr.msk.bf16.mxu1 %vm4920_vm15, %v5889_v57  ;;  %v6509_v57 = vld [vmem:[%s8848_s14 + $0x274] ss:$12 sps:$4 sm:$0xff]  }
 0x421   :  { %4955 = vmatpush1.bf16.msra.mxu0 %v6447_v24  ;;  %v3588_v24 = vrot.slane %v8316_v17, %v7231_v3 }
 0x422   :  { %4956 = vmatprep.subr.bf16.mxu0 %v6452_v26  ;;  %5082 = vmatpush1.bf16.msra.mxu1 %v4922_v60  ;;  %v6515_v60 = vld [vmem:[%s8848_s14 + $0x28c] ss:$12 sps:$4 sm:$0xff]  }
 0x423   :  { %5996 = vmatprep.subr.bf16.mxu1 %v6563_v16  ;;  %v6513_v16 = vld [vmem:[%s8848_s14 + $0x288] ss:$12 sps:$4 sm:$0xff]  }
 0x425   :  { %4957 = vmatpush1.bf16.msra.mxu0 %v6450_v29 }
 0x426   :  { %4958 = vmatprep.subr.bf16.mxu0 %v6455_v32 }
 0x429   :  { %4959 = vmatpush1.bf16.msra.mxu0 %v6453_v35 }
 0x42a   :  { %4960 = vmatprep.subr.bf16.mxu0 %v6458_v14 }
 0x42d   :  { %4961 = vmatpush1.bf16.msra.mxu0 %v6456_v41 }
 0x42e   :  { %4971 = vmatprep.subr.bf16.mxu0 %v6461_v19 }
 0x433   :  { %v2137_v52 = vpop.f32.mrb[20].mxu0 }
 0x434   :  { %v8271_v53 = vadd.f32 %v5529_v48, %v2137_v52  ;;  %v6094_v56 = vpop.f32.mrb[21].mxu0 }
 0x435   :  { %v2140_v62 = vpop.f32.mrb[22].mxu0  ;;  %v6465_v56 = vld [vmem:[%s8848_s14 + $0x1b0] ss:$12 sps:$4 sm:$0xff]  }
 0x436   :  { %v6095_v0 = vpop.f32.mrb[23].mxu0  ;;  %v2144_v33 = vsel %vm2143_vm14, %v8271_v53, -inf  ;;  %v6468_v62 = vld [vmem:[%s8848_s14 + $0x1c8] ss:$12 sps:$4 sm:$0xff]  }
 0x437   :  { %2145 = vmax.xlane.f32.xlu0 %v2144_v33  ;;  %v6471_v0 = vld [vmem:[%s8848_s14 + $0x1e0] ss:$12 sps:$4 sm:$0xff]   ;;  %v6479_v33 = vld [vmem:[%s8848_s14 + $0x1fc] ss:$12 sps:$4 sm:$0xff]  }
 0x473   :  { %v3289_v18 = vpop.f32.mrb[24].mxu0 }
 0x474   :  { %v3290_v20 = vadd.f32 %v3289_v18, %v7856_v54  ;;  %v3291_v25 = vpop.f32.mrb[25].mxu0  ;;  %v3600_v54 = vrot.slane %v8316_v17, %v155_v10  ;;  %v6464_v10 = vld [vmem:[%s8848_s14 + $0x19c] ss:$12 sps:$4 sm:$0xff]   ;;  %v6521_v18 = vld [vmem:[%s8848_s14 + $0x2a4] ss:$12 sps:$4 sm:$0xff]  }
 0x475   :  { %v3292_v26 = vadd.f32 %v3291_v25, %v7864_v58  ;;  %v3293_v29 = vpop.f32.mrb[26].mxu0  ;;  %v6525_v25 = vld [vmem:[%s8848_s14 + $0x2b8] ss:$12 sps:$4 sm:$0xff]  }
 0x476   :  { %v3331_v30 = vadd.f32 %v7924_v49, %v3290_v20  ;;  %v3294_v32 = vpop.f32.mrb[27].mxu0  ;;  %v6519_v20 = vld [vmem:[%s8848_s14 + $0x2a0] ss:$12 sps:$4 sm:$0xff]   ;;  %v6531_v29 = vld [vmem:[%s8848_s14 + $0x2d0] ss:$12 sps:$4 sm:$0xff]  }
 0x477   :  { %v3333_v11 = vadd.f32 %v7926_v51, %v3292_v26  ;;  %v6459_v51 = vld [vmem:[%s8848_s14 + $0x180] ss:$12 sps:$4 sm:$0xff]   ;;  %v3596_v26 = vrot.slane %v8316_v17, %v7241_v8 }
 0x478   :  { %v3625_v35 = vadd.f32 %v3588_v24, %v3331_v30  ;;  %v6527_v24 = vld [vmem:[%s8848_s14 + $0x2bc] ss:$12 sps:$4 sm:$0xff]   ;;  %v6539_v32 = vld [vmem:[%s8848_s14 + $0x2ec] ss:$12 sps:$4 sm:$0xff]  }
 0x479   :  { %v3626_v38 = vadd.f32 %v3592_v28, %v3333_v11  ;;  %v6533_v28 = vld [vmem:[%s8848_s14 + $0x2d4] ss:$12 sps:$4 sm:$0xff]  }
 0x47a   :  { %v3633_v14 = vmax.f32 %v3625_v35, 0.0  ;;  %v6537_v11 = vld [vmem:[%s8848_s14 + $0x2e8] ss:$12 sps:$4 sm:$0xff]   ;;  %v3607_v35 = vsub.s32 5, %v7228_v2 }
 0x47b   :  { %v3412_v34 = vpop.f32.mrb[28].mxu0  ;;  %v3634_v41 = vmax.f32 %v3626_v38, 0.0 }
 0x47c   :  { %v8330_v58 = vadd.f32 %v3412_v34, %v8030_v23  ;;  %v3414_v42 = vpop.f32.mrb[29].mxu0  ;;  %v8338_v46 = vpack.c.bf16 %v3633_v14, %v3633_v14  ;;  %v6545_v14 = vld [vmem:[%s8848_s14 + $0x304] ss:$12 sps:$4 sm:$0xff]  }
 0x47d   :  { %v3415_v19 = vadd.f32 %v3414_v42, %v8039_v27  ;;  %v3416_v43 = vpop.f32.mrb[30].mxu0  ;;  %v8333_v49 = vpack.c.bf16 %v3634_v41, %v3634_v41  ;;  %v6462_v27 = vld [vmem:[%s8848_s14 + $0x198] ss:$12 sps:$4 sm:$0xff]   ;;  %v3608_v42 = vrot.slane %v8316_v17, %v3607_v35  ;;  %v6578_v35 = vld [vmem:[%s8848_s14 + $0x110] ss:$12 sps:$4 sm:$0xff]  }
 0x47e   :  { %v3417_v47 = vpop.f32.mrb[31].mxu0  ;;  %v3627_v30 = vadd.f32 %v3596_v26, %v8330_v58  ;;  %v6543_v43 = vld [vmem:[%s8848_s14 + $0x300] ss:$12 sps:$4 sm:$0xff]  }
 0x47f   :  { %v3628_v48 = vadd.f32 %v3600_v54, %v3415_v19  ;;  %4962 = vmatprep.mubr.bf16.mxu0 %v8333_v49  ;;  %v6569_v26 = vld [vmem:[%s8848_s14 + $0x20] ss:$12 sps:$4 sm:$0xff]  }
 0x480   :  { %4963 = vmatmul.mubr.bf16.vlgmr.msra.gmra.mrb[40].mxu0 %v8338_v46  ;;  %v3635_v38 = vmax.f32 %v3627_v30, 0.0  ;;  %v6577_v30 = vld [vmem:[%s8848_s14 + $0x394] ss:$12 sps:$4 sm:$0xff]  }
 0x481   :  { %v3636_v23 = vmax.f32 %v3628_v48, 0.0  ;;  %4972 = vmatpush1.bf16.msra.mxu0 %v6459_v51 }
 0x482   :  { %4973 = vmatprep.subr.bf16.mxu0 %v6464_v10  ;;  %v8448_v51 = vpack.c.bf16 %v3635_v38, %v3635_v38  ;;  %v6575_v38 = vld [vmem:[%s8848_s14 + $0x390] ss:$12 sps:$4 sm:$0xff]  }
 0x483   :  { %v8351_v52 = vpack.c.bf16 %v3636_v23, %v3636_v23  ;;  %v3615_v23 = vsub.s32 7, %v7228_v2 }
 0x485   :  { %4974 = vmatpush1.bf16.msra.mxu0 %v6462_v27  ;;  %5003 = vmatprep.mubr.bf16.mxu0 %v8351_v52 }
 0x486   :  { %4975 = vmatprep.subr.bf16.mxu0 %v6467_v50 }
 0x489   :  { %4976 = vmatpush1.bf16.msra.mxu0 %v6465_v56  ;;  %v6557_v56 = vld [vmem:[%s8848_s14 + $0x334] ss:$12 sps:$4 sm:$0xff]  }
 0x48a   :  { %4977 = vmatprep.subr.bf16.mxu0 %v6470_v61 }
 0x48d   :  { %4978 = vmatpush1.bf16.msra.mxu0 %v6468_v62 }
 0x48e   :  { %4979 = vmatprep.subr.bf16.mxu0 %v6473_v63 }
 0x491   :  { %4980 = vmatpush1.bf16.msra.mxu0 %v6471_v0 }
 0x492   :  { %4981 = vmatprep.subr.bf16.mxu0 %v6479_v33 }
 0x495   :  { %4982 = vmatpush1.bf16.msra.mxu0 %v6477_v36 }
 0x496   :  { %4983 = vmatprep.subr.bf16.mxu0 %v6485_v1 }
 0x499   :  { %4984 = vmatpush1.bf16.msra.mxu0 %v6483_v4 }
 0x49a   :  { %4985 = vmatprep.subr.bf16.mxu0 %v6491_v7  ;;  %v6555_v7 = vld [vmem:[%s8848_s14 + $0x330] ss:$12 sps:$4 sm:$0xff]  }
 0x49d   :  { %4986 = vmatpush1.bf16.msra.mxu0 %v6489_v37 }
 0x49e   :  { %4987 = vmatprep.subr.bf16.mxu0 %v6497_v9 }
 0x4a1   :  { %4988 = vmatpush1.bf16.msra.mxu0 %v6495_v12 }
 0x4a2   :  { %4989 = vmatprep.subr.bf16.mxu0 %v6503_v13 }
 0x4a5   :  { %4990 = vmatpush1.bf16.msra.mxu0 %v6501_v15 }
 0x4a6   :  { %4991 = vmatprep.subr.bf16.mxu0 %v6509_v57  ;;  %v6560_v57 = vld [vmem:[%s8848_s14 + $0x348] ss:$12 sps:$4 sm:$0xff]  }
 0x4a9   :  { %4992 = vmatpush1.bf16.msra.mxu0 %v6507_v44  ;;  %v6567_v44 = vld [vmem:[%s8848_s14 + $0x364] ss:$12 sps:$4 sm:$0xff]  }
 0x4aa   :  { %4993 = vmatprep.subr.bf16.mxu0 %v6515_v60 }
 0x4ad   :  { %4994 = vmatpush1.bf16.msra.mxu0 %v6513_v16  ;;  %v6564_v16 = vld [vmem:[%s8848_s14 + $0x8] ss:$12 sps:$4 sm:$0xff]  }
 0x4ae   :  { %4995 = vmatprep.subr.bf16.mxu0 %v6521_v18 }
 0x4b1   :  { %4996 = vmatpush1.bf16.msra.mxu0 %v6519_v20  ;;  %v6568_v20 = vld [vmem:[%s8848_s14 + $0xe0] ss:$12 sps:$4 sm:$0xff]  }
 0x4b2   :  { %4997 = vmatprep.subr.bf16.mxu0 %v6527_v24  ;;  %v6565_v24 = vld [vmem:[%s8848_s14 + $0x360] ss:$12 sps:$4 sm:$0xff]  }
 0x4b5   :  { %4998 = vmatpush1.bf16.msra.mxu0 %v6525_v25  ;;  %v6572_v25 = vld [vmem:[%s8848_s14 + $0x37c] ss:$12 sps:$4 sm:$0xff]  }
 0x4b6   :  { %4999 = vmatprep.subr.bf16.mxu0 %v6533_v28  ;;  %v6573_v28 = vld [vmem:[%s8848_s14 + $0xf8] ss:$12 sps:$4 sm:$0xff]  }
 0x4b9   :  { %5000 = vmatpush1.bf16.msra.mxu0 %v6531_v29  ;;  %v6570_v29 = vld [vmem:[%s8848_s14 + $0x378] ss:$12 sps:$4 sm:$0xff]  }
 0x4ba   :  { %5001 = vmatprep.subr.bf16.mxu0 %v6539_v32  ;;  %v6574_v32 = vld [vmem:[%s8848_s14 + $0x38] ss:$12 sps:$4 sm:$0xff]  }
 0x4bb   :  { %v3453_v34 = vpop.f32.mrb[32].mxu0 }
 0x4bc   :  { %v3454_v54 = vadd.f32 %v3453_v34, %v7892_v21  ;;  %v3455_v41 = vpop.f32.mrb[33].mxu0  ;;  %v3611_v21 = vsub.s32 6, %v7228_v2  ;;  %v6579_v34 = vld [vmem:[%s8848_s14 + $0x50] ss:$12 sps:$4 sm:$0xff]  }
 0x4bd   :  { %v3456_v58 = vadd.f32 %v3455_v41, %v7894_v22  ;;  %5002 = vmatpush1.bf16.msra.mxu0 %v6537_v11  ;;  %v3457_v19 = vpop.f32.mrb[34].mxu0  ;;  %v6551_v22 = vld [vmem:[%s8848_s14 + $0x31c] ss:$12 sps:$4 sm:$0xff]  }
 0x4be   :  { %v8451_v47 = vadd.f32 %v8047_v39, %v3454_v54  ;;  %v3458_v10 = vpop.f32.mrb[35].mxu0  ;;  %5012 = vmatprep.subr.bf16.mxu0 %v6545_v14  ;;  %v6549_v39 = vld [vmem:[%s8848_s14 + $0x318] ss:$12 sps:$4 sm:$0xff]   ;;  %v3612_v50 = vrot.slane %v8316_v17, %v3611_v21  ;;  %v6583_v54 = vld [vmem:[%s8848_s14 + $0x128] ss:$12 sps:$4 sm:$0xff]  }
 0x4bf   :  { %v3497_v48 = vadd.f32 %v8049_v40, %v3456_v58  ;;  %v3616_v40 = vrot.slane %v8316_v17, %v3615_v23  ;;  %v6582_v14 = vld [vmem:[%s8848_s14 + $0x3ac] ss:$12 sps:$4 sm:$0xff]   ;;  %v6580_v41 = vld [vmem:[%s8848_s14 + $0x3a8] ss:$12 sps:$4 sm:$0xff]   ;;  %v6587_v58 = vld [vmem:[%s8848_s14 + $0x3c4] ss:$12 sps:$4 sm:$0xff]  }
 0x4c0   :  { %5004 = vmatmul.mubr.bf16.vlgmr.msra.gmra.mrb[40].mxu0 %v8448_v51  ;;  %v6588_v19 = vld [vmem:[%s8848_s14 + $0x140] ss:$12 sps:$4 sm:$0xff]   ;;  %v6592_v10 = vld [vmem:[%s8848_s14 + $0x3dc] ss:$12 sps:$4 sm:$0xff]  }
 0x4c1   :  { %v3630_v27 = vadd.f32 %v3608_v42, %v3497_v48  ;;  %5013 = vmatpush1.bf16.msra.mxu0 %v6543_v43  ;;  %v6584_v42 = vld [vmem:[%s8848_s14 + $0x68] ss:$12 sps:$4 sm:$0xff]   ;;  %v6585_v43 = vld [vmem:[%s8848_s14 + $0x3c0] ss:$12 sps:$4 sm:$0xff]   ;;  %v6590_v48 = vld [vmem:[%s8848_s14 + $0x3d8] ss:$12 sps:$4 sm:$0xff]  }
 0x4c2   :  { %5014 = vmatprep.subr.bf16.mxu0 %v6551_v22  ;;  %v6589_v21 = vld [vmem:[%s8848_s14 + $0x80] ss:$12 sps:$4 sm:$0xff]   ;;  %v6593_v22 = vld [vmem:[%s8848_s14 + $0x158] ss:$12 sps:$4 sm:$0xff]  }
 0x4c3   :  { %v3576_v61 = vpop.f32.mrb[36].mxu0  ;;  %v3638_v62 = vmax.f32 %v3630_v27, 0.0  ;;  %v6597_v23 = vld [vmem:[%s8848_s14 + $0x3f4] ss:$12 sps:$4 sm:$0xff]   ;;  %v6594_v27 = vld [vmem:[%s8848_s14 + $0x98] ss:$12 sps:$4 sm:$0xff]  }
 0x4c4   :  { %v3577_v63 = vadd.f32 %v3576_v61, %v8149_v55  ;;  %v3578_v0 = vpop.f32.mrb[37].mxu0  ;;  %v2146_v33 = vpop.xlane.xlu0 %2145  ;;  %v6562_v55 = vld [vmem:[%s8848_s14 + $0x34c] ss:$12 sps:$4 sm:$0xff]   ;;  %v6599_v61 = vld [vmem:[%s8848_s14 + $0xb0] ss:$12 sps:$4 sm:$0xff]  }
 0x4c5   :  { %v3579_v36 = vadd.f32 %v3578_v0, %v8152_v59  ;;  %5015 = vmatpush1.bf16.msra.mxu0 %v6549_v39  ;;  %v2147_v1 = vsub.f32 %v8271_v53, %v2146_v33  ;;  %v3580_v4 = vpop.f32.mrb[38].mxu0  ;;  %v8474_v37 = vpack.c.bf16 %v3638_v62, %v3638_v62  ;;  %v6598_v39 = vld [vmem:[%s8848_s14 + $0x170] ss:$12 sps:$4 sm:$0xff]   ;;  %v6600_v62 = vld [vmem:[%s8848_s14 + $0x408] ss:$12 sps:$4 sm:$0xff]  }
 0x4c6   :  { %v3631_v9 = vadd.f32 %v3612_v50, %v3577_v63  ;;  %v3581_v12 = vpop.f32.mrb[39].mxu0  ;;  %5016 = vmatprep.subr.bf16.mxu0 %v6557_v56  ;;  %v6595_v50 = vld [vmem:[%s8848_s14 + $0x3f0] ss:$12 sps:$4 sm:$0xff]   ;;  %v6602_v56 = vld [vmem:[%s8848_s14 + $0x40c] ss:$12 sps:$4 sm:$0xff]  }
 0x4c7   :  { %v3632_v13 = vadd.f32 %v3616_v40, %v3579_v36  ;;  %v2148_v15 = vmul.f32 1.442695, %v2147_v1  ;;  %5044 = vmatprep.mubr.bf16.mxu0 %v8474_v37  ;;  %v6603_v40 = vld [vmem:[%s8848_s14 + $0x248] ss:$12 sps:$4 sm:$0xff]   ;;  %v6607_v63 = vld [vmem:[%s8848_s14 + $0x424] ss:$12 sps:$4 sm:$0xff]  }
 0x4c8   :  { %v3639_v59 = vmax.f32 %v3631_v9, 0.0  ;;  %v6604_v0 = vld [vmem:[%s8848_s14 + $0x188] ss:$12 sps:$4 sm:$0xff]   ;;  %v6608_v33 = vld [vmem:[%s8848_s14 + $0x260] ss:$12 sps:$4 sm:$0xff]   ;;  %v3603_v1 = vsub.s32 4, %v7228_v2 }
 0x4c9   :  { %v3640_v53 = vmax.f32 %v3632_v13, 0.0  ;;  %6670 = vpow2.f32 %v2148_v15  ;;  %5017 = vmatpush1.bf16.msra.mxu0 %v6555_v7  ;;  %v6605_v36 = vld [vmem:[%s8848_s14 + $0x420] ss:$12 sps:$4 sm:$0xff]   ;;  %v6612_v4 = vld [vmem:[%s8848_s14 + $0x43c] ss:$12 sps:$4 sm:$0xff]  }
 0x4ca   :  { %5018 = vmatprep.subr.bf16.mxu0 %v6562_v55  ;;  %v8491_v18 = vpack.c.bf16 %v3639_v59, %v3639_v59  ;;  %v6609_v7 = vld [vmem:[%s8848_s14 + $0x1a0] ss:$12 sps:$4 sm:$0xff]   ;;  %v6613_v9 = vld [vmem:[%s8848_s14 + $0x278] ss:$12 sps:$4 sm:$0xff]   ;;  %v6618_v55 = vld [vmem:[%s8848_s14 + $0x290] ss:$12 sps:$4 sm:$0xff]  }
 0x4cb   :  { %v8486_v60 = vpack.c.bf16 %v3640_v53, %v3640_v53  ;;  %v6610_v2 = vld [vmem:[%s8848_s14 + $0x438] ss:$12 sps:$4 sm:$0xff]   ;;  %v6619_v59 = vld [vmem:[%s8848_s14 + $0x1d0] ss:$12 sps:$4 sm:$0xff]   ;;  %v6623_v53 = vld [vmem:[%s8848_s14 + $0x2a8] ss:$12 sps:$4 sm:$0xff]  }
 0x4cc   :  { %v6614_v12 = vld [vmem:[%s8848_s14 + $0x1b8] ss:$12 sps:$4 sm:$0xff]  }
 0x4cd   :  { %5019 = vmatpush1.bf16.msra.mxu0 %v6560_v57  ;;  %5892 = vmatprep.mubr.msk.bf16.mxu1 %vm4916_vm0, %v8486_v60  ;;  %v6622_v15 = vld [vmem:[%s8848_s14 + $0x46c] ss:$12 sps:$4 sm:$0xff]  }
 0x4ce   :  { %5086 = vmatmul.mubr.bf16.vlgmr.msra.gmra.mrb[52].mxu1 %v8491_v18  ;;  %5020 = vmatprep.subr.bf16.mxu0 %v6567_v44  ;;  %v6624_v44 = vld [vmem:[%s8848_s14 + $0x1e8] ss:$12 sps:$4 sm:$0xff]  }
 0x4cf   :  { %5997 = vmatpush3.bf16.msra.mxu1 %v6564_v16  ;;  %5126 = vmatprep.mubr.bf16.mxu1 %v8333_v49  ;;  %v6625_v16 = vld [vmem:[%s8848_s14 + $0x2c0] ss:$12 sps:$4 sm:$0xff]  }
 0x4d0   :  { %5998 = vmatprep.subr.bf16.mxu1 %v6568_v20 }
 0x4d1   :  { %5021 = vmatpush1.bf16.msra.mxu0 %v6565_v24  ;;  %v6626_v24 = vld [vmem:[%s8848_s14 + $0x200] ss:$12 sps:$4 sm:$0xff]  }
 0x4d2   :  { %5022 = vmatprep.subr.bf16.mxu0 %v6572_v25  ;;  %v6627_v25 = vld [vmem:[%s8848_s14 + $0x2d8] ss:$12 sps:$4 sm:$0xff]  }
 0x4d3   :  { %v8518_v49 = vpop.eup %6670  ;;  %5999 = vmatpush3.bf16.msra.mxu1 %v6569_v26  ;;  %v6628_v26 = vld [vmem:[%s8848_s14 + $0x218] ss:$12 sps:$4 sm:$0xff]  }
 0x4d4   :  { %6000 = vmatprep.subr.bf16.mxu1 %v6573_v28  ;;  %v2150_v11 = vsel %vm2143_vm14, %v8518_v49, 0.0  ;;  %v6629_v28 = vld [vmem:[%s8848_s14 + $0x2f0] ss:$12 sps:$4 sm:$0xff]  }
 0x4d5   :  { %5023 = vmatpush1.bf16.msra.mxu0 %v6570_v29  ;;  %2151 = vadd.xlane.f32.xlu0 %v2150_v11  ;;  %v6630_v29 = vld [vmem:[%s8848_s14 + $0x230] ss:$12 sps:$4 sm:$0xff]   ;;  %v6633_v11 = vld [vmem:[%s8848_s14 + $0x3e0] ss:$12 sps:$4 sm:$0xff]  }
 0x4d6   :  { %5024 = vmatprep.subr.bf16.mxu0 %v6577_v30  ;;  %v6631_v30 = vld [vmem:[%s8848_s14 + $0x3c8] ss:$12 sps:$4 sm:$0xff]  }
 0x4d7   :  { %6001 = vmatpush3.bf16.msra.mxu1 %v6574_v32  ;;  %v6632_v32 = vld [vmem:[%s8848_s14 + $0x308] ss:$12 sps:$4 sm:$0xff]  }
 0x4d8   :  { %6002 = vmatprep.subr.bf16.mxu1 %v6578_v35  ;;  %v6634_v35 = vld [vmem:[%s8848_s14 + $0x320] ss:$12 sps:$4 sm:$0xff]  }
 0x4d9   :  { %5025 = vmatpush1.bf16.msra.mxu0 %v6575_v38  ;;  %v6635_v38 = vld [vmem:[%s8848_s14 + $0x3f8] ss:$12 sps:$4 sm:$0xff]  }
 0x4da   :  { %5026 = vmatprep.subr.bf16.mxu0 %v6582_v14  ;;  %v6636_v14 = vld [vmem:[%s8848_s14 + $0x338] ss:$12 sps:$4 sm:$0xff]  }
 0x4db   :  { %6003 = vmatpush3.bf16.msra.mxu1 %v6579_v34  ;;  %v6639_v34 = vld [vmem:[%s8848_s14 + $0x428] ss:$12 sps:$4 sm:$0xff]  }
 0x4dc   :  { %6004 = vmatprep.subr.bf16.mxu1 %v6583_v54  ;;  %v6640_v54 = vld [vmem:[%s8848_s14 + $0x368] ss:$12 sps:$4 sm:$0xff]  }
 0x4dd   :  { %5027 = vmatpush1.bf16.msra.mxu0 %v6580_v41  ;;  %v6641_v41 = vld [vmem:[%s8848_s14 + $0x440] ss:$12 sps:$4 sm:$0xff]  }
 0x4de   :  { %5028 = vmatprep.subr.bf16.mxu0 %v6587_v58  ;;  %v6642_v58 = vld [vmem:[%s8848_s14 + $0x380] ss:$12 sps:$4 sm:$0xff]  }
 0x4df   :  { %6005 = vmatpush3.bf16.msra.mxu1 %v6584_v42  ;;  %v6643_v42 = vld [vmem:[%s8848_s14 + $0x458] ss:$12 sps:$4 sm:$0xff]  }
 0x4e0   :  { %6006 = vmatprep.subr.bf16.mxu1 %v6588_v19  ;;  %v6644_v19 = vld [vmem:[%s8848_s14 + $0x398] ss:$12 sps:$4 sm:$0xff]  }
 0x4e1   :  { %5029 = vmatpush1.bf16.msra.mxu0 %v6585_v43  ;;  %v6645_v43 = vld [vmem:[%s8848_s14 + $0x470] ss:$12 sps:$4 sm:$0xff]  }
 0x4e2   :  { %5030 = vmatprep.subr.bf16.mxu0 %v6592_v10  ;;  %v6646_v10 = vld [vmem:[%s8848_s14 + $0x3b0] ss:$12 sps:$4 sm:$0xff]  }
 0x4e3   :  { %6007 = vmatpush3.bf16.msra.mxu1 %v6589_v21  ;;  %v6647_v21 = vld [vmem:[%s8848_s14 + $0x488] ss:$12 sps:$4 sm:$0xff]  }
 0x4e4   :  { %6008 = vmatprep.subr.bf16.mxu1 %v6593_v22  ;;  %v6648_v22 = vld [vmem:[%s8848_s14 + $0x4a0] ss:$12 sps:$4 sm:$0xff]  }
 0x4e5   :  { %5031 = vmatpush1.bf16.msra.mxu0 %v6590_v48  ;;  %v6649_v48 = vld [vmem:[%s8848_s14 + $0x4b8] ss:$12 sps:$4 sm:$0xff]  }
 0x4e6   :  { %5032 = vmatprep.subr.bf16.mxu0 %v6597_v23  ;;  %v6650_v23 = vld [vmem:[%s8848_s14 + $0x4d0] ss:$12 sps:$4 sm:$0xff]  }
 0x4e7   :  { %6009 = vmatpush3.bf16.msra.mxu1 %v6594_v27  ;;  %v6652_v27 = vld [vmem:[%s8848_s14 + $0x500] ss:$12 sps:$4 sm:$0xff]  }
 0x4e8   :  { %6010 = vmatprep.subr.bf16.mxu1 %v6598_v39  ;;  %v6653_v39 = vld [vmem:[%s8848_s14 + $0x518] ss:$12 sps:$4 sm:$0xff]  }
 0x4e9   :  { %5033 = vmatpush1.bf16.msra.mxu0 %v6595_v50  ;;  %v6654_v50 = vld [vmem:[%s8848_s14 + $0x530] ss:$12 sps:$4 sm:$0xff]  }
 0x4ea   :  { %5034 = vmatprep.subr.bf16.mxu0 %v6602_v56  ;;  %v6655_v56 = vld [vmem:[%s8848_s14 + $0x548] ss:$12 sps:$4 sm:$0xff]  }
 0x4eb   :  { %6011 = vmatpush3.bf16.msra.mxu1 %v6599_v61  ;;  %v6656_v61 = vld [vmem:[%s8848_s14 + $0x560] ss:$12 sps:$4 sm:$0xff]  }
 0x4ec   :  { %6018 = vmatprep.subr.bf16.mxu1 %v6603_v40  ;;  %v6657_v40 = vld [vmem:[%s8848_s14 + $0x578] ss:$12 sps:$4 sm:$0xff]  }
 0x4ed   :  { %5035 = vmatpush1.bf16.msra.mxu0 %v6600_v62  ;;  %v6658_v62 = vld [vmem:[%s8848_s14 + $0x590] ss:$12 sps:$4 sm:$0xff]  }
 0x4ee   :  { %5127 = vmatmul.mubr.bf16.vlgmr.msra.gmra.mrb[56].mxu1 %v8338_v46  ;;  %5036 = vmatprep.subr.bf16.mxu0 %v6607_v63  ;;  %v3604_v46 = vrot.slane %v8316_v17, %v3603_v1  ;;  %v6615_v17 = vld [vmem:[%s8848_s14 + $0x450] ss:$12 sps:$4 sm:$0xff]   ;;  %v6659_v63 = vld [vmem:[%s8848_s14 + $0x5a8] ss:$12 sps:$4 sm:$0xff]  }
 0x4ef   :  { %6019 = vmatpush3.bf16.msra.mxu1 %v6604_v0  ;;  %5166 = vmatprep.mubr.bf16.mxu1 %v8351_v52  ;;  %v6617_v52 = vld [vmem:[%s8848_s14 + $0x454] ss:$12 sps:$4 sm:$0xff]  }
 0x4f0   :  { %6020 = vmatprep.subr.bf16.mxu1 %v6608_v33  ;;  %v3629_v13 = vadd.f32 %v3604_v46, %v8451_v47  ;;  %v6620_v47 = vld [vmem:[%s8848_s14 + $0x468] ss:$12 sps:$4 sm:$0xff]   ;;  %v6660_v0 = vld [vmem:[%s8848_s14 + $0x5c0] ss:$12 sps:$4 sm:$0xff]   ;;  %v6661_v33 = vld [vmem:[%s8848_s14 + $0x5d8] ss:$0 sps:$4 sm:$0xff]  }
 0x4f1   :  { %5037 = vmatpush1.bf16.msra.mxu0 %v6605_v36  ;;  %v4928_v1 = vsel %vm4920_vm15, %v6661_v33, 0 }
 0x4f2   :  { %5038 = vmatprep.subr.bf16.mxu0 %v6612_v4  ;;  %v3637_v57 = vmax.f32 %v3629_v13, 0.0 }
 0x4f3   :  { %6021 = vmatpush3.bf16.msra.mxu1 %v6609_v7 }
 0x4f4   :  { %6022 = vmatprep.subr.bf16.mxu1 %v6613_v9  ;;  %v3645_v20 = vpack.c.bf16 %v3637_v57, %v3637_v57 }
 0x4f5   :  { %5039 = vmatpush1.bf16.msra.mxu0 %v6610_v2 }
 0x4f6   :  { %5040 = vmatprep.subr.bf16.mxu0 %v6617_v52 }
 0x4f7   :  { %6023 = vmatpush3.bf16.msra.mxu1 %v6614_v12 }
 0x4f8   :  { %6024 = vmatprep.subr.bf16.mxu1 %v6618_v55 }
 0x4f9   :  { %5041 = vmatpush1.bf16.msra.mxu0 %v6615_v17 }
 0x4fa   :  { %5042 = vmatprep.subr.bf16.mxu0 %v6622_v15 }
 0x4fb   :  { %6025 = vmatpush3.bf16.msra.mxu1 %v6619_v59 }
 0x4fc   :  { %6026 = vmatprep.subr.bf16.mxu1 %v6623_v53 }
 0x4fd   :  { %5043 = vmatpush1.bf16.msra.mxu0 %v6620_v47 }
 0x4ff   :  { %6027 = vmatpush3.bf16.msra.mxu1 %v6624_v44 }
 0x500   :  { %5045 = vmatmul.mubr.bf16.vlgmr.msra.gmra.mrb[40].mxu0 %v3645_v20  ;;  %6028 = vmatprep.subr.bf16.mxu1 %v6625_v16 }
 0x503   :  { %6029 = vmatpush3.bf16.msra.mxu1 %v6626_v24 }
 0x504   :  { %6030 = vmatprep.subr.bf16.mxu1 %v6627_v25 }
 0x507   :  { %6031 = vmatpush3.bf16.msra.mxu1 %v6628_v26 }
 0x508   :  { %6032 = vmatprep.subr.bf16.mxu1 %v6629_v28 }
 0x50b   :  { %6033 = vmatpush3.bf16.msra.mxu1 %v6630_v29 }
 0x50c   :  { %6040 = vmatprep.subr.bf16.mxu1 %v6631_v30 }
 0x50e   :  { %5167 = vmatmul.mubr.bf16.vlgmr.msra.gmra.mrb[60].mxu1 %v8448_v51  ;;  %v6637_v51 = vld [vmem:[%s8848_s14 + $0x410] ss:$12 sps:$4 sm:$0xff]  }
 0x50f   :  { %6041 = vmatpush3.bf16.msra.mxu1 %v6632_v32  ;;  %5206 = vmatprep.mubr.bf16.mxu1 %v8474_v37  ;;  %v6638_v37 = vld [vmem:[%s8848_s14 + $0x350] ss:$12 sps:$4 sm:$0xff]  }
 0x510   :  { %6042 = vmatprep.subr.bf16.mxu1 %v6633_v11 }
 0x513   :  { %6043 = vmatpush3.bf16.msra.mxu1 %v6634_v35 }
 0x514   :  { %6044 = vmatprep.subr.bf16.mxu1 %v6635_v38 }
 0x517   :  { %6045 = vmatpush3.bf16.msra.mxu1 %v6636_v14 }
 0x518   :  { %6046 = vmatprep.subr.bf16.mxu1 %v6637_v51 }
 0x51b   :  { %6047 = vmatpush3.bf16.msra.mxu1 %v6638_v37 }
 0x51c   :  { %6048 = vmatprep.subr.bf16.mxu1 %v6639_v34 }
 0x51f   :  { %6049 = vmatpush3.bf16.msra.mxu1 %v6640_v54 }
 0x520   :  { %6050 = vmatprep.subr.bf16.mxu1 %v6641_v41 }
 0x523   :  { %6051 = vmatpush3.bf16.msra.mxu1 %v6642_v58 }
 0x524   :  { %6052 = vmatprep.subr.bf16.mxu1 %v6643_v42 }
 0x527   :  { %6053 = vmatpush3.bf16.msra.mxu1 %v6644_v19 }
 0x528   :  { %6054 = vmatprep.subr.bf16.mxu1 %v6645_v43 }
 0x52b   :  { %6055 = vmatpush3.bf16.msra.mxu1 %v6646_v10 }
 0x52c   :  { %5214 = vmatprep.subr.bf16.mxu1 %v6744_v6 }
 0x52e   :  { %5207 = vmatmul.mubr.bf16.vlgmr.msra.gmra.mrb[64].mxu1 %v3645_v20 }
 0x52f   :  { %5215 = vmatpush1.bf16.msra.mxu1 %v6647_v21  ;;  %5893 = vmatprep.mubr.msk.bf16.mxu1 %vm4916_vm0, %v8486_v60  ;;  %v6651_v60 = vld [vmem:[%s8848_s14 + $0x4e8] ss:$12 sps:$4 sm:$0xff]   ;;  %s6748_s14 = smov [#allocation4]  }
 0x530   :  { %5216 = vmatprep.subr.bf16.mxu1 %v6744_v6  ;;  %s5291_s0 = sshll.u32 %s6748_s14, 4  ;;  %s5292_s0 = int_to_ptr.vmem [resolvable:$true] %s5291_s0 }
 0x531   :  { %s6674_s8 = scalar_lea.vmem %s5292_s0, 96  ;;  %p6679_p1 = scmp.lt.s32.totalorder %s5292_s0, %s5292_s0 }
 0x532   :  { %p6675_p0 = scmp.ne.s32.totalorder %s5292_s0, %s6674_s8  ;;  %p6680_p2 = scmp.lt.s32.totalorder %s6674_s8, %s6674_s8 }
 0x533   :  { %5217 = vmatpush1.bf16.msra.mxu1 %v6648_v22 }
 0x534   :  { %5218 = vmatprep.subr.bf16.mxu1 %v6744_v6  ;;  %p6681_p3 = por %p6680_p2, %p6679_p1 }
 0x536   :  { %p6682_p4 = pnand %p6681_p3, %p6675_p0 }
 0x537   :  { %5219 = vmatpush1.bf16.msra.mxu1 %v6649_v48 }
 0x538   :  { %5220 = vmatprep.subr.bf16.mxu1 %v6744_v6 }
 0x53b   :  { %5221 = vmatpush1.bf16.msra.mxu1 %v6650_v23 }
 0x53c   :  { %5222 = vmatprep.subr.bf16.mxu1 %v6744_v6 }
 0x53f   :  { %5223 = vmatpush1.bf16.msra.mxu1 %v6651_v60 }
 0x540   :  { %5224 = vmatprep.subr.bf16.mxu1 %v6744_v6 }
 0x543   :  { %5225 = vmatpush1.bf16.msra.mxu1 %v6652_v27 }
 0x544   :  { %5226 = vmatprep.subr.bf16.mxu1 %v6744_v6 }
 0x547   :  { %5227 = vmatpush1.bf16.msra.mxu1 %v6653_v39 }
 0x548   :  { %5228 = vmatprep.subr.bf16.mxu1 %v6744_v6 }
 0x54b   :  { %5229 = vmatpush1.bf16.msra.mxu1 %v6654_v50 }
 0x54c   :  { %5230 = vmatprep.subr.bf16.mxu1 %v6744_v6 }
 0x54f   :  { %5231 = vmatpush1.bf16.msra.mxu1 %v6655_v56 }
 0x550   :  { %5232 = vmatprep.subr.bf16.mxu1 %v6744_v6 }
 0x553   :  { %5233 = vmatpush1.bf16.msra.mxu1 %v6656_v61 }
 0x554   :  { %5234 = vmatprep.subr.bf16.mxu1 %v6744_v6 }
 0x557   :  { %5235 = vmatpush1.bf16.msra.mxu1 %v6657_v40 }
 0x558   :  { %5236 = vmatprep.subr.bf16.mxu1 %v6744_v6 }
 0x55b   :  { %5237 = vmatpush1.bf16.msra.mxu1 %v6658_v62 }
 0x55c   :  { %5238 = vmatprep.subr.bf16.mxu1 %v6744_v6 }
 0x55f   :  { %5239 = vmatpush1.bf16.msra.mxu1 %v6659_v63 }
 0x560   :  { %5240 = vmatprep.subr.bf16.mxu1 %v6744_v6 }
 0x562   :  { %v2152_v36 = vpop.xlane.xlu0 %2151 }
 0x563   :  { %5241 = vmatpush1.bf16.msra.mxu1 %v6660_v0  ;;  %6672 = vrcp.f32 %v2152_v36 }
 0x564   :  { %5242 = vmatprep.subr.bf16.mxu1 %v6744_v6 }
 0x567   :  { %5243 = vmatpush1.bf16.msra.mxu1 %v4928_v1 }
 0x56a   :  { %5247 = vmatmul.mubr.bf16.vlgmr.msra.gmra.mrb[68].mxu1 %v8491_v18 }
 0x56d   :  { %v6673_v4 = vpop.eup %6672 }
 0x56e   :  { %v2154_v7 = vmul.f32 %v6673_v4, %v8518_v49 }
 0x570   :  { %2155 = vst.msk [vmem:[#allocation2] sm:$0x3] %vm2143_vm14, %v2154_v7 }
 0x5a1   :  { %v5087_v9 = vpop.f32.mrb[52].mxu1 }
 0x5a2   :  { %v5089_v2 = vpop.f32.mrb[53].mxu1 }
 0x5a3   :  { %v5091_v46 = vpop.f32.mrb[54].mxu1 }
 0x5a4   :  { %v5092_v52 = vpop.f32.mrb[55].mxu1 }
 0x5c1   :  { %v6012_v12 = vpop.f32.mrb[56].mxu1 }
 0x5c2   :  { %v6013_v6 = vpop.f32.mrb[57].mxu1 }
 0x5c3   :  { %v6014_v55 = vadd.f32 %v6013_v6, %v6012_v12  ;;  %v6015_v18 = vpop.f32.mrb[58].mxu1 }
 0x5c4   :  { %6685 = shalt.err (!%p6682_p4)
}
 0x5c5   :  { %s6686_s21 = scalar_lea.hbm %s8851_s17, 96 }
 0x5c6   :  { %p6687_p5 = scmp.ne.s32.totalorder %s8851_s17, %s6686_s21  ;;  %p6690_p6 = scmp.lt.u32.totalorder %s6686_s21, %s8851_s17 }
 0x5c8   :  { %p6692_p7 = pnand %p6690_p6, %p6687_p5 }
 0x5ca   :  { %6695 = shalt.err (!%p6692_p7)
}
 0x5cb   :  { %5294 = dma.vmem_to_hbm [thread:$0]  %s5292_s0, 96, %s8851_s17, [#allocation5]   ;;  %v6016_v49 = vpop.f32.mrb[59].mxu1 }
 0x5cc   :  { %s6696_s3 = scalar_lea.vmem %s8781_s1, 32  ;;  %p6701_p9 = scmp.lt.s32.totalorder %s8781_s1, %s8781_s1 }
 0x5cd   :  { %p6697_p8 = scmp.ne.s32.totalorder %s8781_s1, %s6696_s3  ;;  %p6702_p10 = scmp.lt.s32.totalorder %s6696_s3, %s6696_s3 }
 0x5cf   :  { %p6703_p11 = por %p6702_p10, %p6701_p9 }
 0x5d1   :  { %p6704_p12 = pnand %p6703_p11, %p6697_p8 }
 0x5d3   :  { %6707 = shalt.err (!%p6704_p12)
}
 0x5d4   :  { %s6708_s24 = scalar_lea.hbm %s8850_s16, 32 }
 0x5d5   :  { %p6709_p13 = scmp.ne.s32.totalorder %s8850_s16, %s6708_s24  ;;  %p6712_p0 = scmp.lt.u32.totalorder %s6708_s24, %s8850_s16 }
 0x5d7   :  { %p6714_p1 = pnand %p6712_p0, %p6709_p13 }
 0x5d9   :  { %6717 = shalt.err (!%p6714_p1)
}
 0x5da   :  { %5284 = dma.vmem_to_hbm [thread:$0]  %s8781_s1, 32, %s8850_s16, [#allocation3]   ;;  %v3899_v17 = vld [vmem:[%s8849_s15] sm:$0x7]  ;;  %v5046_v59 = vpop.f32.mrb[40].mxu0 }
 0x5db   :  { %v3904_v13 = vrot.slane %v3899_v17, %v7231_v3  ;;  %v3908_v15 = vrot.slane %v3899_v17, %v7237_v5  ;;  %v5048_v47 = vpop.f32.mrb[41].mxu0  ;;  %v3912_v26 = vrot.slane %v3899_v17, %v7241_v8  ;;  %s6750_s15 = smov [#allocation6]  }
 0x5dc   :  { %v5050_v44 = vpop.f32.mrb[42].mxu0  ;;  %s5301_s16 = sshll.u32 %s6750_s15, 4  ;;  %s5302_s16 = int_to_ptr.vmem [resolvable:$true] %s5301_s16 }
 0x5dd   :  { %v6104_v53 = vadd.f32 %v5046_v59, %v3904_v13  ;;  %v6106_v57 = vadd.f32 %v5048_v47, %v3908_v15  ;;  %v5051_v20 = vpop.f32.mrb[43].mxu0  ;;  %v5129_v30 = vadd.f32 %v6014_v55, %v3912_v26  ;;  %s6718_s28 = scalar_lea.vmem %s5302_s16, 96  ;;  %p6723_p3 = scmp.lt.s32.totalorder %s5302_s16, %s5302_s16 }
 0x5de   :  { %p6719_p2 = scmp.ne.s32.totalorder %s5302_s16, %s6718_s28  ;;  %p6724_p4 = scmp.lt.s32.totalorder %s6718_s28, %s6718_s28 }
 0x5df   :  { %v6105_v16 = vadd.f32 %v6104_v53, %v5087_v9  ;;  %v6107_v24 = vadd.f32 %v6106_v57, %v5089_v2 }
 0x5e0   :  { %p6725_p5 = por %p6724_p4, %p6723_p3 }
 0x5e1   :  { %v5257_v25 = vcombine.low %v6105_v16, %v6107_v24  ;;  %v6034_v28 = vpop.f32.mrb[60].mxu1 }
 0x5e2   :  { %v6035_v29 = vpop.f32.mrb[61].mxu1  ;;  %p6726_p6 = pnand %p6725_p5, %p6719_p2 }
 0x5e3   :  { %v6036_v32 = vadd.f32 %v6035_v29, %v6034_v28  ;;  %v6037_v11 = vpop.f32.mrb[62].mxu1  ;;  %v5264_v43 = vrot.slane %v5257_v25, %v7478_v31 }
 0x5e4   :  { %v6038_v35 = vpop.f32.mrb[63].mxu1 }
 0x5e5   :  { %v5169_v3 = vadd.f32 %v6036_v32, %v5129_v30 }
 0x601   :  { %v6056_v38 = vpop.f32.mrb[64].mxu1 }
 0x602   :  { %v6057_v5 = vpop.f32.mrb[65].mxu1 }
 0x603   :  { %v6058_v14 = vadd.f32 %v6057_v5, %v6056_v38  ;;  %v6059_v51 = vpop.f32.mrb[66].mxu1 }
 0x604   :  { %v6060_v37 = vpop.f32.mrb[67].mxu1 }
 0x605   :  { %v5209_v34 = vadd.f32 %v6058_v14, %v5169_v3 }
 0x63d   :  { %v5248_v54 = vpop.f32.mrb[68].mxu1 }
 0x63e   :  { %v5249_v41 = vadd.f32 %v5248_v54, %v5209_v34  ;;  %v5250_v58 = vpop.f32.mrb[69].mxu1 }
 0x63f   :  { %v5251_v42 = vpop.f32.mrb[70].mxu1 }
 0x640   :  { %v5271_v8 = vrot.slane %v5249_v41, %v7478_v31  ;;  %v5252_v19 = vpop.f32.mrb[71].mxu1 }
 0x642   :  { %v5272_v10 = vcombine.low %v5264_v43, %v5271_v8 }
 0x644   :  { %5274 = vst.msk [vmem:[#allocation6] sm:$0x3f] %vm7495_vm10, %v5272_v10 }
 0x645   :  { %6729 = shalt.err (!%p6726_p6)
}
 0x646   :  { %s6730_s0 = scalar_lea.hbm %s8852_s18, 96 }
 0x647   :  { %p6731_p7 = scmp.ne.s32.totalorder %s8852_s18, %s6730_s0  ;;  %p6734_p8 = scmp.lt.u32.totalorder %s6730_s0, %s8852_s18 }
 0x649   :  { %p6736_p9 = pnand %p6734_p8, %p6731_p7 }
 0x64b   :  { %6739 = shalt.err (!%p6736_p9)
}
 0x64c   :  { %5304 = dma.vmem_to_hbm [thread:$0]  %s5302_s16, 96, %s8852_s18, [#allocation5]  }
 0x64d   :  { %6740 = dma.done.wait [#allocation3], 32  }
 0x64e   :  { %6741 = vsyncadd [#allocation3], 4294967264 }
 0x64f   :  { %6742 = dma.done.wait [#allocation5], 192  }
 0x650   :  { %6743 = vsyncadd [#allocation5], 4294967104 }
 0x651   :  { %5314 = vsyncpa [#allocation3], 1 }
 0x652   :  { %5315 = vsyncpa [#allocation5], 1 }

// kernel: mario_icm_forward.2
= control target key start
LH: loop header
LB: loop body
LE: loop exit
PB: predicated region body
PF: predicated region fallthrough
CT: control target
= control target key end

     0   :  { %v18554_v0 = vmov 0   ;;  %vm429_vm0 = vcmask 130048   ;;  %s18538_s1 = inlined_call_operand.vmem [shape: bf16[144,128], index: 1, kind: input, shape index: {}]   ;;  %s18539_s0 = inlined_call_operand.vmem [shape: bf16[441,144], index: 0, kind: input, shape index: {}]   ;;  %s18540_s2 = inlined_call_operand.vmem [shape: f32[1,128], index: 2, kind: input, shape index: {}]   ;;  %s18541_s3 = inlined_call_operand.vmem [shape: bf16[9,121,441], index: 3, kind: input, shape index: {}]   ;;  %s18542_s4 = inlined_call_operand.vmem [shape: bf16[9,128,128], index: 4, kind: input, shape index: {}]   ;;  %s18543_s6 = inlined_call_operand.vmem [shape: bf16[9,36,121], index: 6, kind: input, shape index: {}]   ;;  %s18544_s5 = inlined_call_operand.vmem [shape: f32[1,128], index: 5, kind: input, shape index: {}]   ;;  %s18545_s7 = inlined_call_operand.vmem [shape: bf16[9,128,128], index: 7, kind: input, shape index: {}]   ;;  %s18546_s9 = inlined_call_operand.vmem [shape: bf16[9,9,36], index: 9, kind: input, shape index: {}]   ;;  %s18547_s10 = inlined_call_operand.vmem [shape: bf16[9,128,128], index: 10, kind: input, shape index: {}]   ;;  %s18548_s8 = inlined_call_operand.vmem [shape: f32[1,128], index: 8, kind: input, shape index: {}]   ;;  %s18549_s11 = inlined_call_operand.vmem [shape: f32[1,128], index: 11, kind: input, shape index: {}]   ;;  %s18550_s12 = inlined_call_operand.vmem [shape: f32[9,128], index: 12, kind: output, shape index: {}]  }
   0x1   :  { %514 = vmatprep.subr.bf16.mxu0 %v18554_v0  ;;  %v13701_v1 = vld [vmem:[%s18538_s1] sm:$0xff]   ;;  %v13702_v2 = vld [vmem:[%s18538_s1 + $0x8] sm:$0xff]   ;;  %v13703_v3 = vld [vmem:[%s18538_s1 + $0x10] sm:$0xff]  }
   0x2   :  { %515 = vmatpush1.bf16.msra.mxu0 %v13701_v1  ;;  %v13704_v4 = vld [vmem:[%s18538_s1 + $0x18] sm:$0xff]   ;;  %v13712_v5 = vld [vmem:[%s18539_s0 + $0x4] ss:$8 sps:$4 sm:$0xff]   ;;  %v13707_v8 = vld [vmem:[%s18538_s1 + $0x30] sm:$0xff]  }
   0x3   :  { %516 = vmatprep.subr.bf16.mxu0 %v18554_v0  ;;  %10020 = vmatprep.mubr.msk.bf16.mxu0 %vm429_vm0, %v13712_v5  ;;  %v13705_v6 = vld [vmem:[%s18538_s1 + $0x20] sm:$0xff]   ;;  %v13706_v7 = vld [vmem:[%s18538_s1 + $0x28] sm:$0xff]   ;;  %v13708_v9 = vld [vmem:[%s18538_s1 + $0x38] sm:$0xff]  }
   0x4   :  { %v13709_v10 = vld [vmem:[%s18538_s1 + $0x40] sm:$0xff]   ;;  %v13713_v12 = vld [vmem:[%s18539_s0 + $0x14] ss:$8 sps:$4 sm:$0xff]   ;;  %v13715_v13 = vld [vmem:[%s18539_s0 + $0x10] ss:$8 sps:$4 sm:$0xff]  }
   0x5   :  { %v13710_v11 = vld [vmem:[%s18539_s0] ss:$8 sps:$4 sm:$0xff]   ;;  %v13716_v14 = vld [vmem:[%s18539_s0 + $0x24] ss:$8 sps:$4 sm:$0xff]   ;;  %v13719_v16 = vld [vmem:[%s18539_s0 + $0x34] ss:$8 sps:$4 sm:$0xff]  }
   0x6   :  { %517 = vmatpush1.bf16.msra.mxu0 %v13702_v2  ;;  %v13718_v15 = vld [vmem:[%s18539_s0 + $0x20] ss:$8 sps:$4 sm:$0xff]   ;;  %v13721_v17 = vld [vmem:[%s18539_s0 + $0x30] ss:$8 sps:$4 sm:$0xff]   ;;  %v13722_v18 = vld [vmem:[%s18539_s0 + $0x44] ss:$8 sps:$4 sm:$0xff]  }
   0x7   :  { %518 = vmatprep.subr.bf16.mxu0 %v18554_v0  ;;  %v13724_v19 = vld [vmem:[%s18539_s0 + $0x40] ss:$8 sps:$4 sm:$0xff]   ;;  %v13725_v20 = vld [vmem:[%s18539_s0 + $0x54] ss:$8 sps:$4 sm:$0xff]   ;;  %v13727_v21 = vld [vmem:[%s18539_s0 + $0x50] ss:$8 sps:$4 sm:$0xff]  }
   0x8   :  { %v13728_v22 = vld [vmem:[%s18539_s0 + $0x64] ss:$8 sps:$4 sm:$0xff]   ;;  %v13730_v23 = vld [vmem:[%s18539_s0 + $0x60] ss:$8 sps:$4 sm:$0xff]   ;;  %v13731_v24 = vld [vmem:[%s18539_s0 + $0x74] ss:$8 sps:$4 sm:$0xff]  }
   0x9   :  { %v13733_v25 = vld [vmem:[%s18539_s0 + $0x70] ss:$8 sps:$4 sm:$0xff]   ;;  %v13734_v26 = vld [vmem:[%s18539_s0 + $0x84] ss:$8 sps:$4 sm:$0xff]   ;;  %v13736_v27 = vld [vmem:[%s18539_s0 + $0x80] ss:$8 sps:$4 sm:$0xff]  }
   0xa   :  { %519 = vmatpush1.bf16.msra.mxu0 %v13703_v3  ;;  %v13737_v28 = vld [vmem:[%s18539_s0 + $0x94] ss:$8 sps:$4 sm:$0xff]   ;;  %v13739_v29 = vld [vmem:[%s18539_s0 + $0x90] ss:$8 sps:$4 sm:$0xff]   ;;  %v13740_v30 = vld [vmem:[%s18539_s0 + $0xa4] ss:$8 sps:$4 sm:$0xff]  }
   0xb   :  { %520 = vmatprep.subr.bf16.mxu0 %v18554_v0  ;;  %v13742_v31 = vld [vmem:[%s18539_s0 + $0xa0] ss:$8 sps:$4 sm:$0xff]   ;;  %v13743_v32 = vld [vmem:[%s18539_s0 + $0xb4] ss:$8 sps:$4 sm:$0xff]   ;;  %v13745_v33 = vld [vmem:[%s18539_s0 + $0xb0] ss:$8 sps:$4 sm:$0xff]  }
   0xc   :  { %v13746_v34 = vld [vmem:[%s18539_s0 + $0xc4] ss:$8 sps:$4 sm:$0xff]   ;;  %v13748_v35 = vld [vmem:[%s18539_s0 + $0xc0] ss:$8 sps:$4 sm:$0xff]   ;;  %v13749_v36 = vld [vmem:[%s18539_s0 + $0xd4] ss:$8 sps:$4 sm:$0xff]  }
   0xd   :  { %v13751_v37 = vld [vmem:[%s18539_s0 + $0xd0] ss:$8 sps:$4 sm:$0xff]   ;;  %v13752_v38 = vld [vmem:[%s18539_s0 + $0xe4] ss:$8 sps:$4 sm:$0xff]   ;;  %v13754_v39 = vld [vmem:[%s18539_s0 + $0xe0] ss:$8 sps:$4 sm:$0xff]  }
   0xe   :  { %521 = vmatpush1.bf16.msra.mxu0 %v13704_v4  ;;  %v13755_v40 = vld [vmem:[%s18539_s0 + $0xf4] ss:$8 sps:$4 sm:$0xff]   ;;  %v13757_v41 = vld [vmem:[%s18539_s0 + $0xf0] ss:$8 sps:$4 sm:$0xff]   ;;  %v13758_v42 = vld [vmem:[%s18539_s0 + $0x104] ss:$8 sps:$4 sm:$0xff]  }
   0xf   :  { %522 = vmatprep.subr.bf16.mxu0 %v18554_v0  ;;  %v13760_v43 = vld [vmem:[%s18539_s0 + $0x100] ss:$8 sps:$4 sm:$0xff]   ;;  %v13761_v44 = vld [vmem:[%s18539_s0 + $0x114] ss:$8 sps:$4 sm:$0xff]   ;;  %v13763_v45 = vld [vmem:[%s18539_s0 + $0x110] ss:$8 sps:$4 sm:$0xff]  }
  0x10   :  { %v13764_v46 = vld [vmem:[%s18539_s0 + $0x124] ss:$8 sps:$4 sm:$0xff]   ;;  %v13766_v47 = vld [vmem:[%s18539_s0 + $0x120] ss:$8 sps:$4 sm:$0xff]   ;;  %v13767_v48 = vld [vmem:[%s18539_s0 + $0x134] ss:$8 sps:$4 sm:$0xff]  }
  0x11   :  { %v13769_v49 = vld [vmem:[%s18539_s0 + $0x130] ss:$8 sps:$4 sm:$0xff]   ;;  %v13770_v50 = vld [vmem:[%s18539_s0 + $0x144] ss:$8 sps:$4 sm:$0xff]   ;;  %v13772_v51 = vld [vmem:[%s18539_s0 + $0x140] ss:$8 sps:$4 sm:$0xff]  }
  0x12   :  { %523 = vmatpush1.bf16.msra.mxu0 %v13705_v6  ;;  %v13773_v52 = vld [vmem:[%s18539_s0 + $0x154] ss:$8 sps:$4 sm:$0xff]   ;;  %v13775_v53 = vld [vmem:[%s18539_s0 + $0x150] ss:$8 sps:$4 sm:$0xff]   ;;  %v13776_v54 = vld [vmem:[%s18539_s0 + $0x164] ss:$8 sps:$4 sm:$0xff]  }
  0x13   :  { %524 = vmatprep.subr.bf16.mxu0 %v18554_v0  ;;  %v13778_v55 = vld [vmem:[%s18539_s0 + $0x160] ss:$8 sps:$4 sm:$0xff]   ;;  %v13779_v56 = vld [vmem:[%s18539_s0 + $0x174] ss:$8 sps:$4 sm:$0xff]   ;;  %v13781_v57 = vld [vmem:[%s18539_s0 + $0x170] ss:$8 sps:$4 sm:$0xff]  }
  0x14   :  { %v13782_v58 = vld [vmem:[%s18539_s0 + $0x184] ss:$8 sps:$4 sm:$0xff]   ;;  %v13784_v59 = vld [vmem:[%s18539_s0 + $0x180] ss:$8 sps:$4 sm:$0xff]   ;;  %v13785_v60 = vld [vmem:[%s18539_s0 + $0x194] ss:$8 sps:$4 sm:$0xff]  }
  0x15   :  { %v13787_v61 = vld [vmem:[%s18539_s0 + $0x190] ss:$8 sps:$4 sm:$0xff]   ;;  %v13788_v62 = vld [vmem:[%s18539_s0 + $0x1a4] ss:$8 sps:$4 sm:$0xff]   ;;  %v13790_v63 = vld [vmem:[%s18539_s0 + $0x1a0] ss:$8 sps:$4 sm:$0xff]  }
  0x16   :  { %525 = vmatpush1.bf16.msra.mxu0 %v13706_v7  ;;  %v13791_v1 = vld [vmem:[%s18539_s0 + $0x1b4] ss:$8 sps:$4 sm:$0x1f]   ;;  %v14933_v2 = vld [vmem:[%s18540_s2] ss:$0 sm:$0xff] }
  0x17   :  { %526 = vmatprep.subr.bf16.mxu0 %v18554_v0  ;;  %v13793_v6 = vld [vmem:[%s18539_s0 + $0x1b0] ss:$8 sps:$4 sm:$0x1f]  }
  0x1a   :  { %527 = vmatpush1.bf16.msra.mxu0 %v13707_v8 }
  0x1b   :  { %528 = vmatprep.subr.bf16.mxu0 %v18554_v0 }
  0x1e   :  { %529 = vmatpush1.bf16.msra.mxu0 %v13708_v9 }
  0x1f   :  { %530 = vmatprep.subr.bf16.mxu0 %v18554_v0 }
  0x22   :  { %531 = vmatpush1.bf16.msra.mxu0 %v13709_v10 }
  0x25   :  { %547 = vmatmul.mubr.bf16.vlgmr.msra.gmra.mrb[0].mxu0 %v13710_v11 }
  0x26   :  { %10021 = vmatprep.mubr.msk.bf16.mxu0 %vm429_vm0, %v13713_v12 }
  0x2d   :  { %555 = vmatmul.mubr.bf16.gmra.mrb[4].mxu0 %v13715_v13 }
  0x2e   :  { %10022 = vmatprep.mubr.msk.bf16.mxu0 %vm429_vm0, %v13716_v14 }
  0x35   :  { %563 = vmatmul.mubr.bf16.gmra.mrb[8].mxu0 %v13718_v15 }
  0x36   :  { %10023 = vmatprep.mubr.msk.bf16.mxu0 %vm429_vm0, %v13719_v16 }
  0x3d   :  { %571 = vmatmul.mubr.bf16.gmra.mrb[12].mxu0 %v13721_v17 }
  0x3e   :  { %10024 = vmatprep.mubr.msk.bf16.mxu0 %vm429_vm0, %v13722_v18 }
  0x45   :  { %579 = vmatmul.mubr.bf16.gmra.mrb[16].mxu0 %v13724_v19 }
  0x46   :  { %10025 = vmatprep.mubr.msk.bf16.mxu0 %vm429_vm0, %v13725_v20 }
  0x4d   :  { %587 = vmatmul.mubr.bf16.gmra.mrb[20].mxu0 %v13727_v21 }
  0x4e   :  { %10026 = vmatprep.mubr.msk.bf16.mxu0 %vm429_vm0, %v13728_v22 }
  0x55   :  { %595 = vmatmul.mubr.bf16.gmra.mrb[24].mxu0 %v13730_v23 }
  0x56   :  { %10027 = vmatprep.mubr.msk.bf16.mxu0 %vm429_vm0, %v13731_v24 }
  0x5d   :  { %603 = vmatmul.mubr.bf16.gmra.mrb[28].mxu0 %v13733_v25 }
  0x5e   :  { %10028 = vmatprep.mubr.msk.bf16.mxu0 %vm429_vm0, %v13734_v26 }
  0x65   :  { %611 = vmatmul.mubr.bf16.gmra.mrb[32].mxu0 %v13736_v27 }
  0x66   :  { %10029 = vmatprep.mubr.msk.bf16.mxu0 %vm429_vm0, %v13737_v28 }
  0x6d   :  { %619 = vmatmul.mubr.bf16.gmra.mrb[36].mxu0 %v13739_v29 }
  0x6e   :  { %10030 = vmatprep.mubr.msk.bf16.mxu0 %vm429_vm0, %v13740_v30 }
  0x75   :  { %627 = vmatmul.mubr.bf16.gmra.mrb[40].mxu0 %v13742_v31 }
  0x76   :  { %10031 = vmatprep.mubr.msk.bf16.mxu0 %vm429_vm0, %v13743_v32 }
  0x7d   :  { %635 = vmatmul.mubr.bf16.gmra.mrb[44].mxu0 %v13745_v33 }
  0x7e   :  { %10032 = vmatprep.mubr.msk.bf16.mxu0 %vm429_vm0, %v13746_v34 }
  0x85   :  { %643 = vmatmul.mubr.bf16.gmra.mrb[48].mxu0 %v13748_v35 }
  0x86   :  { %10033 = vmatprep.mubr.msk.bf16.mxu0 %vm429_vm0, %v13749_v36 }
  0x8d   :  { %651 = vmatmul.mubr.bf16.gmra.mrb[52].mxu0 %v13751_v37 }
  0x8e   :  { %10034 = vmatprep.mubr.msk.bf16.mxu0 %vm429_vm0, %v13752_v38 }
  0x95   :  { %659 = vmatmul.mubr.bf16.gmra.mrb[56].mxu0 %v13754_v39  ;;  %v13796_v39 = vld [vmem:[%s18541_s3 + $0x4] ss:$16 sps:$4 sm:$0xff]  }
  0x96   :  { %10035 = vmatprep.mubr.msk.bf16.mxu0 %vm429_vm0, %v13755_v40  ;;  %1383 = vmatprep.mubr.bf16.mxu1 %v13796_v39 }
  0x9d   :  { %667 = vmatmul.mubr.bf16.gmra.mrb[60].mxu0 %v13757_v41 }
  0x9e   :  { %10036 = vmatprep.mubr.msk.bf16.mxu0 %vm429_vm0, %v13758_v42 }
  0xa5   :  { %675 = vmatmul.mubr.bf16.gmra.mrb[64].mxu0 %v13760_v43 }
  0xa6   :  { %10037 = vmatprep.mubr.msk.bf16.mxu0 %vm429_vm0, %v13761_v44 }
  0xad   :  { %683 = vmatmul.mubr.bf16.gmra.mrb[68].mxu0 %v13763_v45 }
  0xae   :  { %10038 = vmatprep.mubr.msk.bf16.mxu0 %vm429_vm0, %v13764_v46 }
  0xb5   :  { %691 = vmatmul.mubr.bf16.gmra.mrb[72].mxu0 %v13766_v47 }
  0xb6   :  { %10039 = vmatprep.mubr.msk.bf16.mxu0 %vm429_vm0, %v13767_v48 }
  0xbd   :  { %699 = vmatmul.mubr.bf16.gmra.mrb[76].mxu0 %v13769_v49 }
  0xbe   :  { %10040 = vmatprep.mubr.msk.bf16.mxu0 %vm429_vm0, %v13770_v50 }
  0xc5   :  { %707 = vmatmul.mubr.bf16.gmra.mrb[80].mxu0 %v13772_v51 }
  0xc6   :  { %10041 = vmatprep.mubr.msk.bf16.mxu0 %vm429_vm0, %v13773_v52 }
  0xcd   :  { %715 = vmatmul.mubr.bf16.gmra.mrb[84].mxu0 %v13775_v53 }
  0xce   :  { %10042 = vmatprep.mubr.msk.bf16.mxu0 %vm429_vm0, %v13776_v54 }
  0xd5   :  { %723 = vmatmul.mubr.bf16.gmra.mrb[88].mxu0 %v13778_v55 }
  0xd6   :  { %10043 = vmatprep.mubr.msk.bf16.mxu0 %vm429_vm0, %v13779_v56 }
  0xdd   :  { %731 = vmatmul.mubr.bf16.gmra.mrb[92].mxu0 %v13781_v57 }
  0xde   :  { %10044 = vmatprep.mubr.msk.bf16.mxu0 %vm429_vm0, %v13782_v58 }
  0xe5   :  { %739 = vmatmul.mubr.bf16.gmra.mrb[96].mxu0 %v13784_v59 }
  0xe6   :  { %10045 = vmatprep.mubr.msk.bf16.mxu0 %vm429_vm0, %v13785_v60 }
  0xed   :  { %747 = vmatmul.mubr.bf16.gmra.mrb[100].mxu0 %v13787_v61 }
  0xee   :  { %10046 = vmatprep.mubr.msk.bf16.mxu0 %vm429_vm0, %v13788_v62 }
  0xf5   :  { %755 = vmatmul.mubr.bf16.gmra.mrb[104].mxu0 %v13790_v63 }
  0xf6   :  { %10047 = vmatprep.mubr.msk.bf16.mxu0 %vm429_vm0, %v13791_v1 }
  0xf8   :  { %v548_v3 = vpop.f32.mrb[0].mxu0 }
  0xf9   :  { %v549_v4 = vadd.f32 %v14933_v2, %v548_v3  ;;  %v550_v5 = vpop.f32.mrb[1].mxu0 }
  0xfa   :  { %v551_v7 = vpop.f32.mrb[2].mxu0 }
  0xfb   :  { %v827_v8 = vmin.f32 %v549_v4, 0.0  ;;  %v552_v9 = vadd.f32 %v14933_v2, %v551_v7  ;;  %v553_v10 = vpop.f32.mrb[3].mxu0  ;;  %vm771_vm1 = vcmp.gt.f32.partialorder %v549_v4, 0.0 }
  0xfd   :  { %v883_v11 = vmul.f32 1.442695, %v827_v8  ;;  %v828_v12 = vmin.f32 %v552_v9, 0.0  ;;  %763 = vmatmul.mubr.bf16.gmra.mrb[108].mxu0 %v13793_v6  ;;  %vm772_vm2 = vcmp.gt.f32.partialorder %v552_v9, 0.0 }
  0xff   :  { %14478 = vpow2.f32 %v883_v11  ;;  %v885_v13 = vmul.f32 1.442695, %v828_v12 }
 0x100   :  { %v556_v14 = vpop.f32.mrb[4].mxu0 }
 0x101   :  { %14480 = vpow2.f32 %v885_v13  ;;  %v557_v15 = vadd.f32 %v14933_v2, %v556_v14  ;;  %v558_v16 = vpop.f32.mrb[5].mxu0 }
 0x102   :  { %v559_v17 = vpop.f32.mrb[6].mxu0 }
 0x103   :  { %v829_v18 = vmin.f32 %v557_v15, 0.0  ;;  %v560_v19 = vadd.f32 %v14933_v2, %v559_v17  ;;  %v561_v20 = vpop.f32.mrb[7].mxu0  ;;  %vm773_vm3 = vcmp.gt.f32.partialorder %v557_v15, 0.0 }
 0x105   :  { %v887_v21 = vmul.f32 1.442695, %v829_v18  ;;  %v830_v22 = vmin.f32 %v560_v19, 0.0  ;;  %vm774_vm4 = vcmp.gt.f32.partialorder %v560_v19, 0.0 }
 0x107   :  { %14482 = vpow2.f32 %v887_v21  ;;  %v889_v23 = vmul.f32 1.442695, %v830_v22 }
 0x108   :  { %v564_v24 = vpop.f32.mrb[8].mxu0 }
 0x109   :  { %v14479_v25 = vpop.eup %14478  ;;  %14484 = vpow2.f32 %v889_v23  ;;  %v565_v26 = vadd.f32 %v14933_v2, %v564_v24  ;;  %v566_v27 = vpop.f32.mrb[9].mxu0 }
 0x10a   :  { %v10048_v28 = vadd.f32 -1.0, %v14479_v25  ;;  %v567_v29 = vpop.f32.mrb[10].mxu0 }
 0x10b   :  { %v14481_v30 = vpop.eup %14480  ;;  %v831_v31 = vmin.f32 %v565_v26, 0.0  ;;  %v568_v32 = vadd.f32 %v14933_v2, %v567_v29  ;;  %v569_v33 = vpop.f32.mrb[11].mxu0  ;;  %vm775_vm5 = vcmp.gt.f32.partialorder %v565_v26, 0.0 }
 0x10c   :  { %v10049_v34 = vadd.f32 -1.0, %v14481_v30  ;;  %v1051_v37 = vsel %vm771_vm1, %v549_v4, %v10048_v28 }
 0x10d   :  { %v891_v35 = vmul.f32 1.442695, %v831_v31  ;;  %v832_v36 = vmin.f32 %v568_v32, 0.0  ;;  %vm776_vm6 = vcmp.gt.f32.partialorder %v568_v32, 0.0 }
 0x10e   :  { %v1052_v38 = vsel %vm772_vm2, %v552_v9, %v10049_v34 }
 0x10f   :  { %v14948_v40 = vpack.c.bf16 %v1052_v38, %v1051_v37  ;;  %14486 = vpow2.f32 %v891_v35  ;;  %v893_v41 = vmul.f32 1.442695, %v832_v36 }
 0x110   :  { %v572_v42 = vpop.f32.mrb[12].mxu0 }
 0x111   :  { %18597 = vst [vmem:[#allocation2_spill] sm:$0xff] %v14948_v40  ;;  %v14483_v43 = vpop.eup %14482  ;;  %14488 = vpow2.f32 %v893_v41  ;;  %v573_v44 = vadd.f32 %v14933_v2, %v572_v42  ;;  %v574_v45 = vpop.f32.mrb[13].mxu0 }
 0x112   :  { %v10050_v46 = vadd.f32 -1.0, %v14483_v43  ;;  %v575_v47 = vpop.f32.mrb[14].mxu0 }
 0x113   :  { %v14485_v48 = vpop.eup %14484  ;;  %v833_v49 = vmin.f32 %v573_v44, 0.0  ;;  %v576_v50 = vadd.f32 %v14933_v2, %v575_v47  ;;  %v577_v51 = vpop.f32.mrb[15].mxu0  ;;  %vm777_vm7 = vcmp.gt.f32.partialorder %v573_v44, 0.0 }
 0x114   :  { %v10051_v52 = vadd.f32 -1.0, %v14485_v48  ;;  %v1053_v55 = vsel %vm773_vm3, %v557_v15, %v10050_v46 }
 0x115   :  { %v895_v53 = vmul.f32 1.442695, %v833_v49  ;;  %v834_v54 = vmin.f32 %v576_v50, 0.0  ;;  %vm778_vm8 = vcmp.gt.f32.partialorder %v576_v50, 0.0 }
 0x116   :  { %v1054_v56 = vsel %vm774_vm4, %v560_v19, %v10051_v52 }
 0x117   :  { %v14952_v57 = vpack.c.bf16 %v1054_v56, %v1053_v55  ;;  %14490 = vpow2.f32 %v895_v53  ;;  %v897_v58 = vmul.f32 1.442695, %v834_v54 }
 0x118   :  { %v580_v59 = vpop.f32.mrb[16].mxu0 }
 0x119   :  { %18598 = vst [vmem:[#allocation3_spill] sm:$0xff] %v14952_v57  ;;  %v14487_v60 = vpop.eup %14486  ;;  %14492 = vpow2.f32 %v897_v58  ;;  %v581_v61 = vadd.f32 %v14933_v2, %v580_v59  ;;  %v582_v62 = vpop.f32.mrb[17].mxu0 }
 0x11a   :  { %v10052_v63 = vadd.f32 -1.0, %v14487_v60  ;;  %v583_v1 = vpop.f32.mrb[18].mxu0 }
 0x11b   :  { %v14489_v3 = vpop.eup %14488  ;;  %v835_v4 = vmin.f32 %v581_v61, 0.0  ;;  %v584_v5 = vadd.f32 %v14933_v2, %v583_v1  ;;  %v585_v6 = vpop.f32.mrb[19].mxu0  ;;  %vm779_vm9 = vcmp.gt.f32.partialorder %v581_v61, 0.0 }
 0x11c   :  { %v10053_v7 = vadd.f32 -1.0, %v14489_v3  ;;  %v1055_v10 = vsel %vm775_vm5, %v565_v26, %v10052_v63 }
 0x11d   :  { %v899_v8 = vmul.f32 1.442695, %v835_v4  ;;  %v836_v9 = vmin.f32 %v584_v5, 0.0  ;;  %vm780_vm10 = vcmp.gt.f32.partialorder %v584_v5, 0.0 }
 0x11e   :  { %v1056_v11 = vsel %vm776_vm6, %v568_v32, %v10053_v7 }
 0x11f   :  { %v14956_v12 = vpack.c.bf16 %v1056_v11, %v1055_v10  ;;  %14494 = vpow2.f32 %v899_v8  ;;  %v901_v13 = vmul.f32 1.442695, %v836_v9 }
 0x120   :  { %v588_v14 = vpop.f32.mrb[20].mxu0 }
 0x121   :  { %18599 = vst [vmem:[#allocation4_spill] sm:$0xff] %v14956_v12  ;;  %v14491_v15 = vpop.eup %14490  ;;  %14496 = vpow2.f32 %v901_v13  ;;  %v589_v16 = vadd.f32 %v14933_v2, %v588_v14  ;;  %v590_v17 = vpop.f32.mrb[21].mxu0 }
 0x122   :  { %v10054_v18 = vadd.f32 -1.0, %v14491_v15  ;;  %v591_v19 = vpop.f32.mrb[22].mxu0 }
 0x123   :  { %v14493_v20 = vpop.eup %14492  ;;  %v837_v21 = vmin.f32 %v589_v16, 0.0  ;;  %v592_v22 = vadd.f32 %v14933_v2, %v591_v19  ;;  %v593_v23 = vpop.f32.mrb[23].mxu0  ;;  %vm781_vm11 = vcmp.gt.f32.partialorder %v589_v16, 0.0 }
 0x124   :  { %v10055_v24 = vadd.f32 -1.0, %v14493_v20  ;;  %v1057_v27 = vsel %vm777_vm7, %v573_v44, %v10054_v18 }
 0x125   :  { %v903_v25 = vmul.f32 1.442695, %v837_v21  ;;  %v838_v26 = vmin.f32 %v592_v22, 0.0  ;;  %vm782_vm12 = vcmp.gt.f32.partialorder %v592_v22, 0.0 }
 0x126   :  { %v1058_v28 = vsel %vm778_vm8, %v576_v50, %v10055_v24 }
 0x127   :  { %v14960_v29 = vpack.c.bf16 %v1058_v28, %v1057_v27  ;;  %14498 = vpow2.f32 %v903_v25  ;;  %v905_v30 = vmul.f32 1.442695, %v838_v26 }
 0x128   :  { %v596_v31 = vpop.f32.mrb[24].mxu0 }
 0x129   :  { %18600 = vst [vmem:[#allocation5_spill] sm:$0xff] %v14960_v29  ;;  %v14495_v32 = vpop.eup %14494  ;;  %14500 = vpow2.f32 %v905_v30  ;;  %v597_v33 = vadd.f32 %v14933_v2, %v596_v31  ;;  %v598_v34 = vpop.f32.mrb[25].mxu0 }
 0x12a   :  { %v10056_v35 = vadd.f32 -1.0, %v14495_v32  ;;  %v599_v36 = vpop.f32.mrb[26].mxu0 }
 0x12b   :  { %v14497_v37 = vpop.eup %14496  ;;  %v839_v38 = vmin.f32 %v597_v33, 0.0  ;;  %v600_v39 = vadd.f32 %v14933_v2, %v599_v36  ;;  %v601_v41 = vpop.f32.mrb[27].mxu0  ;;  %vm783_vm13 = vcmp.gt.f32.partialorder %v597_v33, 0.0 }
 0x12c   :  { %v10057_v42 = vadd.f32 -1.0, %v14497_v37  ;;  %v1059_v45 = vsel %vm779_vm9, %v581_v61, %v10056_v35 }
 0x12d   :  { %v907_v43 = vmul.f32 1.442695, %v839_v38  ;;  %v840_v44 = vmin.f32 %v600_v39, 0.0  ;;  %vm784_vm14 = vcmp.gt.f32.partialorder %v600_v39, 0.0 }
 0x12e   :  { %v1060_v46 = vsel %vm780_vm10, %v584_v5, %v10057_v42 }
 0x12f   :  { %v14964_v47 = vpack.c.bf16 %v1060_v46, %v1059_v45  ;;  %14502 = vpow2.f32 %v907_v43  ;;  %v909_v48 = vmul.f32 1.442695, %v840_v44 }
 0x130   :  { %v604_v49 = vpop.f32.mrb[28].mxu0 }
 0x131   :  { %18601 = vst [vmem:[#allocation6_spill] sm:$0xff] %v14964_v47  ;;  %v14499_v50 = vpop.eup %14498  ;;  %14504 = vpow2.f32 %v909_v48  ;;  %v605_v51 = vadd.f32 %v14933_v2, %v604_v49  ;;  %v606_v52 = vpop.f32.mrb[29].mxu0 }
 0x132   :  { %v10058_v53 = vadd.f32 -1.0, %v14499_v50  ;;  %v607_v54 = vpop.f32.mrb[30].mxu0 }
 0x133   :  { %v14501_v55 = vpop.eup %14500  ;;  %v841_v56 = vmin.f32 %v605_v51, 0.0  ;;  %v608_v58 = vadd.f32 %v14933_v2, %v607_v54  ;;  %v609_v59 = vpop.f32.mrb[31].mxu0  ;;  %vm785_vm15 = vcmp.gt.f32.partialorder %v605_v51, 0.0 }
 0x134   :  { %v10059_v60 = vadd.f32 -1.0, %v14501_v55  ;;  %v1061_v63 = vsel %vm781_vm11, %v589_v16, %v10058_v53 }
 0x135   :  { %v911_v61 = vmul.f32 1.442695, %v841_v56  ;;  %v842_v62 = vmin.f32 %v608_v58, 0.0  ;;  %vm786_vm0 = vcmp.gt.f32.partialorder %v608_v58, 0.0 }
 0x136   :  { %v1062_v1 = vsel %vm782_vm12, %v592_v22, %v10059_v60 }
 0x137   :  { %v14968_v3 = vpack.c.bf16 %v1062_v1, %v1061_v63  ;;  %14506 = vpow2.f32 %v911_v61  ;;  %v913_v4 = vmul.f32 1.442695, %v842_v62 }
 0x138   :  { %v612_v5 = vpop.f32.mrb[32].mxu0 }
 0x139   :  { %18602 = vst [vmem:[#allocation7_spill] sm:$0xff] %v14968_v3  ;;  %v14503_v6 = vpop.eup %14502  ;;  %14508 = vpow2.f32 %v913_v4  ;;  %v613_v7 = vadd.f32 %v14933_v2, %v612_v5  ;;  %v614_v8 = vpop.f32.mrb[33].mxu0 }
 0x13a   :  { %v10060_v9 = vadd.f32 -1.0, %v14503_v6  ;;  %v615_v10 = vpop.f32.mrb[34].mxu0 }
 0x13b   :  { %v14505_v11 = vpop.eup %14504  ;;  %v843_v13 = vmin.f32 %v613_v7, 0.0  ;;  %v616_v14 = vadd.f32 %v14933_v2, %v615_v10  ;;  %v617_v15 = vpop.f32.mrb[35].mxu0  ;;  %vm787_vm1 = vcmp.gt.f32.partialorder %v613_v7, 0.0 }
 0x13c   :  { %v10061_v16 = vadd.f32 -1.0, %v14505_v11  ;;  %v1063_v19 = vsel %vm783_vm13, %v597_v33, %v10060_v9 }
 0x13d   :  { %v915_v17 = vmul.f32 1.442695, %v843_v13  ;;  %v844_v18 = vmin.f32 %v616_v14, 0.0  ;;  %vm788_vm2 = vcmp.gt.f32.partialorder %v616_v14, 0.0 }
 0x13e   :  { %v1064_v20 = vsel %vm784_vm14, %v600_v39, %v10061_v16 }
 0x13f   :  { %v14972_v21 = vpack.c.bf16 %v1064_v20, %v1063_v19  ;;  %14510 = vpow2.f32 %v915_v17  ;;  %v917_v22 = vmul.f32 1.442695, %v844_v18 }
 0x140   :  { %v620_v23 = vpop.f32.mrb[36].mxu0 }
 0x141   :  { %18603 = vst [vmem:[#allocation8_spill] sm:$0xff] %v14972_v21  ;;  %v14507_v24 = vpop.eup %14506  ;;  %14512 = vpow2.f32 %v917_v22  ;;  %v621_v25 = vadd.f32 %v14933_v2, %v620_v23  ;;  %v622_v26 = vpop.f32.mrb[37].mxu0 }
 0x142   :  { %v10062_v27 = vadd.f32 -1.0, %v14507_v24  ;;  %v623_v28 = vpop.f32.mrb[38].mxu0 }
 0x143   :  { %v14509_v30 = vpop.eup %14508  ;;  %v845_v31 = vmin.f32 %v621_v25, 0.0  ;;  %v624_v32 = vadd.f32 %v14933_v2, %v623_v28  ;;  %v625_v34 = vpop.f32.mrb[39].mxu0  ;;  %vm789_vm3 = vcmp.gt.f32.partialorder %v621_v25, 0.0 }
 0x144   :  { %v10063_v33 = vadd.f32 -1.0, %v14509_v30  ;;  %v1065_v37 = vsel %vm785_vm15, %v605_v51, %v10062_v27 }
 0x145   :  { %v919_v35 = vmul.f32 1.442695, %v845_v31  ;;  %v846_v36 = vmin.f32 %v624_v32, 0.0  ;;  %vm790_vm4 = vcmp.gt.f32.partialorder %v624_v32, 0.0 }
 0x146   :  { %v1066_v38 = vsel %vm786_vm0, %v608_v58, %v10063_v33 }
 0x147   :  { %v14976_v39 = vpack.c.bf16 %v1066_v38, %v1065_v37  ;;  %14514 = vpow2.f32 %v919_v35  ;;  %v921_v41 = vmul.f32 1.442695, %v846_v36 }
 0x148   :  { %v628_v42 = vpop.f32.mrb[40].mxu0 }
 0x149   :  { %18604 = vst [vmem:[#allocation9_spill] sm:$0xff] %v14976_v39  ;;  %v14511_v43 = vpop.eup %14510  ;;  %14516 = vpow2.f32 %v921_v41  ;;  %v629_v44 = vadd.f32 %v14933_v2, %v628_v42  ;;  %v630_v45 = vpop.f32.mrb[41].mxu0 }
 0x14a   :  { %v10064_v46 = vadd.f32 -1.0, %v14511_v43  ;;  %v631_v48 = vpop.f32.mrb[42].mxu0 }
 0x14b   :  { %v14513_v49 = vpop.eup %14512  ;;  %v847_v50 = vmin.f32 %v629_v44, 0.0  ;;  %v632_v52 = vadd.f32 %v14933_v2, %v631_v48  ;;  %v633_v53 = vpop.f32.mrb[43].mxu0  ;;  %vm791_vm5 = vcmp.gt.f32.partialorder %v629_v44, 0.0 }
 0x14c   :  { %v10065_v51 = vadd.f32 -1.0, %v14513_v49  ;;  %v1067_v56 = vsel %vm787_vm1, %v613_v7, %v10064_v46 }
 0x14d   :  { %v923_v54 = vmul.f32 1.442695, %v847_v50  ;;  %v848_v55 = vmin.f32 %v632_v52, 0.0  ;;  %vm792_vm6 = vcmp.gt.f32.partialorder %v632_v52, 0.0 }
 0x14e   :  { %v1068_v58 = vsel %vm788_vm2, %v616_v14, %v10065_v51 }
 0x14f   :  { %v14980_v59 = vpack.c.bf16 %v1068_v58, %v1067_v56  ;;  %14518 = vpow2.f32 %v923_v54  ;;  %v925_v60 = vmul.f32 1.442695, %v848_v55 }
 0x150   :  { %v636_v61 = vpop.f32.mrb[44].mxu0 }
 0x151   :  { %18605 = vst [vmem:[#allocation10_spill] sm:$0xff] %v14980_v59  ;;  %v14515_v62 = vpop.eup %14514  ;;  %14520 = vpow2.f32 %v925_v60  ;;  %v637_v63 = vadd.f32 %v14933_v2, %v636_v61  ;;  %v638_v1 = vpop.f32.mrb[45].mxu0  ;;  %11472 = vmatprep.subr.bf16.mxu1 %v14980_v59  ;;  %v15009_v61 = vld [vmem:[%s18540_s2] ss:$0 sm:$0xff] }
 0x152   :  { %v10066_v4 = vadd.f32 -1.0, %v14515_v62  ;;  %v639_v5 = vpop.f32.mrb[46].mxu0  ;;  %11473 = vmatpush3.bf16.msra.mxu1 %v14948_v40 }
 0x153   :  { %v14517_v6 = vpop.eup %14516  ;;  %v849_v8 = vmin.f32 %v637_v63, 0.0  ;;  %v640_v7 = vadd.f32 %v14933_v2, %v639_v5  ;;  %v641_v9 = vpop.f32.mrb[47].mxu0  ;;  %vm793_vm7 = vcmp.gt.f32.partialorder %v637_v63, 0.0 }
 0x154   :  { %v10067_v10 = vadd.f32 -1.0, %v14517_v6  ;;  %v1069_v14 = vsel %vm789_vm3, %v621_v25, %v10066_v4 }
 0x155   :  { %v927_v11 = vmul.f32 1.442695, %v849_v8  ;;  %v850_v13 = vmin.f32 %v640_v7, 0.0  ;;  %vm794_vm8 = vcmp.gt.f32.partialorder %v640_v7, 0.0 }
 0x156   :  { %v1070_v15 = vsel %vm790_vm4, %v624_v32, %v10067_v10 }
 0x157   :  { %v14986_v16 = vpack.c.bf16 %v1070_v15, %v1069_v14  ;;  %14522 = vpow2.f32 %v927_v11  ;;  %v929_v17 = vmul.f32 1.442695, %v850_v13 }
 0x158   :  { %v644_v18 = vpop.f32.mrb[48].mxu0 }
 0x159   :  { %18606 = vst [vmem:[#allocation11_spill] sm:$0xff] %v14986_v16  ;;  %v14519_v19 = vpop.eup %14518  ;;  %14524 = vpow2.f32 %v929_v17  ;;  %v14989_v20 = vadd.f32 %v14933_v2, %v644_v18  ;;  %v646_v22 = vpop.f32.mrb[49].mxu0  ;;  %11474 = vmatprep.subr.bf16.mxu1 %v14986_v16 }
 0x15a   :  { %v10068_v23 = vadd.f32 -1.0, %v14519_v19  ;;  %v647_v24 = vpop.f32.mrb[50].mxu0  ;;  %11475 = vmatpush3.bf16.msra.mxu1 %v14952_v57 }
 0x15b   :  { %v14521_v26 = vpop.eup %14520  ;;  %v851_v25 = vmin.f32 %v14989_v20, 0.0  ;;  %v648_v27 = vadd.f32 %v14933_v2, %v647_v24  ;;  %v649_v28 = vpop.f32.mrb[51].mxu0  ;;  %vm795_vm9 = vcmp.gt.f32.partialorder %v14989_v20, 0.0 }
 0x15c   :  { %v10069_v30 = vadd.f32 -1.0, %v14521_v26  ;;  %v1071_v34 = vsel %vm791_vm5, %v629_v44, %v10068_v23 }
 0x15d   :  { %v931_v31 = vmul.f32 1.442695, %v851_v25  ;;  %v852_v32 = vmin.f32 %v648_v27, 0.0  ;;  %vm796_vm10 = vcmp.gt.f32.partialorder %v648_v27, 0.0 }
 0x15e   :  { %v1072_v33 = vsel %vm792_vm6, %v632_v52, %v10069_v30 }
 0x15f   :  { %v14995_v35 = vpack.c.bf16 %v1072_v33, %v1071_v34  ;;  %14526 = vpow2.f32 %v931_v31  ;;  %v933_v36 = vmul.f32 1.442695, %v852_v32 }
 0x160   :  { %v652_v37 = vpop.f32.mrb[52].mxu0 }
 0x161   :  { %18607 = vst [vmem:[#allocation12_spill] sm:$0xff] %v14995_v35  ;;  %v14523_v38 = vpop.eup %14522  ;;  %14528 = vpow2.f32 %v933_v36  ;;  %v14998_v41 = vadd.f32 %v14933_v2, %v652_v37  ;;  %v654_v42 = vpop.f32.mrb[53].mxu0  ;;  %11476 = vmatprep.subr.bf16.mxu1 %v14995_v35 }
 0x162   :  { %v10070_v43 = vadd.f32 -1.0, %v14523_v38  ;;  %v655_v45 = vpop.f32.mrb[54].mxu0  ;;  %11477 = vmatpush3.bf16.msra.mxu1 %v14956_v12 }
 0x163   :  { %v14525_v46 = vpop.eup %14524  ;;  %v853_v44 = vmin.f32 %v14998_v41, 0.0  ;;  %v656_v48 = vadd.f32 %v14933_v2, %v655_v45  ;;  %v657_v49 = vpop.f32.mrb[55].mxu0  ;;  %vm797_vm11 = vcmp.gt.f32.partialorder %v14998_v41, 0.0 }
 0x164   :  { %v10071_v50 = vadd.f32 -1.0, %v14525_v46  ;;  %v1073_v51 = vsel %vm793_vm7, %v637_v63, %v10070_v43 }
 0x165   :  { %v935_v52 = vmul.f32 1.442695, %v853_v44  ;;  %v854_v53 = vmin.f32 %v656_v48, 0.0  ;;  %vm798_vm12 = vcmp.gt.f32.partialorder %v656_v48, 0.0 }
 0x166   :  { %v1074_v54 = vsel %vm794_vm8, %v640_v7, %v10071_v50 }
 0x167   :  { %v15004_v55 = vpack.c.bf16 %v1074_v54, %v1073_v51  ;;  %14530 = vpow2.f32 %v935_v52  ;;  %v937_v56 = vmul.f32 1.442695, %v854_v53 }
 0x168   :  { %v660_v58 = vpop.f32.mrb[56].mxu0 }
 0x169   :  { %18608 = vst [vmem:[#allocation13_spill] sm:$0xff] %v15004_v55  ;;  %v14527_v60 = vpop.eup %14526  ;;  %14532 = vpow2.f32 %v937_v56  ;;  %v661_v2 = vadd.f32 %v15009_v61, %v660_v58  ;;  %v662_v62 = vpop.f32.mrb[57].mxu0  ;;  %11478 = vmatprep.subr.bf16.mxu1 %v15004_v55 }
 0x16a   :  { %v10072_v1 = vadd.f32 -1.0, %v14527_v60  ;;  %v663_v63 = vpop.f32.mrb[58].mxu0  ;;  %11479 = vmatpush3.bf16.msra.mxu1 %v14960_v29 }
 0x16b   :  { %v14529_v4 = vpop.eup %14528  ;;  %v855_v5 = vmin.f32 %v661_v2, 0.0  ;;  %v664_v6 = vadd.f32 %v15009_v61, %v663_v63  ;;  %v665_v8 = vpop.f32.mrb[59].mxu0  ;;  %vm799_vm13 = vcmp.gt.f32.partialorder %v661_v2, 0.0 }
 0x16c   :  { %v10073_v7 = vadd.f32 -1.0, %v14529_v4  ;;  %v1075_v11 = vsel %vm795_vm9, %v14989_v20, %v10072_v1 }
 0x16d   :  { %v939_v9 = vmul.f32 1.442695, %v855_v5  ;;  %v856_v10 = vmin.f32 %v664_v6, 0.0  ;;  %vm800_vm14 = vcmp.gt.f32.partialorder %v664_v6, 0.0 }
 0x16e   :  { %v1076_v13 = vsel %vm796_vm10, %v648_v27, %v10073_v7 }
 0x16f   :  { %v15017_v14 = vpack.c.bf16 %v1076_v13, %v1075_v11  ;;  %14534 = vpow2.f32 %v939_v9  ;;  %v941_v15 = vmul.f32 1.442695, %v856_v10 }
 0x170   :  { %v668_v17 = vpop.f32.mrb[60].mxu0 }
 0x171   :  { %18609 = vst [vmem:[#allocation14_spill] sm:$0xff] %v15017_v14  ;;  %v14531_v18 = vpop.eup %14530  ;;  %14536 = vpow2.f32 %v941_v15  ;;  %v669_v19 = vadd.f32 %v15009_v61, %v668_v17  ;;  %v670_v22 = vpop.f32.mrb[61].mxu0  ;;  %11480 = vmatprep.subr.bf16.mxu1 %v15017_v14 }
 0x172   :  { %v10074_v23 = vadd.f32 -1.0, %v14531_v18  ;;  %v671_v24 = vpop.f32.mrb[62].mxu0  ;;  %11481 = vmatpush3.bf16.msra.mxu1 %v14964_v47 }
 0x173   :  { %v14533_v26 = vpop.eup %14532  ;;  %v857_v25 = vmin.f32 %v669_v19, 0.0  ;;  %v672_v20 = vadd.f32 %v15009_v61, %v671_v24  ;;  %v673_v27 = vpop.f32.mrb[63].mxu0  ;;  %vm801_vm15 = vcmp.gt.f32.partialorder %v669_v19, 0.0 }
 0x174   :  { %v10075_v28 = vadd.f32 -1.0, %v14533_v26  ;;  %v1077_v32 = vsel %vm797_vm11, %v14998_v41, %v10074_v23 }
 0x175   :  { %v943_v30 = vmul.f32 1.442695, %v857_v25  ;;  %v858_v31 = vmin.f32 %v672_v20, 0.0  ;;  %vm802_vm0 = vcmp.gt.f32.partialorder %v672_v20, 0.0  ;;  %v13794_v25 = vld [vmem:[%s18541_s3] ss:$16 sps:$4 sm:$0xff]  }
 0x176   :  { %v1078_v34 = vsel %vm798_vm12, %v656_v48, %v10075_v28 }
 0x177   :  { %v15025_v33 = vpack.c.bf16 %v1078_v34, %v1077_v32  ;;  %14538 = vpow2.f32 %v943_v30  ;;  %v945_v36 = vmul.f32 1.442695, %v858_v31 }
 0x178   :  { %v676_v37 = vpop.f32.mrb[64].mxu0 }
 0x179   :  { %18610 = vst [vmem:[#allocation15_spill] sm:$0xff] %v15025_v33  ;;  %v14535_v38 = vpop.eup %14534  ;;  %14540 = vpow2.f32 %v945_v36  ;;  %v15028_v42 = vadd.f32 %v15009_v61, %v676_v37  ;;  %v678_v43 = vpop.f32.mrb[65].mxu0  ;;  %11482 = vmatprep.subr.bf16.mxu1 %v15025_v33 }
 0x17a   :  { %v10076_v45 = vadd.f32 -1.0, %v14535_v38  ;;  %v679_v46 = vpop.f32.mrb[66].mxu0  ;;  %11483 = vmatpush3.bf16.msra.mxu1 %v14968_v3 }
 0x17b   :  { %v14537_v44 = vpop.eup %14536  ;;  %v859_v41 = vmin.f32 %v15028_v42, 0.0  ;;  %v680_v48 = vadd.f32 %v15009_v61, %v679_v46  ;;  %v681_v49 = vpop.f32.mrb[67].mxu0  ;;  %vm803_vm1 = vcmp.gt.f32.partialorder %v15028_v42, 0.0 }
 0x17c   :  { %v10077_v50 = vadd.f32 -1.0, %v14537_v44  ;;  %v1079_v51 = vsel %vm799_vm13, %v661_v2, %v10076_v45 }
 0x17d   :  { %v947_v52 = vmul.f32 1.442695, %v859_v41  ;;  %v860_v53 = vmin.f32 %v680_v48, 0.0  ;;  %vm804_vm2 = vcmp.gt.f32.partialorder %v680_v48, 0.0 }
 0x17e   :  { %v1080_v54 = vsel %vm800_vm14, %v664_v6, %v10077_v50 }
 0x17f   :  { %v15034_v56 = vpack.c.bf16 %v1080_v54, %v1079_v51  ;;  %14542 = vpow2.f32 %v947_v52  ;;  %v949_v58 = vmul.f32 1.442695, %v860_v53  ;;  %v13799_v52 = vld [vmem:[%s18541_s3 + $0x20] ss:$16 sps:$4 sm:$0xff]   ;;  %v13800_v53 = vld [vmem:[%s18541_s3 + $0x44] ss:$16 sps:$4 sm:$0xff]  }
 0x180   :  { %v684_v60 = vpop.f32.mrb[68].mxu0 }
 0x181   :  { %18611 = vst [vmem:[#allocation16_spill] sm:$0xff] %v15034_v56  ;;  %v14539_v62 = vpop.eup %14538  ;;  %14544 = vpow2.f32 %v949_v58  ;;  %v15037_v1 = vadd.f32 %v15009_v61, %v684_v60  ;;  %v686_v63 = vpop.f32.mrb[69].mxu0  ;;  %11484 = vmatprep.subr.bf16.mxu1 %v15034_v56 }
 0x182   :  { %v10078_v4 = vadd.f32 -1.0, %v14539_v62  ;;  %v687_v5 = vpop.f32.mrb[70].mxu0  ;;  %11485 = vmatpush3.bf16.msra.mxu1 %v14972_v21 }
 0x183   :  { %v14541_v8 = vpop.eup %14540  ;;  %v861_v2 = vmin.f32 %v15037_v1, 0.0  ;;  %v15043_v6 = vadd.f32 %v15009_v61, %v687_v5  ;;  %v689_v7 = vpop.f32.mrb[71].mxu0  ;;  %vm805_vm3 = vcmp.gt.f32.partialorder %v15037_v1, 0.0 }
 0x184   :  { %v10079_v9 = vadd.f32 -1.0, %v14541_v8  ;;  %v1081_v13 = vsel %vm801_vm15, %v669_v19, %v10078_v4  ;;  %vm1319_vm15 = vcmask 465920  }
 0x185   :  { %v951_v10 = vmul.f32 1.442695, %v861_v2  ;;  %v862_v11 = vmin.f32 %v15043_v6, 0.0  ;;  %vm806_vm4 = vcmp.gt.f32.partialorder %v15043_v6, 0.0 }
 0x186   :  { %v1082_v15 = vsel %vm802_vm0, %v672_v20, %v10079_v9  ;;  %v13797_v20 = vld [vmem:[%s18541_s3 + $0x24] ss:$16 sps:$4 sm:$0xff]  }
 0x187   :  { %v15046_v17 = vpack.c.bf16 %v1082_v15, %v1081_v13  ;;  %14546 = vpow2.f32 %v951_v10  ;;  %v953_v18 = vmul.f32 1.442695, %v862_v11 }
 0x188   :  { %v692_v22 = vpop.f32.mrb[72].mxu0 }
 0x189   :  { %18612 = vst [vmem:[#allocation17_spill] sm:$0xff] %v15046_v17  ;;  %v14543_v23 = vpop.eup %14542  ;;  %14548 = vpow2.f32 %v953_v18  ;;  %v15049_v24 = vadd.f32 %v15009_v61, %v692_v22  ;;  %v694_v26 = vpop.f32.mrb[73].mxu0  ;;  %11486 = vmatprep.subr.bf16.mxu1 %v15046_v17  ;;  %v13803_v18 = vld [vmem:[%s18541_s3 + $0x64] ss:$16 sps:$4 sm:$0xff]  }
 0x18a   :  { %v10080_v27 = vadd.f32 -1.0, %v14543_v23  ;;  %v695_v19 = vpop.f32.mrb[74].mxu0  ;;  %11487 = vmatpush3.bf16.msra.mxu1 %v14976_v39 }
 0x18b   :  { %v14545_v28 = vpop.eup %14544  ;;  %v863_v30 = vmin.f32 %v15049_v24, 0.0  ;;  %v15061_v31 = vadd.f32 %v15009_v61, %v695_v19  ;;  %v697_v32 = vpop.f32.mrb[75].mxu0  ;;  %1448 = vmatprep.subr.bf16.mxu1 %v18554_v0  ;;  %vm807_vm5 = vcmp.gt.f32.partialorder %v15049_v24, 0.0 }
 0x18c   :  { %v10081_v34 = vadd.f32 -1.0, %v14545_v28  ;;  %v1083_v38 = vsel %vm803_vm1, %v15028_v42, %v10080_v27 }
 0x18d   :  { %v955_v36 = vmul.f32 1.442695, %v863_v30  ;;  %v864_v37 = vmin.f32 %v15061_v31, 0.0  ;;  %1384 = vmatmul.mubr.bf16.vlgmr.msra.gmra.mrb[0].mxu1 %v13794_v25  ;;  %vm808_vm6 = vcmp.gt.f32.partialorder %v15061_v31, 0.0 }
 0x18e   :  { %v1084_v43 = vsel %vm804_vm2, %v680_v48, %v10081_v34  ;;  %1391 = vmatprep.mubr.bf16.mxu1 %v13797_v20 }
 0x18f   :  { %v15067_v45 = vpack.c.bf16 %v1084_v43, %v1083_v38  ;;  %14550 = vpow2.f32 %v955_v36  ;;  %v957_v46 = vmul.f32 1.442695, %v864_v37 }
 0x190   :  { %v700_v44 = vpop.f32.mrb[76].mxu0 }
 0x191   :  { %18613 = vst [vmem:[#allocation18_spill] sm:$0xff] %v15067_v45  ;;  %v14547_v41 = vpop.eup %14546  ;;  %14552 = vpow2.f32 %v957_v46  ;;  %v15070_v49 = vadd.f32 %v15009_v61, %v700_v44  ;;  %v702_v50 = vpop.f32.mrb[77].mxu0  ;;  %1449 = vmatpush1.bf16.msra.mxu1 %v15067_v45  ;;  %v13806_v44 = vld [vmem:[%s18541_s3 + $0x84] ss:$16 sps:$4 sm:$0xff]  }
 0x192   :  { %v10082_v42 = vadd.f32 -1.0, %v14547_v41  ;;  %v703_v48 = vpop.f32.mrb[78].mxu0  ;;  %1450 = vmatprep.subr.bf16.mxu1 %v18554_v0 }
 0x193   :  { %v14549_v51 = vpop.eup %14548  ;;  %v865_v54 = vmin.f32 %v15070_v49, 0.0  ;;  %v15082_v58 = vadd.f32 %v15009_v61, %v703_v48  ;;  %v705_v60 = vpop.f32.mrb[79].mxu0  ;;  %vm809_vm7 = vcmp.gt.f32.partialorder %v15070_v49, 0.0 }
 0x194   :  { %v10083_v62 = vadd.f32 -1.0, %v14549_v51  ;;  %v1085_v5 = vsel %vm805_vm3, %v15037_v1, %v10082_v42  ;;  %v13802_v1 = vld [vmem:[%s18541_s3 + $0x40] ss:$16 sps:$4 sm:$0xff]  }
 0x195   :  { %v959_v63 = vmul.f32 1.442695, %v865_v54  ;;  %v866_v4 = vmin.f32 %v15082_v58, 0.0  ;;  %1392 = vmatmul.mubr.bf16.gmra.mrb[4].mxu1 %v13799_v52  ;;  %vm810_vm8 = vcmp.gt.f32.partialorder %v15082_v58, 0.0 }
 0x196   :  { %v1086_v8 = vsel %vm806_vm4, %v15043_v6, %v10083_v62  ;;  %1399 = vmatprep.mubr.bf16.mxu1 %v13800_v53 }
 0x197   :  { %v15089_v2 = vpack.c.bf16 %v1086_v8, %v1085_v5  ;;  %14554 = vpow2.f32 %v959_v63  ;;  %v961_v7 = vmul.f32 1.442695, %v866_v4 }
 0x198   :  { %v708_v9 = vpop.f32.mrb[80].mxu0 }
 0x199   :  { %18614 = vst [vmem:[#allocation19_spill] sm:$0xff] %v15089_v2  ;;  %v14551_v10 = vpop.eup %14550  ;;  %14556 = vpow2.f32 %v961_v7  ;;  %v15092_v11 = vadd.f32 %v15009_v61, %v708_v9  ;;  %v710_v13 = vpop.f32.mrb[81].mxu0  ;;  %1451 = vmatpush1.bf16.msra.mxu1 %v15089_v2 }
 0x19a   :  { %v10084_v15 = vadd.f32 -1.0, %v14551_v10  ;;  %v711_v6 = vpop.f32.mrb[82].mxu0  ;;  %1452 = vmatprep.subr.bf16.mxu1 %v18554_v0  ;;  %v13809_v10 = vld [vmem:[%s18541_s3 + $0xa4] ss:$16 sps:$4 sm:$0xff]  }
 0x19b   :  { %v14553_v22 = vpop.eup %14552  ;;  %v867_v23 = vmin.f32 %v15092_v11, 0.0  ;;  %v15104_v26 = vadd.f32 %v15009_v61, %v711_v6  ;;  %v713_v25 = vpop.f32.mrb[83].mxu0  ;;  %vm811_vm9 = vcmp.gt.f32.partialorder %v15092_v11, 0.0 }
 0x19c   :  { %v10085_v27 = vadd.f32 -1.0, %v14553_v22  ;;  %v1087_v28 = vsel %vm807_vm5, %v15049_v24, %v10084_v15  ;;  %v13805_v24 = vld [vmem:[%s18541_s3 + $0x60] ss:$16 sps:$4 sm:$0xff]  }
 0x19d   :  { %v963_v19 = vmul.f32 1.442695, %v867_v23  ;;  %v868_v20 = vmin.f32 %v15104_v26, 0.0  ;;  %1400 = vmatmul.mubr.bf16.gmra.mrb[8].mxu1 %v13802_v1  ;;  %vm812_vm10 = vcmp.gt.f32.partialorder %v15104_v26, 0.0 }
 0x19e   :  { %v1088_v30 = vsel %vm808_vm6, %v15061_v31, %v10085_v27  ;;  %1407 = vmatprep.mubr.bf16.mxu1 %v13803_v18 }
 0x19f   :  { %v15111_v32 = vpack.c.bf16 %v1088_v30, %v1087_v28  ;;  %14558 = vpow2.f32 %v963_v19  ;;  %v965_v34 = vmul.f32 1.442695, %v868_v20 }
 0x1a0   :  { %v716_v36 = vpop.f32.mrb[84].mxu0 }
 0x1a1   :  { %18615 = vst [vmem:[#allocation20_spill] sm:$0xff] %v15111_v32  ;;  %v14555_v37 = vpop.eup %14554  ;;  %14560 = vpow2.f32 %v965_v34  ;;  %v15114_v38 = vadd.f32 %v15009_v61, %v716_v36  ;;  %v718_v43 = vpop.f32.mrb[85].mxu0  ;;  %1453 = vmatpush1.bf16.msra.mxu1 %v15111_v32 }
 0x1a2   :  { %v10086_v46 = vadd.f32 -1.0, %v14555_v37  ;;  %v719_v31 = vpop.f32.mrb[86].mxu0  ;;  %1454 = vmatprep.subr.bf16.mxu1 %v18554_v0  ;;  %v13812_v43 = vld [vmem:[%s18541_s3 + $0xc4] ss:$16 sps:$4 sm:$0xff]  }
 0x1a3   :  { %v14557_v41 = vpop.eup %14556  ;;  %v869_v50 = vmin.f32 %v15114_v38, 0.0  ;;  %v15126_v52 = vadd.f32 %v15009_v61, %v719_v31  ;;  %v721_v42 = vpop.f32.mrb[87].mxu0  ;;  %vm813_vm11 = vcmp.gt.f32.partialorder %v15114_v38, 0.0 }
 0x1a4   :  { %v10087_v48 = vadd.f32 -1.0, %v14557_v41  ;;  %v1089_v54 = vsel %vm809_vm7, %v15070_v49, %v10086_v46  ;;  %v13808_v49 = vld [vmem:[%s18541_s3 + $0x80] ss:$16 sps:$4 sm:$0xff]  }
 0x1a5   :  { %v967_v53 = vmul.f32 1.442695, %v869_v50  ;;  %v870_v51 = vmin.f32 %v15126_v52, 0.0  ;;  %1408 = vmatmul.mubr.bf16.gmra.mrb[12].mxu1 %v13805_v24  ;;  %vm814_vm12 = vcmp.gt.f32.partialorder %v15126_v52, 0.0 }
 0x1a6   :  { %v1090_v60 = vsel %vm810_vm8, %v15082_v58, %v10087_v48  ;;  %1415 = vmatprep.mubr.bf16.mxu1 %v13806_v44  ;;  %vm1344_vm8 = vcmask 1043456  }
 0x1a7   :  { %v15133_v62 = vpack.c.bf16 %v1090_v60, %v1089_v54  ;;  %14562 = vpow2.f32 %v967_v53  ;;  %v969_v63 = vmul.f32 1.442695, %v870_v51 }
 0x1a8   :  { %v724_v4 = vpop.f32.mrb[88].mxu0 }
 0x1a9   :  { %18616 = vst [vmem:[#allocation21_spill] sm:$0xff] %v15133_v62  ;;  %v14559_v5 = vpop.eup %14558  ;;  %14564 = vpow2.f32 %v969_v63  ;;  %v15136_v8 = vadd.f32 %v15009_v61, %v724_v4  ;;  %v726_v7 = vpop.f32.mrb[89].mxu0  ;;  %1455 = vmatpush1.bf16.msra.mxu1 %v15133_v62 }
 0x1aa   :  { %v10088_v9 = vadd.f32 -1.0, %v14559_v5  ;;  %v727_v58 = vpop.f32.mrb[90].mxu0  ;;  %1456 = vmatprep.subr.bf16.mxu1 %v18554_v0 }
 0x1ab   :  { %v14561_v13 = vpop.eup %14560  ;;  %v871_v1 = vmin.f32 %v15136_v8, 0.0  ;;  %v15148_v15 = vadd.f32 %v15009_v61, %v727_v58  ;;  %v729_v6 = vpop.f32.mrb[91].mxu0  ;;  %vm815_vm13 = vcmp.gt.f32.partialorder %v15136_v8, 0.0 }
 0x1ac   :  { %v10089_v18 = vadd.f32 -1.0, %v14561_v13  ;;  %v1091_v25 = vsel %vm811_vm9, %v15092_v11, %v10088_v9  ;;  %v13811_v11 = vld [vmem:[%s18541_s3 + $0xa0] ss:$16 sps:$4 sm:$0xff]   ;;  %vm1345_vm9 = vcmask 1044480  }
 0x1ad   :  { %v971_v22 = vmul.f32 1.442695, %v871_v1  ;;  %v872_v23 = vmin.f32 %v15148_v15, 0.0  ;;  %1416 = vmatmul.mubr.bf16.gmra.mrb[16].mxu1 %v13808_v49  ;;  %v13815_v49 = vld [vmem:[%s18541_s3 + $0xe4] ss:$16 sps:$4 sm:$0x1f]  }
 0x1ae   :  { %v1092_v27 = vsel %vm812_vm10, %v15104_v26, %v10089_v18  ;;  %1423 = vmatprep.mubr.bf16.mxu1 %v13809_v10  ;;  %vm816_vm14 = vcmp.gt.f32.partialorder %v15148_v15, 0.0 }
 0x1af   :  { %v15155_v19 = vpack.c.bf16 %v1092_v27, %v1091_v25  ;;  %14566 = vpow2.f32 %v971_v22  ;;  %v973_v20 = vmul.f32 1.442695, %v872_v23 }
 0x1b0   :  { %v732_v28 = vpop.f32.mrb[92].mxu0 }
 0x1b1   :  { %18617 = vst [vmem:[#allocation22_spill] sm:$0xff] %v15155_v19  ;;  %v14563_v30 = vpop.eup %14562  ;;  %14568 = vpow2.f32 %v973_v20  ;;  %v15158_v34 = vadd.f32 %v15009_v61, %v732_v28  ;;  %v734_v36 = vpop.f32.mrb[93].mxu0  ;;  %1457 = vmatpush1.bf16.msra.mxu1 %v15155_v19 }
 0x1b2   :  { %v10090_v37 = vadd.f32 -1.0, %v14563_v30  ;;  %v735_v26 = vpop.f32.mrb[94].mxu0  ;;  %1458 = vmatprep.subr.bf16.mxu1 %v18554_v0 }
 0x1b3   :  { %v14565_v24 = vpop.eup %14564  ;;  %v873_v46 = vmin.f32 %v15158_v34, 0.0  ;;  %v15170_v31 = vadd.f32 %v15009_v61, %v735_v26  ;;  %v737_v44 = vpop.f32.mrb[95].mxu0  ;;  %vm817_vm0 = vcmp.gt.f32.partialorder %v15158_v34, 0.0 }
 0x1b4   :  { %v10091_v41 = vadd.f32 -1.0, %v14565_v24  ;;  %v1093_v48 = vsel %vm813_vm11, %v15114_v38, %v10090_v37  ;;  %v13814_v38 = vld [vmem:[%s18541_s3 + $0xc0] ss:$16 sps:$4 sm:$0xff]   ;;  %v13820_v37 = vld [vmem:[%s18541_s3 + $0xc] ss:$16 sps:$4 sm:$0xff]  }
 0x1b5   :  { %v975_v50 = vmul.f32 1.442695, %v873_v46  ;;  %v874_v42 = vmin.f32 %v15170_v31, 0.0  ;;  %1424 = vmatmul.mubr.bf16.gmra.mrb[20].mxu1 %v13811_v11  ;;  %vm818_vm1 = vcmp.gt.f32.partialorder %v15170_v31, 0.0 }
 0x1b6   :  { %v1094_v53 = vsel %vm814_vm12, %v15126_v52, %v10091_v41  ;;  %1431 = vmatprep.mubr.bf16.mxu1 %v13812_v43  ;;  %vm14636_vm12 = vmmov 0  }
 0x1b7   :  { %v15177_v51 = vpack.c.bf16 %v1094_v53, %v1093_v48  ;;  %14570 = vpow2.f32 %v975_v50  ;;  %v977_v54 = vmul.f32 1.442695, %v874_v42 }
 0x1b8   :  { %v740_v60 = vpop.f32.mrb[96].mxu0 }
 0x1b9   :  { %18618 = vst [vmem:[#allocation23_spill] sm:$0xff] %v15177_v51  ;;  %v14567_v63 = vpop.eup %14566  ;;  %14572 = vpow2.f32 %v977_v54  ;;  %v15180_v4 = vadd.f32 %v15009_v61, %v740_v60  ;;  %v742_v5 = vpop.f32.mrb[97].mxu0  ;;  %1459 = vmatpush1.bf16.msra.mxu1 %v15177_v51 }
 0x1ba   :  { %v10092_v7 = vadd.f32 -1.0, %v14567_v63  ;;  %v743_v52 = vpop.f32.mrb[98].mxu0  ;;  %1460 = vmatprep.subr.bf16.mxu1 %v18554_v0 }
 0x1bb   :  { %v14569_v9 = vpop.eup %14568  ;;  %v875_v58 = vmin.f32 %v15180_v4, 0.0  ;;  %v744_v10 = vadd.f32 %v15009_v61, %v743_v52  ;;  %v745_v13 = vpop.f32.mrb[99].mxu0  ;;  %vm819_vm2 = vcmp.gt.f32.partialorder %v15180_v4, 0.0 }
 0x1bc   :  { %v10093_v1 = vadd.f32 -1.0, %v14569_v9  ;;  %v1095_v22 = vsel %vm815_vm13, %v15136_v8, %v10092_v7  ;;  %v13817_v8 = vld [vmem:[%s18541_s3 + $0xe0] ss:$16 sps:$4 sm:$0x1f]  }
 0x1bd   :  { %v979_v6 = vmul.f32 1.442695, %v875_v58  ;;  %v876_v18 = vmin.f32 %v744_v10, 0.0  ;;  %1432 = vmatmul.mubr.bf16.gmra.mrb[24].mxu1 %v13814_v38  ;;  %vm820_vm3 = vcmp.gt.f32.partialorder %v744_v10, 0.0 }
 0x1be   :  { %v1096_v23 = vsel %vm816_vm14, %v15148_v15, %v10093_v1  ;;  %1439 = vmatprep.mubr.bf16.mxu1 %v13815_v49 }
 0x1bf   :  { %v15196_v25 = vpack.c.bf16 %v1096_v23, %v1095_v22  ;;  %14574 = vpow2.f32 %v979_v6  ;;  %v981_v27 = vmul.f32 1.442695, %v876_v18 }
 0x1c0   :  { %v748_v20 = vpop.f32.mrb[100].mxu0 }
 0x1c1   :  { %18619 = vst [vmem:[#allocation24_spill] sm:$0xff] %v15196_v25  ;;  %v14571_v28 = vpop.eup %14570  ;;  %14576 = vpow2.f32 %v981_v27  ;;  %v15199_v30 = vadd.f32 %v15009_v61, %v748_v20  ;;  %v750_v36 = vpop.f32.mrb[101].mxu0  ;;  %1461 = vmatpush1.bf16.msra.mxu1 %v15196_v25 }
 0x1c2   :  { %v10094_v11 = vadd.f32 -1.0, %v14571_v28  ;;  %v751_v15 = vpop.f32.mrb[102].mxu0  ;;  %1462 = vmatprep.subr.bf16.mxu1 %v18554_v0 }
 0x1c3   :  { %v14573_v26 = vpop.eup %14572  ;;  %v877_v43 = vmin.f32 %v15199_v30, 0.0  ;;  %v752_v24 = vadd.f32 %v15009_v61, %v751_v15  ;;  %v753_v46 = vpop.f32.mrb[103].mxu0  ;;  %vm821_vm4 = vcmp.gt.f32.partialorder %v15199_v30, 0.0 }
 0x1c4   :  { %v10095_v44 = vadd.f32 -1.0, %v14573_v26  ;;  %v1097_v42 = vsel %vm817_vm0, %v15158_v34, %v10094_v11 }
 0x1c5   :  { %v983_v41 = vmul.f32 1.442695, %v877_v43  ;;  %v878_v50 = vmin.f32 %v752_v24, 0.0  ;;  %1440 = vmatmul.mubr.bf16.gmra.mrb[28].mxu1 %v13817_v8  ;;  %vm822_vm5 = vcmp.gt.f32.partialorder %v752_v24, 0.0 }
 0x1c6   :  { %v1098_v48 = vsel %vm818_vm1, %v15170_v31, %v10095_v44  ;;  %10136 = vmatprep.mubr.msk.bf16.mxu1 %vm1319_vm15, %v13820_v37 }
 0x1c7   :  { %v15216_v53 = vpack.c.bf16 %v1098_v48, %v1097_v42  ;;  %14578 = vpow2.f32 %v983_v41  ;;  %v985_v54 = vmul.f32 1.442695, %v878_v50 }
 0x1c8   :  { %v756_v60 = vpop.f32.mrb[104].mxu0 }
 0x1c9   :  { %18620 = vst [vmem:[#allocation25_spill] sm:$0xff] %v15216_v53  ;;  %v14575_v63 = vpop.eup %14574  ;;  %14580 = vpow2.f32 %v985_v54  ;;  %v757_v5 = vadd.f32 %v15009_v61, %v756_v60  ;;  %v758_v38 = vpop.f32.mrb[105].mxu0  ;;  %1463 = vmatpush1.bf16.msra.mxu1 %v15216_v53 }
 0x1ca   :  { %v10096_v7 = vadd.f32 -1.0, %v14575_v63  ;;  %v759_v52 = vpop.f32.mrb[106].mxu0  ;;  %1464 = vmatprep.subr.bf16.mxu1 %v18554_v0 }
 0x1cb   :  { %v14577_v34 = vpop.eup %14576  ;;  %v879_v31 = vmin.f32 %v757_v5, 0.0  ;;  %v760_v49 = vadd.f32 %v15009_v61, %v759_v52  ;;  %v761_v9 = vpop.f32.mrb[107].mxu0  ;;  %vm823_vm6 = vcmp.gt.f32.partialorder %v757_v5, 0.0 }
 0x1cc   :  { %v10097_v58 = vadd.f32 -1.0, %v14577_v34  ;;  %v1099_v6 = vsel %vm819_vm2, %v15180_v4, %v10096_v7  ;;  %v14634_v34 = vmov 65535  }
 0x1cd   :  { %v987_v13 = vmul.f32 1.442695, %v879_v31  ;;  %v880_v1 = vmin.f32 %v760_v49, 0.0  ;;  %vm824_vm7 = vcmp.gt.f32.partialorder %v760_v49, 0.0  ;;  %v1346_v31 = vsel %vm1344_vm8, 4294967295, %v14634_v34 }
 0x1ce   :  { %v1100_v18 = vsel %vm820_vm3, %v744_v10, %v10097_v58  ;;  %v13857_v34 = vld [vmem:[%s18541_s3 + $0x1a4] ss:$16 sps:$4 sm:$0xff]  }
 0x1cf   :  { %v15224_v22 = vpack.c.bf16 %v1100_v18, %v1099_v6  ;;  %14582 = vpow2.f32 %v987_v13  ;;  %v989_v23 = vmul.f32 1.442695, %v880_v1  ;;  %v13818_v6 = vld [vmem:[%s18541_s3 + $0x8] ss:$16 sps:$4 sm:$0xff]   ;;  %v13821_v18 = vld [vmem:[%s18541_s3 + $0x2c] ss:$16 sps:$4 sm:$0xff]  }
 0x1d0   :  { %v764_v27 = vpop.f32.mrb[108].mxu0 }
 0x1d1   :  { %18621 = vst [vmem:[#allocation26_spill] sm:$0xff] %v15224_v22  ;;  %v14579_v20 = vpop.eup %14578  ;;  %14584 = vpow2.f32 %v989_v23  ;;  %v765_v28 = vadd.f32 %v15009_v61, %v764_v27  ;;  %v766_v36 = vpop.f32.mrb[109].mxu0  ;;  %1465 = vmatpush1.bf16.msra.mxu1 %v15224_v22  ;;  %v13823_v23 = vld [vmem:[%s18541_s3 + $0x28] ss:$16 sps:$4 sm:$0xff]   ;;  %v13824_v27 = vld [vmem:[%s18541_s3 + $0x4c] ss:$16 sps:$4 sm:$0xff]  }
 0x1d2   :  { %v10098_v8 = vadd.f32 -1.0, %v14579_v20  ;;  %v767_v11 = vpop.f32.mrb[110].mxu0  ;;  %1466 = vmatprep.subr.bf16.mxu1 %v18554_v0  ;;  %v13826_v20 = vld [vmem:[%s18541_s3 + $0x48] ss:$16 sps:$4 sm:$0xff]  }
 0x1d3   :  { %v14581_v15 = vpop.eup %14580  ;;  %v881_v37 = vmin.f32 %v765_v28, 0.0  ;;  %v768_v4 = vadd.f32 %v15009_v61, %v767_v11  ;;  %v769_v10 = vpop.f32.mrb[111].mxu0  ;;  %vm825_vm10 = vcmp.gt.f32.partialorder %v765_v28, 0.0  ;;  %v13829_v36 = vld [vmem:[%s18541_s3 + $0x68] ss:$16 sps:$4 sm:$0xff]  }
 0x1d4   :  { %v10099_v26 = vadd.f32 -1.0, %v14581_v15  ;;  %v1101_v44 = vsel %vm821_vm4, %v15199_v30, %v10098_v8  ;;  %v13830_v8 = vld [vmem:[%s18541_s3 + $0x8c] ss:$16 sps:$4 sm:$0xff]   ;;  %v13832_v11 = vld [vmem:[%s18541_s3 + $0x88] ss:$16 sps:$4 sm:$0xff]  }
 0x1d5   :  { %v991_v43 = vmul.f32 1.442695, %v881_v37  ;;  %v882_v46 = vmin.f32 %v768_v4, 0.0  ;;  %vm826_vm11 = vcmp.gt.f32.partialorder %v768_v4, 0.0  ;;  %v13833_v15 = vld [vmem:[%s18541_s3 + $0xac] ss:$16 sps:$4 sm:$0xff]  }
 0x1d6   :  { %v1102_v41 = vsel %vm822_vm5, %v752_v24, %v10099_v26  ;;  %v13881_v37 = vld [vmem:[%s18542_s4 + $0x40] sm:$0xff]   ;;  %v13836_v10 = vld [vmem:[%s18541_s3 + $0xcc] ss:$16 sps:$4 sm:$0xff]   ;;  %v13838_v26 = vld [vmem:[%s18541_s3 + $0xc8] ss:$16 sps:$4 sm:$0xff]  }
 0x1d7   :  { %v15232_v50 = vpack.c.bf16 %v1102_v41, %v1101_v44  ;;  %14586 = vpow2.f32 %v991_v43  ;;  %v993_v42 = vmul.f32 1.442695, %v882_v46  ;;  %12507 = vmatprep.subr.bf16.mxu0 %v13881_v37  ;;  %v13839_v43 = vld [vmem:[%s18541_s3 + $0xec] ss:$16 sps:$4 sm:$0x1f]  }
 0x1d8   :  { %12508 = vmatpush3.bf16.msra.mxu0 %v13881_v37  ;;  %v13841_v46 = vld [vmem:[%s18541_s3 + $0xe8] ss:$16 sps:$4 sm:$0x1f]   ;;  %v13844_v44 = vld [vmem:[%s18541_s3 + $0x104] ss:$16 sps:$4 sm:$0xff]  }
 0x1d9   :  { %18622 = vst [vmem:[#allocation27_spill] sm:$0xff] %v15232_v50  ;;  %v14583_v48 = vpop.eup %14582  ;;  %14588 = vpow2.f32 %v993_v42  ;;  %1467 = vmatpush1.bf16.msra.mxu1 %v15232_v50  ;;  %v13891_v41 = vld [vmem:[%s18542_s4 + $0x48] sm:$0xff]   ;;  %v13842_v42 = vld [vmem:[%s18541_s3 + $0x100] ss:$16 sps:$4 sm:$0xff]  }
 0x1da   :  { %v10100_v54 = vadd.f32 -1.0, %v14583_v48  ;;  %1468 = vmatprep.subr.bf16.mxu1 %v18554_v0  ;;  %12509 = vmatprep.subr.bf16.mxu0 %v13891_v41  ;;  %v13845_v48 = vld [vmem:[%s18541_s3 + $0x124] ss:$16 sps:$4 sm:$0xff]   ;;  %v13866_v37 = vld [vmem:[%s18541_s3 + $0x108] ss:$16 sps:$4 sm:$0xff]  }
 0x1db   :  { %v14585_v61 = vpop.eup %14584 }
 0x1dc   :  { %v10101_v60 = vadd.f32 -1.0, %v14585_v61  ;;  %v1103_v63 = vsel %vm823_vm6, %v757_v5, %v10100_v54  ;;  %v15240_v5 = vsel %vm1345_vm9, %v1346_v31, 0  ;;  %12510 = vmatpush3.bf16.msra.mxu0 %v13891_v41  ;;  %v13847_v54 = vld [vmem:[%s18541_s3 + $0x120] ss:$16 sps:$4 sm:$0xff]   ;;  %v13848_v61 = vld [vmem:[%s18541_s3 + $0x144] ss:$16 sps:$4 sm:$0xff]  }
 0x1dd   :  { %18624 = vst [vmem:[#allocation29_spill] sm:$0xff] %v15240_v5  ;;  %v13859_v31 = vld [vmem:[%s18541_s3 + $0x1a0] ss:$16 sps:$4 sm:$0xff]  }
 0x1de   :  { %v1104_v38 = vsel %vm824_vm7, %v760_v49, %v10101_v60  ;;  %v13850_v60 = vld [vmem:[%s18541_s3 + $0x140] ss:$16 sps:$4 sm:$0xff]  }
 0x1df   :  { %v15236_v7 = vpack.c.bf16 %v1104_v38, %v1103_v63  ;;  %v13851_v63 = vld [vmem:[%s18541_s3 + $0x164] ss:$16 sps:$4 sm:$0xff]   ;;  %v13853_v38 = vld [vmem:[%s18541_s3 + $0x160] ss:$16 sps:$4 sm:$0xff]  }
 0x1e1   :  { %18623 = vst [vmem:[#allocation28_spill] sm:$0xff] %v15236_v7  ;;  %v14587_v30 = vpop.eup %14586  ;;  %1469 = vmatpush1.bf16.msra.mxu1 %v15236_v7 }
 0x1e2   :  { %v10102_v24 = vadd.f32 -1.0, %v14587_v30  ;;  %1470 = vmatprep.subr.bf16.mxu1 %v18554_v0  ;;  %v13854_v30 = vld [vmem:[%s18541_s3 + $0x184] ss:$16 sps:$4 sm:$0xff]  }
 0x1e3   :  { %v14589_v52 = vpop.eup %14588 }
 0x1e4   :  { %v10103_v9 = vadd.f32 -1.0, %v14589_v52  ;;  %v1105_v58 = vsel %vm825_vm10, %v765_v28, %v10102_v24  ;;  %v13827_v28 = vld [vmem:[%s18541_s3 + $0x6c] ss:$16 sps:$4 sm:$0xff]   ;;  %v13904_v24 = vld [vmem:[%s18542_s4 + $0x50] sm:$0xff]  }
 0x1e5   :  { %12511 = vmatprep.subr.bf16.mxu0 %v13904_v24  ;;  %v13856_v52 = vld [vmem:[%s18541_s3 + $0x180] ss:$16 sps:$4 sm:$0xff]  }
 0x1e6   :  { %v1106_v13 = vsel %vm826_vm11, %v768_v4, %v10103_v9  ;;  %v13835_v4 = vld [vmem:[%s18541_s3 + $0xa8] ss:$16 sps:$4 sm:$0xff]   ;;  %12512 = vmatpush3.bf16.msra.mxu0 %v13904_v24  ;;  %v13860_v9 = vld [vmem:[%s18541_s3 + $0x1c4] ss:$16 sps:$4 sm:$0xff]  }
 0x1e7   :  { %v1134_v49 = vpack.c.bf16 %v1106_v13, %v1105_v58  ;;  %v13862_v58 = vld [vmem:[%s18541_s3 + $0x1c0] ss:$16 sps:$4 sm:$0xff]   ;;  %v13863_v13 = vld [vmem:[%s18541_s3 + $0x1e4] ss:$16 sps:$4 sm:$0x1f]  }
 0x1e8   :  { %v13874_v24 = vld [vmem:[%s18541_s3 + $0x148] ss:$16 sps:$4 sm:$0xff]  }
 0x1e9   :  { %v15243_v1 = vand.u32 %v15240_v5, %v1134_v49  ;;  %v13946_v5 = vld [vmem:[%s18541_s3 + $0x30c] ss:$16 sps:$4 sm:$0xff]  }
 0x1eb   :  { %18625 = vst [vmem:[#allocation30_spill] sm:$0xff] %v15243_v1  ;;  %1471 = vmatpush1.bf16.msra.mxu1 %v15243_v1 }
 0x1ec   :  { %11536 = vmatprep.subr.bf16.mxu1 %v14980_v59 }
 0x1ee   :  { %1481 = vmatmul.mubr.bf16.vlgmr.msra.gmra.mrb[32].mxu1 %v13818_v6 }
 0x1ef   :  { %11537 = vmatpush3.bf16.msra.mxu1 %v14948_v40  ;;  %10137 = vmatprep.mubr.msk.bf16.mxu1 %vm1319_vm15, %v13821_v18  ;;  %v13865_v18 = vld [vmem:[%s18541_s3 + $0x1e0] ss:$16 sps:$4 sm:$0x1f]  }
 0x1f0   :  { %11538 = vmatprep.subr.bf16.mxu1 %v14986_v16 }
 0x1f3   :  { %11539 = vmatpush3.bf16.msra.mxu1 %v14952_v57 }
 0x1f4   :  { %11540 = vmatprep.subr.bf16.mxu1 %v14995_v35 }
 0x1f6   :  { %1489 = vmatmul.mubr.bf16.gmra.mrb[36].mxu1 %v13823_v23 }
 0x1f7   :  { %11541 = vmatpush3.bf16.msra.mxu1 %v14956_v12  ;;  %10138 = vmatprep.mubr.msk.bf16.mxu1 %vm1319_vm15, %v13824_v27 }
 0x1f8   :  { %11542 = vmatprep.subr.bf16.mxu1 %v15004_v55 }
 0x1fb   :  { %11543 = vmatpush3.bf16.msra.mxu1 %v14960_v29 }
 0x1fc   :  { %11544 = vmatprep.subr.bf16.mxu1 %v15017_v14 }
 0x1fe   :  { %1497 = vmatmul.mubr.bf16.gmra.mrb[40].mxu1 %v13826_v20  ;;  %v13868_v20 = vld [vmem:[%s18541_s3 + $0x10c] ss:$16 sps:$4 sm:$0xff]  }
 0x1ff   :  { %11545 = vmatpush3.bf16.msra.mxu1 %v14964_v47  ;;  %10139 = vmatprep.mubr.msk.bf16.mxu1 %vm1319_vm15, %v13827_v28 }
 0x200   :  { %11546 = vmatprep.subr.bf16.mxu1 %v15025_v33 }
 0x203   :  { %11547 = vmatpush3.bf16.msra.mxu1 %v14968_v3 }
 0x204   :  { %11548 = vmatprep.subr.bf16.mxu1 %v15034_v56 }
 0x206   :  { %1505 = vmatmul.mubr.bf16.gmra.mrb[44].mxu1 %v13829_v36 }
 0x207   :  { %11549 = vmatpush3.bf16.msra.mxu1 %v14972_v21  ;;  %10140 = vmatprep.mubr.msk.bf16.mxu1 %vm1319_vm15, %v13830_v8  ;;  %v13914_v8 = vld [vmem:[%s18542_s4 + $0x58] sm:$0xff]  }
 0x208   :  { %11550 = vmatprep.subr.bf16.mxu1 %v15046_v17  ;;  %12513 = vmatprep.subr.bf16.mxu0 %v13914_v8 }
 0x209   :  { %12514 = vmatpush3.bf16.msra.mxu0 %v13914_v8 }
 0x20b   :  { %11551 = vmatpush3.bf16.msra.mxu1 %v14976_v39 }
 0x20c   :  { %1875 = vmatprep.subr.bf16.mxu1 %v18554_v0 }
 0x20e   :  { %1513 = vmatmul.mubr.bf16.gmra.mrb[48].mxu1 %v13832_v11 }
 0x20f   :  { %10141 = vmatprep.mubr.msk.bf16.mxu1 %vm1319_vm15, %v13833_v15 }
 0x216   :  { %1521 = vmatmul.mubr.bf16.gmra.mrb[52].mxu1 %v13835_v4 }
 0x217   :  { %10142 = vmatprep.mubr.msk.bf16.mxu1 %vm1319_vm15, %v13836_v10 }
 0x21e   :  { %1529 = vmatmul.mubr.bf16.gmra.mrb[56].mxu1 %v13838_v26  ;;  %v13869_v26 = vld [vmem:[%s18541_s3 + $0x12c] ss:$16 sps:$4 sm:$0xff]  }
 0x21f   :  { %10143 = vmatprep.mubr.msk.bf16.mxu1 %vm1319_vm15, %v13839_v43 }
 0x226   :  { %1537 = vmatmul.mubr.bf16.gmra.mrb[60].mxu1 %v13841_v46 }
 0x227   :  { %1810 = vmatprep.mubr.bf16.mxu1 %v13844_v44 }
 0x22e   :  { %1811 = vmatmul.mubr.bf16.vlgmr.msra.gmra.mrb[64].mxu1 %v13842_v42  ;;  %v13871_v42 = vld [vmem:[%s18541_s3 + $0x128] ss:$16 sps:$4 sm:$0xff]  }
 0x22f   :  { %1876 = vmatpush1.bf16.msra.mxu1 %v15067_v45  ;;  %1818 = vmatprep.mubr.bf16.mxu1 %v13845_v48 }
 0x230   :  { %1877 = vmatprep.subr.bf16.mxu1 %v18554_v0 }
 0x233   :  { %1878 = vmatpush1.bf16.msra.mxu1 %v15089_v2 }
 0x234   :  { %1879 = vmatprep.subr.bf16.mxu1 %v18554_v0 }
 0x236   :  { %1819 = vmatmul.mubr.bf16.gmra.mrb[68].mxu1 %v13847_v54 }
 0x237   :  { %1880 = vmatpush1.bf16.msra.mxu1 %v15111_v32  ;;  %1826 = vmatprep.mubr.bf16.mxu1 %v13848_v61  ;;  %v13872_v61 = vld [vmem:[%s18541_s3 + $0x14c] ss:$16 sps:$4 sm:$0xff]  }
 0x238   :  { %1881 = vmatprep.subr.bf16.mxu1 %v18554_v0 }
 0x23b   :  { %1882 = vmatpush1.bf16.msra.mxu1 %v15133_v62 }
 0x23c   :  { %1883 = vmatprep.subr.bf16.mxu1 %v18554_v0 }
 0x23e   :  { %1827 = vmatmul.mubr.bf16.gmra.mrb[72].mxu1 %v13850_v60 }
 0x23f   :  { %1884 = vmatpush1.bf16.msra.mxu1 %v15155_v19  ;;  %1834 = vmatprep.mubr.bf16.mxu1 %v13851_v63 }
 0x240   :  { %1885 = vmatprep.subr.bf16.mxu1 %v18554_v0 }
 0x243   :  { %1886 = vmatpush1.bf16.msra.mxu1 %v15177_v51 }
 0x244   :  { %1887 = vmatprep.subr.bf16.mxu1 %v18554_v0 }
 0x246   :  { %1835 = vmatmul.mubr.bf16.gmra.mrb[76].mxu1 %v13853_v38 }
 0x247   :  { %1888 = vmatpush1.bf16.msra.mxu1 %v15196_v25  ;;  %1842 = vmatprep.mubr.bf16.mxu1 %v13854_v30 }
 0x248   :  { %1889 = vmatprep.subr.bf16.mxu1 %v18554_v0 }
 0x24b   :  { %1890 = vmatpush1.bf16.msra.mxu1 %v15216_v53 }
 0x24c   :  { %1891 = vmatprep.subr.bf16.mxu1 %v18554_v0 }
 0x24e   :  { %1843 = vmatmul.mubr.bf16.gmra.mrb[80].mxu1 %v13856_v52 }
 0x24f   :  { %1892 = vmatpush1.bf16.msra.mxu1 %v15224_v22  ;;  %1850 = vmatprep.mubr.bf16.mxu1 %v13857_v34 }
 0x250   :  { %1893 = vmatprep.subr.bf16.mxu1 %v18554_v0 }
 0x253   :  { %1894 = vmatpush1.bf16.msra.mxu1 %v15232_v50 }
 0x254   :  { %1895 = vmatprep.subr.bf16.mxu1 %v18554_v0 }
 0x256   :  { %1851 = vmatmul.mubr.bf16.gmra.mrb[84].mxu1 %v13859_v31  ;;  %v13875_v31 = vld [vmem:[%s18541_s3 + $0x16c] ss:$16 sps:$4 sm:$0xff]  }
 0x257   :  { %1896 = vmatpush1.bf16.msra.mxu1 %v15236_v7  ;;  %1858 = vmatprep.mubr.bf16.mxu1 %v13860_v9 }
 0x258   :  { %1897 = vmatprep.subr.bf16.mxu1 %v18554_v0 }
 0x25b   :  { %1898 = vmatpush1.bf16.msra.mxu1 %v15243_v1 }
 0x25c   :  { %11632 = vmatprep.subr.bf16.mxu1 %v14980_v59 }
 0x25e   :  { %1859 = vmatmul.mubr.bf16.gmra.mrb[88].mxu1 %v13862_v58 }
 0x25f   :  { %1866 = vmatprep.mubr.bf16.mxu1 %v13863_v13  ;;  %v13927_v13 = vld [vmem:[%s18542_s4 + $0x60] sm:$0xff]  }
 0x260   :  { %v11488_v49 = vpop.f32.mrb[0].mxu1  ;;  %12515 = vmatprep.subr.bf16.mxu0 %v13927_v13 }
 0x261   :  { %v11489_v6 = vpop.f32.mrb[1].mxu1  ;;  %12516 = vmatpush3.bf16.msra.mxu0 %v13927_v13 }
 0x262   :  { %v15396_v23 = vadd.f32 %v11489_v6, %v11488_v49  ;;  %v11491_v27 = vpop.f32.mrb[2].mxu1 }
 0x263   :  { %v11492_v28 = vpop.f32.mrb[3].mxu1 }
 0x264   :  { %v15401_v36 = vadd.f32 %v11492_v28, %v11491_v27  ;;  %v13878_v28 = vld [vmem:[%s18541_s3 + $0x18c] ss:$16 sps:$4 sm:$0xff]  }
 0x266   :  { %1867 = vmatmul.mubr.bf16.gmra.mrb[92].mxu1 %v13865_v18  ;;  %v13877_v18 = vld [vmem:[%s18541_s3 + $0x168] ss:$16 sps:$4 sm:$0xff]  }
 0x267   :  { %10208 = vmatprep.mubr.msk.bf16.mxu1 %vm1319_vm15, %v13868_v20 }
 0x268   :  { %v11494_v11 = vpop.f32.mrb[4].mxu1 }
 0x269   :  { %v11495_v15 = vpop.f32.mrb[5].mxu1 }
 0x26a   :  { %v15410_v4 = vadd.f32 %v11495_v15, %v11494_v11  ;;  %v11497_v10 = vpop.f32.mrb[6].mxu1 }
 0x26b   :  { %v11498_v43 = vpop.f32.mrb[7].mxu1 }
 0x26c   :  { %v15415_v46 = vadd.f32 %v11498_v43, %v11497_v10  ;;  %v13880_v10 = vld [vmem:[%s18541_s3 + $0x188] ss:$16 sps:$4 sm:$0xff]  }
 0x26e   :  { %1908 = vmatmul.mubr.bf16.vlgmr.msra.gmra.mrb[96].mxu1 %v13866_v37 }
 0x26f   :  { %11633 = vmatpush3.bf16.msra.mxu1 %v14948_v40  ;;  %10209 = vmatprep.mubr.msk.bf16.mxu1 %vm1319_vm15, %v13869_v26 }
 0x270   :  { %11634 = vmatprep.subr.bf16.mxu1 %v14986_v16  ;;  %v11500_v44 = vpop.f32.mrb[8].mxu1 }
 0x271   :  { %v11501_v41 = vpop.f32.mrb[9].mxu1 }
 0x272   :  { %v15423_v48 = vadd.f32 %v11501_v41, %v11500_v44  ;;  %v11503_v54 = vpop.f32.mrb[10].mxu1  ;;  %v13882_v44 = vld [vmem:[%s18541_s3 + $0x1ac] ss:$16 sps:$4 sm:$0xff]  }
 0x273   :  { %11635 = vmatpush3.bf16.msra.mxu1 %v14952_v57  ;;  %v11504_v60 = vpop.f32.mrb[11].mxu1 }
 0x274   :  { %11636 = vmatprep.subr.bf16.mxu1 %v14995_v35  ;;  %v15430_v63 = vadd.f32 %v11504_v60, %v11503_v54  ;;  %v13884_v60 = vld [vmem:[%s18541_s3 + $0x1a8] ss:$16 sps:$4 sm:$0xff]  }
 0x276   :  { %1916 = vmatmul.mubr.bf16.gmra.mrb[100].mxu1 %v13871_v42 }
 0x277   :  { %11637 = vmatpush3.bf16.msra.mxu1 %v14956_v12  ;;  %10210 = vmatprep.mubr.msk.bf16.mxu1 %vm1319_vm15, %v13872_v61 }
 0x278   :  { %11638 = vmatprep.subr.bf16.mxu1 %v15004_v55  ;;  %v11506_v38 = vpop.f32.mrb[12].mxu1 }
 0x279   :  { %v11507_v30 = vpop.f32.mrb[13].mxu1 }
 0x27a   :  { %v15438_v52 = vadd.f32 %v11507_v30, %v11506_v38  ;;  %v11509_v34 = vpop.f32.mrb[14].mxu1 }
 0x27b   :  { %11639 = vmatpush3.bf16.msra.mxu1 %v14960_v29  ;;  %v11510_v9 = vpop.f32.mrb[15].mxu1 }
 0x27c   :  { %11640 = vmatprep.subr.bf16.mxu1 %v15017_v14  ;;  %v15445_v58 = vadd.f32 %v11510_v9, %v11509_v34 }
 0x27e   :  { %1924 = vmatmul.mubr.bf16.gmra.mrb[104].mxu1 %v13874_v24  ;;  %v13885_v24 = vld [vmem:[%s18541_s3 + $0x1cc] ss:$16 sps:$4 sm:$0xff]  }
 0x27f   :  { %11641 = vmatpush3.bf16.msra.mxu1 %v14964_v47  ;;  %10211 = vmatprep.mubr.msk.bf16.mxu1 %vm1319_vm15, %v13875_v31 }
 0x280   :  { %11642 = vmatprep.subr.bf16.mxu1 %v15025_v33  ;;  %v11512_v49 = vpop.f32.mrb[16].mxu1 }
 0x281   :  { %v11513_v6 = vpop.f32.mrb[17].mxu1 }
 0x282   :  { %v15456_v27 = vadd.f32 %v11513_v6, %v11512_v49  ;;  %v11515_v20 = vpop.f32.mrb[18].mxu1  ;;  %v13887_v49 = vld [vmem:[%s18541_s3 + $0x1c8] ss:$16 sps:$4 sm:$0xff]  }
 0x283   :  { %11643 = vmatpush3.bf16.msra.mxu1 %v14968_v3  ;;  %v11516_v8 = vpop.f32.mrb[19].mxu1 }
 0x284   :  { %11644 = vmatprep.subr.bf16.mxu1 %v15034_v56  ;;  %v15463_v11 = vadd.f32 %v11516_v8, %v11515_v20  ;;  %v13888_v20 = vld [vmem:[%s18541_s3 + $0x1ec] ss:$16 sps:$4 sm:$0x1f]  }
 0x285   :  { %v13937_v8 = vld [vmem:[%s18542_s4 + $0x68] sm:$0xff]  }
 0x286   :  { %1932 = vmatmul.mubr.bf16.gmra.mrb[108].mxu1 %v13877_v18  ;;  %12517 = vmatprep.subr.bf16.mxu0 %v13937_v8 }
 0x287   :  { %11645 = vmatpush3.bf16.msra.mxu1 %v14972_v21  ;;  %10212 = vmatprep.mubr.msk.bf16.mxu1 %vm1319_vm15, %v13878_v28 }
 0x288   :  { %11646 = vmatprep.subr.bf16.mxu1 %v15046_v17  ;;  %v11518_v15 = vpop.f32.mrb[20].mxu1  ;;  %12518 = vmatpush3.bf16.msra.mxu0 %v13937_v8 }
 0x289   :  { %v11519_v37 = vpop.f32.mrb[21].mxu1 }
 0x28a   :  { %v15471_v26 = vadd.f32 %v11519_v37, %v11518_v15  ;;  %v11521_v43 = vpop.f32.mrb[22].mxu1  ;;  %v13890_v37 = vld [vmem:[%s18541_s3 + $0x1e8] ss:$16 sps:$4 sm:$0x1f]  }
 0x28b   :  { %11647 = vmatpush3.bf16.msra.mxu1 %v14976_v39  ;;  %v11522_v41 = vpop.f32.mrb[23].mxu1 }
 0x28c   :  { %11712 = vmatprep.subr.bf16.mxu1 %v14980_v59  ;;  %v15478_v42 = vadd.f32 %v11522_v41, %v11521_v43  ;;  %v13892_v43 = vld [vmem:[%s18541_s3 + $0x200] ss:$16 sps:$4 sm:$0xff]  }
 0x28d   :  { %v13897_v41 = vld [vmem:[%s18541_s3 + $0x220] ss:$16 sps:$4 sm:$0xff]  }
 0x28e   :  { %1940 = vmatmul.mubr.bf16.gmra.mrb[112].mxu1 %v13880_v10  ;;  %v13894_v10 = vld [vmem:[%s18541_s3 + $0x204] ss:$16 sps:$4 sm:$0xff]  }
 0x28f   :  { %10213 = vmatprep.mubr.msk.bf16.mxu1 %vm1319_vm15, %v13882_v44  ;;  %v13895_v44 = vld [vmem:[%s18541_s3 + $0x224] ss:$16 sps:$4 sm:$0xff]  }
 0x290   :  { %v11524_v54 = vpop.f32.mrb[24].mxu1 }
 0x291   :  { %v11525_v61 = vpop.f32.mrb[25].mxu1 }
 0x292   :  { %v15484_v38 = vadd.f32 %v11525_v61, %v11524_v54  ;;  %v11527_v30 = vpop.f32.mrb[26].mxu1  ;;  %v13898_v54 = vld [vmem:[%s18541_s3 + $0x244] ss:$16 sps:$4 sm:$0xff]  }
 0x293   :  { %v11528_v34 = vpop.f32.mrb[27].mxu1  ;;  %v13950_v61 = vld [vmem:[%s18542_s4 + $0x70] sm:$0xff]  }
 0x294   :  { %v15489_v31 = vadd.f32 %v11528_v34, %v11527_v30  ;;  %12519 = vmatprep.subr.bf16.mxu0 %v13950_v61  ;;  %v13901_v30 = vld [vmem:[%s18541_s3 + $0x264] ss:$16 sps:$4 sm:$0xff]  }
 0x295   :  { %12520 = vmatpush3.bf16.msra.mxu0 %v13950_v61 }
 0x296   :  { %1948 = vmatmul.mubr.bf16.gmra.mrb[116].mxu1 %v13884_v60  ;;  %v13900_v60 = vld [vmem:[%s18541_s3 + $0x240] ss:$16 sps:$4 sm:$0xff]  }
 0x297   :  { %10214 = vmatprep.mubr.msk.bf16.mxu1 %vm1319_vm15, %v13885_v24 }
 0x298   :  { %v11530_v9 = vpop.f32.mrb[28].mxu1 }
 0x299   :  { %v11531_v13 = vpop.f32.mrb[29].mxu1 }
 0x29a   :  { %v15495_v6 = vadd.f32 %v11531_v13, %v11530_v9  ;;  %v11533_v18 = vpop.f32.mrb[30].mxu1  ;;  %v13903_v13 = vld [vmem:[%s18541_s3 + $0x260] ss:$16 sps:$4 sm:$0xff]  }
 0x29b   :  { %v11534_v28 = vpop.f32.mrb[31].mxu1 }
 0x29c   :  { %v15503_v15 = vadd.f32 %v11534_v28, %v11533_v18  ;;  %v13905_v18 = vld [vmem:[%s18541_s3 + $0x284] ss:$16 sps:$4 sm:$0xff]  }
 0x29e   :  { %1956 = vmatmul.mubr.bf16.gmra.mrb[120].mxu1 %v13887_v49 }
 0x29f   :  { %10215 = vmatprep.mubr.msk.bf16.mxu1 %vm1319_vm15, %v13888_v20 }
 0x2a6   :  { %1964 = vmatmul.mubr.bf16.gmra.mrb[124].mxu1 %v13890_v37 }
 0x2a7   :  { %2528 = vmatprep.mubr.bf16.mxu1 %v13894_v10 }
 0x2ae   :  { %2529 = vmatmul.mubr.bf16.vlgmr.msra.gmra.mrb[128].mxu1 %v13892_v43 }
 0x2af   :  { %11713 = vmatpush3.bf16.msra.mxu1 %v14948_v40  ;;  %2536 = vmatprep.mubr.bf16.mxu1 %v13895_v44  ;;  %v13908_v44 = vld [vmem:[%s18541_s3 + $0x2a4] ss:$16 sps:$4 sm:$0xff]  }
 0x2b0   :  { %11714 = vmatprep.subr.bf16.mxu1 %v14986_v16 }
 0x2b3   :  { %11715 = vmatpush3.bf16.msra.mxu1 %v14952_v57 }
 0x2b4   :  { %11716 = vmatprep.subr.bf16.mxu1 %v14995_v35 }
 0x2b6   :  { %2537 = vmatmul.mubr.bf16.gmra.mrb[132].mxu1 %v13897_v41  ;;  %v13957_v41 = vld [vmem:[%s18542_s4 + $0x78] sm:$0xff]  }
 0x2b7   :  { %11717 = vmatpush3.bf16.msra.mxu1 %v14956_v12  ;;  %2544 = vmatprep.mubr.bf16.mxu1 %v13898_v54 }
 0x2b8   :  { %11718 = vmatprep.subr.bf16.mxu1 %v15004_v55  ;;  %12521 = vmatprep.subr.bf16.mxu0 %v13957_v41 }
 0x2b9   :  { %12522 = vmatpush3.bf16.msra.mxu0 %v13957_v41 }
 0x2bb   :  { %11719 = vmatpush3.bf16.msra.mxu1 %v14960_v29 }
 0x2bc   :  { %11720 = vmatprep.subr.bf16.mxu1 %v15017_v14 }
 0x2be   :  { %2545 = vmatmul.mubr.bf16.gmra.mrb[136].mxu1 %v13900_v60 }
 0x2bf   :  { %11721 = vmatpush3.bf16.msra.mxu1 %v14964_v47  ;;  %2552 = vmatprep.mubr.bf16.mxu1 %v13901_v30 }
 0x2c0   :  { %11722 = vmatprep.subr.bf16.mxu1 %v15025_v33 }
 0x2c1   :  { %v1482_v24 = vpop.f32.mrb[32].mxu1 }
 0x2c2   :  { %v15544_v34 = vadd.f32 %v15396_v23, %v1482_v24  ;;  %v1484_v9 = vpop.f32.mrb[33].mxu1 }
 0x2c3   :  { %11723 = vmatpush3.bf16.msra.mxu1 %v14968_v3  ;;  %v1485_v49 = vpop.f32.mrb[34].mxu1 }
 0x2c4   :  { %v15554_v20 = vadd.f32 %v15401_v36, %v1485_v49  ;;  %11724 = vmatprep.subr.bf16.mxu1 %v15034_v56  ;;  %v1487_v28 = vpop.f32.mrb[35].mxu1  ;;  %v13907_v36 = vld [vmem:[%s18541_s3 + $0x280] ss:$16 sps:$4 sm:$0xff]  }
 0x2c6   :  { %2553 = vmatmul.mubr.bf16.gmra.mrb[140].mxu1 %v13903_v13  ;;  %v13911_v13 = vld [vmem:[%s18541_s3 + $0x2c4] ss:$16 sps:$4 sm:$0xff]  }
 0x2c7   :  { %11725 = vmatpush3.bf16.msra.mxu1 %v14972_v21  ;;  %2560 = vmatprep.mubr.bf16.mxu1 %v13905_v18 }
 0x2c8   :  { %11726 = vmatprep.subr.bf16.mxu1 %v15046_v17 }
 0x2c9   :  { %v1490_v8 = vpop.f32.mrb[36].mxu1 }
 0x2ca   :  { %v15562_v37 = vadd.f32 %v15410_v4, %v1490_v8  ;;  %v1492_v10 = vpop.f32.mrb[37].mxu1 }
 0x2cb   :  { %11727 = vmatpush3.bf16.msra.mxu1 %v14976_v39  ;;  %v1493_v43 = vpop.f32.mrb[38].mxu1 }
 0x2cc   :  { %v15575_v54 = vadd.f32 %v15415_v46, %v1493_v43  ;;  %v1495_v4 = vpop.f32.mrb[39].mxu1  ;;  %3182 = vmatprep.subr.bf16.mxu1 %v18554_v0  ;;  %v13910_v46 = vld [vmem:[%s18541_s3 + $0x2a0] ss:$16 sps:$4 sm:$0xff]  }
 0x2ce   :  { %2561 = vmatmul.mubr.bf16.gmra.mrb[144].mxu1 %v13907_v36  ;;  %v13913_v36 = vld [vmem:[%s18541_s3 + $0x2c0] ss:$16 sps:$4 sm:$0xff]  }
 0x2cf   :  { %2568 = vmatprep.mubr.bf16.mxu1 %v13908_v44 }
 0x2d1   :  { %v1498_v60 = vpop.f32.mrb[40].mxu1 }
 0x2d2   :  { %v15581_v30 = vadd.f32 %v15423_v48, %v1498_v60  ;;  %v1500_v24 = vpop.f32.mrb[41].mxu1 }
 0x2d3   :  { %v1501_v9 = vpop.f32.mrb[42].mxu1 }
 0x2d4   :  { %v15590_v49 = vadd.f32 %v15430_v63, %v1501_v9  ;;  %v1503_v18 = vpop.f32.mrb[43].mxu1  ;;  %v13915_v63 = vld [vmem:[%s18541_s3 + $0x2e4] ss:$16 sps:$4 sm:$0x1f]  }
 0x2d6   :  { %2569 = vmatmul.mubr.bf16.gmra.mrb[148].mxu1 %v13910_v46  ;;  %v13917_v46 = vld [vmem:[%s18541_s3 + $0x2e0] ss:$16 sps:$4 sm:$0x1f]  }
 0x2d7   :  { %2576 = vmatprep.mubr.bf16.mxu1 %v13911_v13 }
 0x2d9   :  { %v1506_v48 = vpop.f32.mrb[44].mxu1 }
 0x2da   :  { %v15595_v8 = vadd.f32 %v15438_v52, %v1506_v48  ;;  %v1508_v10 = vpop.f32.mrb[45].mxu1 }
 0x2db   :  { %v1509_v43 = vpop.f32.mrb[46].mxu1 }
 0x2dc   :  { %v15604_v44 = vadd.f32 %v15445_v58, %v1509_v43  ;;  %v1511_v41 = vpop.f32.mrb[47].mxu1  ;;  %v13920_v58 = vld [vmem:[%s18541_s3 + $0x304] ss:$16 sps:$4 sm:$0xff]  }
 0x2dd   :  { %v13921_v41 = vld [vmem:[%s18541_s3 + $0x324] ss:$16 sps:$4 sm:$0xff]  }
 0x2de   :  { %2577 = vmatmul.mubr.bf16.gmra.mrb[152].mxu1 %v13913_v36 }
 0x2df   :  { %2584 = vmatprep.mubr.bf16.mxu1 %v13915_v63 }
 0x2e1   :  { %v1514_v52 = vpop.f32.mrb[48].mxu1 }
 0x2e2   :  { %v15609_v60 = vadd.f32 %v15456_v27, %v1514_v52  ;;  %v1516_v24 = vpop.f32.mrb[49].mxu1  ;;  %v15623_v27 = vld [vmem:[%s18542_s4] sm:$0xff]  }
 0x2e3   :  { %v1517_v9 = vpop.f32.mrb[50].mxu1  ;;  %12539 = vmatprep.subr.bf16.mxu0 %v15623_v27 }
 0x2e4   :  { %v15618_v13 = vadd.f32 %v15463_v11, %v1517_v9  ;;  %v1519_v18 = vpop.f32.mrb[51].mxu1  ;;  %v13918_v11 = vld [vmem:[%s18541_s3 + $0x300] ss:$16 sps:$4 sm:$0xff]  }
 0x2e6   :  { %2585 = vmatmul.mubr.bf16.gmra.mrb[156].mxu1 %v13917_v46 }
 0x2e7   :  { %3117 = vmatprep.mubr.bf16.mxu1 %v13920_v58 }
 0x2e9   :  { %v1522_v10 = vpop.f32.mrb[52].mxu1 }
 0x2ea   :  { %v15629_v36 = vadd.f32 %v15471_v26, %v1522_v10  ;;  %v1524_v43 = vpop.f32.mrb[53].mxu1  ;;  %v13924_v10 = vld [vmem:[%s18541_s3 + $0x344] ss:$16 sps:$4 sm:$0xff]  }
 0x2eb   :  { %v1525_v63 = vpop.f32.mrb[54].mxu1 }
 0x2ec   :  { %18626 = vst [vmem:[#allocation31_spill] sm:$0xff] %v15629_v36  ;;  %v15638_v52 = vadd.f32 %v15478_v42, %v1525_v63  ;;  %v1527_v24 = vpop.f32.mrb[55].mxu1  ;;  %v13923_v42 = vld [vmem:[%s18541_s3 + $0x320] ss:$16 sps:$4 sm:$0xff]  }
 0x2ee   :  { %18627 = vst [vmem:[#allocation32_spill] sm:$0xff] %v15638_v52  ;;  %3118 = vmatmul.mubr.bf16.vlgmr.msra.gmra.mrb[160].mxu1 %v13918_v11  ;;  %v13956_v52 = vld [vmem:[%s18541_s3 + $0x368] ss:$16 sps:$4 sm:$0xff]  }
 0x2ef   :  { %3183 = vmatpush1.bf16.msra.mxu1 %v15067_v45  ;;  %3125 = vmatprep.mubr.bf16.mxu1 %v13921_v41 }
 0x2f0   :  { %3184 = vmatprep.subr.bf16.mxu1 %v18554_v0 }
 0x2f1   :  { %v1530_v26 = vpop.f32.mrb[56].mxu1 }
 0x2f2   :  { %v15645_v9 = vadd.f32 %v15484_v38, %v1530_v26  ;;  %v1532_v58 = vpop.f32.mrb[57].mxu1 }
 0x2f3   :  { %3185 = vmatpush1.bf16.msra.mxu1 %v15089_v2  ;;  %v1533_v18 = vpop.f32.mrb[58].mxu1  ;;  %v13928_v58 = vld [vmem:[%s18541_s3 + $0x364] ss:$16 sps:$4 sm:$0xff]  }
 0x2f4   :  { %18628 = vst [vmem:[#allocation33_spill] sm:$0xff] %v15645_v9  ;;  %v15655_v43 = vadd.f32 %v15489_v31, %v1533_v18  ;;  %v1535_v11 = vpop.f32.mrb[59].mxu1  ;;  %3186 = vmatprep.subr.bf16.mxu1 %v18554_v0  ;;  %v13926_v31 = vld [vmem:[%s18541_s3 + $0x340] ss:$16 sps:$4 sm:$0xff]  }
 0x2f6   :  { %18629 = vst [vmem:[#allocation34_spill] sm:$0xff] %v15655_v43  ;;  %3126 = vmatmul.mubr.bf16.gmra.mrb[164].mxu1 %v13923_v42 }
 0x2f7   :  { %3187 = vmatpush1.bf16.msra.mxu1 %v15111_v32  ;;  %3133 = vmatprep.mubr.bf16.mxu1 %v13924_v10 }
 0x2f8   :  { %3188 = vmatprep.subr.bf16.mxu1 %v18554_v0 }
 0x2f9   :  { %v1538_v63 = vpop.f32.mrb[60].mxu1 }
 0x2fa   :  { %v15663_v41 = vadd.f32 %v15495_v6, %v1538_v63  ;;  %v1540_v24 = vpop.f32.mrb[61].mxu1  ;;  %v13930_v63 = vld [vmem:[%s18541_s3 + $0x360] ss:$16 sps:$4 sm:$0xff]  }
 0x2fb   :  { %3189 = vmatpush1.bf16.msra.mxu1 %v15133_v62  ;;  %v1541_v26 = vpop.f32.mrb[62].mxu1 }
 0x2fc   :  { %18630 = vst [vmem:[#allocation35_spill] sm:$0xff] %v15663_v41  ;;  %v15673_v42 = vadd.f32 %v15503_v15, %v1541_v26  ;;  %v1543_v18 = vpop.f32.mrb[63].mxu1  ;;  %3190 = vmatprep.subr.bf16.mxu1 %v18554_v0 }
 0x2fe   :  { %18631 = vst [vmem:[#allocation36_spill] sm:$0xff] %v15673_v42  ;;  %3134 = vmatmul.mubr.bf16.gmra.mrb[168].mxu1 %v13926_v31  ;;  %v13931_v31 = vld [vmem:[%s18541_s3 + $0x384] ss:$16 sps:$4 sm:$0xff]  }
 0x2ff   :  { %3191 = vmatpush1.bf16.msra.mxu1 %v15155_v19  ;;  %3141 = vmatprep.mubr.bf16.mxu1 %v13928_v58 }
 0x300   :  { %3192 = vmatprep.subr.bf16.mxu1 %v18554_v0 }
 0x301   :  { %v11552_v10 = vpop.f32.mrb[64].mxu1 }
 0x302   :  { %v11553_v11 = vpop.f32.mrb[65].mxu1 }
 0x303   :  { %v15683_v15 = vadd.f32 %v11553_v11, %v11552_v10  ;;  %3193 = vmatpush1.bf16.msra.mxu1 %v15177_v51  ;;  %v11555_v24 = vpop.f32.mrb[66].mxu1  ;;  %v13933_v11 = vld [vmem:[%s18541_s3 + $0x380] ss:$16 sps:$4 sm:$0xff]  }
 0x304   :  { %v11556_v26 = vpop.f32.mrb[67].mxu1  ;;  %3194 = vmatprep.subr.bf16.mxu1 %v18554_v0 }
 0x305   :  { %v15690_v58 = vadd.f32 %v11556_v26, %v11555_v24 }
 0x306   :  { %3142 = vmatmul.mubr.bf16.gmra.mrb[172].mxu1 %v13930_v63  ;;  %v13934_v63 = vld [vmem:[%s18541_s3 + $0x3a4] ss:$16 sps:$4 sm:$0xff]  }
 0x307   :  { %3195 = vmatpush1.bf16.msra.mxu1 %v15196_v25  ;;  %3149 = vmatprep.mubr.bf16.mxu1 %v13931_v31 }
 0x308   :  { %3196 = vmatprep.subr.bf16.mxu1 %v18554_v0 }
 0x309   :  { %v11558_v18 = vpop.f32.mrb[68].mxu1 }
 0x30a   :  { %v11559_v10 = vpop.f32.mrb[69].mxu1 }
 0x30b   :  { %v15697_v6 = vadd.f32 %v11559_v10, %v11558_v18  ;;  %3197 = vmatpush1.bf16.msra.mxu1 %v15216_v53  ;;  %v11561_v38 = vpop.f32.mrb[70].mxu1  ;;  %v13936_v10 = vld [vmem:[%s18541_s3 + $0x3a0] ss:$16 sps:$4 sm:$0xff]  }
 0x30c   :  { %v11562_v24 = vpop.f32.mrb[71].mxu1  ;;  %3198 = vmatprep.subr.bf16.mxu1 %v18554_v0 }
 0x30d   :  { %v15704_v31 = vadd.f32 %v11562_v24, %v11561_v38  ;;  %v13938_v38 = vld [vmem:[%s18541_s3 + $0x3c4] ss:$16 sps:$4 sm:$0xff]  }
 0x30e   :  { %3150 = vmatmul.mubr.bf16.gmra.mrb[176].mxu1 %v13933_v11 }
 0x30f   :  { %3199 = vmatpush1.bf16.msra.mxu1 %v15224_v22  ;;  %3157 = vmatprep.mubr.bf16.mxu1 %v13934_v63 }
 0x310   :  { %3200 = vmatprep.subr.bf16.mxu1 %v18554_v0 }
 0x311   :  { %v11564_v26 = vpop.f32.mrb[72].mxu1 }
 0x312   :  { %v11565_v18 = vpop.f32.mrb[73].mxu1 }
 0x313   :  { %v15711_v46 = vadd.f32 %v11565_v18, %v11564_v26  ;;  %3201 = vmatpush1.bf16.msra.mxu1 %v15232_v50  ;;  %v11567_v48 = vpop.f32.mrb[74].mxu1  ;;  %v13940_v18 = vld [vmem:[%s18541_s3 + $0x3c0] ss:$16 sps:$4 sm:$0xff]  }
 0x314   :  { %v11568_v11 = vpop.f32.mrb[75].mxu1  ;;  %3202 = vmatprep.subr.bf16.mxu1 %v18554_v0 }
 0x315   :  { %v15718_v63 = vadd.f32 %v11568_v11, %v11567_v48  ;;  %v13941_v48 = vld [vmem:[%s18541_s3 + $0x3e4] ss:$16 sps:$4 sm:$0x1f]  }
 0x316   :  { %3158 = vmatmul.mubr.bf16.gmra.mrb[180].mxu1 %v13936_v10 }
 0x317   :  { %3203 = vmatpush1.bf16.msra.mxu1 %v15236_v7  ;;  %3165 = vmatprep.mubr.bf16.mxu1 %v13938_v38 }
 0x318   :  { %3204 = vmatprep.subr.bf16.mxu1 %v18554_v0 }
 0x319   :  { %v11570_v24 = vpop.f32.mrb[76].mxu1 }
 0x31a   :  { %v11571_v26 = vpop.f32.mrb[77].mxu1 }
 0x31b   :  { %v15725_v4 = vadd.f32 %v11571_v26, %v11570_v24  ;;  %3205 = vmatpush1.bf16.msra.mxu1 %v15243_v1  ;;  %v11573_v28 = vpop.f32.mrb[78].mxu1  ;;  %v13943_v24 = vld [vmem:[%s18541_s3 + $0x3e0] ss:$16 sps:$4 sm:$0x1f]  }
 0x31c   :  { %v11574_v10 = vpop.f32.mrb[79].mxu1  ;;  %3771 = vmatprep.subr.bf16.mxu1 %v18554_v0 }
 0x31d   :  { %v15732_v38 = vadd.f32 %v11574_v10, %v11573_v28 }
 0x31e   :  { %3166 = vmatmul.mubr.bf16.gmra.mrb[184].mxu1 %v13940_v18 }
 0x31f   :  { %3173 = vmatprep.mubr.bf16.mxu1 %v13941_v48  ;;  %v13944_v48 = vld [vmem:[%s18541_s3 + $0x308] ss:$16 sps:$4 sm:$0xff]  }
 0x321   :  { %v11576_v11 = vpop.f32.mrb[80].mxu1 }
 0x322   :  { %v11577_v61 = vpop.f32.mrb[81].mxu1 }
 0x323   :  { %v15737_v26 = vadd.f32 %v11577_v61, %v11576_v11  ;;  %v11579_v23 = vpop.f32.mrb[82].mxu1  ;;  %v13947_v11 = vld [vmem:[%s18541_s3 + $0x32c] ss:$16 sps:$4 sm:$0xff]  }
 0x324   :  { %v11580_v41 = vpop.f32.mrb[83].mxu1 }
 0x325   :  { %v15742_v42 = vadd.f32 %v11580_v41, %v11579_v23 }
 0x326   :  { %3174 = vmatmul.mubr.bf16.gmra.mrb[188].mxu1 %v13943_v24  ;;  %v13949_v24 = vld [vmem:[%s18541_s3 + $0x328] ss:$16 sps:$4 sm:$0xff]  }
 0x327   :  { %10408 = vmatprep.mubr.msk.bf16.mxu1 %vm1319_vm15, %v13946_v5  ;;  %v18632_v5 = vmov 0  }
 0x329   :  { %v11582_v28 = vpop.f32.mrb[84].mxu1 }
 0x32a   :  { %v11583_v18 = vpop.f32.mrb[85].mxu1 }
 0x32b   :  { %v15748_v10 = vadd.f32 %v11583_v18, %v11582_v28  ;;  %v11585_v61 = vpop.f32.mrb[86].mxu1 }
 0x32c   :  { %v11586_v0 = vpop.f32.mrb[87].mxu1 }
 0x32d   :  { %v15753_v9 = vadd.f32 %v11586_v0, %v11585_v61  ;;  %v13951_v0 = vld [vmem:[%s18541_s3 + $0x34c] ss:$16 sps:$4 sm:$0xff]  }
 0x32e   :  { %3215 = vmatmul.mubr.bf16.vlgmr.msra.gmra.mrb[192].mxu1 %v13944_v48 }
 0x32f   :  { %3772 = vmatpush1.bf16.msra.mxu1 %v15067_v45  ;;  %10409 = vmatprep.mubr.msk.bf16.mxu1 %vm1319_vm15, %v13947_v11 }
 0x330   :  { %3773 = vmatprep.subr.bf16.mxu1 %v18632_v5 }
 0x331   :  { %v11588_v23 = vpop.f32.mrb[88].mxu1 }
 0x332   :  { %v11589_v41 = vpop.f32.mrb[89].mxu1 }
 0x333   :  { %v15761_v28 = vadd.f32 %v11589_v41, %v11588_v23  ;;  %3774 = vmatpush1.bf16.msra.mxu1 %v15089_v2  ;;  %v11591_v18 = vpop.f32.mrb[90].mxu1  ;;  %v13953_v41 = vld [vmem:[%s18541_s3 + $0x348] ss:$16 sps:$4 sm:$0xff]  }
 0x334   :  { %v11592_v48 = vpop.f32.mrb[91].mxu1  ;;  %3775 = vmatprep.subr.bf16.mxu1 %v18632_v5 }
 0x335   :  { %v15768_v61 = vadd.f32 %v11592_v48, %v11591_v18 }
 0x336   :  { %3223 = vmatmul.mubr.bf16.gmra.mrb[196].mxu1 %v13949_v24  ;;  %v13954_v24 = vld [vmem:[%s18541_s3 + $0x36c] ss:$16 sps:$4 sm:$0xff]  }
 0x337   :  { %3776 = vmatpush1.bf16.msra.mxu1 %v15111_v32  ;;  %10410 = vmatprep.mubr.msk.bf16.mxu1 %vm1319_vm15, %v13951_v0 }
 0x338   :  { %3777 = vmatprep.subr.bf16.mxu1 %v18632_v5 }
 0x339   :  { %v11594_v11 = vpop.f32.mrb[92].mxu1 }
 0x33a   :  { %v11595_v23 = vpop.f32.mrb[93].mxu1 }
 0x33b   :  { %v15776_v43 = vadd.f32 %v11595_v23, %v11594_v11  ;;  %3778 = vmatpush1.bf16.msra.mxu1 %v15133_v62  ;;  %v11597_v36 = vpop.f32.mrb[94].mxu1 }
 0x33c   :  { %v11598_v18 = vpop.f32.mrb[95].mxu1  ;;  %3779 = vmatprep.subr.bf16.mxu1 %v18632_v5 }
 0x33d   :  { %v15783_v0 = vadd.f32 %v11598_v18, %v11597_v36  ;;  %v13958_v36 = vld [vmem:[%s18541_s3 + $0x38c] ss:$16 sps:$4 sm:$0xff]  }
 0x33e   :  { %3231 = vmatmul.mubr.bf16.gmra.mrb[200].mxu1 %v13953_v41 }
 0x33f   :  { %3780 = vmatpush1.bf16.msra.mxu1 %v15155_v19  ;;  %10411 = vmatprep.mubr.msk.bf16.mxu1 %vm1319_vm15, %v13954_v24 }
 0x340   :  { %3781 = vmatprep.subr.bf16.mxu1 %v18632_v5 }
 0x341   :  { %v1909_v48 = vpop.f32.mrb[96].mxu1 }
 0x342   :  { %v1910_v11 = vadd.f32 %v15683_v15, %v1909_v48  ;;  %v1911_v23 = vpop.f32.mrb[97].mxu1 }
 0x343   :  { %3782 = vmatpush1.bf16.msra.mxu1 %v15177_v51  ;;  %v1912_v62 = vpop.f32.mrb[98].mxu1 }
 0x344   :  { %v1913_v41 = vadd.f32 %v15690_v58, %v1912_v62  ;;  %v1914_v24 = vpop.f32.mrb[99].mxu1  ;;  %3783 = vmatprep.subr.bf16.mxu1 %v18632_v5  ;;  %v13960_v62 = vld [vmem:[%s18541_s3 + $0x388] ss:$16 sps:$4 sm:$0xff]  }
 0x346   :  { %3239 = vmatmul.mubr.bf16.gmra.mrb[204].mxu1 %v13956_v52  ;;  %v1972_v18 = vpack.c.bf16 %v1913_v41, %v1910_v11  ;;  %v13961_v52 = vld [vmem:[%s18541_s3 + $0x3ac] ss:$16 sps:$4 sm:$0xff]  }
 0x347   :  { %3784 = vmatpush1.bf16.msra.mxu1 %v15196_v25  ;;  %10412 = vmatprep.mubr.msk.bf16.mxu1 %vm1319_vm15, %v13958_v36 }
 0x348   :  { %12523 = vmatprep.mubr.bf16.mxu0 %v1972_v18  ;;  %3785 = vmatprep.subr.bf16.mxu1 %v18632_v5 }
 0x349   :  { %v1917_v15 = vpop.f32.mrb[100].mxu1 }
 0x34a   :  { %v1918_v48 = vadd.f32 %v15697_v6, %v1917_v15  ;;  %v1919_v23 = vpop.f32.mrb[101].mxu1  ;;  %v13971_v6 = vld [vmem:[%s18542_s4 + $0x8] sm:$0xff]  }
 0x34b   :  { %3786 = vmatpush1.bf16.msra.mxu1 %v15216_v53  ;;  %v1920_v58 = vpop.f32.mrb[102].mxu1  ;;  %v13963_v15 = vld [vmem:[%s18541_s3 + $0x3a8] ss:$16 sps:$4 sm:$0xff]  }
 0x34c   :  { %v1921_v11 = vadd.f32 %v15704_v31, %v1920_v58  ;;  %v1922_v36 = vpop.f32.mrb[103].mxu1  ;;  %3787 = vmatprep.subr.bf16.mxu1 %v18632_v5 }
 0x34e   :  { %v1973_v41 = vpack.c.bf16 %v1921_v11, %v1918_v48  ;;  %3247 = vmatmul.mubr.bf16.gmra.mrb[208].mxu1 %v13960_v62  ;;  %v13975_v48 = vld [vmem:[%s18542_s4 + $0x10] sm:$0xff]   ;;  %v13964_v62 = vld [vmem:[%s18541_s3 + $0x3cc] ss:$16 sps:$4 sm:$0xff]  }
 0x34f   :  { %3788 = vmatpush1.bf16.msra.mxu1 %v15224_v22  ;;  %10413 = vmatprep.mubr.msk.bf16.mxu1 %vm1319_vm15, %v13961_v52  ;;  %v13976_v52 = vld [vmem:[%s18542_s4 + $0x18] sm:$0xff]  }
 0x350   :  { %12524 = vmatmul.mubr.bf16.vlgmr.msra.gmra.mrb[112].mxu0 %v1973_v41  ;;  %3789 = vmatprep.subr.bf16.mxu1 %v18632_v5  ;;  %v13966_v41 = vld [vmem:[%s18541_s3 + $0x3c8] ss:$16 sps:$4 sm:$0xff]  }
 0x351   :  { %v1925_v24 = vpop.f32.mrb[104].mxu1  ;;  %12540 = vmatpush3.bf16.msra.mxu0 %v15623_v27 }
 0x352   :  { %v1926_v31 = vadd.f32 %v15711_v46, %v1925_v24  ;;  %v1927_v18 = vpop.f32.mrb[105].mxu1  ;;  %12541 = vmatprep.subr.bf16.mxu0 %v13971_v6 }
 0x353   :  { %3790 = vmatpush1.bf16.msra.mxu1 %v15232_v50  ;;  %v1928_v23 = vpop.f32.mrb[106].mxu1 }
 0x354   :  { %v1929_v27 = vadd.f32 %v15718_v63, %v1928_v23  ;;  %v1930_v46 = vpop.f32.mrb[107].mxu1  ;;  %3791 = vmatprep.subr.bf16.mxu1 %v18632_v5 }
 0x355   :  { %12542 = vmatpush3.bf16.msra.mxu0 %v13971_v6  ;;  %v13980_v6 = vld [vmem:[%s18542_s4 + $0x20] sm:$0xff]   ;;  %v13985_v46 = vld [vmem:[%s18542_s4 + $0x30] sm:$0xff]  }
 0x356   :  { %3255 = vmatmul.mubr.bf16.gmra.mrb[212].mxu1 %v13963_v15  ;;  %v1974_v58 = vpack.c.bf16 %v1929_v27, %v1926_v31  ;;  %12543 = vmatprep.subr.bf16.mxu0 %v13975_v48  ;;  %v13967_v31 = vld [vmem:[%s18541_s3 + $0x3ec] ss:$16 sps:$4 sm:$0x1f]  }
 0x357   :  { %3792 = vmatpush1.bf16.msra.mxu1 %v15236_v7  ;;  %10414 = vmatprep.mubr.msk.bf16.mxu1 %vm1319_vm15, %v13964_v62 }
 0x358   :  { %12527 = vmatprep.mubr.bf16.mxu0 %v1974_v58  ;;  %3793 = vmatprep.subr.bf16.mxu1 %v18632_v5 }
 0x359   :  { %v1933_v11 = vpop.f32.mrb[108].mxu1  ;;  %12544 = vmatpush3.bf16.msra.mxu0 %v13975_v48  ;;  %v13981_v48 = vld [vmem:[%s18542_s4 + $0x28] sm:$0xff]  }
 0x35a   :  { %v1934_v63 = vadd.f32 %v15725_v4, %v1933_v11  ;;  %v1935_v36 = vpop.f32.mrb[109].mxu1  ;;  %12545 = vmatprep.subr.bf16.mxu0 %v13976_v52 }
 0x35b   :  { %3794 = vmatpush1.bf16.msra.mxu1 %v15243_v1  ;;  %v1936_v24 = vpop.f32.mrb[110].mxu1  ;;  %v13986_v36 = vld [vmem:[%s18542_s4 + $0x38] sm:$0xff]  }
 0x35c   :  { %v1937_v18 = vadd.f32 %v15732_v38, %v1936_v24  ;;  %11872 = vmatprep.subr.bf16.mxu1 %v14980_v59  ;;  %v1938_v4 = vpop.f32.mrb[111].mxu1  ;;  %v13969_v38 = vld [vmem:[%s18541_s3 + $0x3e8] ss:$16 sps:$4 sm:$0x1f]  }
 0x35d   :  { %12546 = vmatpush3.bf16.msra.mxu0 %v13976_v52  ;;  %v13974_v52 = vld [vmem:[%s18541_s3 + $0x40c] ss:$16 sps:$4 sm:$0xff]  }
 0x35e   :  { %3263 = vmatmul.mubr.bf16.gmra.mrb[216].mxu1 %v13966_v41  ;;  %v1975_v15 = vpack.c.bf16 %v1937_v18, %v1934_v63  ;;  %12547 = vmatprep.subr.bf16.mxu0 %v13980_v6  ;;  %v13977_v18 = vld [vmem:[%s18541_s3 + $0x42c] ss:$16 sps:$4 sm:$0xff]  }
 0x35f   :  { %10415 = vmatprep.mubr.msk.bf16.mxu1 %vm1319_vm15, %v13967_v31 }
 0x360   :  { %12528 = vmatmul.mubr.bf16.gmra.mrb[116].mxu0 %v1975_v15 }
 0x361   :  { %v1941_v23 = vpop.f32.mrb[112].mxu1  ;;  %12548 = vmatpush3.bf16.msra.mxu0 %v13980_v6 }
 0x362   :  { %v1942_v62 = vadd.f32 %v15737_v26, %v1941_v23  ;;  %v1943_v27 = vpop.f32.mrb[113].mxu1  ;;  %12549 = vmatprep.subr.bf16.mxu0 %v13981_v48 }
 0x363   :  { %v1944_v58 = vpop.f32.mrb[114].mxu1 }
 0x364   :  { %v1945_v11 = vadd.f32 %v15742_v42, %v1944_v58  ;;  %v1946_v63 = vpop.f32.mrb[115].mxu1  ;;  %v13972_v42 = vld [vmem:[%s18541_s3 + $0x408] ss:$16 sps:$4 sm:$0xff]  }
 0x365   :  { %12550 = vmatpush3.bf16.msra.mxu0 %v13981_v48 }
 0x366   :  { %3271 = vmatmul.mubr.bf16.gmra.mrb[220].mxu1 %v13969_v38  ;;  %v1976_v26 = vpack.c.bf16 %v1945_v11, %v1942_v62  ;;  %12551 = vmatprep.subr.bf16.mxu0 %v13985_v46  ;;  %v13982_v38 = vld [vmem:[%s18541_s3 + $0x44c] ss:$16 sps:$4 sm:$0xff]  }
 0x367   :  { %10504 = vmatprep.mubr.msk.bf16.mxu1 %vm1319_vm15, %v13974_v52 }
 0x368   :  { %12531 = vmatprep.mubr.bf16.mxu0 %v1976_v26 }
 0x369   :  { %v1949_v41 = vpop.f32.mrb[116].mxu1  ;;  %12552 = vmatpush3.bf16.msra.mxu0 %v13985_v46 }
 0x36a   :  { %v1950_v6 = vadd.f32 %v15748_v10, %v1949_v41  ;;  %v1951_v24 = vpop.f32.mrb[117].mxu1  ;;  %12553 = vmatprep.subr.bf16.mxu0 %v13986_v36 }
 0x36b   :  { %v1952_v31 = vpop.f32.mrb[118].mxu1 }
 0x36c   :  { %v1953_v4 = vadd.f32 %v15753_v9, %v1952_v31  ;;  %v1954_v15 = vpop.f32.mrb[119].mxu1  ;;  %v13979_v9 = vld [vmem:[%s18541_s3 + $0x428] ss:$16 sps:$4 sm:$0xff]  }
 0x36d   :  { %12554 = vmatpush3.bf16.msra.mxu0 %v13986_v36  ;;  %v13987_v36 = vld [vmem:[%s18541_s3 + $0x46c] ss:$16 sps:$4 sm:$0xff]   ;;  %v13992_v31 = vld [vmem:[%s18541_s3 + $0x488] ss:$16 sps:$4 sm:$0xff]  }
 0x36e   :  { %3804 = vmatmul.mubr.bf16.vlgmr.msra.gmra.mrb[224].mxu1 %v13972_v42  ;;  %v1977_v48 = vpack.c.bf16 %v1953_v4, %v1950_v6  ;;  %2593 = vmatprep.subr.bf16.mxu0 %v18632_v5  ;;  %v13990_v42 = vld [vmem:[%s18541_s3 + $0x48c] ss:$16 sps:$4 sm:$0xff]  }
 0x36f   :  { %11873 = vmatpush3.bf16.msra.mxu1 %v14948_v40  ;;  %10505 = vmatprep.mubr.msk.bf16.mxu1 %vm1319_vm15, %v13977_v18  ;;  %v13993_v18 = vld [vmem:[%s18541_s3 + $0x4ac] ss:$16 sps:$4 sm:$0xff]  }
 0x370   :  { %11874 = vmatprep.subr.bf16.mxu1 %v14986_v16  ;;  %12532 = vmatmul.mubr.bf16.gmra.mrb[120].mxu0 %v1977_v48  ;;  %v18638_v4 = vld [vmem:[#allocation21_spill] sm:$0xff] }
 0x371   :  { %v1957_v10 = vpop.f32.mrb[120].mxu1  ;;  %v18643_v15 = vld [vmem:[#allocation33_spill] sm:$0xff] }
 0x372   :  { %v1958_v23 = vadd.f32 %v15761_v28, %v1957_v10  ;;  %v1959_v62 = vpop.f32.mrb[121].mxu1  ;;  %v13998_v10 = vld [vmem:[%s18541_s3 + $0x4c8] ss:$16 sps:$4 sm:$0xff]  }
 0x373   :  { %11875 = vmatpush3.bf16.msra.mxu1 %v14952_v57  ;;  %v1960_v27 = vpop.f32.mrb[122].mxu1  ;;  %v14010_v62 = vld [vmem:[%s18541_s3 + $0x20c] ss:$16 sps:$4 sm:$0xff]  }
 0x374   :  { %v1961_v46 = vadd.f32 %v15768_v61, %v1960_v27  ;;  %11876 = vmatprep.subr.bf16.mxu1 %v14995_v35  ;;  %v1962_v58 = vpop.f32.mrb[123].mxu1  ;;  %v13984_v61 = vld [vmem:[%s18541_s3 + $0x448] ss:$16 sps:$4 sm:$0xff]  }
 0x375   :  { %v18646_v27 = vld [vmem:[#allocation35_spill] sm:$0xff]  ;;  %v14004_v58 = vld [vmem:[%s18541_s3 + $0x504] ss:$16 sps:$4 sm:$0xff]  }
 0x376   :  { %3812 = vmatmul.mubr.bf16.gmra.mrb[228].mxu1 %v13979_v9  ;;  %v1978_v52 = vpack.c.bf16 %v1961_v46, %v1958_v23  ;;  %v13999_v23 = vld [vmem:[%s18541_s3 + $0x4ec] ss:$16 sps:$4 sm:$0x1f]   ;;  %v18645_v9 = vld [vmem:[#allocation36_spill] sm:$0xff] }
 0x377   :  { %11877 = vmatpush3.bf16.msra.mxu1 %v14956_v12  ;;  %10506 = vmatprep.mubr.msk.bf16.mxu1 %vm1319_vm15, %v13982_v38  ;;  %v18647_v38 = vpack.c.bf16 %v18645_v9, %v18646_v27  ;;  %v14001_v46 = vld [vmem:[%s18541_s3 + $0x4e8] ss:$16 sps:$4 sm:$0x1f]  }
 0x378   :  { %11878 = vmatprep.subr.bf16.mxu1 %v15004_v55  ;;  %12535 = vmatprep.mubr.bf16.mxu0 %v1978_v52 }
 0x379   :  { %v1965_v28 = vpop.f32.mrb[124].mxu1 }
 0x37a   :  { %v1966_v11 = vadd.f32 %v15776_v43, %v1965_v28  ;;  %v1967_v63 = vpop.f32.mrb[125].mxu1  ;;  %v18633_v43 = vpack.c.bf16 %v15554_v20, %v15544_v34  ;;  %v18634_v34 = vpack.c.bf16 %v15575_v54, %v15562_v37  ;;  %v18635_v20 = vpack.c.bf16 %v15590_v49, %v15581_v30  ;;  %v13995_v30 = vld [vmem:[%s18541_s3 + $0x4a8] ss:$16 sps:$4 sm:$0xff]   ;;  %v13996_v49 = vld [vmem:[%s18541_s3 + $0x4cc] ss:$16 sps:$4 sm:$0xff]  }
 0x37b   :  { %11879 = vmatpush3.bf16.msra.mxu1 %v14960_v29  ;;  %v1968_v26 = vpop.f32.mrb[126].mxu1  ;;  %v18636_v37 = vpack.c.bf16 %v15604_v44, %v15595_v8  ;;  %v18637_v54 = vpack.c.bf16 %v15618_v13, %v15609_v60  ;;  %v18639_v8 = vld [vmem:[#allocation32_spill] sm:$0xff]  ;;  %v18640_v44 = vld [vmem:[#allocation31_spill] sm:$0xff]  ;;  %v18642_v13 = vld [vmem:[#allocation34_spill] sm:$0xff] }
 0x37c   :  { %v1969_v41 = vadd.f32 %v15783_v0, %v1968_v26  ;;  %11880 = vmatprep.subr.bf16.mxu1 %v15017_v14  ;;  %v1970_v6 = vpop.f32.mrb[127].mxu1  ;;  %v13989_v0 = vld [vmem:[%s18541_s3 + $0x468] ss:$16 sps:$4 sm:$0xff]   ;;  %v18641_v60 = vpack.c.bf16 %v18639_v8, %v18640_v44  ;;  %v18644_v48 = vpack.c.bf16 %v18642_v13, %v18643_v15  ;;  %v14002_v26 = vld [vmem:[%s18541_s3 + $0x500] ss:$16 sps:$4 sm:$0xff]  }
 0x37d   :  { %v14007_v6 = vld [vmem:[%s18541_s3 + $0x524] ss:$16 sps:$4 sm:$0xff]   ;;  %v14014_v8 = vld [vmem:[%s18541_s3 + $0x22c] ss:$16 sps:$4 sm:$0xff]  }
 0x37e   :  { %3820 = vmatmul.mubr.bf16.gmra.mrb[232].mxu1 %v13984_v61  ;;  %v1979_v24 = vpack.c.bf16 %v1969_v41, %v1966_v11 }
 0x37f   :  { %11881 = vmatpush3.bf16.msra.mxu1 %v14964_v47  ;;  %10507 = vmatprep.mubr.msk.bf16.mxu1 %vm1319_vm15, %v13987_v36 }
 0x380   :  { %11882 = vmatprep.subr.bf16.mxu1 %v15025_v33  ;;  %12536 = vmatmul.mubr.bf16.gmra.mrb[124].mxu0 %v1979_v24 }
 0x381   :  { %12555 = vmatprep.mubr.bf16.mxu0 %v18633_v43  ;;  %v11648_v52 = vpop.f32.mrb[128].mxu1 }
 0x382   :  { %v11649_v28 = vpop.f32.mrb[129].mxu1 }
 0x383   :  { %11883 = vmatpush3.bf16.msra.mxu1 %v14968_v3  ;;  %v15991_v11 = vadd.f32 %v11649_v28, %v11648_v52  ;;  %v11651_v63 = vpop.f32.mrb[130].mxu1 }
 0x384   :  { %11884 = vmatprep.subr.bf16.mxu1 %v15034_v56  ;;  %v11652_v61 = vpop.f32.mrb[131].mxu1 }
 0x385   :  { %v15998_v36 = vadd.f32 %v11652_v61, %v11651_v63  ;;  %v14020_v63 = vld [vmem:[%s18541_s3 + $0x24c] ss:$16 sps:$4 sm:$0xff]  }
 0x386   :  { %3828 = vmatmul.mubr.bf16.gmra.mrb[236].mxu1 %v13989_v0 }
 0x387   :  { %11885 = vmatpush3.bf16.msra.mxu1 %v14972_v21  ;;  %10508 = vmatprep.mubr.msk.bf16.mxu1 %vm1319_vm15, %v13990_v42 }
 0x388   :  { %11886 = vmatprep.subr.bf16.mxu1 %v15046_v17  ;;  %12556 = vmatmul.mubr.bf16.vlgmr.msra.gmra.mrb[112].mxu0 %v18634_v34  ;;  %v14005_v34 = vld [vmem:[%s18541_s3 + $0x520] ss:$16 sps:$4 sm:$0xff]  }
 0x389   :  { %2594 = vmatpush1.bf16.msra.mxu0 %v15067_v45  ;;  %12559 = vmatprep.mubr.bf16.mxu0 %v18635_v20  ;;  %v11654_v41 = vpop.f32.mrb[132].mxu1 }
 0x38a   :  { %2595 = vmatprep.subr.bf16.mxu0 %v18632_v5  ;;  %v11655_v24 = vpop.f32.mrb[133].mxu1 }
 0x38b   :  { %11887 = vmatpush3.bf16.msra.mxu1 %v14976_v39  ;;  %v16007_v43 = vadd.f32 %v11655_v24, %v11654_v41  ;;  %v11657_v0 = vpop.f32.mrb[134].mxu1 }
 0x38c   :  { %11952 = vmatprep.subr.bf16.mxu1 %v14980_v59  ;;  %v11658_v42 = vpop.f32.mrb[135].mxu1 }
 0x38d   :  { %2596 = vmatpush1.bf16.msra.mxu0 %v15089_v2  ;;  %v16014_v20 = vadd.f32 %v11658_v42, %v11657_v0 }
 0x38e   :  { %3836 = vmatmul.mubr.bf16.gmra.mrb[240].mxu1 %v13992_v31  ;;  %2597 = vmatprep.subr.bf16.mxu0 %v18632_v5 }
 0x38f   :  { %10509 = vmatprep.mubr.msk.bf16.mxu1 %vm1319_vm15, %v13993_v18  ;;  %v14013_v18 = vld [vmem:[%s18541_s3 + $0x544] ss:$16 sps:$4 sm:$0xff]  }
 0x390   :  { %12560 = vmatmul.mubr.bf16.gmra.mrb[116].mxu0 %v18636_v37 }
 0x391   :  { %2598 = vmatpush1.bf16.msra.mxu0 %v15111_v32  ;;  %12563 = vmatprep.mubr.bf16.mxu0 %v18637_v54  ;;  %v11660_v31 = vpop.f32.mrb[136].mxu1  ;;  %v14008_v54 = vld [vmem:[%s18541_s3 + $0x208] ss:$16 sps:$4 sm:$0xff]  }
 0x392   :  { %2599 = vmatprep.subr.bf16.mxu0 %v18632_v5  ;;  %v11661_v37 = vpop.f32.mrb[137].mxu1 }
 0x395   :  { %2600 = vmatpush1.bf16.msra.mxu0 %v18638_v4 }
 0x396   :  { %3844 = vmatmul.mubr.bf16.gmra.mrb[244].mxu1 %v13995_v30  ;;  %2601 = vmatprep.subr.bf16.mxu0 %v18632_v5  ;;  %v16024_v30 = vadd.f32 %v11661_v37, %v11660_v31  ;;  %v14025_v37 = vld [vmem:[%s18541_s3 + $0x584] ss:$16 sps:$4 sm:$0xff]  }
 0x397   :  { %10510 = vmatprep.mubr.msk.bf16.mxu1 %vm1319_vm15, %v13996_v49  ;;  %v11663_v49 = vpop.f32.mrb[138].mxu1 }
 0x398   :  { %12564 = vmatmul.mubr.bf16.gmra.mrb[120].mxu0 %v18641_v60  ;;  %v11664_v44 = vpop.f32.mrb[139].mxu1 }
 0x399   :  { %2602 = vmatpush1.bf16.msra.mxu0 %v15155_v19  ;;  %12567 = vmatprep.mubr.bf16.mxu0 %v18644_v48  ;;  %v16030_v60 = vadd.f32 %v11664_v44, %v11663_v49  ;;  %v11666_v13 = vpop.f32.mrb[140].mxu1  ;;  %v14022_v49 = vld [vmem:[%s18541_s3 + $0x248] ss:$16 sps:$4 sm:$0xff]  }
 0x39a   :  { %2603 = vmatprep.subr.bf16.mxu0 %v18632_v5  ;;  %v11667_v15 = vpop.f32.mrb[141].mxu1 }
 0x39b   :  { %v16034_v48 = vadd.f32 %v11667_v15, %v11666_v13  ;;  %v14026_v13 = vld [vmem:[%s18541_s3 + $0x26c] ss:$16 sps:$4 sm:$0xff]  }
 0x39d   :  { %2604 = vmatpush1.bf16.msra.mxu0 %v15177_v51 }
 0x39e   :  { %3852 = vmatmul.mubr.bf16.gmra.mrb[248].mxu1 %v13998_v10  ;;  %2605 = vmatprep.subr.bf16.mxu0 %v18632_v5  ;;  %v11669_v10 = vpop.f32.mrb[142].mxu1 }
 0x39f   :  { %10511 = vmatprep.mubr.msk.bf16.mxu1 %vm1319_vm15, %v13999_v23  ;;  %v11670_v23 = vpop.f32.mrb[143].mxu1 }
 0x3a0   :  { %12568 = vmatmul.mubr.bf16.gmra.mrb[124].mxu0 %v18647_v38  ;;  %v16040_v9 = vadd.f32 %v11670_v23, %v11669_v10  ;;  %v14019_v38 = vld [vmem:[%s18541_s3 + $0x564] ss:$16 sps:$4 sm:$0xff]  }
 0x3a1   :  { %2606 = vmatpush1.bf16.msra.mxu0 %v15196_v25  ;;  %10312 = vmatprep.mubr.msk.bf16.mxu0 %vm1319_vm15, %v14010_v62  ;;  %v14011_v62 = vld [vmem:[%s18541_s3 + $0x540] ss:$16 sps:$4 sm:$0xff]   ;;  %v11672_v27 = vpop.f32.mrb[144].mxu1 }
 0x3a2   :  { %2607 = vmatprep.subr.bf16.mxu0 %v18632_v5 }
 0x3a5   :  { %2608 = vmatpush1.bf16.msra.mxu0 %v15216_v53 }
 0x3a6   :  { %3860 = vmatmul.mubr.bf16.gmra.mrb[252].mxu1 %v14001_v46  ;;  %2609 = vmatprep.subr.bf16.mxu0 %v18632_v5  ;;  %v11673_v46 = vpop.f32.mrb[145].mxu1 }
 0x3a7   :  { %4295 = vmatprep.mubr.bf16.mxu1 %v14004_v58  ;;  %v14016_v58 = vld [vmem:[%s18541_s3 + $0x228] ss:$16 sps:$4 sm:$0xff]   ;;  %v16050_v52 = vadd.f32 %v11673_v46, %v11672_v27  ;;  %v11675_v28 = vpop.f32.mrb[146].mxu1 }
 0x3a8   :  { %v11676_v61 = vpop.f32.mrb[147].mxu1 }
 0x3a9   :  { %2610 = vmatpush1.bf16.msra.mxu0 %v15224_v22  ;;  %v11678_v41 = vpop.f32.mrb[148].mxu1 }
 0x3aa   :  { %2611 = vmatprep.subr.bf16.mxu0 %v18632_v5 }
 0x3ad   :  { %2612 = vmatpush1.bf16.msra.mxu0 %v15232_v50 }
 0x3ae   :  { %4296 = vmatmul.mubr.bf16.vlgmr.msra.gmra.mrb[0].mxu1 %v14002_v26  ;;  %2613 = vmatprep.subr.bf16.mxu0 %v18632_v5  ;;  %v16055_v26 = vadd.f32 %v11676_v61, %v11675_v28  ;;  %v14031_v61 = vld [vmem:[%s18541_s3 + $0x5a4] ss:$16 sps:$4 sm:$0xff]  }
 0x3af   :  { %11953 = vmatpush3.bf16.msra.mxu1 %v14948_v40  ;;  %4303 = vmatprep.mubr.bf16.mxu1 %v14007_v6  ;;  %v11679_v6 = vpop.f32.mrb[149].mxu1 }
 0x3b0   :  { %11954 = vmatprep.subr.bf16.mxu1 %v14986_v16  ;;  %v16059_v24 = vadd.f32 %v11679_v6, %v11678_v41  ;;  %v11681_v0 = vpop.f32.mrb[150].mxu1  ;;  %v14028_v6 = vld [vmem:[%s18541_s3 + $0x268] ss:$16 sps:$4 sm:$0xff]  }
 0x3b1   :  { %2614 = vmatpush1.bf16.msra.mxu0 %v15236_v7  ;;  %v11682_v42 = vpop.f32.mrb[151].mxu1 }
 0x3b2   :  { %2615 = vmatprep.subr.bf16.mxu0 %v18632_v5  ;;  %18648 = vst [vmem:[#allocation32_spill] sm:$0xff] %v16059_v24  ;;  %v16065_v31 = vadd.f32 %v11682_v42, %v11681_v0 }
 0x3b3   :  { %11955 = vmatpush3.bf16.msra.mxu1 %v14952_v57 }
 0x3b4   :  { %11956 = vmatprep.subr.bf16.mxu1 %v14995_v35  ;;  %18649 = vst [vmem:[#allocation31_spill] sm:$0xff] %v16065_v31 }
 0x3b5   :  { %2616 = vmatpush1.bf16.msra.mxu0 %v15243_v1 }
 0x3b6   :  { %4304 = vmatmul.mubr.bf16.gmra.mrb[4].mxu1 %v14005_v34  ;;  %v14017_v34 = vld [vmem:[%s18541_s3 + $0x560] ss:$16 sps:$4 sm:$0xff]  }
 0x3b7   :  { %11957 = vmatpush3.bf16.msra.mxu1 %v14956_v12  ;;  %4311 = vmatprep.mubr.bf16.mxu1 %v14013_v18  ;;  %v11684_v18 = vpop.f32.mrb[152].mxu1 }
 0x3b8   :  { %2626 = vmatmul.mubr.bf16.vlgmr.msra.gmra.mrb[128].mxu0 %v14008_v54  ;;  %11958 = vmatprep.subr.bf16.mxu1 %v15004_v55  ;;  %v11685_v54 = vpop.f32.mrb[153].mxu1 }
 0x3b9   :  { %10313 = vmatprep.mubr.msk.bf16.mxu0 %vm1319_vm15, %v14014_v8  ;;  %v16075_v8 = vadd.f32 %v11685_v54, %v11684_v18  ;;  %v11687_v44 = vpop.f32.mrb[154].mxu1 }
 0x3ba   :  { %v11688_v15 = vpop.f32.mrb[155].mxu1 }
 0x3bb   :  { %11959 = vmatpush3.bf16.msra.mxu1 %v14960_v29  ;;  %18650 = vst [vmem:[#allocation34_spill] sm:$0xff] %v16075_v8  ;;  %v16080_v10 = vadd.f32 %v11688_v15, %v11687_v44  ;;  %v11690_v23 = vpop.f32.mrb[156].mxu1 }
 0x3bc   :  { %11960 = vmatprep.subr.bf16.mxu1 %v15017_v14 }
 0x3bd   :  { %18651 = vst [vmem:[#allocation33_spill] sm:$0xff] %v16080_v10 }
 0x3be   :  { %4312 = vmatmul.mubr.bf16.gmra.mrb[8].mxu1 %v14011_v62  ;;  %v11691_v62 = vpop.f32.mrb[157].mxu1 }
 0x3bf   :  { %11961 = vmatpush3.bf16.msra.mxu1 %v14964_v47  ;;  %4319 = vmatprep.mubr.bf16.mxu1 %v14019_v38  ;;  %v16084_v27 = vadd.f32 %v11691_v62, %v11690_v23  ;;  %v11693_v38 = vpop.f32.mrb[158].mxu1  ;;  %v14029_v23 = vld [vmem:[%s18541_s3 + $0x5a0] ss:$16 sps:$4 sm:$0xff]  }
 0x3c0   :  { %2634 = vmatmul.mubr.bf16.gmra.mrb[132].mxu0 %v14016_v58  ;;  %11962 = vmatprep.subr.bf16.mxu1 %v15025_v33  ;;  %v11694_v46 = vpop.f32.mrb[159].mxu1  ;;  %v14023_v58 = vld [vmem:[%s18541_s3 + $0x580] ss:$16 sps:$4 sm:$0xff]  }
 0x3c1   :  { %10314 = vmatprep.mubr.msk.bf16.mxu0 %vm1319_vm15, %v14020_v63  ;;  %18652 = vst [vmem:[#allocation36_spill] sm:$0xff] %v16084_v27  ;;  %v16090_v28 = vadd.f32 %v11694_v46, %v11693_v38  ;;  %v11728_v63 = vpop.f32.mrb[160].mxu1  ;;  %v14037_v46 = vld [vmem:[%s18541_s3 + $0x5c4] ss:$16 sps:$4 sm:$0xff]  }
 0x3c2   :  { %v11729_v41 = vpop.f32.mrb[161].mxu1 }
 0x3c3   :  { %11963 = vmatpush3.bf16.msra.mxu1 %v14968_v3  ;;  %18653 = vst [vmem:[#allocation35_spill] sm:$0xff] %v16090_v28  ;;  %v16100_v0 = vadd.f32 %v11729_v41, %v11728_v63  ;;  %v11731_v42 = vpop.f32.mrb[162].mxu1  ;;  %v14034_v63 = vld [vmem:[%s18541_s3 + $0x288] ss:$16 sps:$4 sm:$0xff]  }
 0x3c4   :  { %11964 = vmatprep.subr.bf16.mxu1 %v15034_v56  ;;  %v11732_v18 = vpop.f32.mrb[163].mxu1 }
 0x3c6   :  { %4320 = vmatmul.mubr.bf16.gmra.mrb[12].mxu1 %v14017_v34  ;;  %v14032_v34 = vld [vmem:[%s18541_s3 + $0x28c] ss:$16 sps:$4 sm:$0xff]  }
 0x3c7   :  { %11965 = vmatpush3.bf16.msra.mxu1 %v14972_v21  ;;  %4327 = vmatprep.mubr.bf16.mxu1 %v14025_v37  ;;  %v16105_v37 = vadd.f32 %v11732_v18, %v11731_v42 }
 0x3c8   :  { %2642 = vmatmul.mubr.bf16.gmra.mrb[136].mxu0 %v14022_v49  ;;  %11966 = vmatprep.subr.bf16.mxu1 %v15046_v17 }
 0x3c9   :  { %10315 = vmatprep.mubr.msk.bf16.mxu0 %vm1319_vm15, %v14026_v13  ;;  %v11734_v54 = vpop.f32.mrb[164].mxu1 }
 0x3ca   :  { %v11735_v49 = vpop.f32.mrb[165].mxu1 }
 0x3cb   :  { %11967 = vmatpush3.bf16.msra.mxu1 %v14976_v39  ;;  %v16107_v44 = vadd.f32 %v11735_v49, %v11734_v54  ;;  %v11737_v13 = vpop.f32.mrb[166].mxu1  ;;  %v14035_v54 = vld [vmem:[%s18541_s3 + $0x5c0] ss:$16 sps:$4 sm:$0xff]  }
 0x3cc   :  { %4949 = vmatprep.subr.bf16.mxu1 %v18632_v5  ;;  %v11738_v15 = vpop.f32.mrb[167].mxu1 }
 0x3cd   :  { %v16113_v62 = vadd.f32 %v11738_v15, %v11737_v13  ;;  %v14043_v13 = vld [vmem:[%s18541_s3 + $0x5e4] ss:$16 sps:$4 sm:$0x1f]  }
 0x3ce   :  { %4328 = vmatmul.mubr.bf16.gmra.mrb[16].mxu1 %v14023_v58 }
 0x3cf   :  { %4335 = vmatprep.mubr.bf16.mxu1 %v14031_v61 }
 0x3d0   :  { %2650 = vmatmul.mubr.bf16.gmra.mrb[140].mxu0 %v14028_v6  ;;  %v14038_v6 = vld [vmem:[%s18541_s3 + $0x2ac] ss:$16 sps:$4 sm:$0xff]  }
 0x3d1   :  { %10316 = vmatprep.mubr.msk.bf16.mxu0 %vm1319_vm15, %v14032_v34  ;;  %v11740_v38 = vpop.f32.mrb[168].mxu1 }
 0x3d2   :  { %v11741_v58 = vpop.f32.mrb[169].mxu1 }
 0x3d3   :  { %v16121_v61 = vadd.f32 %v11741_v58, %v11740_v38  ;;  %v11743_v41 = vpop.f32.mrb[170].mxu1  ;;  %v14044_v58 = vld [vmem:[%s18541_s3 + $0x2cc] ss:$16 sps:$4 sm:$0xff]  }
 0x3d4   :  { %v11744_v42 = vpop.f32.mrb[171].mxu1 }
 0x3d5   :  { %v16126_v34 = vadd.f32 %v11744_v42, %v11743_v41 }
 0x3d6   :  { %4336 = vmatmul.mubr.bf16.gmra.mrb[20].mxu1 %v14029_v23  ;;  %v14040_v23 = vld [vmem:[%s18541_s3 + $0x2a8] ss:$16 sps:$4 sm:$0xff]  }
 0x3d7   :  { %4343 = vmatprep.mubr.bf16.mxu1 %v14037_v46 }
 0x3d8   :  { %2658 = vmatmul.mubr.bf16.gmra.mrb[144].mxu0 %v14034_v63 }
 0x3d9   :  { %10317 = vmatprep.mubr.msk.bf16.mxu0 %vm1319_vm15, %v14038_v6  ;;  %v11746_v18 = vpop.f32.mrb[172].mxu1  ;;  %v14041_v6 = vld [vmem:[%s18541_s3 + $0x5e0] ss:$16 sps:$4 sm:$0x1f]  }
 0x3da   :  { %v11747_v49 = vpop.f32.mrb[173].mxu1 }
 0x3db   :  { %v16135_v15 = vadd.f32 %v11747_v49, %v11746_v18  ;;  %v11749_v38 = vpop.f32.mrb[174].mxu1  ;;  %v14049_v18 = vld [vmem:[%s18541_s3 + $0x604] ss:$16 sps:$4 sm:$0xff]  }
 0x3dc   :  { %v11750_v46 = vpop.f32.mrb[175].mxu1 }
 0x3dd   :  { %v16143_v63 = vadd.f32 %v11750_v46, %v11749_v38  ;;  %v14050_v38 = vld [vmem:[%s18541_s3 + $0x2ec] ss:$16 sps:$4 sm:$0x1f]  }
 0x3de   :  { %4344 = vmatmul.mubr.bf16.gmra.mrb[24].mxu1 %v14035_v54  ;;  %v14046_v54 = vld [vmem:[%s18541_s3 + $0x2c8] ss:$16 sps:$4 sm:$0xff]  }
 0x3df   :  { %4351 = vmatprep.mubr.bf16.mxu1 %v14043_v13 }
 0x3e0   :  { %2666 = vmatmul.mubr.bf16.gmra.mrb[148].mxu0 %v14040_v23 }
 0x3e1   :  { %10318 = vmatprep.mubr.msk.bf16.mxu0 %vm1319_vm15, %v14044_v58  ;;  %v11752_v41 = vpop.f32.mrb[176].mxu1  ;;  %v14047_v58 = vld [vmem:[%s18541_s3 + $0x600] ss:$16 sps:$4 sm:$0xff]  }
 0x3e2   :  { %v11753_v42 = vpop.f32.mrb[177].mxu1 }
 0x3e3   :  { %v16152_v49 = vadd.f32 %v11753_v42, %v11752_v41  ;;  %v11755_v28 = vpop.f32.mrb[178].mxu1  ;;  %v14055_v42 = vld [vmem:[%s18541_s3 + $0x624] ss:$16 sps:$4 sm:$0xff]  }
 0x3e4   :  { %v11756_v13 = vpop.f32.mrb[179].mxu1 }
 0x3e5   :  { %v16160_v23 = vadd.f32 %v11756_v13, %v11755_v28  ;;  %v14052_v28 = vld [vmem:[%s18541_s3 + $0x2e8] ss:$16 sps:$4 sm:$0x1f]   ;;  %v14053_v13 = vld [vmem:[%s18541_s3 + $0x620] ss:$16 sps:$4 sm:$0xff]  }
 0x3e6   :  { %4352 = vmatmul.mubr.bf16.gmra.mrb[28].mxu1 %v14041_v6 }
 0x3e7   :  { %4884 = vmatprep.mubr.bf16.mxu1 %v14049_v18 }
 0x3e8   :  { %2674 = vmatmul.mubr.bf16.gmra.mrb[152].mxu0 %v14046_v54 }
 0x3e9   :  { %10319 = vmatprep.mubr.msk.bf16.mxu0 %vm1319_vm15, %v14050_v38  ;;  %v11758_v46 = vpop.f32.mrb[180].mxu1 }
 0x3ea   :  { %v11759_v41 = vpop.f32.mrb[181].mxu1 }
 0x3eb   :  { %v16169_v27 = vadd.f32 %v11759_v41, %v11758_v46  ;;  %v11761_v10 = vpop.f32.mrb[182].mxu1 }
 0x3ec   :  { %v11762_v6 = vpop.f32.mrb[183].mxu1 }
 0x3ed   :  { %v16174_v18 = vadd.f32 %v11762_v6, %v11761_v10  ;;  %v14058_v10 = vld [vmem:[%s18541_s3 + $0x644] ss:$16 sps:$4 sm:$0xff]  }
 0x3ee   :  { %4885 = vmatmul.mubr.bf16.vlgmr.msra.gmra.mrb[32].mxu1 %v14047_v58 }
 0x3ef   :  { %4950 = vmatpush1.bf16.msra.mxu1 %v15067_v45  ;;  %4892 = vmatprep.mubr.bf16.mxu1 %v14055_v42 }
 0x3f0   :  { %2682 = vmatmul.mubr.bf16.gmra.mrb[156].mxu0 %v14052_v28  ;;  %4951 = vmatprep.subr.bf16.mxu1 %v18632_v5  ;;  %v14101_v28 = vld [vmem:[%s18542_s4 + $0x80] sm:$0xff]  }
 0x3f1   :  { %v11764_v54 = vpop.f32.mrb[184].mxu1  ;;  %12571 = vmatprep.subr.bf16.mxu0 %v14101_v28 }
 0x3f2   :  { %v11765_v38 = vpop.f32.mrb[185].mxu1  ;;  %12572 = vmatpush3.bf16.msra.mxu0 %v14101_v28  ;;  %v14103_v28 = vld [vmem:[%s18542_s4 + $0x90] sm:$0xff]  }
 0x3f3   :  { %4952 = vmatpush1.bf16.msra.mxu1 %v15089_v2  ;;  %v16185_v46 = vadd.f32 %v11765_v38, %v11764_v54  ;;  %v11767_v58 = vpop.f32.mrb[186].mxu1  ;;  %v14056_v54 = vld [vmem:[%s18541_s3 + $0x640] ss:$16 sps:$4 sm:$0xff]  }
 0x3f4   :  { %4953 = vmatprep.subr.bf16.mxu1 %v18632_v5  ;;  %v11768_v41 = vpop.f32.mrb[187].mxu1 }
 0x3f5   :  { %v16188_v42 = vadd.f32 %v11768_v41, %v11767_v58  ;;  %v14102_v41 = vld [vmem:[%s18542_s4 + $0x88] sm:$0xff]  }
 0x3f6   :  { %4893 = vmatmul.mubr.bf16.gmra.mrb[36].mxu1 %v14053_v13  ;;  %v14061_v13 = vld [vmem:[%s18541_s3 + $0x664] ss:$16 sps:$4 sm:$0xff]   ;;  %12573 = vmatprep.subr.bf16.mxu0 %v14102_v41 }
 0x3f7   :  { %4954 = vmatpush1.bf16.msra.mxu1 %v15111_v32  ;;  %4900 = vmatprep.mubr.bf16.mxu1 %v14058_v10 }
 0x3f8   :  { %4955 = vmatprep.subr.bf16.mxu1 %v18632_v5  ;;  %12574 = vmatpush3.bf16.msra.mxu0 %v14102_v41  ;;  %v14104_v41 = vld [vmem:[%s18542_s4 + $0x98] sm:$0xff]  }
 0x3f9   :  { %v11770_v6 = vpop.f32.mrb[188].mxu1  ;;  %12575 = vmatprep.subr.bf16.mxu0 %v14103_v28 }
 0x3fa   :  { %v11771_v38 = vpop.f32.mrb[189].mxu1 }
 0x3fb   :  { %4956 = vmatpush1.bf16.msra.mxu1 %v18638_v4  ;;  %v16202_v10 = vadd.f32 %v11771_v38, %v11770_v6  ;;  %v11773_v58 = vpop.f32.mrb[190].mxu1  ;;  %v14059_v38 = vld [vmem:[%s18541_s3 + $0x660] ss:$16 sps:$4 sm:$0xff]  }
 0x3fc   :  { %4957 = vmatprep.subr.bf16.mxu1 %v18632_v5  ;;  %v11774_v8 = vpop.f32.mrb[191].mxu1  ;;  %12576 = vmatpush3.bf16.msra.mxu0 %v14103_v28 }
 0x3fd   :  { %v16208_v31 = vadd.f32 %v11774_v8, %v11773_v58  ;;  %12577 = vmatprep.subr.bf16.mxu0 %v14104_v41 }
 0x3fe   :  { %4901 = vmatmul.mubr.bf16.gmra.mrb[40].mxu1 %v14056_v54 }
 0x3ff   :  { %4958 = vmatpush1.bf16.msra.mxu1 %v15155_v19  ;;  %4908 = vmatprep.mubr.bf16.mxu1 %v14061_v13  ;;  %v14064_v13 = vld [vmem:[%s18541_s3 + $0x684] ss:$16 sps:$4 sm:$0xff]  }
 0x400   :  { %4959 = vmatprep.subr.bf16.mxu1 %v18632_v5  ;;  %12578 = vmatpush3.bf16.msra.mxu0 %v14104_v41 }
 0x401   :  { %v3216_v6 = vpop.f32.mrb[192].mxu1 }
 0x402   :  { %v16219_v8 = vadd.f32 %v16100_v0, %v3216_v6  ;;  %v3218_v54 = vpop.f32.mrb[193].mxu1  ;;  %v14105_v6 = vld [vmem:[%s18542_s4 + $0xa0] sm:$0xff]  }
 0x403   :  { %4960 = vmatpush1.bf16.msra.mxu1 %v15177_v51  ;;  %v3219_v58 = vpop.f32.mrb[194].mxu1  ;;  %12579 = vmatprep.subr.bf16.mxu0 %v14105_v6 }
 0x404   :  { %4961 = vmatprep.subr.bf16.mxu1 %v18632_v5  ;;  %v16230_v24 = vadd.f32 %v16105_v37, %v3219_v58  ;;  %v3221_v0 = vpop.f32.mrb[195].mxu1  ;;  %v14062_v37 = vld [vmem:[%s18541_s3 + $0x680] ss:$16 sps:$4 sm:$0xff]   ;;  %12580 = vmatpush3.bf16.msra.mxu0 %v14105_v6 }
 0x405   :  { %v14106_v0 = vld [vmem:[%s18542_s4 + $0xa8] sm:$0xff]  }
 0x406   :  { %4909 = vmatmul.mubr.bf16.gmra.mrb[44].mxu1 %v14059_v38  ;;  %12581 = vmatprep.subr.bf16.mxu0 %v14106_v0 }
 0x407   :  { %4962 = vmatpush1.bf16.msra.mxu1 %v15196_v25  ;;  %4916 = vmatprep.mubr.bf16.mxu1 %v14064_v13  ;;  %v14067_v13 = vld [vmem:[%s18541_s3 + $0x6a4] ss:$16 sps:$4 sm:$0xff]  }
 0x408   :  { %4963 = vmatprep.subr.bf16.mxu1 %v18632_v5  ;;  %12582 = vmatpush3.bf16.msra.mxu0 %v14106_v0  ;;  %v14070_v0 = vld [vmem:[%s18541_s3 + $0x6c4] ss:$16 sps:$4 sm:$0xff]  }
 0x409   :  { %v3224_v54 = vpop.f32.mrb[196].mxu1 }
 0x40a   :  { %v16243_v38 = vadd.f32 %v16107_v44, %v3224_v54  ;;  %v3226_v58 = vpop.f32.mrb[197].mxu1  ;;  %v14107_v54 = vld [vmem:[%s18542_s4 + $0xb0] sm:$0xff]  }
 0x40b   :  { %4964 = vmatpush1.bf16.msra.mxu1 %v15216_v53  ;;  %v3227_v41 = vpop.f32.mrb[198].mxu1  ;;  %12583 = vmatprep.subr.bf16.mxu0 %v14107_v54 }
 0x40c   :  { %4965 = vmatprep.subr.bf16.mxu1 %v18632_v5  ;;  %v16254_v28 = vadd.f32 %v16113_v62, %v3227_v41  ;;  %v3229_v44 = vpop.f32.mrb[199].mxu1  ;;  %v14065_v62 = vld [vmem:[%s18541_s3 + $0x6a0] ss:$16 sps:$4 sm:$0xff]   ;;  %12584 = vmatpush3.bf16.msra.mxu0 %v14107_v54 }
 0x40d   :  { %v14108_v44 = vld [vmem:[%s18542_s4 + $0xb8] sm:$0xff]  }
 0x40e   :  { %4917 = vmatmul.mubr.bf16.gmra.mrb[48].mxu1 %v14062_v37  ;;  %12585 = vmatprep.subr.bf16.mxu0 %v14108_v44 }
 0x40f   :  { %4966 = vmatpush1.bf16.msra.mxu1 %v15224_v22  ;;  %4924 = vmatprep.mubr.bf16.mxu1 %v14067_v13 }
 0x410   :  { %4967 = vmatprep.subr.bf16.mxu1 %v18632_v5  ;;  %12586 = vmatpush3.bf16.msra.mxu0 %v14108_v44 }
 0x411   :  { %v3232_v58 = vpop.f32.mrb[200].mxu1 }
 0x412   :  { %v16267_v37 = vadd.f32 %v16121_v61, %v3232_v58  ;;  %v3234_v41 = vpop.f32.mrb[201].mxu1  ;;  %v16286_v58 = vld [vmem:[%s18542_s4 + $0xc0] sm:$0xff]  }
 0x413   :  { %4968 = vmatpush1.bf16.msra.mxu1 %v15232_v50  ;;  %v3235_v13 = vpop.f32.mrb[202].mxu1  ;;  %12603 = vmatprep.subr.bf16.mxu0 %v16286_v58 }
 0x414   :  { %18654 = vst [vmem:[#allocation37_spill] sm:$0xff] %v16267_v37  ;;  %4969 = vmatprep.subr.bf16.mxu1 %v18632_v5  ;;  %v16278_v6 = vadd.f32 %v16126_v34, %v3235_v13  ;;  %v3237_v61 = vpop.f32.mrb[203].mxu1  ;;  %v14068_v34 = vld [vmem:[%s18541_s3 + $0x6c0] ss:$16 sps:$4 sm:$0xff]  }
 0x416   :  { %18655 = vst [vmem:[#allocation38_spill] sm:$0xff] %v16278_v6  ;;  %4925 = vmatmul.mubr.bf16.gmra.mrb[52].mxu1 %v14065_v62 }
 0x417   :  { %4970 = vmatpush1.bf16.msra.mxu1 %v15236_v7  ;;  %4932 = vmatprep.mubr.bf16.mxu1 %v14070_v0  ;;  %v14073_v0 = vld [vmem:[%s18541_s3 + $0x6e4] ss:$16 sps:$4 sm:$0x1f]  }
 0x418   :  { %4971 = vmatprep.subr.bf16.mxu1 %v18632_v5 }
 0x419   :  { %v3240_v41 = vpop.f32.mrb[204].mxu1 }
 0x41a   :  { %v16294_v62 = vadd.f32 %v16135_v15, %v3240_v41  ;;  %v3242_v13 = vpop.f32.mrb[205].mxu1  ;;  %v14071_v41 = vld [vmem:[%s18541_s3 + $0x6e0] ss:$16 sps:$4 sm:$0x1f]  }
 0x41b   :  { %4972 = vmatpush1.bf16.msra.mxu1 %v15243_v1  ;;  %v3243_v44 = vpop.f32.mrb[206].mxu1 }
 0x41c   :  { %5538 = vmatprep.subr.bf16.mxu1 %v18632_v5  ;;  %v16302_v61 = vadd.f32 %v16143_v63, %v3243_v44  ;;  %v3245_v54 = vpop.f32.mrb[207].mxu1  ;;  %v14076_v63 = vld [vmem:[%s18541_s3 + $0x60c] ss:$16 sps:$4 sm:$0xff]  }
 0x41e   :  { %4933 = vmatmul.mubr.bf16.gmra.mrb[56].mxu1 %v14068_v34 }
 0x41f   :  { %4940 = vmatprep.mubr.bf16.mxu1 %v14073_v0 }
 0x421   :  { %v3248_v15 = vpop.f32.mrb[208].mxu1 }
 0x422   :  { %v16310_v13 = vadd.f32 %v16152_v49, %v3248_v15  ;;  %v3250_v6 = vpop.f32.mrb[209].mxu1  ;;  %v14074_v49 = vld [vmem:[%s18541_s3 + $0x608] ss:$16 sps:$4 sm:$0xff]  }
 0x423   :  { %v3251_v44 = vpop.f32.mrb[210].mxu1 }
 0x424   :  { %v16316_v54 = vadd.f32 %v16160_v23, %v3251_v44  ;;  %v3253_v34 = vpop.f32.mrb[211].mxu1  ;;  %v14079_v23 = vld [vmem:[%s18541_s3 + $0x62c] ss:$16 sps:$4 sm:$0xff]  }
 0x426   :  { %4941 = vmatmul.mubr.bf16.gmra.mrb[60].mxu1 %v14071_v41 }
 0x427   :  { %10696 = vmatprep.mubr.msk.bf16.mxu1 %vm1319_vm15, %v14076_v63 }
 0x429   :  { %v3256_v37 = vpop.f32.mrb[212].mxu1 }
 0x42a   :  { %v16325_v6 = vadd.f32 %v16169_v27, %v3256_v37  ;;  %v3258_v15 = vpop.f32.mrb[213].mxu1  ;;  %v14077_v37 = vld [vmem:[%s18541_s3 + $0x628] ss:$16 sps:$4 sm:$0xff]  }
 0x42b   :  { %v3259_v44 = vpop.f32.mrb[214].mxu1 }
 0x42c   :  { %v16331_v41 = vadd.f32 %v16174_v18, %v3259_v44  ;;  %v3261_v34 = vpop.f32.mrb[215].mxu1 }
 0x42e   :  { %4982 = vmatmul.mubr.bf16.vlgmr.msra.gmra.mrb[64].mxu1 %v14074_v49  ;;  %v14082_v49 = vld [vmem:[%s18541_s3 + $0x64c] ss:$16 sps:$4 sm:$0xff]  }
 0x42f   :  { %5539 = vmatpush1.bf16.msra.mxu1 %v15067_v45  ;;  %10697 = vmatprep.mubr.msk.bf16.mxu1 %vm1319_vm15, %v14079_v23 }
 0x430   :  { %5540 = vmatprep.subr.bf16.mxu1 %v18632_v5 }
 0x431   :  { %v3264_v27 = vpop.f32.mrb[216].mxu1 }
 0x432   :  { %v16342_v15 = vadd.f32 %v16185_v46, %v3264_v27  ;;  %v3266_v18 = vpop.f32.mrb[217].mxu1  ;;  %v14080_v27 = vld [vmem:[%s18541_s3 + $0x648] ss:$16 sps:$4 sm:$0xff]  }
 0x433   :  { %5541 = vmatpush1.bf16.msra.mxu1 %v15089_v2  ;;  %v3267_v44 = vpop.f32.mrb[218].mxu1 }
 0x434   :  { %5542 = vmatprep.subr.bf16.mxu1 %v18632_v5  ;;  %v16350_v23 = vadd.f32 %v16188_v42, %v3267_v44  ;;  %v3269_v34 = vpop.f32.mrb[219].mxu1 }
 0x436   :  { %4990 = vmatmul.mubr.bf16.gmra.mrb[68].mxu1 %v14077_v37  ;;  %v14085_v37 = vld [vmem:[%s18541_s3 + $0x66c] ss:$16 sps:$4 sm:$0xff]  }
 0x437   :  { %5543 = vmatpush1.bf16.msra.mxu1 %v15111_v32  ;;  %10698 = vmatprep.mubr.msk.bf16.mxu1 %vm1319_vm15, %v14082_v49 }
 0x438   :  { %5544 = vmatprep.subr.bf16.mxu1 %v18632_v5 }
 0x439   :  { %v3272_v46 = vpop.f32.mrb[220].mxu1 }
 0x43a   :  { %v16361_v18 = vadd.f32 %v16202_v10, %v3272_v46  ;;  %v3274_v42 = vpop.f32.mrb[221].mxu1  ;;  %v14083_v10 = vld [vmem:[%s18541_s3 + $0x668] ss:$16 sps:$4 sm:$0xff]  }
 0x43b   :  { %5545 = vmatpush1.bf16.msra.mxu1 %v18638_v4  ;;  %v3275_v44 = vpop.f32.mrb[222].mxu1  ;;  %v14086_v46 = vld [vmem:[%s18541_s3 + $0x688] ss:$16 sps:$4 sm:$0xff]  }
 0x43c   :  { %5546 = vmatprep.subr.bf16.mxu1 %v18632_v5  ;;  %v16369_v49 = vadd.f32 %v16208_v31, %v3275_v44  ;;  %v3277_v34 = vpop.f32.mrb[223].mxu1  ;;  %v14088_v31 = vld [vmem:[%s18541_s3 + $0x68c] ss:$16 sps:$4 sm:$0xff]   ;;  %v14089_v42 = vld [vmem:[%s18541_s3 + $0x6a8] ss:$16 sps:$4 sm:$0xff]  }
 0x43d   :  { %v14092_v44 = vld [vmem:[%s18541_s3 + $0x6c8] ss:$16 sps:$4 sm:$0xff]   ;;  %v14097_v34 = vld [vmem:[%s18541_s3 + $0x6ec] ss:$16 sps:$4 sm:$0x1f]  }
 0x43e   :  { %4998 = vmatmul.mubr.bf16.gmra.mrb[72].mxu1 %v14080_v27  ;;  %v14091_v27 = vld [vmem:[%s18541_s3 + $0x6ac] ss:$16 sps:$4 sm:$0xff]  }
 0x43f   :  { %5547 = vmatpush1.bf16.msra.mxu1 %v15155_v19  ;;  %10699 = vmatprep.mubr.msk.bf16.mxu1 %vm1319_vm15, %v14085_v37  ;;  %v14094_v37 = vld [vmem:[%s18541_s3 + $0x6cc] ss:$16 sps:$4 sm:$0xff]  }
 0x440   :  { %5548 = vmatprep.subr.bf16.mxu1 %v18632_v5 }
 0x443   :  { %5549 = vmatpush1.bf16.msra.mxu1 %v15177_v51 }
 0x444   :  { %5550 = vmatprep.subr.bf16.mxu1 %v18632_v5 }
 0x446   :  { %5006 = vmatmul.mubr.bf16.gmra.mrb[76].mxu1 %v14083_v10  ;;  %v14095_v10 = vld [vmem:[%s18541_s3 + $0x6e8] ss:$16 sps:$4 sm:$0x1f]  }
 0x447   :  { %5551 = vmatpush1.bf16.msra.mxu1 %v15196_v25  ;;  %10700 = vmatprep.mubr.msk.bf16.mxu1 %vm1319_vm15, %v14088_v31  ;;  %v14100_v31 = vld [vmem:[%s18541_s3 + $0x70c] ss:$16 sps:$4 sm:$0xff]  }
 0x448   :  { %5552 = vmatprep.subr.bf16.mxu1 %v18632_v5 }
 0x44b   :  { %5553 = vmatpush1.bf16.msra.mxu1 %v15216_v53 }
 0x44c   :  { %5554 = vmatprep.subr.bf16.mxu1 %v18632_v5 }
 0x44e   :  { %5014 = vmatmul.mubr.bf16.gmra.mrb[80].mxu1 %v14086_v46  ;;  %v14098_v46 = vld [vmem:[%s18541_s3 + $0x708] ss:$16 sps:$4 sm:$0xff]  }
 0x44f   :  { %5555 = vmatpush1.bf16.msra.mxu1 %v15224_v22  ;;  %10701 = vmatprep.mubr.msk.bf16.mxu1 %vm1319_vm15, %v14091_v27 }
 0x450   :  { %5556 = vmatprep.subr.bf16.mxu1 %v18632_v5 }
 0x453   :  { %5557 = vmatpush1.bf16.msra.mxu1 %v15232_v50 }
 0x454   :  { %5558 = vmatprep.subr.bf16.mxu1 %v18632_v5 }
 0x456   :  { %5022 = vmatmul.mubr.bf16.gmra.mrb[84].mxu1 %v14089_v42 }
 0x457   :  { %5559 = vmatpush1.bf16.msra.mxu1 %v15236_v7  ;;  %10702 = vmatprep.mubr.msk.bf16.mxu1 %vm1319_vm15, %v14094_v37 }
 0x458   :  { %5560 = vmatprep.subr.bf16.mxu1 %v18632_v5 }
 0x45b   :  { %5561 = vmatpush1.bf16.msra.mxu1 %v15243_v1 }
 0x45c   :  { %12112 = vmatprep.subr.bf16.mxu1 %v14980_v59 }
 0x45e   :  { %5030 = vmatmul.mubr.bf16.gmra.mrb[88].mxu1 %v14092_v44 }
 0x45f   :  { %10703 = vmatprep.mubr.msk.bf16.mxu1 %vm1319_vm15, %v14097_v34 }
 0x466   :  { %5038 = vmatmul.mubr.bf16.gmra.mrb[92].mxu1 %v14095_v10 }
 0x467   :  { %10792 = vmatprep.mubr.msk.bf16.mxu1 %vm1319_vm15, %v14100_v31 }
 0x46e   :  { %5571 = vmatmul.mubr.bf16.vlgmr.msra.gmra.mrb[96].mxu1 %v14098_v46 }
 0x46f   :  { %12113 = vmatpush3.bf16.msra.mxu1 %v14948_v40 }
 0x470   :  { %12114 = vmatprep.subr.bf16.mxu1 %v14986_v16 }
 0x473   :  { %12115 = vmatpush3.bf16.msra.mxu1 %v14952_v57 }
 0x474   :  { %12116 = vmatprep.subr.bf16.mxu1 %v14995_v35 }
 0x477   :  { %12117 = vmatpush3.bf16.msra.mxu1 %v14956_v12 }
 0x478   :  { %12118 = vmatprep.subr.bf16.mxu1 %v15004_v55 }
 0x47b   :  { %12119 = vmatpush3.bf16.msra.mxu1 %v14960_v29 }
 0x47c   :  { %12120 = vmatprep.subr.bf16.mxu1 %v15017_v14 }
 0x47f   :  { %12121 = vmatpush3.bf16.msra.mxu1 %v14964_v47 }
 0x480   :  { %12122 = vmatprep.subr.bf16.mxu1 %v15025_v33 }
 0x483   :  { %12123 = vmatpush3.bf16.msra.mxu1 %v14968_v3 }
 0x484   :  { %12124 = vmatprep.subr.bf16.mxu1 %v15034_v56 }
 0x487   :  { %12125 = vmatpush3.bf16.msra.mxu1 %v14972_v21 }
 0x488   :  { %12126 = vmatprep.subr.bf16.mxu1 %v15046_v17 }
 0x48b   :  { %v2627_v27 = vpop.f32.mrb[128].mxu0  ;;  %12127 = vmatpush3.bf16.msra.mxu1 %v14976_v39 }
 0x48c   :  { %v2628_v42 = vadd.f32 %v15991_v11, %v2627_v27  ;;  %v2629_v37 = vpop.f32.mrb[129].mxu0  ;;  %v14110_v11 = vld [vmem:[%s18542_s4 + $0xc8] sm:$0xff]  }
 0x48d   :  { %v2630_v44 = vpop.f32.mrb[130].mxu0 }
 0x48e   :  { %v2631_v34 = vadd.f32 %v15998_v36, %v2630_v44  ;;  %v2632_v10 = vpop.f32.mrb[131].mxu0 }
 0x48f   :  { %v14114_v10 = vld [vmem:[%s18542_s4 + $0xe8] sm:$0xff]  }
 0x490   :  { %v2690_v31 = vpack.c.bf16 %v2631_v34, %v2628_v42 }
 0x492   :  { %12587 = vmatprep.mubr.bf16.mxu0 %v2690_v31 }
 0x493   :  { %v2635_v46 = vpop.f32.mrb[132].mxu0 }
 0x494   :  { %v2636_v63 = vadd.f32 %v16007_v43, %v2635_v46  ;;  %v2637_v0 = vpop.f32.mrb[133].mxu0  ;;  %v14111_v43 = vld [vmem:[%s18542_s4 + $0xd0] sm:$0xff]  }
 0x495   :  { %v2638_v1 = vpop.f32.mrb[134].mxu0 }
 0x496   :  { %v2639_v7 = vadd.f32 %v16014_v20, %v2638_v1  ;;  %v2640_v50 = vpop.f32.mrb[135].mxu0 }
 0x498   :  { %v2691_v22 = vpack.c.bf16 %v2639_v7, %v2636_v63  ;;  %v14113_v63 = vld [vmem:[%s18542_s4 + $0xe0] sm:$0xff]  }
 0x49a   :  { %12588 = vmatmul.mubr.bf16.vlgmr.msra.gmra.mrb[112].mxu0 %v2691_v22  ;;  %v14112_v22 = vld [vmem:[%s18542_s4 + $0xd8] sm:$0xff]  }
 0x49b   :  { %12604 = vmatpush3.bf16.msra.mxu0 %v16286_v58  ;;  %v2643_v36 = vpop.f32.mrb[136].mxu0 }
 0x49c   :  { %v2644_v27 = vadd.f32 %v16024_v30, %v2643_v36  ;;  %v2645_v42 = vpop.f32.mrb[137].mxu0  ;;  %12605 = vmatprep.subr.bf16.mxu0 %v14110_v11 }
 0x49d   :  { %v2646_v0 = vpop.f32.mrb[138].mxu0 }
 0x49e   :  { %v2647_v50 = vadd.f32 %v16030_v60, %v2646_v0  ;;  %v2648_v7 = vpop.f32.mrb[139].mxu0  ;;  %v18656_v0 = vld [vmem:[#allocation32_spill] sm:$0xff] }
 0x49f   :  { %12606 = vmatpush3.bf16.msra.mxu0 %v14110_v11  ;;  %v14115_v11 = vld [vmem:[%s18542_s4 + $0xf0] sm:$0xff]  }
 0x4a0   :  { %12607 = vmatprep.subr.bf16.mxu0 %v14111_v43  ;;  %v2692_v1 = vpack.c.bf16 %v2647_v50, %v2644_v27 }
 0x4a2   :  { %12591 = vmatprep.mubr.bf16.mxu0 %v2692_v1 }
 0x4a3   :  { %12608 = vmatpush3.bf16.msra.mxu0 %v14111_v43  ;;  %v2651_v20 = vpop.f32.mrb[140].mxu0  ;;  %v14116_v43 = vld [vmem:[%s18542_s4 + $0xf8] sm:$0xff]  }
 0x4a4   :  { %v2652_v30 = vadd.f32 %v16034_v48, %v2651_v20  ;;  %v2653_v58 = vpop.f32.mrb[141].mxu0  ;;  %12609 = vmatprep.subr.bf16.mxu0 %v14112_v22 }
 0x4a5   :  { %v2654_v60 = vpop.f32.mrb[142].mxu0 }
 0x4a6   :  { %v2655_v37 = vadd.f32 %v16040_v9, %v2654_v60  ;;  %v2656_v44 = vpop.f32.mrb[143].mxu0 }
 0x4a7   :  { %12610 = vmatpush3.bf16.msra.mxu0 %v14112_v22  ;;  %v18657_v22 = vld [vmem:[#allocation31_spill] sm:$0xff] }
 0x4a8   :  { %12611 = vmatprep.subr.bf16.mxu0 %v14113_v63  ;;  %v2693_v34 = vpack.c.bf16 %v2655_v37, %v2652_v30 }
 0x4aa   :  { %12592 = vmatmul.mubr.bf16.gmra.mrb[116].mxu0 %v2693_v34  ;;  %v18659_v34 = vld [vmem:[#allocation33_spill] sm:$0xff] }
 0x4ab   :  { %12612 = vmatpush3.bf16.msra.mxu0 %v14113_v63  ;;  %v2659_v48 = vpop.f32.mrb[144].mxu0  ;;  %v18658_v63 = vld [vmem:[#allocation34_spill] sm:$0xff] }
 0x4ac   :  { %v2660_v31 = vadd.f32 %v16050_v52, %v2659_v48  ;;  %v2661_v46 = vpop.f32.mrb[145].mxu0  ;;  %12613 = vmatprep.subr.bf16.mxu0 %v14114_v10 }
 0x4ad   :  { %v2662_v9 = vpop.f32.mrb[146].mxu0 }
 0x4ae   :  { %v2663_v36 = vadd.f32 %v16055_v26, %v2662_v9  ;;  %v2664_v27 = vpop.f32.mrb[147].mxu0 }
 0x4af   :  { %12614 = vmatpush3.bf16.msra.mxu0 %v14114_v10 }
 0x4b0   :  { %12615 = vmatprep.subr.bf16.mxu0 %v14115_v11  ;;  %v2694_v42 = vpack.c.bf16 %v2663_v36, %v2660_v31 }
 0x4b2   :  { %12595 = vmatprep.mubr.bf16.mxu0 %v2694_v42  ;;  %v18661_v42 = vld [vmem:[#allocation35_spill] sm:$0xff] }
 0x4b3   :  { %12616 = vmatpush3.bf16.msra.mxu0 %v14115_v11  ;;  %v2667_v52 = vpop.f32.mrb[148].mxu0  ;;  %v18660_v11 = vld [vmem:[#allocation36_spill] sm:$0xff] }
 0x4b4   :  { %v2668_v50 = vadd.f32 %v18656_v0, %v2667_v52  ;;  %v2669_v7 = vpop.f32.mrb[149].mxu0  ;;  %12617 = vmatprep.subr.bf16.mxu0 %v14116_v43 }
 0x4b5   :  { %v2670_v1 = vpop.f32.mrb[150].mxu0  ;;  %v18663_v7 = vpack.c.bf16 %v16254_v28, %v16243_v38  ;;  %v18669_v28 = vpack.c.bf16 %v16331_v41, %v16325_v6  ;;  %v18670_v38 = vpack.c.bf16 %v16350_v23, %v16342_v15  ;;  %v14120_v6 = vld [vmem:[%s18541_s3 + $0x424] ss:$16 sps:$4 sm:$0xff]   ;;  %v14142_v41 = vld [vmem:[%s18542_s4 + $0x108] sm:$0xff]   ;;  %v14122_v23 = vld [vmem:[%s18541_s3 + $0x420] ss:$16 sps:$4 sm:$0xff]  }
 0x4b6   :  { %v2671_v20 = vadd.f32 %v18657_v22, %v2670_v1  ;;  %v2672_v30 = vpop.f32.mrb[151].mxu0  ;;  %v18664_v1 = vld [vmem:[#allocation38_spill] sm:$0xff]  ;;  %v18665_v22 = vld [vmem:[#allocation37_spill] sm:$0xff]  ;;  %v14143_v15 = vld [vmem:[%s18542_s4 + $0x110] sm:$0xff]  }
 0x4b7   :  { %12618 = vmatpush3.bf16.msra.mxu0 %v14116_v43  ;;  %v14125_v30 = vld [vmem:[%s18541_s3 + $0x440] ss:$16 sps:$4 sm:$0xff]  }
 0x4b8   :  { %11792 = vmatprep.subr.bf16.mxu0 %v14980_v59  ;;  %v2695_v26 = vpack.c.bf16 %v2671_v20, %v2668_v50  ;;  %v18662_v50 = vpack.c.bf16 %v16230_v24, %v16219_v8  ;;  %v18666_v20 = vpack.c.bf16 %v18664_v1, %v18665_v22  ;;  %v18667_v24 = vpack.c.bf16 %v16302_v61, %v16294_v62  ;;  %v14119_v62 = vld [vmem:[%s18541_s3 + $0x404] ss:$16 sps:$4 sm:$0xff]   ;;  %v14148_v1 = vld [vmem:[%s18542_s4 + $0x138] sm:$0xff]  }
 0x4b9   :  { %v18668_v8 = vpack.c.bf16 %v16316_v54, %v16310_v13  ;;  %v18671_v61 = vpack.c.bf16 %v16369_v49, %v16361_v18  ;;  %v14141_v13 = vld [vmem:[%s18542_s4 + $0x100] sm:$0xff]   ;;  %v14144_v49 = vld [vmem:[%s18542_s4 + $0x118] sm:$0xff]  }
 0x4ba   :  { %12596 = vmatmul.mubr.bf16.gmra.mrb[120].mxu0 %v2695_v26  ;;  %v14117_v54 = vld [vmem:[%s18541_s3 + $0x400] ss:$16 sps:$4 sm:$0xff]   ;;  %v14123_v18 = vld [vmem:[%s18541_s3 + $0x444] ss:$16 sps:$4 sm:$0xff]  }
 0x4bb   :  { %v2675_v58 = vpop.f32.mrb[152].mxu0  ;;  %v14126_v26 = vld [vmem:[%s18541_s3 + $0x464] ss:$16 sps:$4 sm:$0xff]  }
 0x4bc   :  { %v2676_v60 = vadd.f32 %v18658_v63, %v2675_v58  ;;  %v2677_v37 = vpop.f32.mrb[153].mxu0  ;;  %v14128_v58 = vld [vmem:[%s18541_s3 + $0x460] ss:$16 sps:$4 sm:$0xff]   ;;  %v14129_v63 = vld [vmem:[%s18541_s3 + $0x484] ss:$16 sps:$4 sm:$0xff]  }
 0x4bd   :  { %v2678_v44 = vpop.f32.mrb[154].mxu0  ;;  %v14132_v37 = vld [vmem:[%s18541_s3 + $0x4a4] ss:$16 sps:$4 sm:$0xff]  }
 0x4be   :  { %v2679_v10 = vadd.f32 %v18659_v34, %v2678_v44  ;;  %v2680_v48 = vpop.f32.mrb[155].mxu0  ;;  %v14134_v44 = vld [vmem:[%s18541_s3 + $0x4a0] ss:$16 sps:$4 sm:$0xff]   ;;  %v14135_v34 = vld [vmem:[%s18541_s3 + $0x4c4] ss:$16 sps:$4 sm:$0xff]  }
 0x4bf   :  { %v14138_v48 = vld [vmem:[%s18541_s3 + $0x4e4] ss:$16 sps:$4 sm:$0x1f]  }
 0x4c0   :  { %v2696_v31 = vpack.c.bf16 %v2679_v10, %v2676_v60  ;;  %v14131_v60 = vld [vmem:[%s18541_s3 + $0x480] ss:$16 sps:$4 sm:$0xff]  }
 0x4c1   :  { %v14137_v10 = vld [vmem:[%s18541_s3 + $0x4c0] ss:$16 sps:$4 sm:$0xff]  }
 0x4c2   :  { %12599 = vmatprep.mubr.bf16.mxu0 %v2696_v31  ;;  %v14140_v31 = vld [vmem:[%s18541_s3 + $0x4e0] ss:$16 sps:$4 sm:$0x1f]  }
 0x4c3   :  { %v2683_v46 = vpop.f32.mrb[156].mxu0 }
 0x4c4   :  { %v2684_v9 = vadd.f32 %v18660_v11, %v2683_v46  ;;  %v2685_v36 = vpop.f32.mrb[157].mxu0  ;;  %v3805_v46 = vpop.f32.mrb[224].mxu1  ;;  %v14145_v11 = vld [vmem:[%s18542_s4 + $0x120] sm:$0xff]  }
 0x4c5   :  { %v2686_v27 = vpop.f32.mrb[158].mxu0 }
 0x4c6   :  { %v2687_v43 = vadd.f32 %v18661_v42, %v2686_v27  ;;  %v2688_v52 = vpop.f32.mrb[159].mxu0  ;;  %v14146_v42 = vld [vmem:[%s18542_s4 + $0x128] sm:$0xff]  }
 0x4c7   :  { %v14147_v52 = vld [vmem:[%s18542_s4 + $0x130] sm:$0xff]  }
 0x4c8   :  { %v2697_v0 = vpack.c.bf16 %v2687_v43, %v2684_v9  ;;  %v3807_v9 = vpop.f32.mrb[225].mxu1 }
 0x4c9   :  { %v3808_v36 = vpop.f32.mrb[226].mxu1 }
 0x4ca   :  { %12600 = vmatmul.mubr.bf16.gmra.mrb[124].mxu0 %v2697_v0  ;;  %v3810_v27 = vpop.f32.mrb[227].mxu1 }
 0x4cb   :  { %12619 = vmatprep.mubr.bf16.mxu0 %v18662_v50  ;;  %v3813_v43 = vpop.f32.mrb[228].mxu1 }
 0x4cc   :  { %v3815_v0 = vpop.f32.mrb[229].mxu1 }
 0x4cd   :  { %v3816_v50 = vpop.f32.mrb[230].mxu1 }
 0x4d2   :  { %12620 = vmatmul.mubr.bf16.vlgmr.msra.gmra.mrb[112].mxu0 %v18663_v7  ;;  %v3818_v7 = vpop.f32.mrb[231].mxu1 }
 0x4d3   :  { %11793 = vmatpush3.bf16.msra.mxu0 %v14948_v40  ;;  %12623 = vmatprep.mubr.bf16.mxu0 %v18666_v20  ;;  %v16593_v22 = vpop.f32.mrb[232].mxu1 }
 0x4d4   :  { %11794 = vmatprep.subr.bf16.mxu0 %v14986_v16  ;;  %v3823_v20 = vpop.f32.mrb[233].mxu1 }
 0x4d7   :  { %11795 = vmatpush3.bf16.msra.mxu0 %v14952_v57 }
 0x4d8   :  { %11796 = vmatprep.subr.bf16.mxu0 %v14995_v35 }
 0x4da   :  { %12624 = vmatmul.mubr.bf16.gmra.mrb[116].mxu0 %v18667_v24  ;;  %v16596_v24 = vpop.f32.mrb[234].mxu1 }
 0x4db   :  { %11797 = vmatpush3.bf16.msra.mxu0 %v14956_v12  ;;  %12627 = vmatprep.mubr.bf16.mxu0 %v18668_v8  ;;  %v3826_v8 = vpop.f32.mrb[235].mxu1 }
 0x4dc   :  { %11798 = vmatprep.subr.bf16.mxu0 %v15004_v55 }
 0x4df   :  { %11799 = vmatpush3.bf16.msra.mxu0 %v14960_v29 }
 0x4e0   :  { %11800 = vmatprep.subr.bf16.mxu0 %v15017_v14 }
 0x4e2   :  { %12628 = vmatmul.mubr.bf16.gmra.mrb[120].mxu0 %v18669_v28  ;;  %v16598_v28 = vpop.f32.mrb[236].mxu1 }
 0x4e3   :  { %11801 = vmatpush3.bf16.msra.mxu0 %v14964_v47  ;;  %12631 = vmatprep.mubr.bf16.mxu0 %v18670_v38  ;;  %v3831_v38 = vpop.f32.mrb[237].mxu1 }
 0x4e4   :  { %11802 = vmatprep.subr.bf16.mxu0 %v15025_v33 }
 0x4e7   :  { %11803 = vmatpush3.bf16.msra.mxu0 %v14968_v3 }
 0x4e8   :  { %11804 = vmatprep.subr.bf16.mxu0 %v15034_v56 }
 0x4ea   :  { %12632 = vmatmul.mubr.bf16.gmra.mrb[124].mxu0 %v18671_v61 }
 0x4eb   :  { %11805 = vmatpush3.bf16.msra.mxu0 %v14972_v21  ;;  %3706 = vmatprep.mubr.bf16.mxu0 %v14119_v62  ;;  %v16600_v62 = vpop.f32.mrb[238].mxu1 }
 0x4ec   :  { %11806 = vmatprep.subr.bf16.mxu0 %v15046_v17  ;;  %v3834_v61 = vpop.f32.mrb[239].mxu1 }
 0x4ef   :  { %11807 = vmatpush3.bf16.msra.mxu0 %v14976_v39 }
 0x4f0   :  { %12635 = vmatprep.subr.bf16.mxu0 %v14141_v13 }
 0x4f2   :  { %3707 = vmatmul.mubr.bf16.vlgmr.msra.gmra.mrb[160].mxu0 %v14117_v54 }
 0x4f3   :  { %3714 = vmatprep.mubr.bf16.mxu0 %v14120_v6  ;;  %12636 = vmatpush3.bf16.msra.mxu0 %v14141_v13  ;;  %v16602_v13 = vpop.f32.mrb[240].mxu1 }
 0x4f4   :  { %12637 = vmatprep.subr.bf16.mxu0 %v14142_v41  ;;  %v3839_v54 = vpop.f32.mrb[241].mxu1 }
 0x4f5   :  { %v16604_v6 = vpop.f32.mrb[242].mxu1 }
 0x4f7   :  { %12638 = vmatpush3.bf16.msra.mxu0 %v14142_v41  ;;  %v3842_v41 = vpop.f32.mrb[243].mxu1 }
 0x4f8   :  { %12639 = vmatprep.subr.bf16.mxu0 %v14143_v15 }
 0x4fa   :  { %3715 = vmatmul.mubr.bf16.gmra.mrb[164].mxu0 %v14122_v23 }
 0x4fb   :  { %3722 = vmatprep.mubr.bf16.mxu0 %v14123_v18  ;;  %12640 = vmatpush3.bf16.msra.mxu0 %v14143_v15  ;;  %v16606_v15 = vpop.f32.mrb[244].mxu1 }
 0x4fc   :  { %12641 = vmatprep.subr.bf16.mxu0 %v14144_v49  ;;  %v3847_v23 = vpop.f32.mrb[245].mxu1 }
 0x4fd   :  { %v16608_v18 = vpop.f32.mrb[246].mxu1 }
 0x4ff   :  { %12642 = vmatpush3.bf16.msra.mxu0 %v14144_v49  ;;  %v3850_v49 = vpop.f32.mrb[247].mxu1 }
 0x500   :  { %12643 = vmatprep.subr.bf16.mxu0 %v14145_v11 }
 0x502   :  { %3723 = vmatmul.mubr.bf16.gmra.mrb[168].mxu0 %v14125_v30  ;;  %v16610_v30 = vpop.f32.mrb[248].mxu1 }
 0x503   :  { %3730 = vmatprep.mubr.bf16.mxu0 %v14126_v26  ;;  %12644 = vmatpush3.bf16.msra.mxu0 %v14145_v11  ;;  %v3855_v26 = vpop.f32.mrb[249].mxu1 }
 0x504   :  { %12645 = vmatprep.subr.bf16.mxu0 %v14146_v42 }
 0x507   :  { %12646 = vmatpush3.bf16.msra.mxu0 %v14146_v42 }
 0x508   :  { %12647 = vmatprep.subr.bf16.mxu0 %v14147_v52 }
 0x50a   :  { %3731 = vmatmul.mubr.bf16.gmra.mrb[172].mxu0 %v14128_v58  ;;  %v16612_v58 = vpop.f32.mrb[250].mxu1 }
 0x50b   :  { %3738 = vmatprep.mubr.bf16.mxu0 %v14129_v63  ;;  %12648 = vmatpush3.bf16.msra.mxu0 %v14147_v52  ;;  %v3858_v63 = vpop.f32.mrb[251].mxu1 }
 0x50c   :  { %12649 = vmatprep.subr.bf16.mxu0 %v14148_v1 }
 0x50f   :  { %12650 = vmatpush3.bf16.msra.mxu0 %v14148_v1 }
 0x510   :  { %4360 = vmatprep.subr.bf16.mxu0 %v18632_v5 }
 0x512   :  { %3739 = vmatmul.mubr.bf16.gmra.mrb[176].mxu0 %v14131_v60  ;;  %v16614_v60 = vpop.f32.mrb[252].mxu1 }
 0x513   :  { %3746 = vmatprep.mubr.bf16.mxu0 %v14132_v37  ;;  %v3863_v37 = vpop.f32.mrb[253].mxu1 }
 0x51a   :  { %3747 = vmatmul.mubr.bf16.gmra.mrb[180].mxu0 %v14134_v44  ;;  %v16616_v44 = vpop.f32.mrb[254].mxu1 }
 0x51b   :  { %3754 = vmatprep.mubr.bf16.mxu0 %v14135_v34  ;;  %v3866_v34 = vpop.f32.mrb[255].mxu1 }
 0x51c   :  { %v11888_v9 = vpop.f32.mrb[0].mxu1 }
 0x51d   :  { %v11889_v42 = vpop.f32.mrb[1].mxu1 }
 0x51e   :  { %v16618_v7 = vpop.f32.mrb[2].mxu1  ;;  %v16620_v1 = vadd.f32 %v11889_v42, %v11888_v9 }
 0x51f   :  { %v16622_v20 = vpop.f32.mrb[3].mxu1 }
 0x520   :  { %18672 = vst [vmem:[#allocation32_spill] sm:$0xff] %v16620_v1  ;;  %v16624_v38 = vpop.f32.mrb[4].mxu1  ;;  %v18676_v1 = vld [vmem:[#allocation30_spill] sm:$0xff] }
 0x521   :  { %v16626_v61 = vpop.f32.mrb[5].mxu1 }
 0x522   :  { %3755 = vmatmul.mubr.bf16.gmra.mrb[184].mxu0 %v14137_v10  ;;  %v16628_v23 = vpop.f32.mrb[6].mxu1 }
 0x523   :  { %3762 = vmatprep.mubr.bf16.mxu0 %v14138_v48  ;;  %v16630_v26 = vpop.f32.mrb[7].mxu1 }
 0x524   :  { %v16632_v37 = vpop.f32.mrb[8].mxu1 }
 0x52a   :  { %3763 = vmatmul.mubr.bf16.gmra.mrb[188].mxu0 %v14140_v31 }
 0x5c5   :  { %v11808_v10 = vpop.f32.mrb[160].mxu0 }
 0x5c6   :  { %v11809_v48 = vpop.f32.mrb[161].mxu0 }
 0x5c7   :  { %v11810_v31 = vadd.f32 %v11809_v48, %v11808_v10  ;;  %v11811_v11 = vpop.f32.mrb[162].mxu0  ;;  %v16634_v10 = vpop.f32.mrb[9].mxu1 }
 0x5c8   :  { %v11812_v27 = vpop.f32.mrb[163].mxu0 }
 0x5c9   :  { %v3806_v52 = vadd.f32 %v11810_v31, %v3805_v46  ;;  %v11813_v0 = vadd.f32 %v11812_v27, %v11811_v11  ;;  %v16636_v31 = vpop.f32.mrb[10].mxu1 }
 0x5ca   :  { %v16638_v11 = vpop.f32.mrb[11].mxu1 }
 0x5cb   :  { %v3809_v8 = vadd.f32 %v11813_v0, %v3808_v36  ;;  %v16640_v27 = vpop.f32.mrb[12].mxu1 }
 0x5cc   :  { %v16642_v42 = vpop.f32.mrb[13].mxu1 }
 0x5cd   :  { %v11814_v54 = vpop.f32.mrb[164].mxu0  ;;  %v3868_v41 = vpack.c.bf16 %v3809_v8, %v3806_v52  ;;  %v16644_v8 = vpop.f32.mrb[14].mxu1 }
 0x5ce   :  { %v11815_v49 = vpop.f32.mrb[165].mxu0 }
 0x5cf   :  { %v11816_v46 = vadd.f32 %v11815_v49, %v11814_v54  ;;  %v11817_v63 = vpop.f32.mrb[166].mxu0  ;;  %12651 = vmatprep.mubr.bf16.mxu0 %v3868_v41  ;;  %v16646_v41 = vpop.f32.mrb[15].mxu1 }
 0x5d0   :  { %v11818_v34 = vpop.f32.mrb[167].mxu0 }
 0x5d1   :  { %v3814_v36 = vadd.f32 %v11816_v46, %v3813_v43  ;;  %v11819_v48 = vadd.f32 %v11818_v34, %v11817_v63  ;;  %v16648_v43 = vpop.f32.mrb[16].mxu1 }
 0x5d3   :  { %v3817_v9 = vadd.f32 %v11819_v48, %v3816_v50  ;;  %v16651_v50 = vpop.f32.mrb[17].mxu1 }
 0x5d5   :  { %v3869_v52 = vpack.c.bf16 %v3817_v9, %v3814_v36  ;;  %v11820_v0 = vpop.f32.mrb[168].mxu0  ;;  %v16655_v36 = vpop.f32.mrb[18].mxu1 }
 0x5d6   :  { %v11821_v54 = vpop.f32.mrb[169].mxu0  ;;  %v16657_v48 = vpop.f32.mrb[19].mxu1 }
 0x5d7   :  { %v11822_v49 = vadd.f32 %v11821_v54, %v11820_v0  ;;  %v11823_v39 = vpop.f32.mrb[170].mxu0  ;;  %12652 = vmatmul.mubr.bf16.vlgmr.msra.gmra.mrb[112].mxu0 %v3869_v52  ;;  %v16660_v0 = vpop.f32.mrb[20].mxu1 }
 0x5d8   :  { %4361 = vmatpush1.bf16.msra.mxu0 %v15067_v45  ;;  %v11824_v46 = vpop.f32.mrb[171].mxu0  ;;  %v16663_v52 = vpop.f32.mrb[21].mxu1 }
 0x5d9   :  { %v3822_v63 = vadd.f32 %v11822_v49, %v16593_v22  ;;  %v11825_v34 = vadd.f32 %v11824_v46, %v11823_v39  ;;  %4362 = vmatprep.subr.bf16.mxu0 %v18632_v5  ;;  %v16666_v22 = vpop.f32.mrb[22].mxu1 }
 0x5da   :  { %v16668_v49 = vpop.f32.mrb[23].mxu1 }
 0x5db   :  { %v3825_v9 = vadd.f32 %v11825_v34, %v16596_v24  ;;  %v16670_v21 = vpop.f32.mrb[24].mxu1 }
 0x5dc   :  { %4363 = vmatpush1.bf16.msra.mxu0 %v15089_v2  ;;  %v16673_v34 = vpop.f32.mrb[25].mxu1 }
 0x5dd   :  { %v11826_v54 = vpop.f32.mrb[172].mxu0  ;;  %4364 = vmatprep.subr.bf16.mxu0 %v18632_v5  ;;  %v3870_v45 = vpack.c.bf16 %v3825_v9, %v3822_v63  ;;  %v16677_v63 = vpop.f32.mrb[26].mxu1 }
 0x5de   :  { %v11827_v39 = vpop.f32.mrb[173].mxu0  ;;  %v16679_v9 = vpop.f32.mrb[27].mxu1 }
 0x5df   :  { %v11828_v46 = vadd.f32 %v11827_v39, %v11826_v54  ;;  %v11829_v17 = vpop.f32.mrb[174].mxu0  ;;  %12655 = vmatprep.mubr.bf16.mxu0 %v3870_v45  ;;  %v16682_v39 = vpop.f32.mrb[28].mxu1 }
 0x5e0   :  { %4365 = vmatpush1.bf16.msra.mxu0 %v15111_v32  ;;  %v11830_v24 = vpop.f32.mrb[175].mxu0  ;;  %v16685_v45 = vpop.f32.mrb[29].mxu1 }
 0x5e1   :  { %v3830_v2 = vadd.f32 %v11828_v46, %v16598_v28  ;;  %v11831_v56 = vadd.f32 %v11830_v24, %v11829_v17  ;;  %4366 = vmatprep.subr.bf16.mxu0 %v18632_v5  ;;  %v16688_v28 = vpop.f32.mrb[30].mxu1 }
 0x5e2   :  { %v16690_v46 = vpop.f32.mrb[31].mxu1 }
 0x5e3   :  { %v3833_v54 = vadd.f32 %v11831_v56, %v16600_v62  ;;  %v11968_v47 = vpop.f32.mrb[32].mxu1 }
 0x5e4   :  { %4367 = vmatpush1.bf16.msra.mxu0 %v18638_v4  ;;  %v11969_v62 = vpop.f32.mrb[33].mxu1 }
 0x5e5   :  { %v11832_v32 = vpop.f32.mrb[176].mxu0  ;;  %4368 = vmatprep.subr.bf16.mxu0 %v18632_v5  ;;  %v3871_v3 = vpack.c.bf16 %v3833_v54, %v3830_v2  ;;  %v11971_v29 = vpop.f32.mrb[34].mxu1  ;;  %v16695_v2 = vadd.f32 %v11969_v62, %v11968_v47 }
 0x5e6   :  { %v11833_v17 = vpop.f32.mrb[177].mxu0  ;;  %v11972_v54 = vpop.f32.mrb[35].mxu1 }
 0x5e7   :  { %v11834_v24 = vadd.f32 %v11833_v17, %v11832_v32  ;;  %v11835_v33 = vpop.f32.mrb[178].mxu0  ;;  %12656 = vmatmul.mubr.bf16.gmra.mrb[116].mxu0 %v3871_v3  ;;  %v11974_v12 = vpop.f32.mrb[36].mxu1  ;;  %v16698_v32 = vadd.f32 %v11972_v54, %v11971_v29 }
 0x5e8   :  { %4369 = vmatpush1.bf16.msra.mxu0 %v15155_v19  ;;  %v11836_v56 = vpop.f32.mrb[179].mxu0  ;;  %v11975_v3 = vpop.f32.mrb[37].mxu1 }
 0x5e9   :  { %v3838_v4 = vadd.f32 %v11834_v24, %v16602_v13  ;;  %v11837_v14 = vadd.f32 %v11836_v56, %v11835_v33  ;;  %4370 = vmatprep.subr.bf16.mxu0 %v18632_v5  ;;  %v11977_v13 = vpop.f32.mrb[38].mxu1  ;;  %v16702_v33 = vadd.f32 %v11975_v3, %v11974_v12 }
 0x5ea   :  { %v11978_v56 = vpop.f32.mrb[39].mxu1 }
 0x5eb   :  { %v3841_v55 = vadd.f32 %v11837_v14, %v16604_v6  ;;  %v11980_v35 = vpop.f32.mrb[40].mxu1  ;;  %v16704_v14 = vadd.f32 %v11978_v56, %v11977_v13 }
 0x5ec   :  { %4371 = vmatpush1.bf16.msra.mxu0 %v15177_v51  ;;  %v11981_v6 = vpop.f32.mrb[41].mxu1 }
 0x5ed   :  { %v11838_v17 = vpop.f32.mrb[180].mxu0  ;;  %4372 = vmatprep.subr.bf16.mxu0 %v18632_v5  ;;  %v3872_v19 = vpack.c.bf16 %v3841_v55, %v3838_v4  ;;  %v11983_v55 = vpop.f32.mrb[42].mxu1  ;;  %v16709_v12 = vadd.f32 %v11981_v6, %v11980_v35 }
 0x5ee   :  { %v11839_v24 = vpop.f32.mrb[181].mxu0  ;;  %v11984_v4 = vpop.f32.mrb[43].mxu1 }
 0x5ef   :  { %v11840_v47 = vadd.f32 %v11839_v24, %v11838_v17  ;;  %v11841_v62 = vpop.f32.mrb[182].mxu0  ;;  %12659 = vmatprep.mubr.bf16.mxu0 %v3872_v19  ;;  %v11986_v17 = vpop.f32.mrb[44].mxu1  ;;  %v16712_v19 = vadd.f32 %v11984_v4, %v11983_v55 }
 0x5f0   :  { %4373 = vmatpush1.bf16.msra.mxu0 %v15196_v25  ;;  %v11842_v29 = vpop.f32.mrb[183].mxu0  ;;  %v11987_v13 = vpop.f32.mrb[45].mxu1 }
 0x5f1   :  { %v3846_v54 = vadd.f32 %v11840_v47, %v16606_v15  ;;  %v11843_v51 = vadd.f32 %v11842_v29, %v11841_v62  ;;  %4374 = vmatprep.subr.bf16.mxu0 %v18632_v5  ;;  %v11989_v15 = vpop.f32.mrb[46].mxu1  ;;  %v16716_v47 = vadd.f32 %v11987_v13, %v11986_v17 }
 0x5f2   :  { %v11990_v29 = vpop.f32.mrb[47].mxu1 }
 0x5f3   :  { %v3849_v3 = vadd.f32 %v11843_v51, %v16608_v18  ;;  %v16718_v25 = vpop.f32.mrb[48].mxu1  ;;  %v16720_v51 = vadd.f32 %v11990_v29, %v11989_v15  ;;  %v18673_v18 = vld [vmem:[#allocation26_spill] sm:$0xff] }
 0x5f4   :  { %4375 = vmatpush1.bf16.msra.mxu0 %v15216_v53  ;;  %v16723_v4 = vpop.f32.mrb[49].mxu1 }
 0x5f5   :  { %v11844_v24 = vpop.f32.mrb[184].mxu0  ;;  %4376 = vmatprep.subr.bf16.mxu0 %v18632_v5  ;;  %v3873_v56 = vpack.c.bf16 %v3849_v3, %v3846_v54  ;;  %v16727_v3 = vpop.f32.mrb[50].mxu1 }
 0x5f6   :  { %v11845_v62 = vpop.f32.mrb[185].mxu0  ;;  %v16729_v17 = vpop.f32.mrb[51].mxu1 }
 0x5f7   :  { %v11846_v35 = vadd.f32 %v11845_v62, %v11844_v24  ;;  %v11847_v6 = vpop.f32.mrb[186].mxu0  ;;  %12660 = vmatmul.mubr.bf16.gmra.mrb[120].mxu0 %v3873_v56  ;;  %v16732_v24 = vpop.f32.mrb[52].mxu1  ;;  %v18674_v56 = vld [vmem:[#allocation27_spill] sm:$0xff] }
 0x5f8   :  { %4377 = vmatpush1.bf16.msra.mxu0 %v18673_v18  ;;  %v11848_v55 = vpop.f32.mrb[187].mxu0  ;;  %v16735_v15 = vpop.f32.mrb[53].mxu1 }
 0x5f9   :  { %v3854_v53 = vadd.f32 %v11846_v35, %v16610_v30  ;;  %v11849_v54 = vadd.f32 %v11848_v55, %v11847_v6  ;;  %4378 = vmatprep.subr.bf16.mxu0 %v18632_v5  ;;  %v16738_v30 = vpop.f32.mrb[54].mxu1 }
 0x5fa   :  { %v16740_v6 = vpop.f32.mrb[55].mxu1 }
 0x5fb   :  { %v3857_v13 = vadd.f32 %v11849_v54, %v16612_v58  ;;  %v12004_v57 = vpop.f32.mrb[56].mxu1  ;;  %v18675_v58 = vld [vmem:[#allocation28_spill] sm:$0xff] }
 0x5fc   :  { %4379 = vmatpush1.bf16.msra.mxu0 %v18674_v56  ;;  %v12005_v16 = vpop.f32.mrb[57].mxu1 }
 0x5fd   :  { %v11850_v62 = vpop.f32.mrb[188].mxu0  ;;  %4380 = vmatprep.subr.bf16.mxu0 %v18632_v5  ;;  %v3874_v29 = vpack.c.bf16 %v3857_v13, %v3854_v53  ;;  %v16745_v59 = vadd.f32 %v12005_v16, %v12004_v57  ;;  %v12007_v53 = vpop.f32.mrb[58].mxu1  ;;  %v14173_v13 = vld [vmem:[%s18542_s4 + $0x140] sm:$0xff]   ;;  %v16759_v57 = vadd.f32 %v16622_v20, %v16618_v7 }
 0x5fe   :  { %v11851_v35 = vpop.f32.mrb[189].mxu0 }
 0x5ff   :  { %v11852_v55 = vadd.f32 %v11851_v35, %v11850_v62  ;;  %v11853_v18 = vpop.f32.mrb[190].mxu0  ;;  %12663 = vmatprep.mubr.bf16.mxu0 %v3874_v29  ;;  %v12008_v62 = vpop.f32.mrb[59].mxu1 }
 0x600   :  { %4381 = vmatpush1.bf16.msra.mxu0 %v18675_v58  ;;  %v11854_v54 = vpop.f32.mrb[191].mxu0  ;;  %v16751_v35 = vadd.f32 %v12008_v62, %v12007_v53  ;;  %v12010_v58 = vpop.f32.mrb[60].mxu1 }
 0x601   :  { %v3862_v56 = vadd.f32 %v11852_v55, %v16614_v60  ;;  %v11855_v40 = vadd.f32 %v11854_v54, %v11853_v18  ;;  %4382 = vmatprep.subr.bf16.mxu0 %v18632_v5  ;;  %v14151_v60 = vld [vmem:[%s18541_s3 + $0x50c] ss:$16 sps:$4 sm:$0xff]   ;;  %v12011_v18 = vpop.f32.mrb[61].mxu1 }
 0x602   :  { %v16761_v55 = vadd.f32 %v12011_v18, %v12010_v58  ;;  %v12013_v54 = vpop.f32.mrb[62].mxu1 }
 0x603   :  { %v3865_v29 = vadd.f32 %v11855_v40, %v16616_v44  ;;  %v12014_v40 = vpop.f32.mrb[63].mxu1 }
 0x604   :  { %4383 = vmatpush1.bf16.msra.mxu0 %v18676_v1  ;;  %v16763_v44 = vadd.f32 %v12014_v40, %v12013_v54  ;;  %v4983_v53 = vpop.f32.mrb[64].mxu1 }
 0x605   :  { %v3875_v16 = vpack.c.bf16 %v3865_v29, %v3862_v56  ;;  %12667 = vmatprep.subr.bf16.mxu0 %v14173_v13  ;;  %v16767_v62 = vadd.f32 %v16695_v2, %v4983_v53  ;;  %v4985_v1 = vpop.f32.mrb[65].mxu1  ;;  %v14149_v56 = vld [vmem:[%s18541_s3 + $0x508] ss:$16 sps:$4 sm:$0xff]   ;;  %v14152_v29 = vld [vmem:[%s18541_s3 + $0x52c] ss:$16 sps:$4 sm:$0xff]  }
 0x606   :  { %v4986_v5 = vpop.f32.mrb[66].mxu1 }
 0x607   :  { %12664 = vmatmul.mubr.bf16.gmra.mrb[124].mxu0 %v3875_v16  ;;  %v16770_v7 = vadd.f32 %v16698_v32, %v4986_v5  ;;  %v4988_v20 = vpop.f32.mrb[67].mxu1  ;;  %v16785_v5 = vadd.f32 %v16626_v61, %v16624_v38  ;;  %v16789_v32 = vadd.f32 %v16630_v26, %v16628_v23  ;;  %v14174_v16 = vld [vmem:[%s18542_s4 + $0x148] sm:$0xff]  }
 0x608   :  { %10600 = vmatprep.mubr.msk.bf16.mxu0 %vm1319_vm15, %v14151_v60  ;;  %v4991_v58 = vpop.f32.mrb[68].mxu1 }
 0x609   :  { %v5046_v60 = vpack.c.bf16 %v16770_v7, %v16767_v62  ;;  %v16781_v2 = vadd.f32 %v16702_v33, %v4991_v58  ;;  %v4993_v1 = vpop.f32.mrb[69].mxu1  ;;  %v18683_v62 = vld [vmem:[#allocation4_spill] sm:$0xff]  ;;  %v18684_v7 = vld [vmem:[#allocation13_spill] sm:$0xff] }
 0x60a   :  { %v4994_v18 = vpop.f32.mrb[70].mxu1 }
 0x60b   :  { %v16795_v54 = vadd.f32 %v16704_v14, %v4994_v18  ;;  %v4996_v40 = vpop.f32.mrb[71].mxu1  ;;  %v14175_v14 = vld [vmem:[%s18542_s4 + $0x150] sm:$0xff]   ;;  %v16826_v18 = vadd.f32 %v16638_v11, %v16636_v31  ;;  %v14157_v31 = vld [vmem:[%s18541_s3 + $0x548] ss:$16 sps:$4 sm:$0xff]   ;;  %v14158_v11 = vld [vmem:[%s18541_s3 + $0x56c] ss:$16 sps:$4 sm:$0xff]  }
 0x60c   :  { %v4999_v33 = vpop.f32.mrb[72].mxu1  ;;  %v14176_v40 = vld [vmem:[%s18542_s4 + $0x158] sm:$0xff]  }
 0x60d   :  { %v5047_v38 = vpack.c.bf16 %v16795_v54, %v16781_v2  ;;  %v16801_v61 = vadd.f32 %v16709_v12, %v4999_v33  ;;  %v5001_v23 = vpop.f32.mrb[73].mxu1  ;;  %v14155_v12 = vld [vmem:[%s18541_s3 + $0x54c] ss:$16 sps:$4 sm:$0xff]   ;;  %v18686_v2 = vld [vmem:[#allocation14_spill] sm:$0xff] }
 0x60e   :  { %v5002_v26 = vpop.f32.mrb[74].mxu1  ;;  %v16852_v23 = vadd.f32 %v16646_v41, %v16644_v8  ;;  %v14163_v8 = vld [vmem:[%s18541_s3 + $0x588] ss:$16 sps:$4 sm:$0xff]   ;;  %v14164_v41 = vld [vmem:[%s18541_s3 + $0x5ac] ss:$16 sps:$4 sm:$0xff]   ;;  %v18687_v54 = vld [vmem:[#allocation6_spill] sm:$0xff] }
 0x60f   :  { %4393 = vmatmul.mubr.bf16.vlgmr.msra.gmra.mrb[192].mxu0 %v14149_v56  ;;  %v16807_v53 = vadd.f32 %v16712_v19, %v5002_v26  ;;  %v5004_v20 = vpop.f32.mrb[75].mxu1  ;;  %v14154_v56 = vld [vmem:[%s18541_s3 + $0x528] ss:$16 sps:$4 sm:$0xff]   ;;  %v16822_v19 = vadd.f32 %v16634_v10, %v16632_v37  ;;  %v14177_v10 = vld [vmem:[%s18542_s4 + $0x160] sm:$0xff]  }
 0x610   :  { %10601 = vmatprep.mubr.msk.bf16.mxu0 %vm1319_vm15, %v14152_v29  ;;  %12668 = vmatpush3.bf16.msra.mxu0 %v14173_v13  ;;  %v5007_v58 = vpop.f32.mrb[76].mxu1  ;;  %v14160_v26 = vld [vmem:[%s18541_s3 + $0x568] ss:$16 sps:$4 sm:$0xff]   ;;  %v16878_v20 = vadd.f32 %v16663_v52, %v16660_v0  ;;  %v16897_v0 = vadd.f32 %v16679_v9, %v16677_v63  ;;  %v11994_v63 = vadd.f32 %v16723_v4, %v16718_v25  ;;  %v14179_v25 = vld [vmem:[%s18542_s4 + $0x170] sm:$0xff]  }
 0x611   :  { %12669 = vmatprep.subr.bf16.mxu0 %v14174_v16  ;;  %v5048_v13 = vpack.c.bf16 %v16807_v53, %v16801_v61  ;;  %v16818_v29 = vadd.f32 %v16716_v47, %v5007_v58  ;;  %v5009_v1 = vpop.f32.mrb[77].mxu1  ;;  %v14169_v52 = vld [vmem:[%s18541_s3 + $0x5c8] ss:$16 sps:$4 sm:$0xff]   ;;  %v14191_v53 = vld [vmem:[%s18541_s3 + $0x704] ss:$16 sps:$4 sm:$0xff]  }
 0x612   :  { %v5010_v33 = vpop.f32.mrb[78].mxu1  ;;  %v14180_v1 = vld [vmem:[%s18542_s4 + $0x178] sm:$0xff]   ;;  %v18689_v61 = vld [vmem:[#allocation7_spill] sm:$0xff] }
 0x613   :  { %v5012_v47 = vpop.f32.mrb[79].mxu1 }
 0x614   :  { %12670 = vmatpush3.bf16.msra.mxu0 %v14174_v16  ;;  %v16832_v16 = vadd.f32 %v16720_v51, %v5010_v33  ;;  %v16848_v51 = vadd.f32 %v16642_v42, %v16640_v27  ;;  %v16863_v27 = vadd.f32 %v16651_v50, %v16648_v43  ;;  %v16867_v42 = vadd.f32 %v16657_v48, %v16655_v36  ;;  %v14166_v50 = vld [vmem:[%s18541_s3 + $0x5a8] ss:$16 sps:$4 sm:$0xff]   ;;  %v14167_v36 = vld [vmem:[%s18541_s3 + $0x5cc] ss:$16 sps:$4 sm:$0xff]   ;;  %v5015_v9 = vpop.f32.mrb[80].mxu1 }
 0x615   :  { %12671 = vmatprep.subr.bf16.mxu0 %v14175_v14  ;;  %v16882_v43 = vadd.f32 %v16668_v49, %v16666_v22  ;;  %v16893_v48 = vadd.f32 %v16673_v34, %v16670_v21  ;;  %v14170_v22 = vld [vmem:[%s18541_s3 + $0x5ec] ss:$16 sps:$4 sm:$0x1f]   ;;  %v16908_v49 = vadd.f32 %v16685_v45, %v16682_v39  ;;  %v16912_v21 = vadd.f32 %v16690_v46, %v16688_v28  ;;  %v14172_v34 = vld [vmem:[%s18541_s3 + $0x5e8] ss:$16 sps:$4 sm:$0x1f]  }
 0x616   :  { %v5049_v37 = vpack.c.bf16 %v16832_v16, %v16818_v29  ;;  %v14178_v39 = vld [vmem:[%s18542_s4 + $0x168] sm:$0xff]   ;;  %v5017_v45 = vpop.f32.mrb[81].mxu1  ;;  %v11997_v28 = vadd.f32 %v16729_v17, %v16727_v3  ;;  %v16925_v46 = vadd.f32 %v11994_v63, %v5015_v9  ;;  %v12000_v3 = vadd.f32 %v16735_v15, %v16732_v24  ;;  %v14181_v24 = vld [vmem:[%s18542_s4 + $0x180] sm:$0xff]   ;;  %v18691_v29 = vld [vmem:[#allocation8_spill] sm:$0xff] }
 0x617   :  { %4401 = vmatmul.mubr.bf16.gmra.mrb[196].mxu0 %v14154_v56  ;;  %v5018_v56 = vpop.f32.mrb[82].mxu1  ;;  %v12003_v33 = vadd.f32 %v16740_v6, %v16738_v30  ;;  %v14206_v45 = vld [vmem:[%s18541_s3 + $0x768] ss:$16 sps:$4 sm:$0xff]  }
 0x618   :  { %10602 = vmatprep.mubr.msk.bf16.mxu0 %vm1319_vm15, %v14155_v12  ;;  %12672 = vmatpush3.bf16.msra.mxu0 %v14175_v14  ;;  %v14161_v14 = vld [vmem:[%s18541_s3 + $0x58c] ss:$16 sps:$4 sm:$0xff]   ;;  %v16927_v58 = vadd.f32 %v11997_v28, %v5018_v56  ;;  %v5020_v12 = vpop.f32.mrb[83].mxu1 }
 0x619   :  { %12673 = vmatprep.subr.bf16.mxu0 %v14176_v40  ;;  %v5023_v17 = vpop.f32.mrb[84].mxu1  ;;  %v14208_v28 = vld [vmem:[%s18541_s3 + $0x76c] ss:$16 sps:$4 sm:$0xff]   ;;  %v14212_v12 = vld [vmem:[%s18541_s3 + $0x788] ss:$16 sps:$4 sm:$0xff]  }
 0x61a   :  { %v5050_v4 = vpack.c.bf16 %v16927_v58, %v16925_v46  ;;  %v16941_v47 = vadd.f32 %v12000_v3, %v5023_v17  ;;  %v18677_v3 = vld [vmem:[#allocation32_spill] sm:$0xff]  ;;  %v18692_v16 = vld [vmem:[#allocation17_spill] sm:$0xff] }
 0x61b   :  { %v14189_v46 = vld [vmem:[%s18541_s3 + $0x700] ss:$16 sps:$4 sm:$0xff]   ;;  %v18693_v58 = vld [vmem:[#allocation9_spill] sm:$0xff] }
 0x61c   :  { %12674 = vmatpush3.bf16.msra.mxu0 %v14176_v40  ;;  %v5025_v40 = vpop.f32.mrb[85].mxu1 }
 0x61d   :  { %12675 = vmatprep.subr.bf16.mxu0 %v14177_v10 }
 0x61f   :  { %4409 = vmatmul.mubr.bf16.gmra.mrb[200].mxu0 %v14157_v31 }
 0x620   :  { %10603 = vmatprep.mubr.msk.bf16.mxu0 %vm1319_vm15, %v14158_v11  ;;  %12676 = vmatpush3.bf16.msra.mxu0 %v14177_v10  ;;  %v5026_v10 = vpop.f32.mrb[86].mxu1 }
 0x621   :  { %12677 = vmatprep.subr.bf16.mxu0 %v14178_v39  ;;  %v16943_v31 = vadd.f32 %v12003_v33, %v5026_v10  ;;  %v5028_v11 = vpop.f32.mrb[87].mxu1 }
 0x623   :  { %v5051_v15 = vpack.c.bf16 %v16943_v31, %v16941_v47  ;;  %v14235_v47 = vld [vmem:[%s18542_s4 + $0x1c8] sm:$0xff]   ;;  %v14236_v31 = vld [vmem:[%s18542_s4 + $0x1d0] sm:$0xff]  }
 0x624   :  { %12678 = vmatpush3.bf16.msra.mxu0 %v14178_v39  ;;  %v14196_v39 = vld [vmem:[%s18541_s3 + $0x72c] ss:$16 sps:$4 sm:$0xff]  }
 0x625   :  { %12679 = vmatprep.subr.bf16.mxu0 %v14179_v25  ;;  %10793 = vmatprep.mubr.msk.bf16.mxu1 %vm1319_vm15, %v14196_v39 }
 0x627   :  { %4417 = vmatmul.mubr.bf16.gmra.mrb[204].mxu0 %v14160_v26  ;;  %v5031_v26 = vpop.f32.mrb[88].mxu1 }
 0x628   :  { %10604 = vmatprep.mubr.msk.bf16.mxu0 %vm1319_vm15, %v14161_v14  ;;  %12680 = vmatpush3.bf16.msra.mxu0 %v14179_v25  ;;  %v16951_v14 = vadd.f32 %v16745_v59, %v5031_v26  ;;  %v5033_v30 = vpop.f32.mrb[89].mxu1  ;;  %v14214_v25 = vld [vmem:[%s18541_s3 + $0x78c] ss:$16 sps:$4 sm:$0xff]  }
 0x629   :  { %12681 = vmatprep.subr.bf16.mxu0 %v14180_v1  ;;  %v5034_v6 = vpop.f32.mrb[90].mxu1  ;;  %v14218_v30 = vld [vmem:[%s18541_s3 + $0x7a8] ss:$16 sps:$4 sm:$0xff]  }
 0x62c   :  { %12682 = vmatpush3.bf16.msra.mxu0 %v14180_v1 }
 0x62d   :  { %12699 = vmatprep.subr.bf16.mxu0 %v14181_v24 }
 0x62f   :  { %4425 = vmatmul.mubr.bf16.gmra.mrb[208].mxu0 %v14163_v8  ;;  %v16954_v8 = vadd.f32 %v16751_v35, %v5034_v6  ;;  %v14194_v35 = vld [vmem:[%s18541_s3 + $0x728] ss:$16 sps:$4 sm:$0xff]   ;;  %v14220_v6 = vld [vmem:[%s18541_s3 + $0x7ac] ss:$16 sps:$4 sm:$0xff]  }
 0x630   :  { %10605 = vmatprep.mubr.msk.bf16.mxu0 %vm1319_vm15, %v14164_v41  ;;  %v5036_v41 = vpop.f32.mrb[91].mxu1  ;;  %5579 = vmatmul.mubr.bf16.gmra.mrb[100].mxu1 %v14194_v35  ;;  %v14182_v35 = vld [vmem:[%s18542_s4 + $0x188] sm:$0xff]  }
 0x637   :  { %4433 = vmatmul.mubr.bf16.gmra.mrb[212].mxu0 %v14166_v50  ;;  %v5052_v50 = vpack.c.bf16 %v16954_v8, %v16951_v14  ;;  %v14198_v14 = vld [vmem:[%s18541_s3 + $0x744] ss:$16 sps:$4 sm:$0xff]   ;;  %v14237_v8 = vld [vmem:[%s18542_s4 + $0x1d8] sm:$0xff]  }
 0x638   :  { %10606 = vmatprep.mubr.msk.bf16.mxu0 %vm1319_vm15, %v14167_v36  ;;  %v5039_v36 = vpop.f32.mrb[92].mxu1 }
 0x63f   :  { %4441 = vmatmul.mubr.bf16.gmra.mrb[216].mxu0 %v14169_v52  ;;  %v16959_v52 = vadd.f32 %v16761_v55, %v5039_v36  ;;  %v14200_v55 = vld [vmem:[%s18541_s3 + $0x748] ss:$16 sps:$4 sm:$0xff]  }
 0x640   :  { %10607 = vmatprep.mubr.msk.bf16.mxu0 %vm1319_vm15, %v14170_v22  ;;  %v5041_v22 = vpop.f32.mrb[93].mxu1 }
 0x647   :  { %4449 = vmatmul.mubr.bf16.gmra.mrb[220].mxu0 %v14172_v34  ;;  %v5042_v34 = vpop.f32.mrb[94].mxu1 }
 0x648   :  { %v16962_v63 = vadd.f32 %v16763_v44, %v5042_v34  ;;  %v5044_v59 = vpop.f32.mrb[95].mxu1  ;;  %v14202_v44 = vld [vmem:[%s18541_s3 + $0x74c] ss:$16 sps:$4 sm:$0xff]  }
 0x649   :  { %10794 = vmatprep.mubr.msk.bf16.mxu1 %vm1319_vm15, %v14202_v44 }
 0x64a   :  { %v5053_v9 = vpack.c.bf16 %v16962_v63, %v16959_v52  ;;  %5587 = vmatmul.mubr.bf16.gmra.mrb[104].mxu1 %v14200_v55  ;;  %v14226_v55 = vld [vmem:[%s18541_s3 + $0x7cc] ss:$16 sps:$4 sm:$0xff]   ;;  %v14204_v52 = vld [vmem:[%s18541_s3 + $0x764] ss:$16 sps:$4 sm:$0xff]   ;;  %v14209_v63 = vld [vmem:[%s18541_s3 + $0x760] ss:$16 sps:$4 sm:$0xff]  }
 0x64b   :  { %10795 = vmatprep.mubr.msk.bf16.mxu1 %vm1319_vm15, %v14208_v28 }
 0x652   :  { %5595 = vmatmul.mubr.bf16.gmra.mrb[108].mxu1 %v14206_v45  ;;  %v14183_v45 = vld [vmem:[%s18542_s4 + $0x190] sm:$0xff]  }
 0x653   :  { %10796 = vmatprep.mubr.msk.bf16.mxu1 %vm1319_vm15, %v14214_v25 }
 0x65a   :  { %5603 = vmatmul.mubr.bf16.gmra.mrb[112].mxu1 %v14212_v12 }
 0x65b   :  { %10797 = vmatprep.mubr.msk.bf16.mxu1 %vm1319_vm15, %v14220_v6 }
 0x662   :  { %5611 = vmatmul.mubr.bf16.gmra.mrb[116].mxu1 %v14218_v30 }
 0x663   :  { %10798 = vmatprep.mubr.msk.bf16.mxu1 %vm1319_vm15, %v14226_v55 }
 0x6e2   :  { %v4394_v56 = vpop.f32.mrb[192].mxu0 }
 0x6e3   :  { %v4395_v17 = vadd.f32 %v18677_v3, %v4394_v56  ;;  %v4396_v1 = vpop.f32.mrb[193].mxu0  ;;  %v14230_v3 = vld [vmem:[%s18541_s3 + $0x7e8] ss:$16 sps:$4 sm:$0x1f]  }
 0x6e4   :  { %v4397_v40 = vpop.f32.mrb[194].mxu0 }
 0x6e5   :  { %v4398_v33 = vadd.f32 %v16759_v57, %v4397_v40  ;;  %v4399_v10 = vpop.f32.mrb[195].mxu0  ;;  %v14232_v40 = vld [vmem:[%s18541_s3 + $0x7ec] ss:$16 sps:$4 sm:$0x1f]  }
 0x6e7   :  { %v4457_v11 = vpack.c.bf16 %v4398_v33, %v4395_v17 }
 0x6e9   :  { %12683 = vmatprep.mubr.bf16.mxu0 %v4457_v11 }
 0x6ea   :  { %v4402_v26 = vpop.f32.mrb[196].mxu0 }
 0x6eb   :  { %v4403_v41 = vadd.f32 %v16785_v5, %v4402_v26  ;;  %v4404_v36 = vpop.f32.mrb[197].mxu0  ;;  %v14224_v5 = vld [vmem:[%s18541_s3 + $0x7c8] ss:$16 sps:$4 sm:$0xff]  }
 0x6ec   :  { %v4405_v22 = vpop.f32.mrb[198].mxu0  ;;  %5619 = vmatmul.mubr.bf16.gmra.mrb[120].mxu1 %v14224_v5 }
 0x6ed   :  { %v4406_v57 = vadd.f32 %v16789_v32, %v4405_v22  ;;  %v4407_v34 = vpop.f32.mrb[199].mxu0  ;;  %10799 = vmatprep.mubr.msk.bf16.mxu1 %vm1319_vm15, %v14232_v40 }
 0x6ef   :  { %v4458_v59 = vpack.c.bf16 %v4406_v57, %v4403_v41 }
 0x6f1   :  { %12684 = vmatmul.mubr.bf16.vlgmr.msra.gmra.mrb[112].mxu0 %v4458_v59  ;;  %v14188_v59 = vld [vmem:[%s18542_s4 + $0x1b8] sm:$0xff]  }
 0x6f2   :  { %12700 = vmatpush3.bf16.msra.mxu0 %v14181_v24  ;;  %v4410_v39 = vpop.f32.mrb[200].mxu0 }
 0x6f3   :  { %v4411_v32 = vadd.f32 %v16822_v19, %v4410_v39  ;;  %v4412_v44 = vpop.f32.mrb[201].mxu0  ;;  %12701 = vmatprep.subr.bf16.mxu0 %v14182_v35  ;;  %v14184_v19 = vld [vmem:[%s18542_s4 + $0x198] sm:$0xff]  }
 0x6f4   :  { %v4413_v28 = vpop.f32.mrb[202].mxu0  ;;  %5627 = vmatmul.mubr.bf16.gmra.mrb[124].mxu1 %v14230_v3  ;;  %v18678_v44 = vld [vmem:[#allocation10_spill] sm:$0xff] }
 0x6f5   :  { %v4414_v24 = vadd.f32 %v16826_v18, %v4413_v28  ;;  %v4415_v56 = vpop.f32.mrb[203].mxu0  ;;  %v14185_v18 = vld [vmem:[%s18542_s4 + $0x1a0] sm:$0xff]  }
 0x6f6   :  { %12702 = vmatpush3.bf16.msra.mxu0 %v14182_v35 }
 0x6f7   :  { %v4459_v12 = vpack.c.bf16 %v4414_v24, %v4411_v32  ;;  %12703 = vmatprep.subr.bf16.mxu0 %v14183_v45 }
 0x6f9   :  { %12687 = vmatprep.mubr.bf16.mxu0 %v4459_v12 }
 0x6fa   :  { %12704 = vmatpush3.bf16.msra.mxu0 %v14183_v45  ;;  %v4418_v25 = vpop.f32.mrb[204].mxu0 }
 0x6fb   :  { %v4419_v17 = vadd.f32 %v16848_v51, %v4418_v25  ;;  %v4420_v1 = vpop.f32.mrb[205].mxu0  ;;  %12705 = vmatprep.subr.bf16.mxu0 %v14184_v19  ;;  %v14186_v51 = vld [vmem:[%s18542_s4 + $0x1a8] sm:$0xff]  }
 0x6fc   :  { %v4421_v33 = vpop.f32.mrb[206].mxu0 }
 0x6fd   :  { %v4422_v10 = vadd.f32 %v16852_v23, %v4421_v33  ;;  %v4423_v11 = vpop.f32.mrb[207].mxu0  ;;  %v14187_v23 = vld [vmem:[%s18542_s4 + $0x1b0] sm:$0xff]  }
 0x6fe   :  { %12706 = vmatpush3.bf16.msra.mxu0 %v14184_v19  ;;  %v14215_v33 = vld [vmem:[%s18541_s3 + $0x780] ss:$16 sps:$4 sm:$0xff]  }
 0x6ff   :  { %v4460_v26 = vpack.c.bf16 %v4422_v10, %v4419_v17  ;;  %12707 = vmatprep.subr.bf16.mxu0 %v14185_v18  ;;  %v14216_v10 = vld [vmem:[%s18541_s3 + $0x7a4] ss:$16 sps:$4 sm:$0xff]   ;;  %v14221_v11 = vld [vmem:[%s18541_s3 + $0x7a0] ss:$16 sps:$4 sm:$0xff]  }
 0x701   :  { %12688 = vmatmul.mubr.bf16.gmra.mrb[116].mxu0 %v4460_v26  ;;  %v14222_v26 = vld [vmem:[%s18541_s3 + $0x7c4] ss:$16 sps:$4 sm:$0xff]  }
 0x702   :  { %12708 = vmatpush3.bf16.msra.mxu0 %v14185_v18  ;;  %v4426_v30 = vpop.f32.mrb[208].mxu0 }
 0x703   :  { %v4427_v6 = vadd.f32 %v16863_v27, %v4426_v30  ;;  %v4428_v41 = vpop.f32.mrb[209].mxu0  ;;  %12709 = vmatprep.subr.bf16.mxu0 %v14186_v51  ;;  %v14228_v30 = vld [vmem:[%s18541_s3 + $0x7e4] ss:$16 sps:$4 sm:$0x1f]  }
 0x704   :  { %v4429_v36 = vpop.f32.mrb[210].mxu0  ;;  %v17152_v41 = vpop.f32.mrb[96].mxu1 }
 0x705   :  { %v4430_v22 = vadd.f32 %v16867_v42, %v4429_v36  ;;  %v4431_v57 = vpop.f32.mrb[211].mxu0  ;;  %v5574_v36 = vpop.f32.mrb[97].mxu1 }
 0x706   :  { %12710 = vmatpush3.bf16.msra.mxu0 %v14186_v51  ;;  %v14227_v51 = vld [vmem:[%s18541_s3 + $0x7c0] ss:$16 sps:$4 sm:$0xff]  }
 0x707   :  { %v4461_v34 = vpack.c.bf16 %v4430_v22, %v4427_v6  ;;  %12711 = vmatprep.subr.bf16.mxu0 %v14187_v23  ;;  %v14233_v6 = vld [vmem:[%s18541_s3 + $0x7e0] ss:$16 sps:$4 sm:$0x1f]   ;;  %v17157_v22 = vpop.f32.mrb[98].mxu1 }
 0x708   :  { %v5577_v57 = vpop.f32.mrb[99].mxu1 }
 0x709   :  { %12691 = vmatprep.mubr.bf16.mxu0 %v4461_v34  ;;  %v14239_v34 = vld [vmem:[%s18542_s4 + $0x1e8] sm:$0xff]  }
 0x70a   :  { %12712 = vmatpush3.bf16.msra.mxu0 %v14187_v23  ;;  %v4434_v27 = vpop.f32.mrb[212].mxu0  ;;  %v14238_v23 = vld [vmem:[%s18542_s4 + $0x1e0] sm:$0xff]  }
 0x70b   :  { %v4435_v35 = vadd.f32 %v16878_v20, %v4434_v27  ;;  %v4436_v39 = vpop.f32.mrb[213].mxu0  ;;  %12713 = vmatprep.subr.bf16.mxu0 %v14188_v59  ;;  %v14240_v27 = vld [vmem:[%s18542_s4 + $0x1f0] sm:$0xff]  }
 0x70c   :  { %v4437_v5 = vpop.f32.mrb[214].mxu0 }
 0x70d   :  { %v4438_v55 = vadd.f32 %v16882_v43, %v4437_v5  ;;  %v4439_v32 = vpop.f32.mrb[215].mxu0 }
 0x70e   :  { %12714 = vmatpush3.bf16.msra.mxu0 %v14188_v59  ;;  %v17162_v59 = vpop.f32.mrb[100].mxu1 }
 0x70f   :  { %v4462_v42 = vpack.c.bf16 %v4438_v55, %v4435_v35  ;;  %12032 = vmatprep.subr.bf16.mxu0 %v18678_v44  ;;  %v5582_v35 = vpop.f32.mrb[101].mxu1  ;;  %v14241_v55 = vld [vmem:[%s18542_s4 + $0x1f8] sm:$0xff]  }
 0x710   :  { %v17167_v39 = vpop.f32.mrb[102].mxu1 }
 0x711   :  { %12692 = vmatmul.mubr.bf16.gmra.mrb[120].mxu0 %v4462_v42  ;;  %v5585_v5 = vpop.f32.mrb[103].mxu1  ;;  %v18694_v42 = vmov 0  }
 0x712   :  { %v4442_v45 = vpop.f32.mrb[216].mxu0 }
 0x713   :  { %v4443_v28 = vadd.f32 %v16893_v48, %v4442_v45  ;;  %v4444_v24 = vpop.f32.mrb[217].mxu0  ;;  %v18679_v48 = vld [vmem:[#allocation2_spill] sm:$0xff] }
 0x714   :  { %v4445_v56 = vpop.f32.mrb[218].mxu0 }
 0x715   :  { %v4446_v12 = vadd.f32 %v16897_v0, %v4445_v56  ;;  %v4447_v19 = vpop.f32.mrb[219].mxu0  ;;  %v18680_v0 = vld [vmem:[#allocation11_spill] sm:$0xff] }
 0x717   :  { %v4463_v20 = vpack.c.bf16 %v4446_v12, %v4443_v28 }
 0x719   :  { %12695 = vmatprep.mubr.bf16.mxu0 %v4463_v20 }
 0x71a   :  { %v4450_v25 = vpop.f32.mrb[220].mxu0 }
 0x71b   :  { %v4451_v3 = vadd.f32 %v16908_v49, %v4450_v25  ;;  %v4452_v43 = vpop.f32.mrb[221].mxu0  ;;  %v18681_v49 = vld [vmem:[#allocation3_spill] sm:$0xff] }
 0x71c   :  { %v4453_v17 = vpop.f32.mrb[222].mxu0 }
 0x71d   :  { %v4454_v1 = vadd.f32 %v16912_v21, %v4453_v17  ;;  %v4455_v18 = vpop.f32.mrb[223].mxu0  ;;  %v18682_v21 = vld [vmem:[#allocation12_spill] sm:$0xff]  ;;  %v17172_v32 = vpop.f32.mrb[104].mxu1 }
 0x71e   :  { %v5590_v44 = vpop.f32.mrb[105].mxu1 }
 0x71f   :  { %v4464_v40 = vpack.c.bf16 %v4454_v1, %v4451_v3  ;;  %v17175_v45 = vpop.f32.mrb[106].mxu1 }
 0x720   :  { %v5593_v28 = vpop.f32.mrb[107].mxu1 }
 0x721   :  { %12696 = vmatmul.mubr.bf16.gmra.mrb[124].mxu0 %v4464_v40 }
 0x722   :  { %12715 = vmatprep.mubr.bf16.mxu0 %v5046_v60  ;;  %v18685_v60 = vld [vmem:[#allocation5_spill] sm:$0xff] }
 0x725   :  { %v17177_v24 = vpop.f32.mrb[108].mxu1 }
 0x726   :  { %v5598_v56 = vpop.f32.mrb[109].mxu1 }
 0x727   :  { %v17179_v12 = vpop.f32.mrb[110].mxu1  ;;  %v18695_v56 = vld [vmem:[#allocation18_spill] sm:$0xff] }
 0x728   :  { %v5601_v19 = vpop.f32.mrb[111].mxu1 }
 0x729   :  { %12716 = vmatmul.mubr.bf16.vlgmr.msra.gmra.mrb[112].mxu0 %v5047_v38  ;;  %v18688_v38 = vld [vmem:[#allocation15_spill] sm:$0xff] }
 0x72a   :  { %12033 = vmatpush3.bf16.msra.mxu0 %v18679_v48  ;;  %12719 = vmatprep.mubr.bf16.mxu0 %v5048_v13  ;;  %v18690_v13 = vld [vmem:[#allocation16_spill] sm:$0xff] }
 0x72b   :  { %12034 = vmatprep.subr.bf16.mxu0 %v18680_v0 }
 0x72d   :  { %v17181_v20 = vpop.f32.mrb[112].mxu1 }
 0x72e   :  { %12035 = vmatpush3.bf16.msra.mxu0 %v18681_v49  ;;  %v5606_v25 = vpop.f32.mrb[113].mxu1 }
 0x72f   :  { %12036 = vmatprep.subr.bf16.mxu0 %v18682_v21  ;;  %v17183_v3 = vpop.f32.mrb[114].mxu1 }
 0x730   :  { %v5609_v43 = vpop.f32.mrb[115].mxu1 }
 0x731   :  { %12720 = vmatmul.mubr.bf16.gmra.mrb[116].mxu0 %v5049_v37  ;;  %v14234_v37 = vld [vmem:[%s18542_s4 + $0x1c0] sm:$0xff]  }
 0x732   :  { %12037 = vmatpush3.bf16.msra.mxu0 %v18683_v62  ;;  %12723 = vmatprep.mubr.bf16.mxu0 %v5050_v4  ;;  %v14192_v4 = vld [vmem:[%s18541_s3 + $0x724] ss:$16 sps:$4 sm:$0xff]  }
 0x733   :  { %12038 = vmatprep.subr.bf16.mxu0 %v18684_v7 }
 0x735   :  { %v17185_v17 = vpop.f32.mrb[116].mxu1 }
 0x736   :  { %12039 = vmatpush3.bf16.msra.mxu0 %v18685_v60  ;;  %v5614_v1 = vpop.f32.mrb[117].mxu1 }
 0x737   :  { %12040 = vmatprep.subr.bf16.mxu0 %v18686_v2  ;;  %v17187_v18 = vpop.f32.mrb[118].mxu1 }
 0x738   :  { %v5617_v40 = vpop.f32.mrb[119].mxu1 }
 0x739   :  { %12724 = vmatmul.mubr.bf16.gmra.mrb[120].mxu0 %v5051_v15  ;;  %v14197_v15 = vld [vmem:[%s18541_s3 + $0x720] ss:$16 sps:$4 sm:$0xff]  }
 0x73a   :  { %12041 = vmatpush3.bf16.msra.mxu0 %v18687_v54  ;;  %12727 = vmatprep.mubr.bf16.mxu0 %v5052_v50  ;;  %v14203_v50 = vld [vmem:[%s18541_s3 + $0x740] ss:$16 sps:$4 sm:$0xff]  }
 0x73b   :  { %12042 = vmatprep.subr.bf16.mxu0 %v18688_v38  ;;  %v14242_v54 = vld [vmem:[%s18541_s3 + $0x800] ss:$16 sps:$4 sm:$0xff]   ;;  %v14244_v38 = vld [vmem:[%s18541_s3 + $0x804] ss:$16 sps:$4 sm:$0xff]  }
 0x73c   :  { %6062 = vmatprep.mubr.bf16.mxu1 %v14244_v38  ;;  %v18698_v38 = vld [vmem:[#allocation21_spill] sm:$0xff] }
 0x73d   :  { %6063 = vmatmul.mubr.bf16.vlgmr.msra.gmra.mrb[128].mxu1 %v14242_v54 }
 0x73e   :  { %12043 = vmatpush3.bf16.msra.mxu0 %v18689_v61  ;;  %v14248_v61 = vld [vmem:[%s18541_s3 + $0x820] ss:$16 sps:$4 sm:$0xff]  }
 0x73f   :  { %12044 = vmatprep.subr.bf16.mxu0 %v18690_v13  ;;  %v14254_v13 = vld [vmem:[%s18541_s3 + $0x840] ss:$16 sps:$4 sm:$0xff]  }
 0x741   :  { %12728 = vmatmul.mubr.bf16.gmra.mrb[124].mxu0 %v5053_v9  ;;  %v14210_v9 = vld [vmem:[%s18541_s3 + $0x784] ss:$16 sps:$4 sm:$0xff]  }
 0x742   :  { %12045 = vmatpush3.bf16.msra.mxu0 %v18691_v29  ;;  %5473 = vmatprep.mubr.bf16.mxu0 %v14191_v53  ;;  %v14250_v53 = vld [vmem:[%s18541_s3 + $0x824] ss:$16 sps:$4 sm:$0xff]  }
 0x743   :  { %12046 = vmatprep.subr.bf16.mxu0 %v18692_v16  ;;  %6070 = vmatprep.mubr.bf16.mxu1 %v14250_v53  ;;  %v14256_v29 = vld [vmem:[%s18541_s3 + $0x844] ss:$16 sps:$4 sm:$0xff]   ;;  %v14260_v16 = vld [vmem:[%s18541_s3 + $0x860] ss:$16 sps:$4 sm:$0xff]  }
 0x745   :  { %6071 = vmatmul.mubr.bf16.gmra.mrb[132].mxu1 %v14248_v61 }
 0x746   :  { %12047 = vmatpush3.bf16.msra.mxu0 %v18693_v58  ;;  %6078 = vmatprep.mubr.bf16.mxu1 %v14256_v29  ;;  %v14268_v58 = vld [vmem:[%s18541_s3 + $0x884] ss:$16 sps:$4 sm:$0xff]  }
 0x747   :  { %12731 = vmatprep.subr.bf16.mxu0 %v14234_v37 }
 0x749   :  { %5474 = vmatmul.mubr.bf16.vlgmr.msra.gmra.mrb[224].mxu0 %v14189_v46  ;;  %v14266_v46 = vld [vmem:[%s18541_s3 + $0x880] ss:$16 sps:$4 sm:$0xff]  }
 0x74a   :  { %5481 = vmatprep.mubr.bf16.mxu0 %v14192_v4  ;;  %12732 = vmatpush3.bf16.msra.mxu0 %v14234_v37  ;;  %v14262_v37 = vld [vmem:[%s18541_s3 + $0x864] ss:$16 sps:$4 sm:$0xff]   ;;  %v14272_v4 = vld [vmem:[%s18541_s3 + $0x8a0] ss:$16 sps:$4 sm:$0xff]  }
 0x74b   :  { %12733 = vmatprep.subr.bf16.mxu0 %v14235_v47 }
 0x74d   :  { %6079 = vmatmul.mubr.bf16.gmra.mrb[136].mxu1 %v14254_v13 }
 0x74e   :  { %12734 = vmatpush3.bf16.msra.mxu0 %v14235_v47  ;;  %6086 = vmatprep.mubr.bf16.mxu1 %v14262_v37  ;;  %v14274_v47 = vld [vmem:[%s18541_s3 + $0x8a4] ss:$16 sps:$4 sm:$0xff]  }
 0x74f   :  { %12735 = vmatprep.subr.bf16.mxu0 %v14236_v31  ;;  %v18699_v37 = vld [vmem:[#allocation22_spill] sm:$0xff] }
 0x751   :  { %5482 = vmatmul.mubr.bf16.gmra.mrb[228].mxu0 %v14197_v15  ;;  %v14280_v15 = vld [vmem:[%s18541_s3 + $0x8c4] ss:$16 sps:$4 sm:$0xff]  }
 0x752   :  { %5489 = vmatprep.mubr.bf16.mxu0 %v14198_v14  ;;  %12736 = vmatpush3.bf16.msra.mxu0 %v14236_v31  ;;  %v14278_v31 = vld [vmem:[%s18541_s3 + $0x8c0] ss:$16 sps:$4 sm:$0xff]  }
 0x753   :  { %12737 = vmatprep.subr.bf16.mxu0 %v14237_v8  ;;  %v14284_v14 = vld [vmem:[%s18541_s3 + $0x8e0] ss:$16 sps:$4 sm:$0x1f]  }
 0x755   :  { %6087 = vmatmul.mubr.bf16.gmra.mrb[140].mxu1 %v14260_v16 }
 0x756   :  { %12738 = vmatpush3.bf16.msra.mxu0 %v14237_v8  ;;  %6094 = vmatprep.mubr.bf16.mxu1 %v14268_v58  ;;  %v14286_v8 = vld [vmem:[%s18541_s3 + $0x8e4] ss:$16 sps:$4 sm:$0x1f]  }
 0x757   :  { %12739 = vmatprep.subr.bf16.mxu0 %v14238_v23 }
 0x759   :  { %5490 = vmatmul.mubr.bf16.gmra.mrb[232].mxu0 %v14203_v50 }
 0x75a   :  { %5497 = vmatprep.mubr.bf16.mxu0 %v14204_v52  ;;  %12740 = vmatpush3.bf16.msra.mxu0 %v14238_v23 }
 0x75b   :  { %12741 = vmatprep.subr.bf16.mxu0 %v14239_v34 }
 0x75d   :  { %6095 = vmatmul.mubr.bf16.gmra.mrb[144].mxu1 %v14266_v46 }
 0x75e   :  { %12742 = vmatpush3.bf16.msra.mxu0 %v14239_v34  ;;  %6102 = vmatprep.mubr.bf16.mxu1 %v14274_v47 }
 0x75f   :  { %12743 = vmatprep.subr.bf16.mxu0 %v14240_v27 }
 0x761   :  { %5498 = vmatmul.mubr.bf16.gmra.mrb[236].mxu0 %v14209_v63 }
 0x762   :  { %5505 = vmatprep.mubr.bf16.mxu0 %v14210_v9  ;;  %12744 = vmatpush3.bf16.msra.mxu0 %v14240_v27 }
 0x763   :  { %12745 = vmatprep.subr.bf16.mxu0 %v14241_v55 }
 0x765   :  { %6103 = vmatmul.mubr.bf16.gmra.mrb[148].mxu1 %v14272_v4  ;;  %v18700_v4 = vld [vmem:[#allocation23_spill] sm:$0xff] }
 0x766   :  { %12746 = vmatpush3.bf16.msra.mxu0 %v14241_v55  ;;  %6110 = vmatprep.mubr.bf16.mxu1 %v14280_v15 }
 0x767   :  { %6127 = vmatprep.subr.bf16.mxu0 %v18694_v42 }
 0x769   :  { %5506 = vmatmul.mubr.bf16.gmra.mrb[240].mxu0 %v14215_v33 }
 0x76a   :  { %5513 = vmatprep.mubr.bf16.mxu0 %v14216_v10 }
 0x76d   :  { %6111 = vmatmul.mubr.bf16.gmra.mrb[152].mxu1 %v14278_v31 }
 0x76e   :  { %6118 = vmatprep.mubr.bf16.mxu1 %v14286_v8 }
 0x771   :  { %5514 = vmatmul.mubr.bf16.gmra.mrb[244].mxu0 %v14221_v11 }
 0x772   :  { %5521 = vmatprep.mubr.bf16.mxu0 %v14222_v26 }
 0x775   :  { %6119 = vmatmul.mubr.bf16.gmra.mrb[156].mxu1 %v14284_v14 }
 0x779   :  { %5522 = vmatmul.mubr.bf16.gmra.mrb[248].mxu0 %v14227_v51 }
 0x77a   :  { %5529 = vmatprep.mubr.bf16.mxu0 %v14228_v30 }
 0x781   :  { %5530 = vmatmul.mubr.bf16.gmra.mrb[252].mxu0 %v14233_v6 }
 0x7bf   :  { %v17189_v48 = vpop.f32.mrb[120].mxu1 }
 0x7c0   :  { %v5622_v0 = vpop.f32.mrb[121].mxu1 }
 0x7c1   :  { %v17191_v49 = vpop.f32.mrb[122].mxu1 }
 0x7c2   :  { %v5625_v21 = vpop.f32.mrb[123].mxu1 }
 0x7c7   :  { %v17193_v62 = vpop.f32.mrb[124].mxu1 }
 0x7c8   :  { %v5630_v7 = vpop.f32.mrb[125].mxu1 }
 0x7c9   :  { %v17195_v60 = vpop.f32.mrb[126].mxu1  ;;  %v18697_v7 = vld [vmem:[#allocation20_spill] sm:$0xff] }
 0x7ca   :  { %v5633_v2 = vpop.f32.mrb[127].mxu1 }
 0x81c   :  { %v12048_v50 = vpop.f32.mrb[224].mxu0 }
 0x81d   :  { %v12049_v52 = vpop.f32.mrb[225].mxu0 }
 0x81e   :  { %v12050_v63 = vadd.f32 %v12049_v52, %v12048_v50  ;;  %v12051_v9 = vpop.f32.mrb[226].mxu0  ;;  %v18701_v50 = vld [vmem:[#allocation24_spill] sm:$0xff] }
 0x81f   :  { %v12052_v33 = vpop.f32.mrb[227].mxu0 }
 0x820   :  { %v5573_v10 = vadd.f32 %v12050_v63, %v17152_v41  ;;  %v12053_v11 = vadd.f32 %v12052_v33, %v12051_v9  ;;  %v18702_v9 = vld [vmem:[#allocation25_spill] sm:$0xff] }
 0x822   :  { %v5576_v26 = vadd.f32 %v12053_v11, %v17157_v22 }
 0x824   :  { %v12054_v51 = vpop.f32.mrb[228].mxu0  ;;  %v5635_v30 = vpack.c.bf16 %v5576_v26, %v5573_v10 }
 0x825   :  { %v12055_v6 = vpop.f32.mrb[229].mxu0 }
 0x826   :  { %v12056_v23 = vadd.f32 %v12055_v6, %v12054_v51  ;;  %v12057_v36 = vpop.f32.mrb[230].mxu0  ;;  %12747 = vmatprep.mubr.bf16.mxu0 %v5635_v30  ;;  %v18703_v30 = vld [vmem:[#allocation26_spill] sm:$0xff] }
 0x827   :  { %v12058_v57 = vpop.f32.mrb[231].mxu0 }
 0x828   :  { %v5581_v34 = vadd.f32 %v12056_v23, %v17162_v59  ;;  %v12059_v27 = vadd.f32 %v12058_v57, %v12057_v36  ;;  %v18696_v59 = vld [vmem:[#allocation19_spill] sm:$0xff] }
 0x829   :  { %v18704_v36 = vld [vmem:[#allocation27_spill] sm:$0xff] }
 0x82a   :  { %v5584_v35 = vadd.f32 %v12059_v27, %v17167_v39 }
 0x82c   :  { %v5636_v5 = vpack.c.bf16 %v5584_v35, %v5581_v34  ;;  %v12060_v55 = vpop.f32.mrb[232].mxu0 }
 0x82d   :  { %v12061_v44 = vpop.f32.mrb[233].mxu0 }
 0x82e   :  { %v12062_v28 = vadd.f32 %v12061_v44, %v12060_v55  ;;  %v12063_v41 = vpop.f32.mrb[234].mxu0  ;;  %12748 = vmatmul.mubr.bf16.vlgmr.msra.gmra.mrb[112].mxu0 %v5636_v5  ;;  %v18705_v55 = vld [vmem:[#allocation28_spill] sm:$0xff] }
 0x82f   :  { %6128 = vmatpush1.bf16.msra.mxu0 %v18695_v56  ;;  %v12064_v22 = vpop.f32.mrb[235].mxu0  ;;  %v18706_v56 = vld [vmem:[#allocation30_spill] sm:$0xff] }
 0x830   :  { %v5589_v19 = vadd.f32 %v12062_v28, %v17172_v32  ;;  %v12065_v25 = vadd.f32 %v12064_v22, %v12063_v41  ;;  %6129 = vmatprep.subr.bf16.mxu0 %v18694_v42  ;;  %v14247_v22 = vld [vmem:[%s18541_s3 + $0x80c] ss:$16 sps:$4 sm:$0xff]  }
 0x832   :  { %v5592_v43 = vadd.f32 %v12065_v25, %v17175_v45  ;;  %v14292_v25 = vld [vmem:[%s18542_s4 + $0x210] sm:$0xff]  }
 0x833   :  { %6130 = vmatpush1.bf16.msra.mxu0 %v18696_v59  ;;  %v14259_v59 = vld [vmem:[%s18541_s3 + $0x84c] ss:$16 sps:$4 sm:$0xff]  }
 0x834   :  { %v12066_v1 = vpop.f32.mrb[236].mxu0  ;;  %6131 = vmatprep.subr.bf16.mxu0 %v18694_v42  ;;  %v5637_v39 = vpack.c.bf16 %v5592_v43, %v5589_v19  ;;  %v14251_v43 = vld [vmem:[%s18541_s3 + $0x828] ss:$16 sps:$4 sm:$0xff]  }
 0x835   :  { %v12067_v40 = vpop.f32.mrb[237].mxu0 }
 0x836   :  { %v12068_v0 = vadd.f32 %v12067_v40, %v12066_v1  ;;  %v12069_v21 = vpop.f32.mrb[238].mxu0  ;;  %12751 = vmatprep.mubr.bf16.mxu0 %v5637_v39  ;;  %v14293_v1 = vld [vmem:[%s18542_s4 + $0x218] sm:$0xff]   ;;  %v14294_v39 = vld [vmem:[%s18542_s4 + $0x220] sm:$0xff]  }
 0x837   :  { %6132 = vmatpush1.bf16.msra.mxu0 %v18697_v7  ;;  %v12070_v2 = vpop.f32.mrb[239].mxu0  ;;  %v14257_v40 = vld [vmem:[%s18541_s3 + $0x848] ss:$16 sps:$4 sm:$0xff]   ;;  %v14271_v7 = vld [vmem:[%s18541_s3 + $0x88c] ss:$16 sps:$4 sm:$0xff]  }
 0x838   :  { %v5597_v32 = vadd.f32 %v12068_v0, %v17177_v24  ;;  %v12071_v54 = vadd.f32 %v12070_v2, %v12069_v21  ;;  %6133 = vmatprep.subr.bf16.mxu0 %v18694_v42  ;;  %v14265_v0 = vld [vmem:[%s18541_s3 + $0x86c] ss:$16 sps:$4 sm:$0xff]   ;;  %v14263_v21 = vld [vmem:[%s18541_s3 + $0x868] ss:$16 sps:$4 sm:$0xff]  }
 0x839   :  { %v14269_v2 = vld [vmem:[%s18541_s3 + $0x888] ss:$16 sps:$4 sm:$0xff]  }
 0x83a   :  { %v5600_v45 = vadd.f32 %v12071_v54, %v17179_v12  ;;  %v14275_v54 = vld [vmem:[%s18541_s3 + $0x8a8] ss:$16 sps:$4 sm:$0xff]  }
 0x83b   :  { %6134 = vmatpush1.bf16.msra.mxu0 %v18698_v38  ;;  %v14281_v38 = vld [vmem:[%s18541_s3 + $0x8c8] ss:$16 sps:$4 sm:$0xff]  }
 0x83c   :  { %v12072_v61 = vpop.f32.mrb[240].mxu0  ;;  %6135 = vmatprep.subr.bf16.mxu0 %v18694_v42  ;;  %v5638_v53 = vpack.c.bf16 %v5600_v45, %v5597_v32  ;;  %v14277_v32 = vld [vmem:[%s18541_s3 + $0x8ac] ss:$16 sps:$4 sm:$0xff]  }
 0x83d   :  { %v12073_v13 = vpop.f32.mrb[241].mxu0  ;;  %v14283_v45 = vld [vmem:[%s18541_s3 + $0x8cc] ss:$16 sps:$4 sm:$0xff]  }
 0x83e   :  { %v12074_v29 = vadd.f32 %v12073_v13, %v12072_v61  ;;  %v12075_v16 = vpop.f32.mrb[242].mxu0  ;;  %12752 = vmatmul.mubr.bf16.gmra.mrb[116].mxu0 %v5638_v53  ;;  %v14289_v61 = vld [vmem:[%s18541_s3 + $0x8ec] ss:$16 sps:$4 sm:$0x1f]   ;;  %v12128_v13 = vpop.f32.mrb[128].mxu1 }
 0x83f   :  { %6136 = vmatpush1.bf16.msra.mxu0 %v18699_v37  ;;  %v12076_v46 = vpop.f32.mrb[243].mxu0  ;;  %v14287_v53 = vld [vmem:[%s18541_s3 + $0x8e8] ss:$16 sps:$4 sm:$0x1f]  }
 0x840   :  { %v5605_v24 = vadd.f32 %v12074_v29, %v17181_v20  ;;  %v12077_v58 = vadd.f32 %v12076_v46, %v12075_v16  ;;  %6137 = vmatprep.subr.bf16.mxu0 %v18694_v42  ;;  %v12129_v29 = vpop.f32.mrb[129].mxu1 }
 0x841   :  { %v12130_v16 = vadd.f32 %v12129_v29, %v12128_v13  ;;  %v12131_v37 = vpop.f32.mrb[130].mxu1 }
 0x842   :  { %v5608_v12 = vadd.f32 %v12077_v58, %v17183_v3  ;;  %v12132_v46 = vpop.f32.mrb[131].mxu1  ;;  %v14295_v58 = vld [vmem:[%s18542_s4 + $0x228] sm:$0xff]  }
 0x843   :  { %6138 = vmatpush1.bf16.msra.mxu0 %v18700_v4 }
 0x844   :  { %v12078_v47 = vpop.f32.mrb[244].mxu0  ;;  %6139 = vmatprep.subr.bf16.mxu0 %v18694_v42  ;;  %v5639_v31 = vpack.c.bf16 %v5608_v12, %v5605_v24  ;;  %v12133_v24 = vadd.f32 %v12132_v46, %v12131_v37  ;;  %v12134_v12 = vpop.f32.mrb[132].mxu1 }
 0x845   :  { %v12079_v15 = vpop.f32.mrb[245].mxu0  ;;  %v12135_v4 = vpop.f32.mrb[133].mxu1 }
 0x846   :  { %v12080_v14 = vadd.f32 %v12079_v15, %v12078_v47  ;;  %v12081_v8 = vpop.f32.mrb[246].mxu0  ;;  %12755 = vmatprep.mubr.bf16.mxu0 %v5639_v31  ;;  %v12136_v47 = vadd.f32 %v12135_v4, %v12134_v12  ;;  %v12137_v31 = vpop.f32.mrb[134].mxu1  ;;  %v14296_v15 = vld [vmem:[%s18542_s4 + $0x230] sm:$0xff]  }
 0x847   :  { %6140 = vmatpush1.bf16.msra.mxu0 %v18701_v50  ;;  %v12082_v52 = vpop.f32.mrb[247].mxu0  ;;  %v14297_v50 = vld [vmem:[%s18542_s4 + $0x238] sm:$0xff]  }
 0x848   :  { %v5613_v20 = vadd.f32 %v12080_v14, %v17185_v17  ;;  %v12083_v63 = vadd.f32 %v12082_v52, %v12081_v8  ;;  %6141 = vmatprep.subr.bf16.mxu0 %v18694_v42  ;;  %v12138_v14 = vpop.f32.mrb[135].mxu1 }
 0x849   :  { %v12139_v8 = vadd.f32 %v12138_v14, %v12137_v31  ;;  %v12140_v52 = vpop.f32.mrb[136].mxu1 }
 0x84a   :  { %v5616_v3 = vadd.f32 %v12083_v63, %v17187_v18 }
 0x84b   :  { %6142 = vmatpush1.bf16.msra.mxu0 %v18702_v9 }
 0x84c   :  { %v12084_v33 = vpop.f32.mrb[248].mxu0  ;;  %6143 = vmatprep.subr.bf16.mxu0 %v18694_v42  ;;  %v5640_v10 = vpack.c.bf16 %v5616_v3, %v5613_v20  ;;  %v12141_v20 = vpop.f32.mrb[137].mxu1 }
 0x84d   :  { %v12085_v11 = vpop.f32.mrb[249].mxu0  ;;  %v12142_v63 = vadd.f32 %v12141_v20, %v12140_v52  ;;  %v12143_v3 = vpop.f32.mrb[138].mxu1 }
 0x84e   :  { %v12086_v26 = vadd.f32 %v12085_v11, %v12084_v33  ;;  %v12087_v51 = vpop.f32.mrb[250].mxu0  ;;  %12756 = vmatmul.mubr.bf16.gmra.mrb[120].mxu0 %v5640_v10  ;;  %v12144_v9 = vpop.f32.mrb[139].mxu1 }
 0x84f   :  { %6144 = vmatpush1.bf16.msra.mxu0 %v18703_v30  ;;  %v12088_v6 = vpop.f32.mrb[251].mxu0  ;;  %v12145_v33 = vadd.f32 %v12144_v9, %v12143_v3  ;;  %v12146_v10 = vpop.f32.mrb[140].mxu1 }
 0x850   :  { %v5621_v17 = vadd.f32 %v12086_v26, %v17189_v48  ;;  %v12089_v23 = vadd.f32 %v12088_v6, %v12087_v51  ;;  %6145 = vmatprep.subr.bf16.mxu0 %v18694_v42  ;;  %v12147_v11 = vpop.f32.mrb[141].mxu1 }
 0x851   :  { %v12148_v26 = vadd.f32 %v12147_v11, %v12146_v10  ;;  %v12149_v51 = vpop.f32.mrb[142].mxu1 }
 0x852   :  { %v5624_v18 = vadd.f32 %v12089_v23, %v17191_v49  ;;  %v14290_v49 = vld [vmem:[%s18542_s4 + $0x200] sm:$0xff]   ;;  %v12150_v30 = vpop.f32.mrb[143].mxu1 }
 0x853   :  { %6146 = vmatpush1.bf16.msra.mxu0 %v18704_v36  ;;  %v12151_v6 = vadd.f32 %v12150_v30, %v12149_v51 }
 0x854   :  { %v12090_v57 = vpop.f32.mrb[252].mxu0  ;;  %6147 = vmatprep.subr.bf16.mxu0 %v18694_v42  ;;  %v5641_v34 = vpack.c.bf16 %v5624_v18, %v5621_v17  ;;  %v12152_v17 = vpop.f32.mrb[144].mxu1 }
 0x855   :  { %v12091_v27 = vpop.f32.mrb[253].mxu0  ;;  %v12153_v23 = vpop.f32.mrb[145].mxu1 }
 0x856   :  { %v12092_v35 = vadd.f32 %v12091_v27, %v12090_v57  ;;  %v12093_v5 = vpop.f32.mrb[254].mxu0  ;;  %12759 = vmatprep.mubr.bf16.mxu0 %v5641_v34  ;;  %v12154_v18 = vadd.f32 %v12153_v23, %v12152_v17  ;;  %v12155_v36 = vpop.f32.mrb[146].mxu1 }
 0x857   :  { %6148 = vmatpush1.bf16.msra.mxu0 %v18705_v55  ;;  %v12094_v44 = vpop.f32.mrb[255].mxu0  ;;  %v12156_v57 = vpop.f32.mrb[147].mxu1 }
 0x858   :  { %v5629_v48 = vadd.f32 %v12092_v35, %v17193_v62  ;;  %v12095_v28 = vadd.f32 %v12094_v44, %v12093_v5  ;;  %6149 = vmatprep.subr.bf16.mxu0 %v18694_v42  ;;  %v14245_v42 = vld [vmem:[%s18541_s3 + $0x808] ss:$16 sps:$4 sm:$0xff]   ;;  %v14253_v62 = vld [vmem:[%s18541_s3 + $0x82c] ss:$16 sps:$4 sm:$0xff]   ;;  %v12157_v34 = vadd.f32 %v12156_v57, %v12155_v36  ;;  %v12158_v27 = vpop.f32.mrb[148].mxu1 }
 0x859   :  { %v12159_v35 = vpop.f32.mrb[149].mxu1 }
 0x85a   :  { %v5632_v41 = vadd.f32 %v12095_v28, %v17195_v60  ;;  %v14291_v60 = vld [vmem:[%s18542_s4 + $0x208] sm:$0xff]   ;;  %v12160_v5 = vadd.f32 %v12159_v35, %v12158_v27  ;;  %v12161_v55 = vpop.f32.mrb[150].mxu1 }
 0x85b   :  { %6150 = vmatpush1.bf16.msra.mxu0 %v18706_v56  ;;  %v12162_v44 = vpop.f32.mrb[151].mxu1 }
 0x85c   :  { %v5642_v19 = vpack.c.bf16 %v5632_v41, %v5629_v48  ;;  %12763 = vmatprep.subr.bf16.mxu0 %v14290_v49  ;;  %v12163_v48 = vadd.f32 %v12162_v44, %v12161_v55  ;;  %v12164_v28 = vpop.f32.mrb[152].mxu1 }
 0x85e   :  { %12760 = vmatmul.mubr.bf16.gmra.mrb[124].mxu0 %v5642_v19 }
 0x85f   :  { %10888 = vmatprep.mubr.msk.bf16.mxu0 %vm1319_vm15, %v14247_v22 }
 0x866   :  { %6160 = vmatmul.mubr.bf16.vlgmr.msra.gmra.mrb[0].mxu0 %v14245_v42 }
 0x867   :  { %10889 = vmatprep.mubr.msk.bf16.mxu0 %vm1319_vm15, %v14253_v62  ;;  %12764 = vmatpush3.bf16.msra.mxu0 %v14290_v49  ;;  %v12165_v49 = vpop.f32.mrb[153].mxu1 }
 0x868   :  { %12765 = vmatprep.subr.bf16.mxu0 %v14291_v60  ;;  %v12166_v41 = vadd.f32 %v12165_v49, %v12164_v28  ;;  %v12167_v56 = vpop.f32.mrb[154].mxu1 }
 0x869   :  { %v12168_v22 = vpop.f32.mrb[155].mxu1 }
 0x86a   :  { %v12169_v19 = vadd.f32 %v12168_v22, %v12167_v56  ;;  %v12170_v42 = vpop.f32.mrb[156].mxu1 }
 0x86b   :  { %12766 = vmatpush3.bf16.msra.mxu0 %v14291_v60  ;;  %v12171_v62 = vpop.f32.mrb[157].mxu1 }
 0x86c   :  { %12767 = vmatprep.subr.bf16.mxu0 %v14292_v25  ;;  %v12172_v60 = vadd.f32 %v12171_v62, %v12170_v42 }
 0x86e   :  { %6168 = vmatmul.mubr.bf16.gmra.mrb[4].mxu0 %v14251_v43 }
 0x86f   :  { %10890 = vmatprep.mubr.msk.bf16.mxu0 %vm1319_vm15, %v14259_v59  ;;  %12768 = vmatpush3.bf16.msra.mxu0 %v14292_v25  ;;  %v12173_v25 = vpop.f32.mrb[158].mxu1 }
 0x870   :  { %12769 = vmatprep.subr.bf16.mxu0 %v14293_v1  ;;  %v12174_v43 = vpop.f32.mrb[159].mxu1 }
 0x871   :  { %v12175_v59 = vadd.f32 %v12174_v43, %v12173_v25 }
 0x873   :  { %12770 = vmatpush3.bf16.msra.mxu0 %v14293_v1 }
 0x874   :  { %12771 = vmatprep.subr.bf16.mxu0 %v14294_v39 }
 0x876   :  { %6176 = vmatmul.mubr.bf16.gmra.mrb[8].mxu0 %v14257_v40 }
 0x877   :  { %10891 = vmatprep.mubr.msk.bf16.mxu0 %vm1319_vm15, %v14265_v0  ;;  %12772 = vmatpush3.bf16.msra.mxu0 %v14294_v39 }
 0x878   :  { %12773 = vmatprep.subr.bf16.mxu0 %v14295_v58 }
 0x87b   :  { %12774 = vmatpush3.bf16.msra.mxu0 %v14295_v58 }
 0x87c   :  { %12775 = vmatprep.subr.bf16.mxu0 %v14296_v15 }
 0x87e   :  { %6184 = vmatmul.mubr.bf16.gmra.mrb[12].mxu0 %v14263_v21 }
 0x87f   :  { %10892 = vmatprep.mubr.msk.bf16.mxu0 %vm1319_vm15, %v14271_v7  ;;  %12776 = vmatpush3.bf16.msra.mxu0 %v14296_v15 }
 0x880   :  { %12777 = vmatprep.subr.bf16.mxu0 %v14297_v50 }
 0x883   :  { %12778 = vmatpush3.bf16.msra.mxu0 %v14297_v50 }
 0x886   :  { %6192 = vmatmul.mubr.bf16.gmra.mrb[16].mxu0 %v14269_v2 }
 0x887   :  { %10893 = vmatprep.mubr.msk.bf16.mxu0 %vm1319_vm15, %v14277_v32 }
 0x88e   :  { %6200 = vmatmul.mubr.bf16.gmra.mrb[20].mxu0 %v14275_v54 }
 0x88f   :  { %10894 = vmatprep.mubr.msk.bf16.mxu0 %vm1319_vm15, %v14283_v45 }
 0x896   :  { %6208 = vmatmul.mubr.bf16.gmra.mrb[24].mxu0 %v14281_v38 }
 0x897   :  { %10895 = vmatprep.mubr.msk.bf16.mxu0 %vm1319_vm15, %v14289_v61 }
 0x89e   :  { %6216 = vmatmul.mubr.bf16.gmra.mrb[28].mxu0 %v14287_v53 }
 0x939   :  { %v6161_v1 = vpop.f32.mrb[0].mxu0 }
 0x93a   :  { %v6162_v39 = vadd.f32 %v12130_v16, %v6161_v1  ;;  %v6163_v40 = vpop.f32.mrb[1].mxu0 }
 0x93b   :  { %v6164_v0 = vpop.f32.mrb[2].mxu0 }
 0x93c   :  { %v6165_v21 = vadd.f32 %v12133_v24, %v6164_v0  ;;  %v6166_v7 = vpop.f32.mrb[3].mxu0 }
 0x93e   :  { %v6224_v2 = vpack.c.bf16 %v6165_v21, %v6162_v39 }
 0x940   :  { %12779 = vmatprep.mubr.bf16.mxu0 %v6224_v2 }
 0x941   :  { %v6169_v32 = vpop.f32.mrb[4].mxu0 }
 0x942   :  { %v6170_v54 = vadd.f32 %v12136_v47, %v6169_v32  ;;  %v6171_v45 = vpop.f32.mrb[5].mxu0 }
 0x943   :  { %v6172_v38 = vpop.f32.mrb[6].mxu0 }
 0x944   :  { %v6173_v61 = vadd.f32 %v12139_v8, %v6172_v38  ;;  %v6174_v53 = vpop.f32.mrb[7].mxu0 }
 0x946   :  { %v6225_v13 = vpack.c.bf16 %v6173_v61, %v6170_v54 }
 0x948   :  { %12780 = vmatmul.mubr.bf16.vlgmr.msra.gmra.mrb[112].mxu0 %v6225_v13 }
 0x949   :  { %v6177_v29 = vpop.f32.mrb[8].mxu0 }
 0x94a   :  { %v6178_v37 = vadd.f32 %v12142_v63, %v6177_v29  ;;  %v6179_v46 = vpop.f32.mrb[9].mxu0 }
 0x94b   :  { %v6180_v58 = vpop.f32.mrb[10].mxu0 }
 0x94c   :  { %v6181_v12 = vadd.f32 %v12145_v33, %v6180_v58  ;;  %v6182_v16 = vpop.f32.mrb[11].mxu0 }
 0x94e   :  { %v6226_v4 = vpack.c.bf16 %v6181_v12, %v6178_v37 }
 0x950   :  { %12783 = vmatprep.mubr.bf16.mxu0 %v6226_v4 }
 0x951   :  { %v6185_v24 = vpop.f32.mrb[12].mxu0 }
 0x952   :  { %v6186_v31 = vadd.f32 %v12148_v26, %v6185_v24  ;;  %v6187_v15 = vpop.f32.mrb[13].mxu0 }
 0x953   :  { %v6188_v14 = vpop.f32.mrb[14].mxu0 }
 0x954   :  { %v6189_v50 = vadd.f32 %v12151_v6, %v6188_v14  ;;  %v6190_v47 = vpop.f32.mrb[15].mxu0 }
 0x956   :  { %v6227_v52 = vpack.c.bf16 %v6189_v50, %v6186_v31 }
 0x958   :  { %12784 = vmatmul.mubr.bf16.gmra.mrb[116].mxu0 %v6227_v52 }
 0x959   :  { %v6193_v8 = vpop.f32.mrb[16].mxu0 }
 0x95a   :  { %v6194_v20 = vadd.f32 %v12154_v18, %v6193_v8  ;;  %v6195_v3 = vpop.f32.mrb[17].mxu0 }
 0x95b   :  { %v6196_v9 = vpop.f32.mrb[18].mxu0 }
 0x95c   :  { %v6197_v10 = vadd.f32 %v12157_v34, %v6196_v9  ;;  %v6198_v63 = vpop.f32.mrb[19].mxu0 }
 0x95e   :  { %v6228_v11 = vpack.c.bf16 %v6197_v10, %v6194_v20 }
 0x960   :  { %12787 = vmatprep.mubr.bf16.mxu0 %v6228_v11 }
 0x961   :  { %v6201_v33 = vpop.f32.mrb[20].mxu0 }
 0x962   :  { %v6202_v51 = vadd.f32 %v12160_v5, %v6201_v33  ;;  %v6203_v30 = vpop.f32.mrb[21].mxu0 }
 0x963   :  { %v6204_v17 = vpop.f32.mrb[22].mxu0 }
 0x964   :  { %v6205_v23 = vadd.f32 %v12163_v48, %v6204_v17  ;;  %v6206_v26 = vpop.f32.mrb[23].mxu0  ;;  %v14635_v48 = vmov 0.0  }
 0x965   :  { %12795 = vmatprep.subr.bf16.mxu1 %v14635_v48  ;;  %12851 = vmatprep.subr.bf16.mxu0 %v14635_v48 }
 0x966   :  { %v6229_v36 = vpack.c.bf16 %v6205_v23, %v6202_v51  ;;  %12811 = vmatprep.mubr.msk.bf16.mxu1 %vm14636_vm12, %v14635_v48 }
 0x968   :  { %12788 = vmatmul.mubr.bf16.gmra.mrb[120].mxu0 %v6229_v36 }
 0x969   :  { %v6209_v6 = vpop.f32.mrb[24].mxu0 }
 0x96a   :  { %v6210_v57 = vadd.f32 %v12166_v41, %v6209_v6  ;;  %v6211_v27 = vpop.f32.mrb[25].mxu0  ;;  %v17373_v41 = vld [vmem:[%s18544_s5] ss:$0 sm:$0xff] }
 0x96b   :  { %v6212_v35 = vpop.f32.mrb[26].mxu0 }
 0x96c   :  { %v6213_v55 = vadd.f32 %v12169_v19, %v6212_v35  ;;  %v6214_v18 = vpop.f32.mrb[27].mxu0 }
 0x96e   :  { %v6230_v44 = vpack.c.bf16 %v6213_v55, %v6210_v57 }
 0x970   :  { %12791 = vmatprep.mubr.bf16.mxu0 %v6230_v44 }
 0x971   :  { %v6217_v34 = vpop.f32.mrb[28].mxu0 }
 0x972   :  { %v6218_v28 = vadd.f32 %v12172_v60, %v6217_v34  ;;  %v6219_v49 = vpop.f32.mrb[29].mxu0 }
 0x973   :  { %v6220_v56 = vpop.f32.mrb[30].mxu0 }
 0x974   :  { %v6221_v22 = vadd.f32 %v12175_v59, %v6220_v56  ;;  %v6222_v5 = vpop.f32.mrb[31].mxu0 }
 0x976   :  { %v6231_v42 = vpack.c.bf16 %v6221_v22, %v6218_v28 }
 0x978   :  { %12792 = vmatmul.mubr.bf16.gmra.mrb[124].mxu0 %v6231_v42 }
 0x979   :  { %12867 = vmatprep.mubr.msk.bf16.mxu0 %vm14636_vm12, %v14635_v48 }
 0xa1b   :  { %v12781_v19 = vpop.f32.mrb[112].mxu0 }
 0xa1c   :  { %v6419_v62 = vadd.f32 %v12781_v19, %v17373_v41  ;;  %v6331_v60 = vpop.f32.mrb[113].mxu0 }
 0xa1d   :  { %v6417_v25 = vadd.f32 %v17373_v41, %v6331_v60  ;;  %v12782_v43 = vpop.f32.mrb[114].mxu0 }
 0xa1e   :  { %v6451_v59 = vmin.f32 %v6419_v62, 0.0  ;;  %v6420_v1 = vadd.f32 %v12782_v43, %v17373_v41  ;;  %v6334_v39 = vpop.f32.mrb[115].mxu0  ;;  %vm6435_vm13 = vcmp.gt.f32.partialorder %v6419_v62, 0.0 }
 0xa1f   :  { %v6449_v40 = vmin.f32 %v6417_v25, 0.0  ;;  %v6418_v0 = vadd.f32 %v17373_v41, %v6334_v39  ;;  %vm6433_vm14 = vcmp.gt.f32.partialorder %v6417_v25, 0.0 }
 0xa20   :  { %v6469_v21 = vmul.f32 1.442695, %v6451_v59  ;;  %v6452_v7 = vmin.f32 %v6420_v1, 0.0  ;;  %vm6436_vm15 = vcmp.gt.f32.partialorder %v6420_v1, 0.0 }
 0xa21   :  { %v6465_v2 = vmul.f32 1.442695, %v6449_v40  ;;  %v6450_v32 = vmin.f32 %v6418_v0, 0.0  ;;  %vm6434_vm0 = vcmp.gt.f32.partialorder %v6418_v0, 0.0 }
 0xa22   :  { %14590 = vpow2.f32 %v6469_v21  ;;  %v6471_v54 = vmul.f32 1.442695, %v6452_v7 }
 0xa23   :  { %14592 = vpow2.f32 %v6465_v2  ;;  %v6467_v45 = vmul.f32 1.442695, %v6450_v32 }
 0xa24   :  { %14594 = vpow2.f32 %v6471_v54 }
 0xa25   :  { %14596 = vpow2.f32 %v6467_v45 }
 0xa2b   :  { %v12785_v38 = vpop.f32.mrb[116].mxu0 }
 0xa2c   :  { %v14591_v61 = vpop.eup %14590  ;;  %v17380_v53 = vadd.f32 %v12785_v38, %v17373_v41  ;;  %v6347_v13 = vpop.f32.mrb[117].mxu0 }
 0xa2d   :  { %v14593_v29 = vpop.eup %14592  ;;  %v10923_v37 = vadd.f32 -1.0, %v14591_v61  ;;  %v17383_v46 = vadd.f32 %v17373_v41, %v6347_v13  ;;  %v12786_v58 = vpop.f32.mrb[118].mxu0 }
 0xa2e   :  { %v14595_v12 = vpop.eup %14594  ;;  %v10921_v16 = vadd.f32 -1.0, %v14593_v29  ;;  %v6455_v4 = vmin.f32 %v17380_v53, 0.0  ;;  %v6424_v24 = vadd.f32 %v12786_v58, %v17373_v41  ;;  %v6350_v31 = vpop.f32.mrb[119].mxu0  ;;  %vm6439_vm1 = vcmp.gt.f32.partialorder %v17380_v53, 0.0 }
 0xa2f   :  { %v14597_v15 = vpop.eup %14596  ;;  %v10924_v14 = vadd.f32 -1.0, %v14595_v12  ;;  %v6453_v50 = vmin.f32 %v17383_v46, 0.0  ;;  %v6515_v47 = vsel %vm6435_vm13, %v6419_v62, %v10923_v37  ;;  %v6422_v10 = vadd.f32 %v17373_v41, %v6350_v31 }
 0xa30   :  { %v10922_v52 = vadd.f32 -1.0, %v14597_v15  ;;  %v6477_v8 = vmul.f32 1.442695, %v6455_v4  ;;  %v6456_v9 = vmin.f32 %v6424_v24, 0.0  ;;  %v6513_v63 = vsel %vm6433_vm14, %v6417_v25, %v10921_v16 }
 0xa31   :  { %v6516_v20 = vsel %vm6436_vm15, %v6420_v1, %v10924_v14  ;;  %v6473_v3 = vmul.f32 1.442695, %v6453_v50  ;;  %v6454_v17 = vmin.f32 %v6422_v10, 0.0  ;;  %vm6437_vm2 = vcmp.gt.f32.partialorder %v17383_v46, 0.0 }
 0xa32   :  { %v17389_v11 = vpack.c.bf16 %v6516_v20, %v6515_v47  ;;  %v6514_v33 = vsel %vm6434_vm0, %v6418_v0, %v10922_v52  ;;  %14598 = vpow2.f32 %v6477_v8  ;;  %v6479_v30 = vmul.f32 1.442695, %v6456_v9 }
 0xa33   :  { %v17391_v51 = vpack.c.bf16 %v6514_v33, %v6513_v63  ;;  %14600 = vpow2.f32 %v6473_v3  ;;  %v6475_v23 = vmul.f32 1.442695, %v6454_v17  ;;  %vm6440_vm3 = vcmp.gt.f32.partialorder %v6424_v24, 0.0 }
 0xa34   :  { %14602 = vpow2.f32 %v6479_v30  ;;  %vm6438_vm4 = vcmp.gt.f32.partialorder %v6422_v10, 0.0  ;;  %vm6555_vm14 = vcmask 990208  }
 0xa35   :  { %12796 = vmatpush3.bf16.msra.mxu1 %v17391_v51  ;;  %14604 = vpow2.f32 %v6475_v23 }
 0xa36   :  { %12797 = vmatprep.subr.bf16.mxu1 %v14635_v48 }
 0xa39   :  { %12798 = vmatpush3.bf16.msra.mxu1 %v17389_v11 }
 0xa3a   :  { %12799 = vmatprep.subr.bf16.mxu1 %v14635_v48 }
 0xa3b   :  { %v12789_v26 = vpop.f32.mrb[120].mxu0 }
 0xa3c   :  { %v14599_v36 = vpop.eup %14598  ;;  %v17398_v6 = vadd.f32 %v12789_v26, %v17373_v41  ;;  %v6363_v57 = vpop.f32.mrb[121].mxu0 }
 0xa3d   :  { %v17402_v27 = vadd.f32 %v17373_v41, %v6363_v57  ;;  %v12790_v35 = vpop.f32.mrb[122].mxu0  ;;  %v14601_v55 = vpop.eup %14600  ;;  %v10927_v18 = vadd.f32 -1.0, %v14599_v36 }
 0xa3e   :  { %v6459_v44 = vmin.f32 %v17398_v6, 0.0  ;;  %v6428_v34 = vadd.f32 %v12790_v35, %v17373_v41  ;;  %v6366_v28 = vpop.f32.mrb[123].mxu0  ;;  %v14603_v49 = vpop.eup %14602  ;;  %v10925_v19 = vadd.f32 -1.0, %v14601_v55  ;;  %vm6443_vm5 = vcmp.gt.f32.partialorder %v17398_v6, 0.0 }
 0xa3f   :  { %v6457_v56 = vmin.f32 %v17402_v27, 0.0  ;;  %v6426_v22 = vadd.f32 %v17373_v41, %v6366_v28  ;;  %v10928_v5 = vadd.f32 -1.0, %v14603_v49  ;;  %v14605_v43 = vpop.eup %14604  ;;  %v6519_v59 = vsel %vm6439_vm1, %v17380_v53, %v10927_v18 }
 0xa40   :  { %v6485_v42 = vmul.f32 1.442695, %v6459_v44  ;;  %v6460_v60 = vmin.f32 %v6428_v34, 0.0  ;;  %v10926_v40 = vadd.f32 -1.0, %v14605_v43  ;;  %v6517_v7 = vsel %vm6437_vm2, %v17383_v46, %v10925_v19  ;;  %v14299_v19 = vld [vmem:[%s18543_s6 + $0x8] sm:$0xff]  }
 0xa41   :  { %v6481_v62 = vmul.f32 1.442695, %v6457_v56  ;;  %v6458_v25 = vmin.f32 %v6426_v22, 0.0  ;;  %v6520_v1 = vsel %vm6440_vm3, %v6424_v24, %v10928_v5  ;;  %vm6441_vm6 = vcmp.gt.f32.partialorder %v17402_v27, 0.0  ;;  %v14305_v43 = vld [vmem:[%s18545_s7 + $0x8] sm:$0xff]  }
 0xa42   :  { %14606 = vpow2.f32 %v6485_v42  ;;  %v17412_v39 = vpack.c.bf16 %v6520_v1, %v6519_v59  ;;  %v6487_v0 = vmul.f32 1.442695, %v6460_v60  ;;  %v6518_v2 = vsel %vm6438_vm4, %v6422_v10, %v10926_v40  ;;  %v14298_v42 = vld [vmem:[%s18543_s6] sm:$0xff]   ;;  %v14301_v60 = vld [vmem:[%s18543_s6 + $0x14] sm:$0xff]  }
 0xa43   :  { %14608 = vpow2.f32 %v6481_v62  ;;  %v6483_v21 = vmul.f32 1.442695, %v6458_v25  ;;  %v17418_v32 = vpack.c.bf16 %v6518_v2, %v6517_v7  ;;  %vm6444_vm7 = vcmp.gt.f32.partialorder %v6428_v34, 0.0  ;;  %v14300_v62 = vld [vmem:[%s18543_s6 + $0x10] ss:$0 sps:$4 sm:$0x33]  }
 0xa44   :  { %14610 = vpow2.f32 %v6487_v0  ;;  %vm6442_vm8 = vcmp.gt.f32.partialorder %v6426_v22, 0.0  ;;  %v14304_v25 = vld [vmem:[%s18545_s7] sm:$0xff]   ;;  %v14306_v1 = vld [vmem:[%s18545_s7 + $0x10] sm:$0xff]   ;;  %v14307_v40 = vld [vmem:[%s18545_s7 + $0x18] sm:$0xff]   ;;  %vm8502_vm4 = vcmask 1041408  }
 0xa45   :  { %14612 = vpow2.f32 %v6483_v21  ;;  %12800 = vmatpush3.bf16.msra.mxu1 %v17418_v32  ;;  %v14302_v59 = vld [vmem:[%s18543_s6 + $0x1c] sm:$0xff]   ;;  %v14303_v0 = vld [vmem:[%s18543_s6 + $0x24] ss:$0 sps:$4 sm:$0x33]   ;;  %v14309_v7 = vld [vmem:[%s18545_s7 + $0x28] sm:$0xff]  }
 0xa46   :  { %12801 = vmatprep.subr.bf16.mxu1 %v14635_v48  ;;  %v14308_v21 = vld [vmem:[%s18545_s7 + $0x20] sm:$0xff]   ;;  %v14310_v2 = vld [vmem:[%s18545_s7 + $0x30] sm:$0xff]  }
 0xa49   :  { %12802 = vmatpush3.bf16.msra.mxu1 %v17412_v39 }
 0xa4a   :  { %12803 = vmatprep.subr.bf16.mxu1 %v14635_v48 }
 0xa4b   :  { %v12793_v54 = vpop.f32.mrb[124].mxu0 }
 0xa4c   :  { %v14607_v45 = vpop.eup %14606  ;;  %v6431_v38 = vadd.f32 %v12793_v54, %v17373_v41  ;;  %v6379_v61 = vpop.f32.mrb[125].mxu0  ;;  %v14311_v54 = vld [vmem:[%s18545_s7 + $0x38] sm:$0xff]  }
 0xa4d   :  { %v14609_v53 = vpop.eup %14608  ;;  %v10931_v13 = vadd.f32 -1.0, %v14607_v45  ;;  %v6429_v29 = vadd.f32 %v17373_v41, %v6379_v61  ;;  %v12794_v37 = vpop.f32.mrb[126].mxu0  ;;  %v14312_v45 = vld [vmem:[%s18545_s7 + $0x40] sm:$0xff]   ;;  %v14314_v61 = vld [vmem:[%s18545_s7 + $0x50] sm:$0xff]  }
 0xa4e   :  { %v10929_v46 = vadd.f32 -1.0, %v14609_v53  ;;  %v6463_v58 = vmin.f32 %v6431_v38, 0.0  ;;  %v6432_v12 = vadd.f32 %v12794_v37, %v17373_v41  ;;  %v6382_v16 = vpop.f32.mrb[127].mxu0  ;;  %v14611_v4 = vpop.eup %14610  ;;  %vm6447_vm9 = vcmp.gt.f32.partialorder %v6431_v38, 0.0  ;;  %12852 = vmatpush3.bf16.msra.mxu0 %v14312_v45  ;;  %v14315_v53 = vld [vmem:[%s18545_s7 + $0x58] sm:$0xff]   ;;  %v14318_v37 = vld [vmem:[%s18545_s7 + $0x70] sm:$0xff]  }
 0xa4f   :  { %v6461_v24 = vmin.f32 %v6429_v29, 0.0  ;;  %v6430_v31 = vadd.f32 %v17373_v41, %v6382_v16  ;;  %v14613_v15 = vpop.eup %14612  ;;  %v10932_v14 = vadd.f32 -1.0, %v14611_v4  ;;  %v6523_v47 = vsel %vm6443_vm5, %v17398_v6, %v10931_v13  ;;  %12853 = vmatprep.subr.bf16.mxu0 %v14635_v48  ;;  %v14316_v13 = vld [vmem:[%s18545_s7 + $0x60] sm:$0xff]  }
 0xa50   :  { %v6493_v50 = vmul.f32 1.442695, %v6463_v58  ;;  %v10930_v52 = vadd.f32 -1.0, %v14613_v15  ;;  %v6464_v20 = vmin.f32 %v6432_v12, 0.0  ;;  %v6521_v3 = vsel %vm6441_vm6, %v17402_v27, %v10929_v46  ;;  %v14319_v46 = vld [vmem:[%s18545_s7 + $0x78] sm:$0xff]   ;;  %v14329_v45 = vld [vmem:[%s18543_s6 + $0x64] sm:$0xff]  }
 0xa51   :  { %v6489_v8 = vmul.f32 1.442695, %v6461_v24  ;;  %v6524_v9 = vsel %vm6444_vm7, %v6428_v34, %v10932_v14  ;;  %v6462_v10 = vmin.f32 %v6430_v31, 0.0  ;;  %vm6448_vm10 = vcmp.gt.f32.partialorder %v6432_v12, 0.0 }
 0xa52   :  { %14614 = vpow2.f32 %v6493_v50  ;;  %v17436_v63 = vpack.c.bf16 %v6524_v9, %v6523_v47  ;;  %v6522_v41 = vsel %vm6442_vm8, %v6426_v22, %v10930_v52  ;;  %v6495_v33 = vmul.f32 1.442695, %v6464_v20  ;;  %v18707_v22 = vld [vmem:[#allocation29_spill] sm:$0xff] }
 0xa53   :  { %14616 = vpow2.f32 %v6489_v8  ;;  %v17438_v30 = vpack.c.bf16 %v6522_v41, %v6521_v3  ;;  %v6491_v17 = vmul.f32 1.442695, %v6462_v10  ;;  %vm6445_vm11 = vcmp.gt.f32.partialorder %v6429_v29, 0.0 }
 0xa54   :  { %14618 = vpow2.f32 %v6495_v33  ;;  %vm6446_vm13 = vcmp.gt.f32.partialorder %v6430_v31, 0.0  ;;  %vm8498_vm5 = vcmask 293888  }
 0xa55   :  { %14620 = vpow2.f32 %v6491_v17  ;;  %12804 = vmatpush3.bf16.msra.mxu1 %v17438_v30 }
 0xa56   :  { %12805 = vmatprep.subr.bf16.mxu1 %v14635_v48 }
 0xa59   :  { %12806 = vmatpush3.bf16.msra.mxu1 %v17436_v63 }
 0xa5a   :  { %12807 = vmatprep.subr.bf16.mxu1 %v14635_v48 }
 0xa5c   :  { %v14615_v23 = vpop.eup %14614 }
 0xa5d   :  { %v14617_v26 = vpop.eup %14616  ;;  %v10935_v36 = vadd.f32 -1.0, %v14615_v23 }
 0xa5e   :  { %v10933_v6 = vadd.f32 -1.0, %v14617_v26  ;;  %v14619_v57 = vpop.eup %14618 }
 0xa5f   :  { %v14621_v27 = vpop.eup %14620  ;;  %v10936_v35 = vadd.f32 -1.0, %v14619_v57  ;;  %v6527_v18 = vsel %vm6447_vm9, %v6431_v38, %v10935_v36  ;;  %v14313_v38 = vld [vmem:[%s18545_s7 + $0x48] sm:$0xff]  }
 0xa60   :  { %v10934_v55 = vadd.f32 -1.0, %v14621_v27  ;;  %v6525_v34 = vsel %vm6445_vm11, %v6429_v29, %v10933_v6  ;;  %12854 = vmatpush3.bf16.msra.mxu0 %v14313_v38  ;;  %v14317_v29 = vld [vmem:[%s18545_s7 + $0x68] sm:$0xff]  }
 0xa61   :  { %v6528_v44 = vsel %vm6448_vm10, %v6432_v12, %v10936_v35  ;;  %12855 = vmatprep.subr.bf16.mxu0 %v14635_v48  ;;  %v14330_v38 = vld [vmem:[%s18543_s6 + $0x6c] sm:$0xff]  }
 0xa62   :  { %v6536_v28 = vpack.c.bf16 %v6528_v44, %v6527_v18  ;;  %v6526_v49 = vsel %vm6446_vm13, %v6430_v31, %v10934_v55 }
 0xa63   :  { %v17444_v56 = vpack.c.bf16 %v6526_v49, %v6525_v34  ;;  %v14321_v49 = vld [vmem:[%s18543_s6 + $0x30] sm:$0xff]  }
 0xa64   :  { %v17449_v5 = vand.u32 %v6536_v28, %v18707_v22  ;;  %12856 = vmatpush3.bf16.msra.mxu0 %v14314_v61  ;;  %v14320_v28 = vld [vmem:[%s18543_s6 + $0x28] sm:$0xff]   ;;  %v14322_v22 = vld [vmem:[%s18543_s6 + $0x38] ss:$0 sps:$4 sm:$0x33]  }
 0xa65   :  { %12808 = vmatpush3.bf16.msra.mxu1 %v17444_v56  ;;  %12857 = vmatprep.subr.bf16.mxu0 %v14635_v48  ;;  %v14331_v61 = vld [vmem:[%s18543_s6 + $0x74] ss:$0 sps:$4 sm:$0x33]  }
 0xa66   :  { %12809 = vmatprep.subr.bf16.mxu1 %v14635_v48 }
 0xa68   :  { %12858 = vmatpush3.bf16.msra.mxu0 %v14315_v53  ;;  %v14332_v53 = vld [vmem:[%s18543_s6 + $0x78] sm:$0xff]  }
 0xa69   :  { %12810 = vmatpush3.bf16.msra.mxu1 %v17449_v5  ;;  %12859 = vmatprep.subr.bf16.mxu0 %v14635_v48 }
 0xa6a   :  { %12823 = vmatprep.subr.bf16.mxu1 %v14635_v48 }
 0xa6c   :  { %12812 = vmatmul.mubr.msk.bf16.vlgmr.msra.gmra.mrb[160].mxu1 %vm6555_vm14, %v14298_v42  ;;  %12860 = vmatpush3.bf16.msra.mxu0 %v14316_v13  ;;  %v14323_v42 = vld [vmem:[%s18543_s6 + $0x3c] sm:$0xff]  }
 0xa6d   :  { %12824 = vmatpush3.bf16.msra.mxu1 %v17391_v51  ;;  %12815 = vmatprep.mubr.msk.bf16.mxu1 %vm14636_vm12, %v14635_v48  ;;  %v14333_v13 = vld [vmem:[%s18543_s6 + $0x80] sm:$0xff]  }
 0xa6e   :  { %12825 = vmatprep.subr.bf16.mxu1 %v14635_v48  ;;  %12861 = vmatprep.subr.bf16.mxu0 %v14635_v48 }
 0xa70   :  { %12862 = vmatpush3.bf16.msra.mxu0 %v14317_v29  ;;  %v14334_v29 = vld [vmem:[%s18543_s6 + $0x88] ss:$0 sps:$4 sm:$0x33]  }
 0xa71   :  { %12826 = vmatpush3.bf16.msra.mxu1 %v17389_v11  ;;  %12863 = vmatprep.subr.bf16.mxu0 %v14635_v48 }
 0xa72   :  { %12827 = vmatprep.subr.bf16.mxu1 %v14635_v48 }
 0xa74   :  { %12816 = vmatmul.mubr.msk.bf16.gmra.mrb[164].mxu1 %vm6555_vm14, %v14299_v19  ;;  %12864 = vmatpush3.bf16.msra.mxu0 %v14318_v37  ;;  %v14324_v19 = vld [vmem:[%s18543_s6 + $0x44] sm:$0xff]  }
 0xa75   :  { %12828 = vmatpush3.bf16.msra.mxu1 %v17418_v32  ;;  %12819 = vmatprep.mubr.msk.bf16.mxu1 %vm14636_vm12, %v14635_v48 }
 0xa76   :  { %12829 = vmatprep.subr.bf16.mxu1 %v14635_v48  ;;  %12865 = vmatprep.subr.bf16.mxu0 %v14635_v48 }
 0xa78   :  { %12866 = vmatpush3.bf16.msra.mxu0 %v14319_v46 }
 0xa79   :  { %12830 = vmatpush3.bf16.msra.mxu1 %v17412_v39  ;;  %12907 = vmatprep.subr.bf16.mxu0 %v14635_v48 }
 0xa7a   :  { %12831 = vmatprep.subr.bf16.mxu1 %v14635_v48 }
 0xa7c   :  { %12820 = vmatmul.mubr.msk.bf16.gmra.mrb[168].mxu1 %vm6555_vm14, %v14300_v62  ;;  %v14325_v62 = vld [vmem:[%s18543_s6 + $0x4c] ss:$0 sps:$4 sm:$0x33]  }
 0xa7d   :  { %12832 = vmatpush3.bf16.msra.mxu1 %v17438_v30  ;;  %12839 = vmatprep.mubr.msk.bf16.mxu1 %vm14636_vm12, %v14635_v48 }
 0xa7e   :  { %12833 = vmatprep.subr.bf16.mxu1 %v14635_v48 }
 0xa81   :  { %12834 = vmatpush3.bf16.msra.mxu1 %v17436_v63 }
 0xa82   :  { %12835 = vmatprep.subr.bf16.mxu1 %v14635_v48 }
 0xa85   :  { %12836 = vmatpush3.bf16.msra.mxu1 %v17444_v56 }
 0xa86   :  { %12837 = vmatprep.subr.bf16.mxu1 %v14635_v48 }
 0xa89   :  { %12838 = vmatpush3.bf16.msra.mxu1 %v17449_v5 }
 0xa8a   :  { %12879 = vmatprep.subr.bf16.mxu1 %v14635_v48 }
 0xa8c   :  { %12840 = vmatmul.mubr.msk.bf16.vlgmr.msra.gmra.mrb[172].mxu1 %vm6555_vm14, %v14301_v60  ;;  %v14338_v60 = vld [vmem:[%s18545_s7 + $0x80] sm:$0xff]  }
 0xa8d   :  { %12843 = vmatprep.mubr.msk.bf16.mxu1 %vm14636_vm12, %v14635_v48  ;;  %12880 = vmatpush3.bf16.msra.mxu1 %v14304_v25  ;;  %v14326_v25 = vld [vmem:[%s18543_s6 + $0x50] sm:$0xff]  }
 0xa8e   :  { %12881 = vmatprep.subr.bf16.mxu1 %v14635_v48 }
 0xa91   :  { %12882 = vmatpush3.bf16.msra.mxu1 %v14305_v43  ;;  %v14339_v43 = vld [vmem:[%s18545_s7 + $0x88] sm:$0xff]  }
 0xa92   :  { %12883 = vmatprep.subr.bf16.mxu1 %v14635_v48 }
 0xa94   :  { %12844 = vmatmul.mubr.msk.bf16.gmra.mrb[176].mxu1 %vm6555_vm14, %v14302_v59  ;;  %v14341_v59 = vld [vmem:[%s18545_s7 + $0x90] sm:$0xff]  }
 0xa95   :  { %12847 = vmatprep.mubr.msk.bf16.mxu1 %vm14636_vm12, %v14635_v48  ;;  %12884 = vmatpush3.bf16.msra.mxu1 %v14306_v1  ;;  %v14327_v1 = vld [vmem:[%s18543_s6 + $0x58] sm:$0xff]  }
 0xa96   :  { %12885 = vmatprep.subr.bf16.mxu1 %v14635_v48 }
 0xa99   :  { %12886 = vmatpush3.bf16.msra.mxu1 %v14307_v40  ;;  %v14342_v40 = vld [vmem:[%s18545_s7 + $0x98] sm:$0xff]  }
 0xa9a   :  { %12887 = vmatprep.subr.bf16.mxu1 %v14635_v48 }
 0xa9c   :  { %12848 = vmatmul.mubr.msk.bf16.gmra.mrb[180].mxu1 %vm6555_vm14, %v14303_v0  ;;  %v14344_v0 = vld [vmem:[%s18545_s7 + $0xa0] sm:$0xff]  }
 0xa9d   :  { %12888 = vmatpush3.bf16.msra.mxu1 %v14308_v21  ;;  %12895 = vmatprep.mubr.msk.bf16.mxu1 %vm14636_vm12, %v14635_v48  ;;  %v14345_v21 = vld [vmem:[%s18545_s7 + $0xa8] sm:$0xff]  }
 0xa9e   :  { %12889 = vmatprep.subr.bf16.mxu1 %v14635_v48 }
 0xaa1   :  { %12890 = vmatpush3.bf16.msra.mxu1 %v14309_v7  ;;  %v14328_v7 = vld [vmem:[%s18543_s6 + $0x60] ss:$0 sps:$4 sm:$0x33]  }
 0xaa2   :  { %12891 = vmatprep.subr.bf16.mxu1 %v14635_v48 }
 0xaa5   :  { %12892 = vmatpush3.bf16.msra.mxu1 %v14310_v2  ;;  %v14346_v2 = vld [vmem:[%s18545_s7 + $0xb0] sm:$0xff]  }
 0xaa6   :  { %12893 = vmatprep.subr.bf16.mxu1 %v14635_v48 }
 0xaa9   :  { %12894 = vmatpush3.bf16.msra.mxu1 %v14311_v54  ;;  %v14348_v54 = vld [vmem:[%s18545_s7 + $0xb8] sm:$0xff]  }
 0xaaa   :  { %12935 = vmatprep.subr.bf16.mxu1 %v14635_v48 }
 0xb3f   :  { %v6602_v58 = vpop.f32.mrb[160].mxu1 }
 0xb40   :  { %v12813_v12 = vpop.f32.mrb[161].mxu1 }
 0xb41   :  { %v6605_v16 = vpop.f32.mrb[162].mxu1 }
 0xb42   :  { %v6624_v4 = vpack.c.bf16 %v6605_v16, %v6602_v58  ;;  %v12814_v24 = vpop.f32.mrb[163].mxu1 }
 0xb44   :  { %12896 = vmatmul.mubr.bf16.vlgmr.msra.gmra.mrb[184].mxu1 %v6624_v4  ;;  %v14335_v4 = vld [vmem:[%s18543_s6 + $0x8c] sm:$0xff]  }
 0xb45   :  { %12899 = vmatprep.mubr.msk.bf16.mxu1 %vm14636_vm12, %v14635_v48  ;;  %12936 = vmatpush3.bf16.msra.mxu1 %v14338_v60 }
 0xb46   :  { %12937 = vmatprep.subr.bf16.mxu1 %v14635_v48 }
 0xb47   :  { %v6610_v31 = vpop.f32.mrb[164].mxu1 }
 0xb48   :  { %v12817_v15 = vpop.f32.mrb[165].mxu1 }
 0xb49   :  { %v6613_v14 = vpop.f32.mrb[166].mxu1  ;;  %12938 = vmatpush3.bf16.msra.mxu1 %v14339_v43  ;;  %v14352_v43 = vld [vmem:[%s18545_s7 + $0xd8] sm:$0xff]  }
 0xb4a   :  { %v6625_v50 = vpack.c.bf16 %v6613_v14, %v6610_v31  ;;  %v12818_v47 = vpop.f32.mrb[167].mxu1  ;;  %12939 = vmatprep.subr.bf16.mxu1 %v14635_v48 }
 0xb4c   :  { %12900 = vmatmul.mubr.bf16.gmra.mrb[188].mxu1 %v6625_v50  ;;  %v14336_v50 = vld [vmem:[%s18543_s6 + $0x94] sm:$0xff]  }
 0xb4d   :  { %12903 = vmatprep.mubr.msk.bf16.mxu1 %vm14636_vm12, %v14635_v48  ;;  %12940 = vmatpush3.bf16.msra.mxu1 %v14341_v59 }
 0xb4e   :  { %12941 = vmatprep.subr.bf16.mxu1 %v14635_v48 }
 0xb4f   :  { %v6618_v52 = vpop.f32.mrb[168].mxu1 }
 0xb50   :  { %v6626_v8 = vpack.c.bf16 %v6618_v52, %v6618_v52  ;;  %v12821_v20 = vpop.f32.mrb[169].mxu1 }
 0xb51   :  { %v6621_v3 = vpop.f32.mrb[170].mxu1  ;;  %12942 = vmatpush3.bf16.msra.mxu1 %v14342_v40 }
 0xb52   :  { %v12822_v9 = vpop.f32.mrb[171].mxu1  ;;  %12943 = vmatprep.subr.bf16.mxu1 %v14635_v48 }
 0xb54   :  { %12904 = vmatmul.mubr.bf16.gmra.mrb[192].mxu1 %v6626_v8 }
 0xb55   :  { %12951 = vmatprep.mubr.msk.bf16.mxu1 %vm14636_vm12, %v14635_v48  ;;  %12944 = vmatpush3.bf16.msra.mxu1 %v14344_v0  ;;  %v14353_v0 = vld [vmem:[%s18545_s7 + $0xe0] sm:$0xff]  }
 0xb56   :  { %12945 = vmatprep.subr.bf16.mxu1 %v14635_v48 }
 0xb59   :  { %12946 = vmatpush3.bf16.msra.mxu1 %v14345_v21 }
 0xb5a   :  { %12947 = vmatprep.subr.bf16.mxu1 %v14635_v48 }
 0xb5d   :  { %12948 = vmatpush3.bf16.msra.mxu1 %v14346_v2  ;;  %v14354_v2 = vld [vmem:[%s18545_s7 + $0xe8] sm:$0xff]  }
 0xb5e   :  { %12949 = vmatprep.subr.bf16.mxu1 %v14635_v48 }
 0xb5f   :  { %v6705_v10 = vpop.f32.mrb[172].mxu1 }
 0xb60   :  { %v12841_v41 = vpop.f32.mrb[173].mxu1 }
 0xb61   :  { %v6708_v33 = vpop.f32.mrb[174].mxu1  ;;  %12950 = vmatpush3.bf16.msra.mxu1 %v14348_v54  ;;  %v14355_v54 = vld [vmem:[%s18545_s7 + $0xf0] sm:$0xff]  }
 0xb62   :  { %v6727_v17 = vpack.c.bf16 %v6708_v33, %v6705_v10  ;;  %v12842_v23 = vpop.f32.mrb[175].mxu1  ;;  %12991 = vmatprep.subr.bf16.mxu1 %v14635_v48  ;;  %v14340_v33 = vld [vmem:[%s18543_s6 + $0xa0] sm:$0xff]  }
 0xb64   :  { %12868 = vmatmul.mubr.bf16.vlgmr.msra.gmra.mrb[32].mxu0 %v6727_v17 }
 0xb65   :  { %12908 = vmatpush3.bf16.msra.mxu0 %v17391_v51  ;;  %12871 = vmatprep.mubr.msk.bf16.mxu0 %vm14636_vm12, %v14635_v48 }
 0xb66   :  { %12909 = vmatprep.subr.bf16.mxu0 %v14635_v48 }
 0xb67   :  { %v6713_v26 = vpop.f32.mrb[176].mxu1 }
 0xb68   :  { %v12845_v36 = vpop.f32.mrb[177].mxu1 }
 0xb69   :  { %12910 = vmatpush3.bf16.msra.mxu0 %v17389_v11  ;;  %v6716_v6 = vpop.f32.mrb[178].mxu1  ;;  %v14343_v36 = vld [vmem:[%s18543_s6 + $0xa8] sm:$0xff]  }
 0xb6a   :  { %v6728_v57 = vpack.c.bf16 %v6716_v6, %v6713_v26  ;;  %12911 = vmatprep.subr.bf16.mxu0 %v14635_v48  ;;  %v12846_v27 = vpop.f32.mrb[179].mxu1 }
 0xb6b   :  { %v14347_v27 = vld [vmem:[%s18543_s6 + $0xb0] ss:$0 sps:$4 sm:$0x33]  }
 0xb6c   :  { %12872 = vmatmul.mubr.bf16.gmra.mrb[36].mxu0 %v6728_v57 }
 0xb6d   :  { %12912 = vmatpush3.bf16.msra.mxu0 %v17418_v32  ;;  %12875 = vmatprep.mubr.msk.bf16.mxu0 %vm14636_vm12, %v14635_v48 }
 0xb6e   :  { %12913 = vmatprep.subr.bf16.mxu0 %v14635_v48 }
 0xb6f   :  { %v6721_v35 = vpop.f32.mrb[180].mxu1 }
 0xb70   :  { %v6729_v55 = vpack.c.bf16 %v6721_v35, %v6721_v35  ;;  %v12849_v18 = vpop.f32.mrb[181].mxu1 }
 0xb71   :  { %12914 = vmatpush3.bf16.msra.mxu0 %v17412_v39  ;;  %v6724_v44 = vpop.f32.mrb[182].mxu1 }
 0xb72   :  { %12915 = vmatprep.subr.bf16.mxu0 %v14635_v48  ;;  %v12850_v34 = vpop.f32.mrb[183].mxu1  ;;  %v14349_v44 = vld [vmem:[%s18545_s7 + $0xc0] sm:$0xff]  }
 0xb74   :  { %12876 = vmatmul.mubr.bf16.gmra.mrb[40].mxu0 %v6729_v55 }
 0xb75   :  { %12916 = vmatpush3.bf16.msra.mxu0 %v17438_v30  ;;  %12923 = vmatprep.mubr.msk.bf16.mxu0 %vm14636_vm12, %v14635_v48 }
 0xb76   :  { %12917 = vmatprep.subr.bf16.mxu0 %v14635_v48 }
 0xb79   :  { %12918 = vmatpush3.bf16.msra.mxu0 %v17436_v63 }
 0xb7a   :  { %12919 = vmatprep.subr.bf16.mxu0 %v14635_v48 }
 0xb7d   :  { %12920 = vmatpush3.bf16.msra.mxu0 %v17444_v56 }
 0xb7e   :  { %12921 = vmatprep.subr.bf16.mxu0 %v14635_v48 }
 0xb81   :  { %12922 = vmatpush3.bf16.msra.mxu0 %v17449_v5 }
 0xb82   :  { %12963 = vmatprep.subr.bf16.mxu0 %v14635_v48 }
 0xb84   :  { %12924 = vmatmul.mubr.msk.bf16.vlgmr.msra.gmra.mrb[44].mxu0 %vm6555_vm14, %v14320_v28 }
 0xb85   :  { %12964 = vmatpush3.bf16.msra.mxu0 %v17391_v51  ;;  %12927 = vmatprep.mubr.msk.bf16.mxu0 %vm14636_vm12, %v14635_v48 }
 0xb86   :  { %12965 = vmatprep.subr.bf16.mxu0 %v14635_v48 }
 0xb89   :  { %12966 = vmatpush3.bf16.msra.mxu0 %v17389_v11 }
 0xb8a   :  { %12967 = vmatprep.subr.bf16.mxu0 %v14635_v48 }
 0xb8c   :  { %12928 = vmatmul.mubr.msk.bf16.gmra.mrb[48].mxu0 %vm6555_vm14, %v14321_v49  ;;  %v14350_v49 = vld [vmem:[%s18545_s7 + $0xc8] sm:$0xff]  }
 0xb8d   :  { %12968 = vmatpush3.bf16.msra.mxu0 %v17418_v32  ;;  %12931 = vmatprep.mubr.msk.bf16.mxu0 %vm14636_vm12, %v14635_v48 }
 0xb8e   :  { %12969 = vmatprep.subr.bf16.mxu0 %v14635_v48 }
 0xb91   :  { %12970 = vmatpush3.bf16.msra.mxu0 %v17412_v39 }
 0xb92   :  { %12971 = vmatprep.subr.bf16.mxu0 %v14635_v48 }
 0xb94   :  { %12932 = vmatmul.mubr.msk.bf16.gmra.mrb[52].mxu0 %vm6555_vm14, %v14322_v22 }
 0xb95   :  { %12972 = vmatpush3.bf16.msra.mxu0 %v17438_v30  ;;  %12979 = vmatprep.mubr.msk.bf16.mxu0 %vm14636_vm12, %v14635_v48 }
 0xb96   :  { %12973 = vmatprep.subr.bf16.mxu0 %v14635_v48 }
 0xb99   :  { %12974 = vmatpush3.bf16.msra.mxu0 %v17436_v63 }
 0xb9a   :  { %12975 = vmatprep.subr.bf16.mxu0 %v14635_v48 }
 0xb9d   :  { %12976 = vmatpush3.bf16.msra.mxu0 %v17444_v56 }
 0xb9e   :  { %12977 = vmatprep.subr.bf16.mxu0 %v14635_v48 }
 0xba1   :  { %12978 = vmatpush3.bf16.msra.mxu0 %v17449_v5 }
 0xba2   :  { %13019 = vmatprep.subr.bf16.mxu0 %v14635_v48 }
 0xba4   :  { %12980 = vmatmul.mubr.msk.bf16.vlgmr.msra.gmra.mrb[56].mxu0 %vm6555_vm14, %v14323_v42 }
 0xba5   :  { %13020 = vmatpush3.bf16.msra.mxu0 %v17391_v51  ;;  %12983 = vmatprep.mubr.msk.bf16.mxu0 %vm14636_vm12, %v14635_v48 }
 0xba6   :  { %13021 = vmatprep.subr.bf16.mxu0 %v14635_v48 }
 0xba9   :  { %13022 = vmatpush3.bf16.msra.mxu0 %v17389_v11 }
 0xbaa   :  { %13023 = vmatprep.subr.bf16.mxu0 %v14635_v48 }
 0xbac   :  { %12984 = vmatmul.mubr.msk.bf16.gmra.mrb[60].mxu0 %vm6555_vm14, %v14324_v19 }
 0xbad   :  { %13024 = vmatpush3.bf16.msra.mxu0 %v17418_v32  ;;  %12987 = vmatprep.mubr.msk.bf16.mxu0 %vm14636_vm12, %v14635_v48 }
 0xbae   :  { %13025 = vmatprep.subr.bf16.mxu0 %v14635_v48 }
 0xbb1   :  { %13026 = vmatpush3.bf16.msra.mxu0 %v17412_v39 }
 0xbb2   :  { %13027 = vmatprep.subr.bf16.mxu0 %v14635_v48 }
 0xbb4   :  { %12988 = vmatmul.mubr.msk.bf16.gmra.mrb[64].mxu0 %vm6555_vm14, %v14325_v62  ;;  %v14351_v62 = vld [vmem:[%s18545_s7 + $0xd0] sm:$0xff]  }
 0xbb5   :  { %13028 = vmatpush3.bf16.msra.mxu0 %v17438_v30  ;;  %13035 = vmatprep.mubr.msk.bf16.mxu0 %vm14636_vm12, %v14635_v48 }
 0xbb6   :  { %13029 = vmatprep.subr.bf16.mxu0 %v14635_v48 }
 0xbb9   :  { %13030 = vmatpush3.bf16.msra.mxu0 %v17436_v63 }
 0xbba   :  { %13031 = vmatprep.subr.bf16.mxu0 %v14635_v48 }
 0xbbd   :  { %13032 = vmatpush3.bf16.msra.mxu0 %v17444_v56 }
 0xbbe   :  { %13033 = vmatprep.subr.bf16.mxu0 %v14635_v48 }
 0xbc1   :  { %13034 = vmatpush3.bf16.msra.mxu0 %v17449_v5 }
 0xbc2   :  { %13075 = vmatprep.subr.bf16.mxu0 %v14635_v48 }
 0xbc4   :  { %13036 = vmatmul.mubr.msk.bf16.vlgmr.msra.gmra.mrb[68].mxu0 %vm6555_vm14, %v14326_v25 }
 0xbc5   :  { %13076 = vmatpush3.bf16.msra.mxu0 %v17391_v51  ;;  %13039 = vmatprep.mubr.msk.bf16.mxu0 %vm14636_vm12, %v14635_v48 }
 0xbc6   :  { %13077 = vmatprep.subr.bf16.mxu0 %v14635_v48 }
 0xbc9   :  { %13078 = vmatpush3.bf16.msra.mxu0 %v17389_v11 }
 0xbca   :  { %13079 = vmatprep.subr.bf16.mxu0 %v14635_v48 }
 0xbcc   :  { %13040 = vmatmul.mubr.msk.bf16.gmra.mrb[72].mxu0 %vm6555_vm14, %v14327_v1 }
 0xbcd   :  { %13080 = vmatpush3.bf16.msra.mxu0 %v17418_v32  ;;  %13043 = vmatprep.mubr.msk.bf16.mxu0 %vm14636_vm12, %v14635_v48 }
 0xbce   :  { %13081 = vmatprep.subr.bf16.mxu0 %v14635_v48 }
 0xbd1   :  { %13082 = vmatpush3.bf16.msra.mxu0 %v17412_v39 }
 0xbd2   :  { %13083 = vmatprep.subr.bf16.mxu0 %v14635_v48 }
 0xbd4   :  { %13044 = vmatmul.mubr.msk.bf16.gmra.mrb[76].mxu0 %vm6555_vm14, %v14328_v7 }
 0xbd5   :  { %13084 = vmatpush3.bf16.msra.mxu0 %v17438_v30  ;;  %13091 = vmatprep.mubr.msk.bf16.mxu0 %vm14636_vm12, %v14635_v48 }
 0xbd6   :  { %13085 = vmatprep.subr.bf16.mxu0 %v14635_v48 }
 0xbd9   :  { %13086 = vmatpush3.bf16.msra.mxu0 %v17436_v63 }
 0xbda   :  { %13087 = vmatprep.subr.bf16.mxu0 %v14635_v48 }
 0xbdd   :  { %13088 = vmatpush3.bf16.msra.mxu0 %v17444_v56 }
 0xbde   :  { %13089 = vmatprep.subr.bf16.mxu0 %v14635_v48 }
 0xbe1   :  { %13090 = vmatpush3.bf16.msra.mxu0 %v17449_v5 }
 0xbe2   :  { %13131 = vmatprep.subr.bf16.mxu0 %v14635_v48 }
 0xbe4   :  { %13092 = vmatmul.mubr.msk.bf16.vlgmr.msra.gmra.mrb[80].mxu0 %vm6555_vm14, %v14329_v45  ;;  %v14356_v45 = vld [vmem:[%s18545_s7 + $0xf8] sm:$0xff]  }
 0xbe5   :  { %13132 = vmatpush3.bf16.msra.mxu0 %v17391_v51  ;;  %13095 = vmatprep.mubr.msk.bf16.mxu0 %vm14636_vm12, %v14635_v48 }
 0xbe6   :  { %13133 = vmatprep.subr.bf16.mxu0 %v14635_v48 }
 0xbe9   :  { %13134 = vmatpush3.bf16.msra.mxu0 %v17389_v11 }
 0xbea   :  { %13135 = vmatprep.subr.bf16.mxu0 %v14635_v48 }
 0xbec   :  { %13096 = vmatmul.mubr.msk.bf16.gmra.mrb[84].mxu0 %vm6555_vm14, %v14330_v38 }
 0xbed   :  { %13136 = vmatpush3.bf16.msra.mxu0 %v17418_v32  ;;  %13099 = vmatprep.mubr.msk.bf16.mxu0 %vm14636_vm12, %v14635_v48 }
 0xbee   :  { %13137 = vmatprep.subr.bf16.mxu0 %v14635_v48 }
 0xbf1   :  { %13138 = vmatpush3.bf16.msra.mxu0 %v17412_v39 }
 0xbf2   :  { %13139 = vmatprep.subr.bf16.mxu0 %v14635_v48 }
 0xbf4   :  { %13100 = vmatmul.mubr.msk.bf16.gmra.mrb[88].mxu0 %vm6555_vm14, %v14331_v61 }
 0xbf5   :  { %13140 = vmatpush3.bf16.msra.mxu0 %v17438_v30  ;;  %13147 = vmatprep.mubr.msk.bf16.mxu0 %vm14636_vm12, %v14635_v48 }
 0xbf6   :  { %13141 = vmatprep.subr.bf16.mxu0 %v14635_v48 }
 0xbf9   :  { %13142 = vmatpush3.bf16.msra.mxu0 %v17436_v63 }
 0xbfa   :  { %13143 = vmatprep.subr.bf16.mxu0 %v14635_v48 }
 0xbfd   :  { %13144 = vmatpush3.bf16.msra.mxu0 %v17444_v56 }
 0xbfe   :  { %13145 = vmatprep.subr.bf16.mxu0 %v14635_v48 }
 0xc01   :  { %13146 = vmatpush3.bf16.msra.mxu0 %v17449_v5 }
 0xc02   :  { %13187 = vmatprep.subr.bf16.mxu0 %v14635_v48 }
 0xc04   :  { %13148 = vmatmul.mubr.msk.bf16.vlgmr.msra.gmra.mrb[92].mxu0 %vm6555_vm14, %v14332_v53 }
 0xc05   :  { %13188 = vmatpush3.bf16.msra.mxu0 %v17391_v51  ;;  %13151 = vmatprep.mubr.msk.bf16.mxu0 %vm14636_vm12, %v14635_v48 }
 0xc06   :  { %13189 = vmatprep.subr.bf16.mxu0 %v14635_v48 }
 0xc09   :  { %13190 = vmatpush3.bf16.msra.mxu0 %v17389_v11 }
 0xc0a   :  { %13191 = vmatprep.subr.bf16.mxu0 %v14635_v48 }
 0xc0c   :  { %13152 = vmatmul.mubr.msk.bf16.gmra.mrb[96].mxu0 %vm6555_vm14, %v14333_v13  ;;  %v14357_v13 = vld [vmem:[%s18545_s7 + $0x100] sm:$0xff]  }
 0xc0d   :  { %13192 = vmatpush3.bf16.msra.mxu0 %v17418_v32  ;;  %13155 = vmatprep.mubr.msk.bf16.mxu0 %vm14636_vm12, %v14635_v48 }
 0xc0e   :  { %13193 = vmatprep.subr.bf16.mxu0 %v14635_v48 }
 0xc11   :  { %13194 = vmatpush3.bf16.msra.mxu0 %v17412_v39 }
 0xc12   :  { %13195 = vmatprep.subr.bf16.mxu0 %v14635_v48 }
 0xc14   :  { %13156 = vmatmul.mubr.msk.bf16.gmra.mrb[100].mxu0 %vm6555_vm14, %v14334_v29 }
 0xc15   :  { %13196 = vmatpush3.bf16.msra.mxu0 %v17438_v30  ;;  %13203 = vmatprep.mubr.msk.bf16.mxu0 %vm14636_vm12, %v14635_v48 }
 0xc16   :  { %13197 = vmatprep.subr.bf16.mxu0 %v14635_v48 }
 0xc17   :  { %v6933_v37 = vpop.f32.mrb[184].mxu1 }
 0xc18   :  { %v12897_v46 = vpop.f32.mrb[185].mxu1 }
 0xc19   :  { %13198 = vmatpush3.bf16.msra.mxu0 %v17436_v63  ;;  %v6936_v58 = vpop.f32.mrb[186].mxu1  ;;  %v14358_v46 = vld [vmem:[%s18545_s7 + $0x108] sm:$0xff]  }
 0xc1a   :  { %v12898_v12 = vpop.f32.mrb[187].mxu1  ;;  %13199 = vmatprep.subr.bf16.mxu0 %v14635_v48 }
 0xc1d   :  { %13200 = vmatpush3.bf16.msra.mxu0 %v17444_v56 }
 0xc1e   :  { %13201 = vmatprep.subr.bf16.mxu0 %v14635_v48 }
 0xc1f   :  { %v6941_v16 = vpop.f32.mrb[188].mxu1 }
 0xc20   :  { %v12901_v24 = vpop.f32.mrb[189].mxu1 }
 0xc21   :  { %13202 = vmatpush3.bf16.msra.mxu0 %v17449_v5  ;;  %v6944_v31 = vpop.f32.mrb[190].mxu1 }
 0xc22   :  { %13243 = vmatprep.subr.bf16.mxu0 %v14635_v48  ;;  %v12902_v15 = vpop.f32.mrb[191].mxu1 }
 0xc23   :  { %v14360_v15 = vld [vmem:[%s18545_s7 + $0x118] sm:$0xff]  }
 0xc24   :  { %13204 = vmatmul.mubr.msk.bf16.vlgmr.msra.gmra.mrb[104].mxu0 %vm6555_vm14, %v14335_v4  ;;  %v14359_v4 = vld [vmem:[%s18545_s7 + $0x110] sm:$0xff]  }
 0xc25   :  { %13244 = vmatpush3.bf16.msra.mxu0 %v17391_v51  ;;  %13207 = vmatprep.mubr.msk.bf16.mxu0 %vm14636_vm12, %v14635_v48  ;;  %v14337_v51 = vld [vmem:[%s18543_s6 + $0x9c] ss:$0 sps:$4 sm:$0x33]  }
 0xc26   :  { %13245 = vmatprep.subr.bf16.mxu0 %v14635_v48 }
 0xc27   :  { %v6949_v14 = vpop.f32.mrb[192].mxu1 }
 0xc28   :  { %v12905_v47 = vpop.f32.mrb[193].mxu1 }
 0xc29   :  { %13246 = vmatpush3.bf16.msra.mxu0 %v17389_v11  ;;  %v6952_v52 = vpop.f32.mrb[194].mxu1 }
 0xc2a   :  { %13247 = vmatprep.subr.bf16.mxu0 %v14635_v48  ;;  %v12906_v8 = vpop.f32.mrb[195].mxu1  ;;  %v14361_v52 = vld [vmem:[%s18545_s7 + $0x120] sm:$0xff]  }
 0xc2c   :  { %13208 = vmatmul.mubr.msk.bf16.gmra.mrb[108].mxu0 %vm6555_vm14, %v14336_v50 }
 0xc2d   :  { %13248 = vmatpush3.bf16.msra.mxu0 %v17418_v32  ;;  %13211 = vmatprep.mubr.msk.bf16.mxu0 %vm14636_vm12, %v14635_v48 }
 0xc2e   :  { %13249 = vmatprep.subr.bf16.mxu0 %v14635_v48 }
 0xc31   :  { %13250 = vmatpush3.bf16.msra.mxu0 %v17412_v39 }
 0xc32   :  { %13251 = vmatprep.subr.bf16.mxu0 %v14635_v48 }
 0xc34   :  { %13212 = vmatmul.mubr.msk.bf16.gmra.mrb[128].mxu0 %vm6555_vm14, %v14337_v51 }
 0xc35   :  { %13252 = vmatpush3.bf16.msra.mxu0 %v17438_v30  ;;  %13259 = vmatprep.mubr.msk.bf16.mxu0 %vm14636_vm12, %v14635_v48 }
 0xc36   :  { %13253 = vmatprep.subr.bf16.mxu0 %v14635_v48 }
 0xc37   :  { %v6829_v11 = vpop.f32.mrb[32].mxu0 }
 0xc38   :  { %v17827_v32 = vadd.f32 %v6933_v37, %v6829_v11  ;;  %v12869_v20 = vpop.f32.mrb[33].mxu0  ;;  %v14362_v11 = vld [vmem:[%s18545_s7 + $0x128] sm:$0xff]  }
 0xc39   :  { %13254 = vmatpush3.bf16.msra.mxu0 %v17436_v63  ;;  %v6832_v3 = vpop.f32.mrb[34].mxu0  ;;  %v14363_v20 = vld [vmem:[%s18545_s7 + $0x130] sm:$0xff]  }
 0xc3a   :  { %v17830_v9 = vadd.f32 %v6936_v58, %v6832_v3  ;;  %v12870_v39 = vpop.f32.mrb[35].mxu0  ;;  %13255 = vmatprep.subr.bf16.mxu0 %v14635_v48  ;;  %v14364_v3 = vld [vmem:[%s18545_s7 + $0x138] sm:$0xff]  }
 0xc3d   :  { %13256 = vmatpush3.bf16.msra.mxu0 %v17444_v56 }
 0xc3e   :  { %13257 = vmatprep.subr.bf16.mxu0 %v14635_v48 }
 0xc3f   :  { %v6837_v30 = vpop.f32.mrb[36].mxu0 }
 0xc40   :  { %v17835_v10 = vadd.f32 %v6941_v16, %v6837_v30  ;;  %v12873_v41 = vpop.f32.mrb[37].mxu0 }
 0xc41   :  { %13258 = vmatpush3.bf16.msra.mxu0 %v17449_v5  ;;  %v6840_v63 = vpop.f32.mrb[38].mxu0 }
 0xc42   :  { %v17841_v17 = vadd.f32 %v6944_v31, %v6840_v63  ;;  %v12874_v23 = vpop.f32.mrb[39].mxu0  ;;  %13299 = vmatprep.subr.bf16.mxu0 %v14635_v48 }
 0xc44   :  { %13260 = vmatmul.mubr.msk.bf16.vlgmr.msra.gmra.mrb[132].mxu0 %vm6555_vm14, %v14340_v33  ;;  %v14365_v33 = vld [vmem:[%s18545_s7 + $0x140] sm:$0xff]  }
 0xc45   :  { %13263 = vmatprep.mubr.msk.bf16.mxu0 %vm14636_vm12, %v14635_v48 }
 0xc47   :  { %v6845_v56 = vpop.f32.mrb[40].mxu0 }
 0xc48   :  { %v17847_v26 = vadd.f32 %v6949_v14, %v6845_v56  ;;  %v12877_v6 = vpop.f32.mrb[41].mxu0  ;;  %v14366_v56 = vld [vmem:[%s18545_s7 + $0x148] sm:$0xff]  }
 0xc49   :  { %v6848_v5 = vpop.f32.mrb[42].mxu0 }
 0xc4a   :  { %v12878_v57 = vpop.f32.mrb[43].mxu0 }
 0xc4b   :  { %v14367_v57 = vld [vmem:[%s18545_s7 + $0x150] sm:$0xff]  }
 0xc4c   :  { %13264 = vmatmul.mubr.msk.bf16.gmra.mrb[136].mxu0 %vm6555_vm14, %v14343_v36 }
 0xc4d   :  { %13267 = vmatprep.mubr.msk.bf16.mxu0 %vm14636_vm12, %v14635_v48 }
 0xc54   :  { %13268 = vmatmul.mubr.msk.bf16.gmra.mrb[140].mxu0 %vm6555_vm14, %v14347_v27 }
 0xc55   :  { %13305 = vmatprep.mubr.msk.bf16.mxu0 %vm14636_vm12, %v14635_v48 }
 0xc57   :  { %v7017_v35 = vpop.f32.mrb[44].mxu0 }
 0xc58   :  { %v12925_v55 = vpop.f32.mrb[45].mxu0 }
 0xc59   :  { %v7020_v18 = vpop.f32.mrb[46].mxu0  ;;  %v14368_v55 = vld [vmem:[%s18545_s7 + $0x158] sm:$0xff]  }
 0xc5a   :  { %v7039_v34 = vpack.c.bf16 %v7020_v18, %v7017_v35  ;;  %v12926_v28 = vpop.f32.mrb[47].mxu0 }
 0xc5b   :  { %v14369_v28 = vld [vmem:[%s18545_s7 + $0x160] sm:$0xff]  }
 0xc5c   :  { %12952 = vmatmul.mubr.bf16.vlgmr.msra.gmra.mrb[196].mxu1 %v7039_v34 }
 0xc5d   :  { %12992 = vmatpush3.bf16.msra.mxu1 %v14349_v44  ;;  %12955 = vmatprep.mubr.msk.bf16.mxu1 %vm14636_vm12, %v14635_v48 }
 0xc5e   :  { %12993 = vmatprep.subr.bf16.mxu1 %v14635_v48 }
 0xc5f   :  { %v7025_v22 = vpop.f32.mrb[48].mxu0 }
 0xc60   :  { %v12929_v42 = vpop.f32.mrb[49].mxu0 }
 0xc61   :  { %v7028_v19 = vpop.f32.mrb[50].mxu0  ;;  %12994 = vmatpush3.bf16.msra.mxu1 %v14350_v49  ;;  %v14370_v42 = vld [vmem:[%s18545_s7 + $0x168] sm:$0xff]  }
 0xc62   :  { %v7040_v60 = vpack.c.bf16 %v7028_v19, %v7025_v22  ;;  %12995 = vmatprep.subr.bf16.mxu1 %v14635_v48  ;;  %v12930_v25 = vpop.f32.mrb[51].mxu0  ;;  %v14371_v19 = vld [vmem:[%s18545_s7 + $0x170] sm:$0xff]  }
 0xc64   :  { %12956 = vmatmul.mubr.bf16.gmra.mrb[200].mxu1 %v7040_v60 }
 0xc65   :  { %12996 = vmatpush3.bf16.msra.mxu1 %v14351_v62  ;;  %12959 = vmatprep.mubr.msk.bf16.mxu1 %vm14636_vm12, %v14635_v48  ;;  %v14372_v62 = vld [vmem:[%s18545_s7 + $0x178] sm:$0xff]  }
 0xc66   :  { %12997 = vmatprep.subr.bf16.mxu1 %v14635_v48 }
 0xc67   :  { %v7033_v59 = vpop.f32.mrb[52].mxu0 }
 0xc68   :  { %v7041_v1 = vpack.c.bf16 %v7033_v59, %v7033_v59  ;;  %v12933_v40 = vpop.f32.mrb[53].mxu0  ;;  %v14373_v59 = vld [vmem:[%s18545_s7 + $0x180] sm:$0xff]  }
 0xc69   :  { %12998 = vmatpush3.bf16.msra.mxu1 %v14352_v43  ;;  %v7036_v21 = vpop.f32.mrb[54].mxu0 }
 0xc6a   :  { %12999 = vmatprep.subr.bf16.mxu1 %v14635_v48  ;;  %v12934_v7 = vpop.f32.mrb[55].mxu0 }
 0xc6c   :  { %12960 = vmatmul.mubr.bf16.gmra.mrb[204].mxu1 %v7041_v1 }
 0xc6d   :  { %13000 = vmatpush3.bf16.msra.mxu1 %v14353_v0  ;;  %13007 = vmatprep.mubr.msk.bf16.mxu1 %vm14636_vm12, %v14635_v48  ;;  %v14374_v0 = vld [vmem:[%s18545_s7 + $0x188] sm:$0xff]  }
 0xc6e   :  { %13001 = vmatprep.subr.bf16.mxu1 %v14635_v48 }
 0xc71   :  { %13002 = vmatpush3.bf16.msra.mxu1 %v14354_v2 }
 0xc72   :  { %13003 = vmatprep.subr.bf16.mxu1 %v14635_v48 }
 0xc75   :  { %13004 = vmatpush3.bf16.msra.mxu1 %v14355_v54  ;;  %v14375_v54 = vld [vmem:[%s18545_s7 + $0x190] sm:$0xff]  }
 0xc76   :  { %13005 = vmatprep.subr.bf16.mxu1 %v14635_v48 }
 0xc77   :  { %v7230_v38 = vpop.f32.mrb[56].mxu0 }
 0xc78   :  { %v12981_v61 = vpop.f32.mrb[57].mxu0 }
 0xc79   :  { %v7233_v53 = vpop.f32.mrb[58].mxu0  ;;  %13006 = vmatpush3.bf16.msra.mxu1 %v14356_v45  ;;  %v14376_v61 = vld [vmem:[%s18545_s7 + $0x198] sm:$0xff]  }
 0xc7a   :  { %v7252_v29 = vpack.c.bf16 %v7233_v53, %v7230_v38  ;;  %v12982_v37 = vpop.f32.mrb[59].mxu0  ;;  %13047 = vmatprep.subr.bf16.mxu1 %v14635_v48 }
 0xc7b   :  { %v14377_v37 = vld [vmem:[%s18545_s7 + $0x1a0] sm:$0xff]  }
 0xc7c   :  { %13008 = vmatmul.mubr.bf16.vlgmr.msra.gmra.mrb[208].mxu1 %v7252_v29 }
 0xc7d   :  { %13048 = vmatpush3.bf16.msra.mxu1 %v14357_v13  ;;  %13011 = vmatprep.mubr.msk.bf16.mxu1 %vm14636_vm12, %v14635_v48 }
 0xc7e   :  { %13049 = vmatprep.subr.bf16.mxu1 %v14635_v48 }
 0xc7f   :  { %v7238_v58 = vpop.f32.mrb[60].mxu0 }
 0xc80   :  { %v12985_v12 = vpop.f32.mrb[61].mxu0 }
 0xc81   :  { %v7241_v16 = vpop.f32.mrb[62].mxu0  ;;  %13050 = vmatpush3.bf16.msra.mxu1 %v14358_v46  ;;  %v14378_v12 = vld [vmem:[%s18545_s7 + $0x1a8] sm:$0xff]  }
 0xc82   :  { %v7253_v24 = vpack.c.bf16 %v7241_v16, %v7238_v58  ;;  %13051 = vmatprep.subr.bf16.mxu1 %v14635_v48  ;;  %v12986_v31 = vpop.f32.mrb[63].mxu0  ;;  %v14379_v16 = vld [vmem:[%s18545_s7 + $0x1b0] sm:$0xff]  }
 0xc84   :  { %13012 = vmatmul.mubr.bf16.gmra.mrb[212].mxu1 %v7253_v24 }
 0xc85   :  { %13052 = vmatpush3.bf16.msra.mxu1 %v14359_v4  ;;  %13015 = vmatprep.mubr.msk.bf16.mxu1 %vm14636_vm12, %v14635_v48  ;;  %v14380_v4 = vld [vmem:[%s18545_s7 + $0x1b8] sm:$0xff]  }
 0xc86   :  { %13053 = vmatprep.subr.bf16.mxu1 %v14635_v48 }
 0xc87   :  { %v7246_v14 = vpop.f32.mrb[64].mxu0 }
 0xc88   :  { %v7254_v50 = vpack.c.bf16 %v7246_v14, %v7246_v14  ;;  %v12989_v47 = vpop.f32.mrb[65].mxu0  ;;  %v14381_v14 = vld [vmem:[%s18545_s7 + $0x1c0] sm:$0xff]  }
 0xc89   :  { %13054 = vmatpush3.bf16.msra.mxu1 %v14360_v15  ;;  %v7249_v8 = vpop.f32.mrb[66].mxu0 }
 0xc8a   :  { %13055 = vmatprep.subr.bf16.mxu1 %v14635_v48  ;;  %v12990_v51 = vpop.f32.mrb[67].mxu0 }
 0xc8c   :  { %13016 = vmatmul.mubr.bf16.gmra.mrb[216].mxu1 %v7254_v50 }
 0xc8d   :  { %13056 = vmatpush3.bf16.msra.mxu1 %v14361_v52  ;;  %13063 = vmatprep.mubr.msk.bf16.mxu1 %vm14636_vm12, %v14635_v48  ;;  %v14382_v52 = vld [vmem:[%s18545_s7 + $0x1c8] sm:$0xff]  }
 0xc8e   :  { %13057 = vmatprep.subr.bf16.mxu1 %v14635_v48 }
 0xc91   :  { %13058 = vmatpush3.bf16.msra.mxu1 %v14362_v11 }
 0xc92   :  { %13059 = vmatprep.subr.bf16.mxu1 %v14635_v48 }
 0xc95   :  { %13060 = vmatpush3.bf16.msra.mxu1 %v14363_v20  ;;  %v14383_v20 = vld [vmem:[%s18545_s7 + $0x1d0] sm:$0xff]  }
 0xc96   :  { %13061 = vmatprep.subr.bf16.mxu1 %v14635_v48 }
 0xc97   :  { %v7443_v39 = vpop.f32.mrb[68].mxu0 }
 0xc98   :  { %v13037_v30 = vpop.f32.mrb[69].mxu0 }
 0xc99   :  { %v7446_v41 = vpop.f32.mrb[70].mxu0  ;;  %13062 = vmatpush3.bf16.msra.mxu1 %v14364_v3  ;;  %v14384_v30 = vld [vmem:[%s18545_s7 + $0x1d8] sm:$0xff]  }
 0xc9a   :  { %v7465_v63 = vpack.c.bf16 %v7446_v41, %v7443_v39  ;;  %v13038_v23 = vpop.f32.mrb[71].mxu0  ;;  %13103 = vmatprep.subr.bf16.mxu1 %v14635_v48 }
 0xc9b   :  { %v14385_v23 = vld [vmem:[%s18545_s7 + $0x1e0] sm:$0xff]  }
 0xc9c   :  { %13064 = vmatmul.mubr.bf16.vlgmr.msra.gmra.mrb[220].mxu1 %v7465_v63 }
 0xc9d   :  { %13104 = vmatpush3.bf16.msra.mxu1 %v14365_v33  ;;  %13067 = vmatprep.mubr.msk.bf16.mxu1 %vm14636_vm12, %v14635_v48 }
 0xc9e   :  { %13105 = vmatprep.subr.bf16.mxu1 %v14635_v48 }
 0xc9f   :  { %v7451_v36 = vpop.f32.mrb[72].mxu0 }
 0xca0   :  { %v13041_v6 = vpop.f32.mrb[73].mxu0 }
 0xca1   :  { %v7454_v5 = vpop.f32.mrb[74].mxu0  ;;  %13106 = vmatpush3.bf16.msra.mxu1 %v14366_v56  ;;  %v14386_v6 = vld [vmem:[%s18545_s7 + $0x1e8] sm:$0xff]  }
 0xca2   :  { %v7466_v27 = vpack.c.bf16 %v7454_v5, %v7451_v36  ;;  %13107 = vmatprep.subr.bf16.mxu1 %v14635_v48  ;;  %v13042_v35 = vpop.f32.mrb[75].mxu0  ;;  %v14387_v5 = vld [vmem:[%s18545_s7 + $0x1f0] sm:$0xff]  }
 0xca4   :  { %13068 = vmatmul.mubr.bf16.gmra.mrb[224].mxu1 %v7466_v27 }
 0xca5   :  { %13108 = vmatpush3.bf16.msra.mxu1 %v14367_v57  ;;  %13071 = vmatprep.mubr.msk.bf16.mxu1 %vm14636_vm12, %v14635_v48  ;;  %v14388_v57 = vld [vmem:[%s18545_s7 + $0x1f8] sm:$0xff]  }
 0xca6   :  { %13109 = vmatprep.subr.bf16.mxu1 %v14635_v48 }
 0xca7   :  { %v7459_v18 = vpop.f32.mrb[76].mxu0 }
 0xca8   :  { %v7467_v44 = vpack.c.bf16 %v7459_v18, %v7459_v18  ;;  %v13045_v34 = vpop.f32.mrb[77].mxu0  ;;  %v14389_v18 = vld [vmem:[%s18545_s7 + $0x200] sm:$0xff]  }
 0xca9   :  { %13110 = vmatpush3.bf16.msra.mxu1 %v14368_v55  ;;  %v7462_v49 = vpop.f32.mrb[78].mxu0 }
 0xcaa   :  { %13111 = vmatprep.subr.bf16.mxu1 %v14635_v48  ;;  %v13046_v22 = vpop.f32.mrb[79].mxu0 }
 0xcac   :  { %13072 = vmatmul.mubr.bf16.gmra.mrb[228].mxu1 %v7467_v44 }
 0xcad   :  { %13112 = vmatpush3.bf16.msra.mxu1 %v14369_v28  ;;  %13119 = vmatprep.mubr.msk.bf16.mxu1 %vm14636_vm12, %v14635_v48  ;;  %v14390_v28 = vld [vmem:[%s18545_s7 + $0x208] sm:$0xff]  }
 0xcae   :  { %13113 = vmatprep.subr.bf16.mxu1 %v14635_v48 }
 0xcb1   :  { %13114 = vmatpush3.bf16.msra.mxu1 %v14370_v42 }
 0xcb2   :  { %13115 = vmatprep.subr.bf16.mxu1 %v14635_v48 }
 0xcb5   :  { %13116 = vmatpush3.bf16.msra.mxu1 %v14371_v19  ;;  %v14391_v19 = vld [vmem:[%s18545_s7 + $0x210] sm:$0xff]  }
 0xcb6   :  { %13117 = vmatprep.subr.bf16.mxu1 %v14635_v48 }
 0xcb7   :  { %v7656_v60 = vpop.f32.mrb[80].mxu0 }
 0xcb8   :  { %v13093_v25 = vpop.f32.mrb[81].mxu0 }
 0xcb9   :  { %v7659_v43 = vpop.f32.mrb[82].mxu0  ;;  %13118 = vmatpush3.bf16.msra.mxu1 %v14372_v62  ;;  %v14392_v25 = vld [vmem:[%s18545_s7 + $0x218] sm:$0xff]  }
 0xcba   :  { %v7678_v1 = vpack.c.bf16 %v7659_v43, %v7656_v60  ;;  %v13094_v40 = vpop.f32.mrb[83].mxu0  ;;  %13159 = vmatprep.subr.bf16.mxu1 %v14635_v48 }
 0xcbb   :  { %v14393_v40 = vld [vmem:[%s18545_s7 + $0x220] sm:$0xff]  }
 0xcbc   :  { %13120 = vmatmul.mubr.bf16.vlgmr.msra.gmra.mrb[232].mxu1 %v7678_v1 }
 0xcbd   :  { %13160 = vmatpush3.bf16.msra.mxu1 %v14373_v59  ;;  %13123 = vmatprep.mubr.msk.bf16.mxu1 %vm14636_vm12, %v14635_v48 }
 0xcbe   :  { %13161 = vmatprep.subr.bf16.mxu1 %v14635_v48 }
 0xcbf   :  { %v7664_v21 = vpop.f32.mrb[84].mxu0 }
 0xcc0   :  { %v13097_v7 = vpop.f32.mrb[85].mxu0 }
 0xcc1   :  { %v7667_v2 = vpop.f32.mrb[86].mxu0  ;;  %13162 = vmatpush3.bf16.msra.mxu1 %v14374_v0  ;;  %v14394_v7 = vld [vmem:[%s18545_s7 + $0x228] sm:$0xff]  }
 0xcc2   :  { %v7679_v45 = vpack.c.bf16 %v7667_v2, %v7664_v21  ;;  %13163 = vmatprep.subr.bf16.mxu1 %v14635_v48  ;;  %v13098_v38 = vpop.f32.mrb[87].mxu0  ;;  %v14395_v2 = vld [vmem:[%s18545_s7 + $0x230] sm:$0xff]  }
 0xcc4   :  { %13124 = vmatmul.mubr.bf16.gmra.mrb[236].mxu1 %v7679_v45 }
 0xcc5   :  { %13164 = vmatpush3.bf16.msra.mxu1 %v14375_v54  ;;  %13127 = vmatprep.mubr.msk.bf16.mxu1 %vm14636_vm12, %v14635_v48  ;;  %v14396_v54 = vld [vmem:[%s18545_s7 + $0x238] sm:$0xff]  }
 0xcc6   :  { %13165 = vmatprep.subr.bf16.mxu1 %v14635_v48 }
 0xcc7   :  { %v7672_v53 = vpop.f32.mrb[88].mxu0 }
 0xcc8   :  { %v7680_v13 = vpack.c.bf16 %v7672_v53, %v7672_v53  ;;  %v13101_v29 = vpop.f32.mrb[89].mxu0 }
 0xcc9   :  { %13166 = vmatpush3.bf16.msra.mxu1 %v14376_v61  ;;  %v7675_v46 = vpop.f32.mrb[90].mxu0 }
 0xcca   :  { %13167 = vmatprep.subr.bf16.mxu1 %v14635_v48  ;;  %v13102_v58 = vpop.f32.mrb[91].mxu0 }
 0xccc   :  { %13128 = vmatmul.mubr.bf16.gmra.mrb[240].mxu1 %v7680_v13 }
 0xccd   :  { %13168 = vmatpush3.bf16.msra.mxu1 %v14377_v37  ;;  %13175 = vmatprep.mubr.msk.bf16.mxu1 %vm14636_vm12, %v14635_v48 }
 0xcce   :  { %13169 = vmatprep.subr.bf16.mxu1 %v14635_v48 }
 0xcd1   :  { %13170 = vmatpush3.bf16.msra.mxu1 %v14378_v12 }
 0xcd2   :  { %13171 = vmatprep.subr.bf16.mxu1 %v14635_v48 }
 0xcd5   :  { %13172 = vmatpush3.bf16.msra.mxu1 %v14379_v16 }
 0xcd6   :  { %13173 = vmatprep.subr.bf16.mxu1 %v14635_v48 }
 0xcd7   :  { %v7869_v24 = vpop.f32.mrb[92].mxu0 }
 0xcd8   :  { %v13149_v31 = vpop.f32.mrb[93].mxu0 }
 0xcd9   :  { %v7872_v15 = vpop.f32.mrb[94].mxu0  ;;  %13174 = vmatpush3.bf16.msra.mxu1 %v14380_v4 }
 0xcda   :  { %v7891_v50 = vpack.c.bf16 %v7872_v15, %v7869_v24  ;;  %v13150_v47 = vpop.f32.mrb[95].mxu0  ;;  %13215 = vmatprep.subr.bf16.mxu1 %v14635_v48 }
 0xcdc   :  { %13176 = vmatmul.mubr.bf16.vlgmr.msra.gmra.mrb[244].mxu1 %v7891_v50 }
 0xcdd   :  { %13216 = vmatpush3.bf16.msra.mxu1 %v14381_v14  ;;  %13179 = vmatprep.mubr.msk.bf16.mxu1 %vm14636_vm12, %v14635_v48 }
 0xcde   :  { %13217 = vmatprep.subr.bf16.mxu1 %v14635_v48 }
 0xcdf   :  { %v7877_v8 = vpop.f32.mrb[96].mxu0 }
 0xce0   :  { %v13153_v51 = vpop.f32.mrb[97].mxu0 }
 0xce1   :  { %v7880_v11 = vpop.f32.mrb[98].mxu0  ;;  %13218 = vmatpush3.bf16.msra.mxu1 %v14382_v52 }
 0xce2   :  { %v7892_v3 = vpack.c.bf16 %v7880_v11, %v7877_v8  ;;  %13219 = vmatprep.subr.bf16.mxu1 %v14635_v48  ;;  %v13154_v39 = vpop.f32.mrb[99].mxu0 }
 0xce4   :  { %13180 = vmatmul.mubr.bf16.gmra.mrb[248].mxu1 %v7892_v3 }
 0xce5   :  { %13220 = vmatpush3.bf16.msra.mxu1 %v14383_v20  ;;  %13183 = vmatprep.mubr.msk.bf16.mxu1 %vm14636_vm12, %v14635_v48 }
 0xce6   :  { %13221 = vmatprep.subr.bf16.mxu1 %v14635_v48 }
 0xce7   :  { %v7885_v41 = vpop.f32.mrb[100].mxu0 }
 0xce8   :  { %v7893_v33 = vpack.c.bf16 %v7885_v41, %v7885_v41  ;;  %v13157_v63 = vpop.f32.mrb[101].mxu0 }
 0xce9   :  { %13222 = vmatpush3.bf16.msra.mxu1 %v14384_v30  ;;  %v7888_v56 = vpop.f32.mrb[102].mxu0 }
 0xcea   :  { %13223 = vmatprep.subr.bf16.mxu1 %v14635_v48  ;;  %v13158_v36 = vpop.f32.mrb[103].mxu0 }
 0xcec   :  { %13184 = vmatmul.mubr.bf16.gmra.mrb[252].mxu1 %v7893_v33 }
 0xced   :  { %13224 = vmatpush3.bf16.msra.mxu1 %v14385_v23  ;;  %13231 = vmatprep.mubr.msk.bf16.mxu1 %vm14636_vm12, %v14635_v48 }
 0xcee   :  { %13225 = vmatprep.subr.bf16.mxu1 %v14635_v48 }
 0xcf1   :  { %13226 = vmatpush3.bf16.msra.mxu1 %v14386_v6 }
 0xcf2   :  { %13227 = vmatprep.subr.bf16.mxu1 %v14635_v48 }
 0xcf5   :  { %13228 = vmatpush3.bf16.msra.mxu1 %v14387_v5 }
 0xcf6   :  { %13229 = vmatprep.subr.bf16.mxu1 %v14635_v48 }
 0xcf7   :  { %v8082_v27 = vpop.f32.mrb[104].mxu0 }
 0xcf8   :  { %v13205_v35 = vpop.f32.mrb[105].mxu0 }
 0xcf9   :  { %v8085_v55 = vpop.f32.mrb[106].mxu0  ;;  %13230 = vmatpush3.bf16.msra.mxu1 %v14388_v57 }
 0xcfa   :  { %v8104_v44 = vpack.c.bf16 %v8085_v55, %v8082_v27  ;;  %v13206_v34 = vpop.f32.mrb[107].mxu0  ;;  %13271 = vmatprep.subr.bf16.mxu1 %v14635_v48 }
 0xcfc   :  { %13232 = vmatmul.mubr.bf16.vlgmr.msra.gmra.mrb[0].mxu1 %v8104_v44 }
 0xcfd   :  { %13272 = vmatpush3.bf16.msra.mxu1 %v14389_v18  ;;  %13235 = vmatprep.mubr.msk.bf16.mxu1 %vm14636_vm12, %v14635_v48 }
 0xcfe   :  { %13273 = vmatprep.subr.bf16.mxu1 %v14635_v48 }
 0xcff   :  { %v8090_v49 = vpop.f32.mrb[108].mxu0 }
 0xd00   :  { %v13209_v22 = vpop.f32.mrb[109].mxu0 }
 0xd01   :  { %v8093_v42 = vpop.f32.mrb[110].mxu0  ;;  %13274 = vmatpush3.bf16.msra.mxu1 %v14390_v28 }
 0xd02   :  { %v8105_v62 = vpack.c.bf16 %v8093_v42, %v8090_v49  ;;  %13275 = vmatprep.subr.bf16.mxu1 %v14635_v48  ;;  %v13210_v60 = vpop.f32.mrb[111].mxu0 }
 0xd04   :  { %13236 = vmatmul.mubr.bf16.gmra.mrb[4].mxu1 %v8105_v62 }
 0xd05   :  { %13276 = vmatpush3.bf16.msra.mxu1 %v14391_v19  ;;  %13239 = vmatprep.mubr.msk.bf16.mxu1 %vm14636_vm12, %v14635_v48 }
 0xd06   :  { %13277 = vmatprep.subr.bf16.mxu1 %v14635_v48 }
 0xd07   :  { %v8098_v43 = vpop.f32.mrb[128].mxu0 }
 0xd08   :  { %v8106_v59 = vpack.c.bf16 %v8098_v43, %v8098_v43  ;;  %v13213_v1 = vpop.f32.mrb[129].mxu0 }
 0xd09   :  { %13278 = vmatpush3.bf16.msra.mxu1 %v14392_v25  ;;  %v8101_v0 = vpop.f32.mrb[130].mxu0 }
 0xd0a   :  { %13279 = vmatprep.subr.bf16.mxu1 %v14635_v48  ;;  %v13214_v21 = vpop.f32.mrb[131].mxu0 }
 0xd0c   :  { %13240 = vmatmul.mubr.bf16.gmra.mrb[8].mxu1 %v8106_v59 }
 0xd0d   :  { %13280 = vmatpush3.bf16.msra.mxu1 %v14393_v40  ;;  %13287 = vmatprep.mubr.msk.bf16.mxu1 %vm14636_vm12, %v14635_v48 }
 0xd0e   :  { %13281 = vmatprep.subr.bf16.mxu1 %v14635_v48 }
 0xd11   :  { %13282 = vmatpush3.bf16.msra.mxu1 %v14394_v7 }
 0xd12   :  { %13283 = vmatprep.subr.bf16.mxu1 %v14635_v48 }
 0xd15   :  { %13284 = vmatpush3.bf16.msra.mxu1 %v14395_v2 }
 0xd16   :  { %13285 = vmatprep.subr.bf16.mxu1 %v14635_v48 }
 0xd17   :  { %v8295_v45 = vpop.f32.mrb[132].mxu0 }
 0xd18   :  { %v13261_v38 = vpop.f32.mrb[133].mxu0 }
 0xd19   :  { %v8298_v61 = vpop.f32.mrb[134].mxu0  ;;  %13286 = vmatpush3.bf16.msra.mxu1 %v14396_v54 }
 0xd1a   :  { %v8317_v53 = vpack.c.bf16 %v8298_v61, %v8295_v45  ;;  %v13262_v13 = vpop.f32.mrb[135].mxu0  ;;  %13319 = vmatprep.subr.bf16.mxu1 %v14635_v48 }
 0xd1c   :  { %13288 = vmatmul.mubr.bf16.vlgmr.msra.gmra.mrb[12].mxu1 %v8317_v53 }
 0xd1d   :  { %13291 = vmatprep.mubr.msk.bf16.mxu1 %vm14636_vm12, %v14635_v48 }
 0xd1f   :  { %v8303_v29 = vpop.f32.mrb[136].mxu0 }
 0xd20   :  { %v13265_v37 = vpop.f32.mrb[137].mxu0 }
 0xd21   :  { %v8306_v46 = vpop.f32.mrb[138].mxu0 }
 0xd22   :  { %v8318_v58 = vpack.c.bf16 %v8306_v46, %v8303_v29  ;;  %v13266_v12 = vpop.f32.mrb[139].mxu0 }
 0xd24   :  { %13292 = vmatmul.mubr.bf16.gmra.mrb[16].mxu1 %v8318_v58 }
 0xd25   :  { %13295 = vmatprep.mubr.msk.bf16.mxu1 %vm14636_vm12, %v14635_v48 }
 0xd27   :  { %v8311_v16 = vpop.f32.mrb[140].mxu0 }
 0xd28   :  { %v8319_v4 = vpack.c.bf16 %v8311_v16, %v8311_v16  ;;  %v13269_v24 = vpop.f32.mrb[141].mxu0 }
 0xd29   :  { %v8314_v31 = vpop.f32.mrb[142].mxu0 }
 0xd2a   :  { %v13270_v15 = vpop.f32.mrb[143].mxu0 }
 0xd2c   :  { %13296 = vmatmul.mubr.bf16.gmra.mrb[20].mxu1 %v8319_v4 }
 0xd2d   :  { %13335 = vmatprep.mubr.msk.bf16.mxu1 %vm14636_vm12, %v14635_v48 }
 0xd2f   :  { %v7141_v14 = vpop.f32.mrb[196].mxu1 }
 0xd30   :  { %v7163_v50 = vadd.f32 %v7141_v14, %v17827_v32  ;;  %v12953_v47 = vpop.f32.mrb[197].mxu1 }
 0xd31   :  { %v7144_v52 = vpop.f32.mrb[198].mxu1 }
 0xd32   :  { %v7164_v8 = vadd.f32 %v7144_v52, %v17830_v9  ;;  %v12954_v51 = vpop.f32.mrb[199].mxu1 }
 0xd37   :  { %v7149_v11 = vpop.f32.mrb[200].mxu1 }
 0xd38   :  { %v7165_v20 = vadd.f32 %v7149_v11, %v17835_v10  ;;  %v12957_v3 = vpop.f32.mrb[201].mxu1 }
 0xd39   :  { %v7152_v39 = vpop.f32.mrb[202].mxu1 }
 0xd3a   :  { %v7166_v30 = vadd.f32 %v7152_v39, %v17841_v17  ;;  %v12958_v41 = vpop.f32.mrb[203].mxu1 }
 0xd3b   :  { %v14403_v41 = vld [vmem:[%s18547_s10 + $0x40] sm:$0xff]  }
 0xd3c   :  { %13320 = vmatpush3.bf16.msra.mxu1 %v14403_v41 }
 0xd3d   :  { %13321 = vmatprep.subr.bf16.mxu1 %v14635_v48 }
 0xd3f   :  { %v7157_v33 = vpop.f32.mrb[204].mxu1 }
 0xd40   :  { %v7167_v63 = vadd.f32 %v7157_v33, %v17847_v26  ;;  %v12961_v23 = vpop.f32.mrb[205].mxu1 }
 0xd41   :  { %v7160_v56 = vpop.f32.mrb[206].mxu1 }
 0xd42   :  { %v12962_v36 = vpop.f32.mrb[207].mxu1 }
 0xd43   :  { %v14405_v36 = vld [vmem:[%s18547_s10 + $0x48] sm:$0xff]  }
 0xd44   :  { %13322 = vmatpush3.bf16.msra.mxu1 %v14405_v36 }
 0xd45   :  { %13323 = vmatprep.subr.bf16.mxu1 %v14635_v48 }
 0xd4f   :  { %v7354_v32 = vpop.f32.mrb[208].mxu1 }
 0xd50   :  { %v7376_v6 = vadd.f32 %v7354_v32, %v7163_v50  ;;  %v13009_v5 = vpop.f32.mrb[209].mxu1 }
 0xd51   :  { %v7357_v57 = vpop.f32.mrb[210].mxu1  ;;  %v14407_v5 = vld [vmem:[%s18547_s10 + $0x50] sm:$0xff]  }
 0xd52   :  { %v7377_v9 = vadd.f32 %v7357_v57, %v7164_v8  ;;  %v13010_v27 = vpop.f32.mrb[211].mxu1  ;;  %13324 = vmatpush3.bf16.msra.mxu1 %v14407_v5 }
 0xd53   :  { %13325 = vmatprep.subr.bf16.mxu1 %v14635_v48 }
 0xd57   :  { %v7362_v35 = vpop.f32.mrb[212].mxu1 }
 0xd58   :  { %v7378_v55 = vadd.f32 %v7362_v35, %v7165_v20  ;;  %v13013_v10 = vpop.f32.mrb[213].mxu1 }
 0xd59   :  { %v7365_v18 = vpop.f32.mrb[214].mxu1 }
 0xd5a   :  { %v7379_v44 = vadd.f32 %v7365_v18, %v7166_v30  ;;  %v13014_v34 = vpop.f32.mrb[215].mxu1 }
 0xd5f   :  { %v7370_v17 = vpop.f32.mrb[216].mxu1 }
 0xd60   :  { %v7380_v28 = vadd.f32 %v7370_v17, %v7167_v63  ;;  %v13017_v49 = vpop.f32.mrb[217].mxu1 }
 0xd61   :  { %v7373_v22 = vpop.f32.mrb[218].mxu1 }
 0xd62   :  { %v13018_v26 = vpop.f32.mrb[219].mxu1 }
 0xd6f   :  { %v7567_v42 = vpop.f32.mrb[220].mxu1 }
 0xd70   :  { %v7589_v19 = vadd.f32 %v7567_v42, %v7376_v6  ;;  %v13065_v62 = vpop.f32.mrb[221].mxu1 }
 0xd71   :  { %v7570_v60 = vpop.f32.mrb[222].mxu1 }
 0xd72   :  { %v7590_v25 = vadd.f32 %v7570_v60, %v7377_v9  ;;  %v13066_v43 = vpop.f32.mrb[223].mxu1 }
 0xd77   :  { %v7575_v59 = vpop.f32.mrb[224].mxu1 }
 0xd78   :  { %v7591_v1 = vadd.f32 %v7575_v59, %v7378_v55  ;;  %v13069_v40 = vpop.f32.mrb[225].mxu1  ;;  %v14409_v55 = vld [vmem:[%s18547_s10 + $0x58] sm:$0xff]  }
 0xd79   :  { %v7578_v0 = vpop.f32.mrb[226].mxu1  ;;  %13326 = vmatpush3.bf16.msra.mxu1 %v14409_v55 }
 0xd7a   :  { %v7592_v21 = vadd.f32 %v7578_v0, %v7379_v44  ;;  %v13070_v7 = vpop.f32.mrb[227].mxu1  ;;  %13327 = vmatprep.subr.bf16.mxu1 %v14635_v48 }
 0xd7f   :  { %v7583_v2 = vpop.f32.mrb[228].mxu1 }
 0xd80   :  { %v7593_v54 = vadd.f32 %v7583_v2, %v7380_v28  ;;  %v13073_v45 = vpop.f32.mrb[229].mxu1 }
 0xd81   :  { %v7586_v38 = vpop.f32.mrb[230].mxu1 }
 0xd82   :  { %v13074_v61 = vpop.f32.mrb[231].mxu1 }
 0xd8f   :  { %v7780_v53 = vpop.f32.mrb[232].mxu1 }
 0xd90   :  { %v7802_v13 = vadd.f32 %v7780_v53, %v7589_v19  ;;  %v13121_v29 = vpop.f32.mrb[233].mxu1 }
 0xd91   :  { %v7783_v37 = vpop.f32.mrb[234].mxu1 }
 0xd92   :  { %v7803_v46 = vadd.f32 %v7783_v37, %v7590_v25  ;;  %v13122_v58 = vpop.f32.mrb[235].mxu1 }
 0xd97   :  { %v7788_v12 = vpop.f32.mrb[236].mxu1 }
 0xd98   :  { %v7804_v16 = vadd.f32 %v7788_v12, %v7591_v1  ;;  %v13125_v4 = vpop.f32.mrb[237].mxu1 }
 0xd99   :  { %v7791_v24 = vpop.f32.mrb[238].mxu1 }
 0xd9a   :  { %v7805_v31 = vadd.f32 %v7791_v24, %v7592_v21  ;;  %v13126_v15 = vpop.f32.mrb[239].mxu1  ;;  %v11231_v21 = vld [vmem:[%s18548_s8] ss:$0 sm:$0xff] }
 0xd9f   :  { %v7796_v14 = vpop.f32.mrb[240].mxu1 }
 0xda0   :  { %v7806_v50 = vadd.f32 %v7796_v14, %v7593_v54  ;;  %v13129_v47 = vpop.f32.mrb[241].mxu1 }
 0xda1   :  { %v7799_v52 = vpop.f32.mrb[242].mxu1 }
 0xda2   :  { %v13130_v8 = vpop.f32.mrb[243].mxu1 }
 0xdaf   :  { %v7993_v51 = vpop.f32.mrb[244].mxu1 }
 0xdb0   :  { %v8015_v11 = vadd.f32 %v7993_v51, %v7802_v13  ;;  %v13177_v20 = vpop.f32.mrb[245].mxu1 }
 0xdb1   :  { %v7996_v3 = vpop.f32.mrb[246].mxu1 }
 0xdb2   :  { %v8016_v39 = vadd.f32 %v7996_v3, %v7803_v46  ;;  %v13178_v30 = vpop.f32.mrb[247].mxu1 }
 0xdb7   :  { %v8001_v33 = vpop.f32.mrb[248].mxu1 }
 0xdb8   :  { %v8017_v63 = vadd.f32 %v8001_v33, %v7804_v16  ;;  %v13181_v23 = vpop.f32.mrb[249].mxu1 }
 0xdb9   :  { %v8004_v56 = vpop.f32.mrb[250].mxu1 }
 0xdba   :  { %v8018_v32 = vadd.f32 %v8004_v56, %v7805_v31  ;;  %v13182_v6 = vpop.f32.mrb[251].mxu1 }
 0xdbf   :  { %v8009_v57 = vpop.f32.mrb[252].mxu1 }
 0xdc0   :  { %v8019_v9 = vadd.f32 %v8009_v57, %v7806_v50  ;;  %v13185_v27 = vpop.f32.mrb[253].mxu1 }
 0xdc1   :  { %v8012_v35 = vpop.f32.mrb[254].mxu1 }
 0xdc2   :  { %v13186_v10 = vpop.f32.mrb[255].mxu1 }
 0xdcf   :  { %v8206_v18 = vpop.f32.mrb[0].mxu1 }
 0xdd0   :  { %v8228_v44 = vadd.f32 %v8206_v18, %v8015_v11  ;;  %v13233_v34 = vpop.f32.mrb[1].mxu1 }
 0xdd1   :  { %v8209_v17 = vpop.f32.mrb[2].mxu1 }
 0xdd2   :  { %v8229_v28 = vadd.f32 %v8209_v17, %v8016_v39  ;;  %v13234_v49 = vpop.f32.mrb[3].mxu1 }
 0xdd7   :  { %v8214_v22 = vpop.f32.mrb[4].mxu1 }
 0xdd8   :  { %v8230_v26 = vadd.f32 %v8214_v22, %v8017_v63  ;;  %v13237_v42 = vpop.f32.mrb[5].mxu1  ;;  %v14397_v22 = vld [vmem:[%s18546_s9] sm:$0x1f]  }
 0xdd9   :  { %v8217_v19 = vpop.f32.mrb[6].mxu1  ;;  %v14399_v42 = vld [vmem:[%s18547_s10] sm:$0xff]  }
 0xdda   :  { %v8231_v62 = vadd.f32 %v8217_v19, %v8018_v32  ;;  %v13238_v60 = vpop.f32.mrb[7].mxu1  ;;  %v14400_v19 = vld [vmem:[%s18547_s10 + $0x8] sm:$0xff]  }
 0xddb   :  { %v14402_v60 = vld [vmem:[%s18547_s10 + $0x18] sm:$0xff]  }
 0xddf   :  { %v8222_v25 = vpop.f32.mrb[8].mxu1 }
 0xde0   :  { %v8232_v43 = vadd.f32 %v8222_v25, %v8019_v9  ;;  %v13241_v59 = vpop.f32.mrb[9].mxu1  ;;  %v14404_v25 = vld [vmem:[%s18547_s10 + $0x20] sm:$0xff]  }
 0xde1   :  { %v8225_v1 = vpop.f32.mrb[10].mxu1  ;;  %v14408_v59 = vld [vmem:[%s18547_s10 + $0x30] sm:$0xff]  }
 0xde2   :  { %v13242_v40 = vpop.f32.mrb[11].mxu1  ;;  %v14410_v1 = vld [vmem:[%s18547_s10 + $0x38] sm:$0xff]  }
 0xde3   :  { %v14411_v40 = vld [vmem:[%s18547_s10 + $0x60] sm:$0xff]  }
 0xde4   :  { %13328 = vmatpush3.bf16.msra.mxu1 %v14411_v40  ;;  %v14441_v40 = vld [vmem:[%s18547_s10 + $0x148] sm:$0xff]  }
 0xde5   :  { %13329 = vmatprep.subr.bf16.mxu1 %v14635_v48 }
 0xdef   :  { %v8419_v0 = vpop.f32.mrb[12].mxu1 }
 0xdf0   :  { %v8441_v7 = vadd.f32 %v8419_v0, %v8228_v44  ;;  %v13289_v2 = vpop.f32.mrb[13].mxu1  ;;  %v14412_v0 = vld [vmem:[%s18547_s10 + $0x68] sm:$0xff]  }
 0xdf1   :  { %v8422_v54 = vpop.f32.mrb[14].mxu1  ;;  %13330 = vmatpush3.bf16.msra.mxu1 %v14412_v0  ;;  %v14442_v0 = vld [vmem:[%s18547_s10 + $0x128] sm:$0xff]  }
 0xdf2   :  { %v8453_v45 = vadd.f32 %v11231_v21, %v8441_v7  ;;  %v8442_v38 = vadd.f32 %v8422_v54, %v8229_v28  ;;  %v13290_v61 = vpop.f32.mrb[15].mxu1  ;;  %13331 = vmatprep.subr.bf16.mxu1 %v14635_v48  ;;  %v14414_v7 = vld [vmem:[%s18547_s10 + $0x78] sm:$0xff]  }
 0xdf4   :  { %v8463_v53 = vmin.f32 %v8453_v45, 0.0  ;;  %v8454_v13 = vadd.f32 %v11231_v21, %v8442_v38  ;;  %vm8458_vm15 = vcmp.gt.f32.partialorder %v8453_v45, 0.0 }
 0xdf6   :  { %v8468_v29 = vmul.f32 1.442695, %v8463_v53  ;;  %v8464_v37 = vmin.f32 %v8454_v13, 0.0  ;;  %vm8459_vm0 = vcmp.gt.f32.partialorder %v8454_v13, 0.0 }
 0xdf7   :  { %v8427_v46 = vpop.f32.mrb[16].mxu1 }
 0xdf8   :  { %14622 = vpow2.f32 %v8468_v29  ;;  %v8470_v58 = vmul.f32 1.442695, %v8464_v37  ;;  %v8443_v12 = vadd.f32 %v8427_v46, %v8230_v26  ;;  %v13293_v16 = vpop.f32.mrb[17].mxu1  ;;  %v14398_v26 = vld [vmem:[%s18546_s9 + $0x8] sm:$0x1f]  }
 0xdf9   :  { %v8430_v4 = vpop.f32.mrb[18].mxu1  ;;  %v14415_v29 = vld [vmem:[%s18546_s9 + $0x10] sm:$0x1f]   ;;  %v14418_v16 = vld [vmem:[%s18547_s10 + $0x88] sm:$0xff]  }
 0xdfa   :  { %14624 = vpow2.f32 %v8470_v58  ;;  %v8455_v24 = vadd.f32 %v11231_v21, %v8443_v12  ;;  %v8444_v31 = vadd.f32 %v8430_v4, %v8231_v62  ;;  %v13294_v15 = vpop.f32.mrb[19].mxu1  ;;  %v14401_v62 = vld [vmem:[%s18547_s10 + $0x10] sm:$0xff]   ;;  %v14417_v12 = vld [vmem:[%s18547_s10 + $0x80] sm:$0xff]  }
 0xdfb   :  { %v14419_v4 = vld [vmem:[%s18547_s10 + $0x90] sm:$0xff]   ;;  %v14420_v15 = vld [vmem:[%s18547_s10 + $0x98] sm:$0xff]  }
 0xdfc   :  { %v8465_v14 = vmin.f32 %v8455_v24, 0.0  ;;  %v8456_v50 = vadd.f32 %v11231_v21, %v8444_v31  ;;  %vm8460_vm1 = vcmp.gt.f32.partialorder %v8455_v24, 0.0  ;;  %v14421_v31 = vld [vmem:[%s18547_s10 + $0xc0] sm:$0xff]  }
 0xdfe   :  { %v8472_v47 = vmul.f32 1.442695, %v8465_v14  ;;  %v8466_v52 = vmin.f32 %v8456_v50, 0.0  ;;  %vm8461_vm2 = vcmp.gt.f32.partialorder %v8456_v50, 0.0  ;;  %v14423_v14 = vld [vmem:[%s18547_s10 + $0xc8] sm:$0xff]  }
 0xdff   :  { %v8435_v8 = vpop.f32.mrb[20].mxu1 }
 0xe00   :  { %14626 = vpow2.f32 %v8472_v47  ;;  %v8474_v51 = vmul.f32 1.442695, %v8466_v52  ;;  %v8445_v11 = vadd.f32 %v8435_v8, %v8232_v43  ;;  %v13297_v20 = vpop.f32.mrb[21].mxu1  ;;  %v14406_v43 = vld [vmem:[%s18547_s10 + $0x28] sm:$0xff]   ;;  %v14425_v52 = vld [vmem:[%s18547_s10 + $0xd0] sm:$0xff]  }
 0xe01   :  { %v8438_v3 = vpop.f32.mrb[22].mxu1  ;;  %v14424_v47 = vld [vmem:[%s18547_s10 + $0xa8] sm:$0xff]   ;;  %v14426_v8 = vld [vmem:[%s18547_s10 + $0xb0] sm:$0xff]   ;;  %v14429_v20 = vld [vmem:[%s18547_s10 + $0xe0] sm:$0xff]  }
 0xe02   :  { %v14623_v39 = vpop.eup %14622  ;;  %14628 = vpow2.f32 %v8474_v51  ;;  %v8457_v30 = vadd.f32 %v11231_v21, %v8445_v11  ;;  %v13298_v41 = vpop.f32.mrb[23].mxu1  ;;  %v14413_v21 = vld [vmem:[%s18547_s10 + $0x70] sm:$0xff]   ;;  %v14427_v51 = vld [vmem:[%s18547_s10 + $0xd8] sm:$0xff]   ;;  %v14430_v3 = vld [vmem:[%s18547_s10 + $0xe8] sm:$0xff]  }
 0xe03   :  { %v11232_v33 = vadd.f32 -1.0, %v14623_v39  ;;  %13332 = vmatpush3.bf16.msra.mxu1 %v14413_v21  ;;  %v14428_v11 = vld [vmem:[%s18547_s10 + $0xb8] sm:$0xff]   ;;  %v14431_v39 = vld [vmem:[%s18547_s10 + $0xf0] sm:$0xff]  }
 0xe04   :  { %v14625_v63 = vpop.eup %14624  ;;  %v8467_v23 = vmin.f32 %v8457_v30, 0.0  ;;  %vm8462_vm3 = vcmp.gt.f32.partialorder %v8457_v30, 0.0  ;;  %13333 = vmatprep.subr.bf16.mxu1 %v14635_v48  ;;  %v14443_v21 = vld [vmem:[%s18547_s10 + $0x150] sm:$0xff]  }
 0xe05   :  { %v11233_v56 = vadd.f32 -1.0, %v14625_v63  ;;  %v8483_v32 = vsel %vm8458_vm15, %v8453_v45, %v11232_v33 }
 0xe06   :  { %v8476_v36 = vmul.f32 1.442695, %v8467_v23 }
 0xe07   :  { %v8484_v6 = vsel %vm8459_vm0, %v8454_v13, %v11233_v56  ;;  %13334 = vmatpush3.bf16.msra.mxu1 %v14414_v7  ;;  %v14444_v7 = vld [vmem:[%s18547_s10 + $0x130] sm:$0xff]  }
 0xe08   :  { %v18119_v5 = vpack.c.bf16 %v8484_v6, %v8483_v32  ;;  %14630 = vpow2.f32 %v8476_v36  ;;  %13369 = vmatprep.subr.bf16.mxu1 %v14635_v48 }
 0xe0a   :  { %v14627_v57 = vpop.eup %14626  ;;  %13300 = vmatpush3.bf16.msra.mxu0 %v18119_v5 }
 0xe0b   :  { %v11234_v9 = vadd.f32 -1.0, %v14627_v57  ;;  %13301 = vmatprep.subr.bf16.mxu0 %v14635_v48 }
 0xe0c   :  { %v14629_v27 = vpop.eup %14628 }
 0xe0d   :  { %v11235_v35 = vadd.f32 -1.0, %v14629_v27  ;;  %v8485_v55 = vsel %vm8460_vm1, %v8455_v24, %v11234_v9  ;;  %v14416_v24 = vld [vmem:[%s18546_s9 + $0x18] sm:$0x1f]  }
 0xe0f   :  { %v8486_v10 = vsel %vm8461_vm2, %v8456_v50, %v11235_v35  ;;  %v14422_v50 = vld [vmem:[%s18547_s10 + $0xa0] sm:$0xff]  }
 0xe10   :  { %v18123_v18 = vpack.c.bf16 %v8486_v10, %v8485_v55 }
 0xe12   :  { %v14631_v44 = vpop.eup %14630  ;;  %13302 = vmatpush3.bf16.msra.mxu0 %v18123_v18 }
 0xe13   :  { %v11236_v34 = vadd.f32 -1.0, %v14631_v44  ;;  %13303 = vmatprep.subr.bf16.mxu0 %v14635_v48 }
 0xe15   :  { %v8487_v17 = vsel %vm8462_vm3, %v8457_v30, %v11236_v34  ;;  %v14432_v30 = vld [vmem:[%s18547_s10 + $0xf8] sm:$0xff]  }
 0xe16   :  { %v8490_v28 = vpack.c.bf16 %v8487_v17, %v8487_v17 }
 0xe18   :  { %v18127_v49 = vsel %vm8502_vm4, %v8490_v28, 0  ;;  %v14433_v28 = vld [vmem:[%s18546_s9 + $0x20] sm:$0x1f]  }
 0xe19   :  { %13304 = vmatpush3.bf16.msra.mxu0 %v18127_v49 }
 0xe1a   :  { %13309 = vmatprep.subr.bf16.mxu0 %v14635_v48 }
 0xe1c   :  { %13306 = vmatmul.mubr.msk.bf16.vlgmr.msra.gmra.mrb[144].mxu0 %vm8498_vm5, %v14397_v22 }
 0xe1d   :  { %13310 = vmatpush3.bf16.msra.mxu0 %v18119_v5  ;;  %13315 = vmatprep.mubr.msk.bf16.mxu0 %vm14636_vm12, %v14635_v48 }
 0xe1e   :  { %13311 = vmatprep.subr.bf16.mxu0 %v14635_v48 }
 0xe21   :  { %13312 = vmatpush3.bf16.msra.mxu0 %v18123_v18 }
 0xe22   :  { %13313 = vmatprep.subr.bf16.mxu0 %v14635_v48 }
 0xe25   :  { %13314 = vmatpush3.bf16.msra.mxu0 %v18127_v49 }
 0xe26   :  { %13339 = vmatprep.subr.bf16.mxu0 %v14635_v48 }
 0xe28   :  { %13316 = vmatmul.mubr.msk.bf16.vlgmr.msra.gmra.mrb[148].mxu0 %vm8498_vm5, %v14398_v26 }
 0xe29   :  { %13340 = vmatpush3.bf16.msra.mxu0 %v14399_v42  ;;  %13355 = vmatprep.mubr.msk.bf16.mxu0 %vm14636_vm12, %v14635_v48  ;;  %v14435_v42 = vld [vmem:[%s18547_s10 + $0x100] sm:$0xff]  }
 0xe2a   :  { %13341 = vmatprep.subr.bf16.mxu0 %v14635_v48 }
 0xe2d   :  { %13342 = vmatpush3.bf16.msra.mxu0 %v14400_v19 }
 0xe2e   :  { %13343 = vmatprep.subr.bf16.mxu0 %v14635_v48 }
 0xe31   :  { %13344 = vmatpush3.bf16.msra.mxu0 %v14401_v62  ;;  %v14436_v62 = vld [vmem:[%s18547_s10 + $0x108] sm:$0xff]  }
 0xe32   :  { %13345 = vmatprep.subr.bf16.mxu0 %v14635_v48 }
 0xe35   :  { %13346 = vmatpush3.bf16.msra.mxu0 %v14402_v60  ;;  %v14437_v60 = vld [vmem:[%s18547_s10 + $0x110] sm:$0xff]  }
 0xe36   :  { %13347 = vmatprep.subr.bf16.mxu0 %v14635_v48 }
 0xe39   :  { %13348 = vmatpush3.bf16.msra.mxu0 %v14404_v25  ;;  %v14434_v25 = vld [vmem:[%s18546_s9 + $0x28] sm:$0x1f]  }
 0xe3a   :  { %13349 = vmatprep.subr.bf16.mxu0 %v14635_v48 }
 0xe3d   :  { %13350 = vmatpush3.bf16.msra.mxu0 %v14406_v43  ;;  %v14439_v43 = vld [vmem:[%s18547_s10 + $0x140] sm:$0xff]  }
 0xe3e   :  { %13351 = vmatprep.subr.bf16.mxu0 %v14635_v48 }
 0xe41   :  { %13352 = vmatpush3.bf16.msra.mxu0 %v14408_v59  ;;  %v14438_v59 = vld [vmem:[%s18547_s10 + $0x118] sm:$0xff]  }
 0xe42   :  { %13353 = vmatprep.subr.bf16.mxu0 %v14635_v48 }
 0xe45   :  { %13354 = vmatpush3.bf16.msra.mxu0 %v14410_v1  ;;  %v14440_v1 = vld [vmem:[%s18547_s10 + $0x120] sm:$0xff]  }
 0xe46   :  { %13359 = vmatprep.subr.bf16.mxu0 %v14635_v48 }
 0xeef   :  { %v8540_v2 = vpop.f32.mrb[144].mxu0 }
 0xef0   :  { %v13307_v54 = vpop.f32.mrb[145].mxu0 }
 0xef1   :  { %v8543_v45 = vpop.f32.mrb[146].mxu0  ;;  %v14446_v54 = vld [vmem:[%s18547_s10 + $0x138] sm:$0xff]  }
 0xef2   :  { %v8547_v38 = vpack.c.bf16 %v8543_v45, %v8540_v2  ;;  %v13308_v61 = vpop.f32.mrb[147].mxu0  ;;  %v14445_v2 = vld [vmem:[%s18547_s10 + $0x158] sm:$0xff]   ;;  %v14447_v45 = vld [vmem:[%s18547_s10 + $0x160] sm:$0xff]  }
 0xef3   :  { %v14449_v61 = vld [vmem:[%s18547_s10 + $0x170] sm:$0xff]  }
 0xef4   :  { %13356 = vmatmul.mubr.bf16.vlgmr.msra.gmra.mrb[152].mxu0 %v8547_v38  ;;  %v14448_v38 = vld [vmem:[%s18547_s10 + $0x168] sm:$0xff]  }
 0xef5   :  { %13360 = vmatpush3.bf16.msra.mxu0 %v18119_v5  ;;  %13365 = vmatprep.mubr.msk.bf16.mxu0 %vm14636_vm12, %v14635_v48 }
 0xef6   :  { %13361 = vmatprep.subr.bf16.mxu0 %v14635_v48 }
 0xef9   :  { %13362 = vmatpush3.bf16.msra.mxu0 %v18123_v18 }
 0xefa   :  { %13363 = vmatprep.subr.bf16.mxu0 %v14635_v48 }
 0xefb   :  { %v8609_v53 = vpop.f32.mrb[148].mxu0 }
 0xefc   :  { %v13317_v13 = vpop.f32.mrb[149].mxu0 }
 0xefd   :  { %13364 = vmatpush3.bf16.msra.mxu0 %v18127_v49  ;;  %v8612_v37 = vpop.f32.mrb[150].mxu0 }
 0xefe   :  { %v8616_v46 = vpack.c.bf16 %v8612_v37, %v8609_v53  ;;  %13389 = vmatprep.subr.bf16.mxu0 %v14635_v48  ;;  %v13318_v58 = vpop.f32.mrb[151].mxu0  ;;  %v14450_v53 = vld [vmem:[%s18547_s10 + $0x178] sm:$0xff]  }
 0xf00   :  { %13366 = vmatmul.mubr.msk.bf16.vlgmr.msra.gmra.mrb[156].mxu0 %vm8498_vm5, %v14415_v29  ;;  %13336 = vmatmul.mubr.bf16.vlgmr.msra.gmra.mrb[24].mxu1 %v8616_v46 }
 0xf01   :  { %13390 = vmatpush3.bf16.msra.mxu0 %v18119_v5  ;;  %13395 = vmatprep.mubr.msk.bf16.mxu0 %vm14636_vm12, %v14635_v48 }
 0xf02   :  { %13391 = vmatprep.subr.bf16.mxu0 %v14635_v48  ;;  %13370 = vmatpush3.bf16.msra.mxu1 %v14417_v12 }
 0xf03   :  { %13371 = vmatprep.subr.bf16.mxu1 %v14635_v48  ;;  %13385 = vmatprep.mubr.msk.bf16.mxu1 %vm14636_vm12, %v14635_v48 }
 0xf05   :  { %13392 = vmatpush3.bf16.msra.mxu0 %v18123_v18 }
 0xf06   :  { %13393 = vmatprep.subr.bf16.mxu0 %v14635_v48  ;;  %13372 = vmatpush3.bf16.msra.mxu1 %v14418_v16 }
 0xf07   :  { %13373 = vmatprep.subr.bf16.mxu1 %v14635_v48 }
 0xf09   :  { %13394 = vmatpush3.bf16.msra.mxu0 %v18127_v49 }
 0xf0a   :  { %13374 = vmatpush3.bf16.msra.mxu1 %v14419_v4  ;;  %13399 = vmatprep.subr.bf16.mxu0 %v14635_v48 }
 0xf0b   :  { %13375 = vmatprep.subr.bf16.mxu1 %v14635_v48 }
 0xf0c   :  { %13396 = vmatmul.mubr.msk.bf16.vlgmr.msra.gmra.mrb[160].mxu0 %vm8498_vm5, %v14416_v24 }
 0xf0d   :  { %13400 = vmatpush3.bf16.msra.mxu0 %v14421_v31  ;;  %13415 = vmatprep.mubr.msk.bf16.mxu0 %vm14636_vm12, %v14635_v48 }
 0xf0e   :  { %13376 = vmatpush3.bf16.msra.mxu1 %v14420_v15  ;;  %13401 = vmatprep.subr.bf16.mxu0 %v14635_v48 }
 0xf0f   :  { %13377 = vmatprep.subr.bf16.mxu1 %v14635_v48 }
 0xf11   :  { %13402 = vmatpush3.bf16.msra.mxu0 %v14423_v14 }
 0xf12   :  { %13378 = vmatpush3.bf16.msra.mxu1 %v14422_v50  ;;  %13403 = vmatprep.subr.bf16.mxu0 %v14635_v48 }
 0xf13   :  { %13379 = vmatprep.subr.bf16.mxu1 %v14635_v48 }
 0xf15   :  { %13404 = vmatpush3.bf16.msra.mxu0 %v14425_v52 }
 0xf16   :  { %13380 = vmatpush3.bf16.msra.mxu1 %v14424_v47  ;;  %13405 = vmatprep.subr.bf16.mxu0 %v14635_v48 }
 0xf17   :  { %13381 = vmatprep.subr.bf16.mxu1 %v14635_v48 }
 0xf19   :  { %13406 = vmatpush3.bf16.msra.mxu0 %v14427_v51 }
 0xf1a   :  { %13382 = vmatpush3.bf16.msra.mxu1 %v14426_v8  ;;  %13407 = vmatprep.subr.bf16.mxu0 %v14635_v48 }
 0xf1b   :  { %13383 = vmatprep.subr.bf16.mxu1 %v14635_v48 }
 0xf1d   :  { %13408 = vmatpush3.bf16.msra.mxu0 %v14429_v20 }
 0xf1e   :  { %13384 = vmatpush3.bf16.msra.mxu1 %v14428_v11  ;;  %13409 = vmatprep.subr.bf16.mxu0 %v14635_v48 }
 0xf1f   :  { %13419 = vmatprep.subr.bf16.mxu1 %v14635_v48 }
 0xf21   :  { %13410 = vmatpush3.bf16.msra.mxu0 %v14430_v3  ;;  %v14451_v3 = vld [vmem:[%s18546_s9 + $0x30] sm:$0x1f]  }
 0xf22   :  { %13411 = vmatprep.subr.bf16.mxu0 %v14635_v48 }
 0xf25   :  { %13412 = vmatpush3.bf16.msra.mxu0 %v14431_v39 }
 0xf26   :  { %13413 = vmatprep.subr.bf16.mxu0 %v14635_v48 }
 0xf29   :  { %13414 = vmatpush3.bf16.msra.mxu0 %v14432_v30 }
 0xf2a   :  { %13449 = vmatprep.subr.bf16.mxu0 %v14635_v48 }
 0xfc7   :  { %v8805_v41 = vpop.f32.mrb[152].mxu0 }
 0xfc8   :  { %v13357_v33 = vpop.f32.mrb[153].mxu0 }
 0xfc9   :  { %v8808_v63 = vpop.f32.mrb[154].mxu0 }
 0xfca   :  { %v13358_v23 = vpop.f32.mrb[155].mxu0 }
 0xfcb   :  { %v14455_v23 = vld [vmem:[%s18547_s10 + $0x190] sm:$0xff]  }
 0xfd3   :  { %v8857_v56 = vpop.f32.mrb[156].mxu0  ;;  %v8716_v36 = vpop.f32.mrb[24].mxu1 }
 0xfd4   :  { %v18289_v32 = vadd.f32 %v8805_v41, %v8716_v36  ;;  %v13367_v6 = vpop.f32.mrb[157].mxu0  ;;  %v13337_v57 = vpop.f32.mrb[25].mxu1  ;;  %v14453_v41 = vld [vmem:[%s18547_s10 + $0x180] sm:$0xff]  }
 0xfd5   :  { %v8860_v9 = vpop.f32.mrb[158].mxu0  ;;  %v8719_v27 = vpop.f32.mrb[26].mxu1  ;;  %v14457_v36 = vld [vmem:[%s18547_s10 + $0x1c0] sm:$0xff]   ;;  %v14459_v57 = vld [vmem:[%s18547_s10 + $0x1c8] sm:$0xff]  }
 0xfd6   :  { %v8864_v35 = vpack.c.bf16 %v8860_v9, %v8857_v56  ;;  %v18291_v55 = vadd.f32 %v8808_v63, %v8719_v27  ;;  %v13368_v10 = vpop.f32.mrb[159].mxu0  ;;  %v13338_v44 = vpop.f32.mrb[27].mxu1  ;;  %v14454_v63 = vld [vmem:[%s18547_s10 + $0x188] sm:$0xff]   ;;  %v14452_v56 = vld [vmem:[%s18546_s9 + $0x38] sm:$0x1f]   ;;  %v14458_v6 = vld [vmem:[%s18547_s10 + $0x1a0] sm:$0xff]  }
 0xfd7   :  { %v14460_v9 = vld [vmem:[%s18547_s10 + $0x1a8] sm:$0xff]   ;;  %v14461_v27 = vld [vmem:[%s18547_s10 + $0x1d0] sm:$0xff]   ;;  %v14464_v10 = vld [vmem:[%s18547_s10 + $0x1b8] sm:$0xff]  }
 0xfd8   :  { %13386 = vmatmul.mubr.bf16.vlgmr.msra.gmra.mrb[28].mxu1 %v8864_v35  ;;  %v14462_v35 = vld [vmem:[%s18547_s10 + $0x1b0] sm:$0xff]   ;;  %v14465_v44 = vld [vmem:[%s18547_s10 + $0x1e0] sm:$0xff]  }
 0xfd9   :  { %13420 = vmatpush3.bf16.msra.mxu1 %v18119_v5  ;;  %13425 = vmatprep.mubr.msk.bf16.mxu1 %vm14636_vm12, %v14635_v48 }
 0xfda   :  { %13421 = vmatprep.subr.bf16.mxu1 %v14635_v48 }
 0xfdd   :  { %13422 = vmatpush3.bf16.msra.mxu1 %v18123_v18 }
 0xfde   :  { %13423 = vmatprep.subr.bf16.mxu1 %v14635_v48 }
 0xfdf   :  { %v9018_v34 = vpop.f32.mrb[160].mxu0 }
 0xfe0   :  { %v13397_v17 = vpop.f32.mrb[161].mxu0 }
 0xfe1   :  { %13424 = vmatpush3.bf16.msra.mxu1 %v18127_v49  ;;  %v9021_v22 = vpop.f32.mrb[162].mxu0  ;;  %v14467_v17 = vld [vmem:[%s18547_s10 + $0x1f0] sm:$0xff]  }
 0xfe2   :  { %v9025_v26 = vpack.c.bf16 %v9021_v22, %v9018_v34  ;;  %13429 = vmatprep.subr.bf16.mxu1 %v14635_v48  ;;  %v13398_v19 = vpop.f32.mrb[163].mxu0  ;;  %v14466_v34 = vld [vmem:[%s18547_s10 + $0x1e8] sm:$0xff]  }
 0xfe4   :  { %13426 = vmatmul.mubr.msk.bf16.vlgmr.msra.gmra.mrb[32].mxu1 %vm8498_vm5, %v14433_v28  ;;  %13416 = vmatmul.mubr.bf16.vlgmr.msra.gmra.mrb[164].mxu0 %v9025_v26  ;;  %v14468_v28 = vld [vmem:[%s18547_s10 + $0x1f8] sm:$0xff]  }
 0xfe5   :  { %13450 = vmatpush3.bf16.msra.mxu0 %v18119_v5  ;;  %13455 = vmatprep.mubr.msk.bf16.mxu0 %vm14636_vm12, %v14635_v48 }
 0xfe6   :  { %13451 = vmatprep.subr.bf16.mxu0 %v14635_v48  ;;  %13430 = vmatpush3.bf16.msra.mxu1 %v14435_v42 }
 0xfe7   :  { %13431 = vmatprep.subr.bf16.mxu1 %v14635_v48  ;;  %13445 = vmatprep.mubr.msk.bf16.mxu1 %vm14636_vm12, %v14635_v48 }
 0xfe9   :  { %13452 = vmatpush3.bf16.msra.mxu0 %v18123_v18 }
 0xfea   :  { %13453 = vmatprep.subr.bf16.mxu0 %v14635_v48  ;;  %13432 = vmatpush3.bf16.msra.mxu1 %v14436_v62 }
 0xfeb   :  { %13433 = vmatprep.subr.bf16.mxu1 %v14635_v48 }
 0xfed   :  { %13454 = vmatpush3.bf16.msra.mxu0 %v18127_v49 }
 0xfee   :  { %13434 = vmatpush3.bf16.msra.mxu1 %v14437_v60  ;;  %13459 = vmatprep.subr.bf16.mxu0 %v14635_v48 }
 0xfef   :  { %13435 = vmatprep.subr.bf16.mxu1 %v14635_v48 }
 0xff0   :  { %13456 = vmatmul.mubr.msk.bf16.vlgmr.msra.gmra.mrb[168].mxu0 %vm8498_vm5, %v14434_v25 }
 0xff1   :  { %13460 = vmatpush3.bf16.msra.mxu0 %v14439_v43  ;;  %13475 = vmatprep.mubr.msk.bf16.mxu0 %vm14636_vm12, %v14635_v48 }
 0xff2   :  { %13436 = vmatpush3.bf16.msra.mxu1 %v14438_v59  ;;  %13461 = vmatprep.subr.bf16.mxu0 %v14635_v48 }
 0xff3   :  { %13437 = vmatprep.subr.bf16.mxu1 %v14635_v48 }
 0xff5   :  { %13462 = vmatpush3.bf16.msra.mxu0 %v14441_v40 }
 0xff6   :  { %13438 = vmatpush3.bf16.msra.mxu1 %v14440_v1  ;;  %13463 = vmatprep.subr.bf16.mxu0 %v14635_v48 }
 0xff7   :  { %13439 = vmatprep.subr.bf16.mxu1 %v14635_v48 }
 0xff9   :  { %13464 = vmatpush3.bf16.msra.mxu0 %v14443_v21 }
 0xffa   :  { %13440 = vmatpush3.bf16.msra.mxu1 %v14442_v0  ;;  %13465 = vmatprep.subr.bf16.mxu0 %v14635_v48 }
 0xffb   :  { %13441 = vmatprep.subr.bf16.mxu1 %v14635_v48 }
 0xffd   :  { %13466 = vmatpush3.bf16.msra.mxu0 %v14445_v2 }
 0xffe   :  { %13442 = vmatpush3.bf16.msra.mxu1 %v14444_v7  ;;  %13467 = vmatprep.subr.bf16.mxu0 %v14635_v48 }
 0xfff   :  { %13443 = vmatprep.subr.bf16.mxu1 %v14635_v48 }
0x1001   :  { %13468 = vmatpush3.bf16.msra.mxu0 %v14447_v45 }
0x1002   :  { %13444 = vmatpush3.bf16.msra.mxu1 %v14446_v54  ;;  %13469 = vmatprep.subr.bf16.mxu0 %v14635_v48 }
0x1003   :  { %13479 = vmatprep.subr.bf16.mxu1 %v14635_v48 }
0x1005   :  { %13470 = vmatpush3.bf16.msra.mxu0 %v14448_v38 }
0x1006   :  { %13471 = vmatprep.subr.bf16.mxu0 %v14635_v48 }
0x1009   :  { %13472 = vmatpush3.bf16.msra.mxu0 %v14449_v61 }
0x100a   :  { %13473 = vmatprep.subr.bf16.mxu0 %v14635_v48 }
0x100d   :  { %13474 = vmatpush3.bf16.msra.mxu0 %v14450_v53  ;;  %v14469_v53 = vld [vmem:[%s18546_s9 + $0x40] sm:$0x1f]  }
0x100e   :  { %13509 = vmatprep.subr.bf16.mxu0 %v14635_v48 }
0x10ab   :  { %v8964_v13 = vpop.f32.mrb[28].mxu1 }
0x10ac   :  { %v8971_v29 = vadd.f32 %v8964_v13, %v18289_v32  ;;  %v13387_v37 = vpop.f32.mrb[29].mxu1  ;;  %v14456_v32 = vld [vmem:[%s18547_s10 + $0x198] sm:$0xff]  }
0x10ad   :  { %v8967_v46 = vpop.f32.mrb[30].mxu1 }
0x10ae   :  { %v8972_v58 = vadd.f32 %v8967_v46, %v18291_v55  ;;  %v13388_v12 = vpop.f32.mrb[31].mxu1  ;;  %v14463_v55 = vld [vmem:[%s18547_s10 + $0x1d8] sm:$0xff]  }
0x10af   :  { %v14473_v46 = vld [vmem:[%s18547_s10 + $0x218] sm:$0xff]   ;;  %v14475_v12 = vld [vmem:[%s18547_s10 + $0x228] sm:$0xff]  }
0x10b7   :  { %v9179_v16 = vpop.f32.mrb[32].mxu1  ;;  %v9125_v4 = vpop.f32.mrb[164].mxu0 }
0x10b8   :  { %v18387_v24 = vadd.f32 %v9125_v4, %v8971_v29  ;;  %v13427_v31 = vpop.f32.mrb[33].mxu1  ;;  %v13417_v15 = vpop.f32.mrb[165].mxu0  ;;  %v14477_v4 = vld [vmem:[%s18547_s10 + $0x238] sm:$0xff]  }
0x10b9   :  { %v9182_v14 = vpop.f32.mrb[34].mxu1  ;;  %v9128_v50 = vpop.f32.mrb[166].mxu0 }
0x10ba   :  { %v9186_v47 = vpack.c.bf16 %v9182_v14, %v9179_v16  ;;  %v18389_v52 = vadd.f32 %v9128_v50, %v8972_v58  ;;  %v13428_v8 = vpop.f32.mrb[35].mxu1  ;;  %v13418_v51 = vpop.f32.mrb[167].mxu0  ;;  %v14474_v58 = vld [vmem:[%s18547_s10 + $0x220] sm:$0xff]   ;;  %v14476_v16 = vld [vmem:[%s18547_s10 + $0x230] sm:$0xff]  }
0x10bc   :  { %13446 = vmatmul.mubr.bf16.vlgmr.msra.gmra.mrb[36].mxu1 %v9186_v47 }
0x10bd   :  { %13480 = vmatpush3.bf16.msra.mxu1 %v18119_v5  ;;  %13485 = vmatprep.mubr.msk.bf16.mxu1 %vm14636_vm12, %v14635_v48 }
0x10be   :  { %13481 = vmatprep.subr.bf16.mxu1 %v14635_v48 }
0x10c1   :  { %13482 = vmatpush3.bf16.msra.mxu1 %v18123_v18 }
0x10c2   :  { %13483 = vmatprep.subr.bf16.mxu1 %v14635_v48 }
0x10c3   :  { %v9340_v11 = vpop.f32.mrb[168].mxu0 }
0x10c4   :  { %v13457_v20 = vpop.f32.mrb[169].mxu0 }
0x10c5   :  { %13484 = vmatpush3.bf16.msra.mxu1 %v18127_v49  ;;  %v9343_v39 = vpop.f32.mrb[170].mxu0 }
0x10c6   :  { %v9347_v30 = vpack.c.bf16 %v9343_v39, %v9340_v11  ;;  %13489 = vmatprep.subr.bf16.mxu1 %v14635_v48  ;;  %v13458_v33 = vpop.f32.mrb[171].mxu0 }
0x10c8   :  { %13486 = vmatmul.mubr.msk.bf16.vlgmr.msra.gmra.mrb[40].mxu1 %vm8498_vm5, %v14451_v3  ;;  %13476 = vmatmul.mubr.bf16.vlgmr.msra.gmra.mrb[172].mxu0 %v9347_v30 }
0x10c9   :  { %13510 = vmatpush3.bf16.msra.mxu0 %v18119_v5  ;;  %13515 = vmatprep.mubr.msk.bf16.mxu0 %vm14636_vm12, %v14635_v48 }
0x10ca   :  { %13511 = vmatprep.subr.bf16.mxu0 %v14635_v48  ;;  %13490 = vmatpush3.bf16.msra.mxu1 %v14453_v41 }
0x10cb   :  { %13491 = vmatprep.subr.bf16.mxu1 %v14635_v48  ;;  %13505 = vmatprep.mubr.msk.bf16.mxu1 %vm14636_vm12, %v14635_v48 }
0x10cd   :  { %13512 = vmatpush3.bf16.msra.mxu0 %v18123_v18 }
0x10ce   :  { %13513 = vmatprep.subr.bf16.mxu0 %v14635_v48  ;;  %13492 = vmatpush3.bf16.msra.mxu1 %v14454_v63 }
0x10cf   :  { %13493 = vmatprep.subr.bf16.mxu1 %v14635_v48 }
0x10d1   :  { %13514 = vmatpush3.bf16.msra.mxu0 %v18127_v49 }
0x10d2   :  { %13494 = vmatpush3.bf16.msra.mxu1 %v14455_v23  ;;  %13519 = vmatprep.subr.bf16.mxu0 %v14635_v48  ;;  %v11471_v23 = vld [vmem:[%s18549_s11] ss:$0 sm:$0xff] }
0x10d3   :  { %13495 = vmatprep.subr.bf16.mxu1 %v14635_v48 }
0x10d4   :  { %13516 = vmatmul.mubr.msk.bf16.vlgmr.msra.gmra.mrb[176].mxu0 %vm8498_vm5, %v14452_v56 }
0x10d5   :  { %13520 = vmatpush3.bf16.msra.mxu0 %v14457_v36  ;;  %13535 = vmatprep.mubr.msk.bf16.mxu0 %vm14636_vm12, %v14635_v48 }
0x10d6   :  { %13496 = vmatpush3.bf16.msra.mxu1 %v14456_v32  ;;  %13521 = vmatprep.subr.bf16.mxu0 %v14635_v48 }
0x10d7   :  { %13497 = vmatprep.subr.bf16.mxu1 %v14635_v48 }
0x10d9   :  { %13522 = vmatpush3.bf16.msra.mxu0 %v14459_v57 }
0x10da   :  { %13498 = vmatpush3.bf16.msra.mxu1 %v14458_v6  ;;  %13523 = vmatprep.subr.bf16.mxu0 %v14635_v48 }
0x10db   :  { %13499 = vmatprep.subr.bf16.mxu1 %v14635_v48 }
0x10dd   :  { %13524 = vmatpush3.bf16.msra.mxu0 %v14461_v27 }
0x10de   :  { %13500 = vmatpush3.bf16.msra.mxu1 %v14460_v9  ;;  %13525 = vmatprep.subr.bf16.mxu0 %v14635_v48 }
0x10df   :  { %13501 = vmatprep.subr.bf16.mxu1 %v14635_v48 }
0x10e1   :  { %13526 = vmatpush3.bf16.msra.mxu0 %v14463_v55 }
0x10e2   :  { %13502 = vmatpush3.bf16.msra.mxu1 %v14462_v35  ;;  %13527 = vmatprep.subr.bf16.mxu0 %v14635_v48 }
0x10e3   :  { %13503 = vmatprep.subr.bf16.mxu1 %v14635_v48 }
0x10e5   :  { %13528 = vmatpush3.bf16.msra.mxu0 %v14465_v44 }
0x10e6   :  { %13504 = vmatpush3.bf16.msra.mxu1 %v14464_v10  ;;  %13529 = vmatprep.subr.bf16.mxu0 %v14635_v48 }
0x10e7   :  { %13539 = vmatprep.subr.bf16.mxu1 %v14635_v48 }
0x10e9   :  { %13530 = vmatpush3.bf16.msra.mxu0 %v14466_v34 }
0x10ea   :  { %13531 = vmatprep.subr.bf16.mxu0 %v14635_v48 }
0x10ed   :  { %13532 = vmatpush3.bf16.msra.mxu0 %v14467_v17 }
0x10ee   :  { %13533 = vmatprep.subr.bf16.mxu0 %v14635_v48 }
0x10f1   :  { %13534 = vmatpush3.bf16.msra.mxu0 %v14468_v28 }
0x118f   :  { %v9286_v22 = vpop.f32.mrb[36].mxu1 }
0x1190   :  { %v9293_v26 = vadd.f32 %v9286_v22, %v18387_v24  ;;  %v13447_v42 = vpop.f32.mrb[37].mxu1 }
0x1191   :  { %v9289_v19 = vpop.f32.mrb[38].mxu1 }
0x1192   :  { %v9294_v62 = vadd.f32 %v9289_v19, %v18389_v52  ;;  %v13448_v60 = vpop.f32.mrb[39].mxu1 }
0x119b   :  { %v9501_v25 = vpop.f32.mrb[40].mxu1  ;;  %v9447_v43 = vpop.f32.mrb[172].mxu0 }
0x119c   :  { %v9454_v59 = vadd.f32 %v9447_v43, %v9293_v26  ;;  %v13487_v1 = vpop.f32.mrb[41].mxu1  ;;  %v13477_v40 = vpop.f32.mrb[173].mxu0 }
0x119d   :  { %v9504_v0 = vpop.f32.mrb[42].mxu1  ;;  %v9450_v21 = vpop.f32.mrb[174].mxu0 }
0x119e   :  { %v9508_v7 = vpack.c.bf16 %v9504_v0, %v9501_v25  ;;  %v9455_v2 = vadd.f32 %v9450_v21, %v9294_v62  ;;  %v13488_v54 = vpop.f32.mrb[43].mxu1  ;;  %v13478_v45 = vpop.f32.mrb[175].mxu0 }
0x11a0   :  { %13506 = vmatmul.mubr.bf16.vlgmr.msra.gmra.mrb[44].mxu1 %v9508_v7 }
0x11a1   :  { %13540 = vmatpush3.bf16.msra.mxu1 %v18119_v5  ;;  %13545 = vmatprep.mubr.msk.bf16.mxu1 %vm14636_vm12, %v14635_v48  ;;  %v14470_v5 = vld [vmem:[%s18547_s10 + $0x200] sm:$0xff]  }
0x11a2   :  { %13541 = vmatprep.subr.bf16.mxu1 %v14635_v48 }
0x11a5   :  { %13542 = vmatpush3.bf16.msra.mxu1 %v18123_v18  ;;  %v14471_v18 = vld [vmem:[%s18547_s10 + $0x208] sm:$0xff]  }
0x11a6   :  { %13543 = vmatprep.subr.bf16.mxu1 %v14635_v48 }
0x11a7   :  { %v9662_v38 = vpop.f32.mrb[176].mxu0 }
0x11a8   :  { %v13517_v61 = vpop.f32.mrb[177].mxu0 }
0x11a9   :  { %13544 = vmatpush3.bf16.msra.mxu1 %v18127_v49  ;;  %v9665_v13 = vpop.f32.mrb[178].mxu0  ;;  %v14472_v49 = vld [vmem:[%s18547_s10 + $0x210] sm:$0xff]  }
0x11aa   :  { %v9669_v29 = vpack.c.bf16 %v9665_v13, %v9662_v38  ;;  %13549 = vmatprep.subr.bf16.mxu1 %v14635_v48  ;;  %v13518_v37 = vpop.f32.mrb[179].mxu0 }
0x11ac   :  { %13546 = vmatmul.mubr.msk.bf16.vlgmr.msra.gmra.mrb[48].mxu1 %vm8498_vm5, %v14469_v53  ;;  %13536 = vmatmul.mubr.bf16.vlgmr.msra.gmra.mrb[180].mxu0 %v9669_v29 }
0x11ad   :  { %13550 = vmatpush3.bf16.msra.mxu1 %v14470_v5  ;;  %13565 = vmatprep.mubr.msk.bf16.mxu1 %vm14636_vm12, %v14635_v48 }
0x11ae   :  { %13551 = vmatprep.subr.bf16.mxu1 %v14635_v48 }
0x11b1   :  { %13552 = vmatpush3.bf16.msra.mxu1 %v14471_v18 }
0x11b2   :  { %13553 = vmatprep.subr.bf16.mxu1 %v14635_v48 }
0x11b5   :  { %13554 = vmatpush3.bf16.msra.mxu1 %v14472_v49 }
0x11b6   :  { %13555 = vmatprep.subr.bf16.mxu1 %v14635_v48 }
0x11b9   :  { %13556 = vmatpush3.bf16.msra.mxu1 %v14473_v46 }
0x11ba   :  { %13557 = vmatprep.subr.bf16.mxu1 %v14635_v48 }
0x11bd   :  { %13558 = vmatpush3.bf16.msra.mxu1 %v14474_v58 }
0x11be   :  { %13559 = vmatprep.subr.bf16.mxu1 %v14635_v48 }
0x11c1   :  { %13560 = vmatpush3.bf16.msra.mxu1 %v14475_v12 }
0x11c2   :  { %13561 = vmatprep.subr.bf16.mxu1 %v14635_v48 }
0x11c5   :  { %13562 = vmatpush3.bf16.msra.mxu1 %v14476_v16 }
0x11c6   :  { %13563 = vmatprep.subr.bf16.mxu1 %v14635_v48 }
0x11c9   :  { %13564 = vmatpush3.bf16.msra.mxu1 %v14477_v4 }
0x1273   :  { %v9608_v24 = vpop.f32.mrb[44].mxu1 }
0x1274   :  { %v9615_v31 = vadd.f32 %v9608_v24, %v9454_v59  ;;  %v13507_v15 = vpop.f32.mrb[45].mxu1 }
0x1275   :  { %v9611_v14 = vpop.f32.mrb[46].mxu1 }
0x1276   :  { %v9616_v50 = vadd.f32 %v9611_v14, %v9455_v2  ;;  %v13508_v47 = vpop.f32.mrb[47].mxu1 }
0x127f   :  { %v9823_v52 = vpop.f32.mrb[48].mxu1  ;;  %v9769_v8 = vpop.f32.mrb[180].mxu0 }
0x1280   :  { %v9776_v51 = vadd.f32 %v9769_v8, %v9615_v31  ;;  %v13547_v11 = vpop.f32.mrb[49].mxu1  ;;  %v13537_v20 = vpop.f32.mrb[181].mxu0 }
0x1281   :  { %v9826_v3 = vpop.f32.mrb[50].mxu1  ;;  %v9772_v39 = vpop.f32.mrb[182].mxu0 }
0x1282   :  { %v9830_v30 = vpack.c.bf16 %v9826_v3, %v9823_v52  ;;  %v9777_v48 = vadd.f32 %v9772_v39, %v9616_v50  ;;  %v13548_v41 = vpop.f32.mrb[51].mxu1  ;;  %v13538_v33 = vpop.f32.mrb[183].mxu0 }
0x1284   :  { %13566 = vmatmul.mubr.bf16.vlgmr.msra.gmra.mrb[52].mxu1 %v9830_v30 }
0x1357   :  { %v9930_v63 = vpop.f32.mrb[52].mxu1 }
0x1358   :  { %v9937_v56 = vadd.f32 %v9930_v63, %v9776_v51  ;;  %v13567_v36 = vpop.f32.mrb[53].mxu1 }
0x1359   :  { %v9933_v32 = vpop.f32.mrb[54].mxu1 }
0x135a   :  { %v9946_v6 = vadd.f32 %v11471_v23, %v9937_v56  ;;  %v9938_v57 = vadd.f32 %v9933_v32, %v9777_v48  ;;  %v13568_v9 = vpop.f32.mrb[55].mxu1 }
0x135c   :  { %9948 = vst [vmem:[%s18550_s12] sm:$0xff] %v9946_v6  ;;  %v9947_v27 = vadd.f32 %v11471_v23, %v9938_v57 }
0x135e   :  { %9949 = vst [vmem:[%s18550_s12 + $0x8] sm:$0x1] %v9947_v27 }

</bundles_post_ra>
